<compile_context>
chip_gen: v7x
topology: tpu7x:2x2x1
jax: 0.10.0
libtpu: 0.0.40
codegen_flags: <defaults>
</compile_context>

<pallas_src>
import functools

import numpy as np

import jax
import jax.numpy as jnp
from jax import lax
from jax.experimental import pallas as pl
from jax.experimental.pallas import tpu as pltpu


# --------------------------- Pallas kernels ---------------------------------

def _conv_pool_bn_kernel(xe_ref, xo_ref, w_ref, bias_ref, g_ref, bt_ref,
                         fold_ref, foldt_ref, o_ref, *, k, n_batch, hp, wp):
    # xe/xo: (N, H/2, W*Cin)  even / odd input rows, lane index = w*Cin + ci
    # w:     (2, k, W*Cin, Wp*Cout)  banded conv weights, [b, di] maps one
    #        row-shifted input slab to the pooled output columns of parity b
    # bias:  (1, Wp*Cout) lane-tiled conv bias
    # g/bt:  (1, Cout)    BatchNorm gamma / beta
    # fold:  (Wp*Cout, Cout)  lane -> channel fold;  foldt: (Cout, Wp*Cout)
    # o:     (N, Hp, Wp*Cout)
    rs = []
    colsum = None
    colsq = None
    for n in range(n_batch):
        xev = xe_ref[n]                        # (H/2, W*Cin)
        xov = xo_ref[n]
        # contiguous row blocks: rowblk[s][ip] = input row (2*ip + s)
        rowblk = []
        for s in range(k + 1):
            src = xev if s % 2 == 0 else xov
            m0 = s // 2
            rowblk.append(src[m0:m0 + hp])     # (Hp, W*Cin)
        ys = []
        for pa in range(2):                    # pool-window row offset
            for pb in range(2):                # pool-window column offset
                acc = None
                for di in range(k):
                    t = jnp.dot(rowblk[pa + di], w_ref[pb, di],
                                preferred_element_type=jnp.float32)
                    acc = t if acc is None else acc + t
                ys.append(acc)                 # conv out at (2ip+pa, 2jp+pb)
        # MaxPool2d(2,2) over the 4 window positions; bias is constant across
        # the window so it commutes with the max.  Then ReLU.
        r = jnp.maximum(jnp.maximum(ys[0], ys[1]), jnp.maximum(ys[2], ys[3]))
        r = jnp.maximum(r + bias_ref[...], 0.0)
        rs.append(r)
        cs = jnp.sum(r, axis=0, keepdims=True)
        cq = jnp.sum(r * r, axis=0, keepdims=True)
        colsum = cs if colsum is None else colsum + cs
        colsq = cq if colsq is None else colsq + cq
    # BatchNorm2d, training mode: per-channel batch mean / biased variance
    # over (N, Hp, Wp).  Channel sums via a tiny fold matmul (lanes = w*C + c).
    cnt = float(n_batch * hp * wp)
    mean = jnp.dot(colsum, fold_ref[...], preferred_element_type=jnp.float32) / cnt
    ex2 = jnp.dot(colsq, fold_ref[...], preferred_element_type=jnp.float32) / cnt
    var = ex2 - mean * mean
    scale_c = g_ref[...] * lax.rsqrt(var + 1e-5)       # (1, Cout)
    shift_c = bt_ref[...] - mean * scale_c
    scale_l = jnp.dot(scale_c, foldt_ref[...], preferred_element_type=jnp.float32)
    shift_l = jnp.dot(shift_c, foldt_ref[...], preferred_element_type=jnp.float32)
    for n in range(n_batch):
        o_ref[n] = rs[n] * scale_l + shift_l


def _loc_sample_kernel(xs_ref, w1_ref, b1_ref, w2_ref, b2_ref,
                       bx_ref, by_ref, hrow_ref, wrow_ref, foldt_ref,
                       imgt_ref, o_ref, *, H, W, C):
    # xs: (1, 500)  flattened features of this image
    # bx/by: (1, HW) affine_grid base coordinates (hoisted constants)
    # hrow: (H, 1)  row indices 0..H-1;  wrow: (W, 1)  col indices 0..W-1
    # foldt: (C, C*W) channel fold;  imgt: (C*W, H) image, row = c*W + w
    # o: (C, HW)  lane-dense output
    # ---- fc_loc: Linear(500,32) -> ReLU -> Linear(32,6) -> theta (1, 6) ----
    h1 = jnp.maximum(
        jnp.dot(xs_ref[...], w1_ref[...],
                preferred_element_type=jnp.float32) + b1_ref[...], 0.0)
    theta = jnp.dot(h1, w2_ref[...],
                    preferred_element_type=jnp.float32) + b2_ref[...]
    t00 = theta[:, 0:1]; t01 = theta[:, 1:2]; t02 = theta[:, 2:3]
    t10 = theta[:, 3:4]; t11 = theta[:, 4:5]; t12 = theta[:, 5:6]

    # ---- affine_grid (align_corners=False), lane-dense per-pixel rows ----
    bx = bx_ref[...]                                   # (1, HW)
    by = by_ref[...]
    gx = bx * t00 + by * t01 + t02
    gy = bx * t10 + by * t11 + t12

    # ---- grid_sample un-normalization (align_corners=False) ----
    ix = ((gx + 1.0) * W - 1.0) * 0.5
    iy = ((gy + 1.0) * H - 1.0) * 0.5
    x0 = jnp.floor(ix); y0 = jnp.floor(iy)
    wx1 = ix - x0; wx0 = 1.0 - wx1
    wy1 = iy - y0; wy0 = 1.0 - wy1

    # Row interpolation matrix  A_T[h, p] = wy0*(h==y0_p) + wy1*(h==y0_p+1).
    # Out-of-bounds source rows simply never match -> zeros padding for free.
    hrow = hrow_ref[...]                               # (H, 1)
    a_t = (jnp.where(hrow == y0, wy0, 0.0) +
           jnp.where(hrow == (y0 + 1.0), wy1, 0.0))    # (H, HW)
    s_t = jnp.dot(imgt_ref[...], a_t,
                  preferred_element_type=jnp.float32)  # (C*W, HW)

    # Column interpolation weights, built at width W and tiled over the C
    # channel blocks (aligned sublane concat).
    wrow = wrow_ref[...]                               # (W, 1)
    bx_t = (jnp.where(wrow == x0, wx0, 0.0) +
            jnp.where(wrow == (x0 + 1.0), wx1, 0.0))   # (W, HW)
    b_t = jnp.concatenate([bx_t] * C, axis=0)          # (C*W, HW)

    # Fold the per-(c, w) rows down to C channels -> lane-dense (C, HW) output.
    o_ref[...] = jnp.dot(foldt_ref[...], s_t * b_t,
                         preferred_element_type=jnp.float32)


# --------------------------- pallas_call wrappers ----------------------------

def _banded_weights(w_oihw, w_in, wp):
    """Banded (Toeplitz) conv weights: (2, k, w_in*Cin, wp*Cout).

    wbig[b, di][a*Cin + ci, jp*Cout + co] = w[co, ci, di, a - 2*jp - b]
    (zero when a - 2*jp - b is outside [0, k)).  Built with an exact gather +
    0/1 mask so no matmul-precision is involved.
    """
    cout, cin, k, _ = w_oihw.shape
    b_i = np.arange(2)[:, None, None]
    jp_i = np.arange(wp)[None, :, None]
    a_i = np.arange(w_in)[None, None, :]
    dj = a_i - 2 * jp_i - b_i                                  # (2, wp, w_in)
    valid = ((dj >= 0) & (dj < k)).astype(np.float32)
    djc = np.clip(dj, 0, k - 1)
    wt = jnp.transpose(w_oihw, (2, 3, 1, 0))                   # (di, dj, ci, co)
    g = jnp.take(wt, jnp.asarray(djc.reshape(-1), jnp.int32), axis=1)
    g = g.reshape(k, 2, wp, w_in, cin, cout)
    g = g * jnp.asarray(valid).reshape(1, 2, wp, w_in, 1, 1)
    g = jnp.transpose(g, (1, 0, 3, 4, 2, 5))                   # (b,di,a,ci,jp,co)
    return g.reshape(2, k, w_in * cin, wp * cout)


def conv_pool_bn(xe, xo, wbig, bias, gamma, beta, *, k, hp, wp, cout):
    n = xe.shape[0]
    wpc = wp * cout
    bias_l = jnp.tile(bias, wp).reshape(1, wpc)
    fold = jnp.asarray(np.tile(np.eye(cout, dtype=np.float32), (wp, 1)))
    foldt = jnp.asarray(np.tile(np.eye(cout, dtype=np.float32), (1, wp)))
    kernel = functools.partial(_conv_pool_bn_kernel,
                               k=k, n_batch=n, hp=hp, wp=wp)
    return pl.pallas_call(
        kernel,
        out_shape=jax.ShapeDtypeStruct((n, hp, wpc), jnp.float32),
        grid=(1,),
        in_specs=[pl.BlockSpec(xe.shape, lambda i: (0, 0, 0)),
                  pl.BlockSpec(xo.shape, lambda i: (0, 0, 0)),
                  pl.BlockSpec(wbig.shape, lambda i: (0, 0, 0, 0)),
                  pl.BlockSpec((1, wpc), lambda i: (0, 0)),
                  pl.BlockSpec((1, cout), lambda i: (0, 0)),
                  pl.BlockSpec((1, cout), lambda i: (0, 0)),
                  pl.BlockSpec((wpc, cout), lambda i: (0, 0)),
                  pl.BlockSpec((cout, wpc), lambda i: (0, 0))],
        out_specs=pl.BlockSpec((n, hp, wpc), lambda i: (0, 0, 0)),
        compiler_params=pltpu.CompilerParams(
            dimension_semantics=("arbitrary",),
            vmem_limit_bytes=32 * 1024 * 1024),
    )(xe, xo, wbig, bias_l, gamma.reshape(1, cout), beta.reshape(1, cout),
      fold, foldt)


def loc_grid_sample(xs, w1, b1, w2, b2, imgt, *, H, W, C):
    # xs: (N, 1, 500)   imgt: (N, C*W, H)
    N, _, K1 = xs.shape
    HW = H * W
    Dh = w1.shape[1]
    Do = w2.shape[1]
    # Grid-invariant constants, DMA'd once (constant index_map) and resident.
    jj = np.arange(HW) % W
    ii = np.arange(HW) // W
    bx = ((2.0 * jj + 1.0) / W - 1.0).astype(np.float32).reshape(1, HW)
    by = ((2.0 * ii + 1.0) / H - 1.0).astype(np.float32).reshape(1, HW)
    hrow = np.arange(H, dtype=np.float32).reshape(H, 1)
    wrow = np.arange(W, dtype=np.float32).reshape(W, 1)
    foldt = np.repeat(np.eye(C, dtype=np.float32), W, axis=1)     # (C, C*W)
    kernel = functools.partial(_loc_sample_kernel, H=H, W=W, C=C)
    return pl.pallas_call(
        kernel,
        out_shape=jax.ShapeDtypeStruct((N, C, HW), jnp.float32),
        grid=(N,),
        in_specs=[pl.BlockSpec((None, 1, K1), lambda n: (n, 0, 0)),
                  pl.BlockSpec((K1, Dh), lambda n: (0, 0)),
                  pl.BlockSpec((1, Dh), lambda n: (0, 0)),
                  pl.BlockSpec((Dh, Do), lambda n: (0, 0)),
                  pl.BlockSpec((1, Do), lambda n: (0, 0)),
                  pl.BlockSpec((1, HW), lambda n: (0, 0)),
                  pl.BlockSpec((1, HW), lambda n: (0, 0)),
                  pl.BlockSpec((H, 1), lambda n: (0, 0)),
                  pl.BlockSpec((W, 1), lambda n: (0, 0)),
                  pl.BlockSpec((C, C * W), lambda n: (0, 0)),
                  pl.BlockSpec((None, C * W, H), lambda n: (n, 0, 0))],
        out_specs=pl.BlockSpec((None, C, HW), lambda n: (n, 0, 0)),
        compiler_params=pltpu.CompilerParams(
            dimension_semantics=("parallel",),
            vmem_limit_bytes=32 * 1024 * 1024),
    )(xs, w1, b1.reshape(1, Dh), w2, b2.reshape(1, Do),
      jnp.asarray(bx), jnp.asarray(by), jnp.asarray(hrow), jnp.asarray(wrow),
      jnp.asarray(foldt), imgt)


# --------------------------- forward pass ------------------------------------

def stn_forward(x_nchw, params):
    N, C, H, W = x_nchw.shape
    # Image rows with lane index w*C + c feed the conv tower; split by row
    # parity so the kernel only needs contiguous (aligned) row blocks.
    x_rows = jnp.transpose(x_nchw, (0, 2, 3, 1)).reshape(N, H, W * C)

    Hp1, Wp1 = (H - 4) // 2, (W - 4) // 2
    wbig1 = _banded_weights(params['conv1_w'], W, Wp1)
    z1 = conv_pool_bn(x_rows[:, 0::2], x_rows[:, 1::2], wbig1,
                      params['conv1_b'], params['bn1_gamma'],
                      params['bn1_beta'], k=5, hp=Hp1, wp=Wp1, cout=10)

    Hp2, Wp2 = (Hp1 - 4) // 2, (Wp1 - 4) // 2
    wbig2 = _banded_weights(params['conv2_w'], Wp1, Wp2)
    z2 = conv_pool_bn(z1[:, 0::2], z1[:, 1::2], wbig2,
                      params['conv2_b'], params['bn2_gamma'],
                      params['bn2_beta'], k=5, hp=Hp2, wp=Wp2, cout=20)
    # z2: (N, 5, 100), lane index = w*20 + c (spatial-major flatten).

    # `xs.view(-1, 20*5*5)` in PyTorch is channel-major; fold that into a
    # one-time permutation of the fc1 weight instead of transposing z2.
    assert Hp2 * Wp2 * 20 == params['fc1_w'].shape[1]
    xs = z2.reshape(N, 1, Hp2 * Wp2 * 20)
    w1p = (params['fc1_w'].reshape(32, 20, Hp2, Wp2)
           .transpose(2, 3, 1, 0).reshape(Hp2 * Wp2 * 20, 32))

    # Image with rows c*W + w and columns h feeds the sampler.
    imgt = jnp.transpose(x_nchw, (0, 1, 3, 2)).reshape(N, C * W, H)
    out = loc_grid_sample(xs, w1p, params['fc1_b'],
                          params['fc2_w'].T, params['fc2_b'], imgt,
                          H=H, W=W, C=C)
    return out.reshape(N, C, H, W), z2


# --------------------------- deterministic params ----------------------------

def init_params(key, num_features):
    k1, k2, k3 = jax.random.split(key, 3)
    return {
        'conv1_w': 0.1 * jax.random.normal(k1, (10, num_features, 5, 5), jnp.float32),
        'conv1_b': jnp.zeros((10,), jnp.float32),
        'bn1_gamma': jnp.ones((10,), jnp.float32),
        'bn1_beta': jnp.zeros((10,), jnp.float32),
        'conv2_w': 0.1 * jax.random.normal(k2, (20, 10, 5, 5), jnp.float32),
        'conv2_b': jnp.zeros((20,), jnp.float32),
        'bn2_gamma': jnp.ones((20,), jnp.float32),
        'bn2_beta': jnp.zeros((20,), jnp.float32),
        'fc1_w': 0.1 * jax.random.normal(k3, (32, 20 * 5 * 5), jnp.float32),
        'fc1_b': jnp.zeros((32,), jnp.float32),
        # fc_loc[2]: zero weight, identity-affine bias (exactly as in __init__)
        'fc2_w': jnp.zeros((6, 32), jnp.float32),
        'fc2_b': jnp.array([1., 0., 0., 0., 1., 0.], jnp.float32),
    }


# --------------------------- pure-JAX references (test only) -----------------

_PREC = lax.Precision.HIGHEST


def _features_ref(x, p):
    def block(z, w, b, g, bt):
        y = lax.conv_general_dilated(z, w, (1, 1), 'VALID',
                                     dimension_numbers=('NCHW', 'OIHW', 'NCHW'),
                                     precision=_PREC)
        y = y + b.reshape(1, -1, 1, 1)
        y = lax.reduce_window(y, -jnp.inf, lax.max, (1, 1, 2, 2), (1, 1, 2, 2),
                              'VALID')
        y = jnp.maximum(y, 0.0)
        m = jnp.mean(y, axis=(0, 2, 3), keepdims=True)
        v = jnp.mean((y - m) ** 2, axis=(0, 2, 3), keepdims=True)
        return ((y - m) * lax.rsqrt(v + 1e-5) * g.reshape(1, -1, 1, 1)
                + bt.reshape(1, -1, 1, 1))
    z = block(x, p['conv1_w'], p['conv1_b'], p['bn1_gamma'], p['bn1_beta'])
    return block(z, p['conv2_w'], p['conv2_b'], p['bn2_gamma'], p['bn2_beta'])


def _stn_ref(x, p):
    N, C, H, W = x.shape
    xs = _features_ref(x, p).reshape(N, -1)
    h = jnp.maximum(jnp.dot(xs, p['fc1_w'].T, precision=_PREC) + p['fc1_b'], 0.0)
    theta = jnp.dot(h, p['fc2_w'].T, precision=_PREC) + p['fc2_b']      # (N, 6)
    jj = (2.0 * jnp.arange(W, dtype=jnp.float32) + 1.0) / W - 1.0
    ii = (2.0 * jnp.arange(H, dtype=jnp.float32) + 1.0) / H - 1.0
    bx = jnp.tile(jj, H)                                                 # (HW,)
    by = jnp.repeat(ii, W)
    gx = theta[:, 0:1] * bx + theta[:, 1:2] * by + theta[:, 2:3]
    gy = theta[:, 3:4] * bx + theta[:, 4:5] * by + theta[:, 5:6]
    ix = ((gx + 1.0) * W - 1.0) * 0.5
    iy = ((gy + 1.0) * H - 1.0) * 0.5
    x0 = jnp.floor(ix); y0 = jnp.floor(iy)
    wx1 = ix - x0; wy1 = iy - y0
    flat = x.reshape(N, C, H * W)

    def corner(yc, xc):
        inb = ((yc >= 0) & (yc <= H - 1) & (xc >= 0) & (xc <= W - 1))
        yi = jnp.clip(yc, 0, H - 1).astype(jnp.int32)
        xi = jnp.clip(xc, 0, W - 1).astype(jnp.int32)
        idx = jnp.broadcast_to((yi * W + xi)[:, None, :], flat.shape)
        g = jnp.take_along_axis(flat, idx, axis=2)
        return g * inb.astype(x.dtype)[:, None, :]

    out = ((1 - wy1)[:, None, :] * ((1 - wx1)[:, None, :] * corner(y0, x0)
                                    + wx1[:, None, :] * corner(y0, x0 + 1))
           + wy1[:, None, :] * ((1 - wx1)[:, None, :] * corner(y0 + 1, x0)
                                + wx1[:, None, :] * corner(y0 + 1, x0 + 1)))
    return out.reshape(N, C, H, W)


if __name__ == "__main__":
    key = jax.random.PRNGKey(0)
    k_x, k_p, k_w = jax.random.split(key, 3)
    # spatial size must be 32 so that the feature map is 20x5x5 (as the
    # module's `xs.view(-1, 20*5*5)` requires); num_features=4, batch=2.
    N, C, H, W = 2, 4, 32, 32
    x = jax.random.normal(k_x, (N, C, H, W), jnp.float32)
    params = init_params(k_p, C)

    fwd = jax.jit(stn_forward)
    out, z2 = fwd(x, params)
    out, z2 = jax.block_until_ready((out, z2))
    assert out.shape == x.shape and out.dtype == jnp.float32

    # 1) conv tower (conv+pool+relu+bn x2) matches a pure-JAX reference.
    z2_ref = _features_ref(x, params)
    z2_k = jnp.transpose(z2.reshape(N, 5, 5, 20), (0, 3, 1, 2))
    assert float(jnp.max(jnp.abs(z2_k - z2_ref))) < 5e-3

    # 2) fc_loc[2] has zero weights and an identity-affine bias, so the STN
    #    must reproduce its input (bilinear sampling at exact pixel centers).
    assert float(jnp.max(jnp.abs(out - x))) < 1e-3

    # 3) non-identity theta: exercise the bilinear sampler / zero padding
    #    against a pure-JAX grid_sample reference.
    params_p = dict(params)
    params_p['fc2_w'] = 0.02 * jax.random.normal(k_w, (6, 32), jnp.float32)
    out_p, _ = fwd(x, params_p)
    out_p = jax.block_until_ready(out_p)
    ref_p = _stn_ref(x, params_p)
    assert float(jnp.max(jnp.abs(out_p - ref_p))) < 5e-3

    print("KERNEL_OK")
</pallas_src>

<mosaic_0001>
module attributes {stable_mosaic.version = 11 : i64} {
  func.func @_conv_pool_bn_kernel(%arg0: i32, %arg1: memref<2x16x128xf32, #tpu.memory_space<vmem>>, %arg2: memref<2x16x128xf32, #tpu.memory_space<vmem>>, %arg3: memref<2x5x128x140xf32, #tpu.memory_space<vmem>>, %arg4: memref<1x140xf32, #tpu.memory_space<vmem>>, %arg5: memref<1x10xf32, #tpu.memory_space<vmem>>, %arg6: memref<1x10xf32, #tpu.memory_space<vmem>>, %arg7: memref<140x10xf32, #tpu.memory_space<vmem>>, %arg8: memref<10x140xf32, #tpu.memory_space<vmem>>, %arg9: memref<2x14x140xf32, #tpu.memory_space<vmem>>) attributes {dimension_semantics = [#tpu.dimension_semantics<arbitrary>], iteration_bounds = array<i64: 1>, scalar_prefetch = 0 : i64, scratch_operands = 0 : i64, tpu.core_type = #tpu.core_type<tc>, window_params = [{pipeline_mode = #tpu.pipeline_mode<synchronous>, transform_indices = @transform_0, window_bounds = array<i64: 2, 16, 128>}, {pipeline_mode = #tpu.pipeline_mode<synchronous>, transform_indices = @transform_1, window_bounds = array<i64: 2, 16, 128>}, {pipeline_mode = #tpu.pipeline_mode<synchronous>, transform_indices = @transform_2, window_bounds = array<i64: 2, 5, 128, 140>}, {pipeline_mode = #tpu.pipeline_mode<synchronous>, transform_indices = @transform_3, window_bounds = array<i64: 1, 140>}, {pipeline_mode = #tpu.pipeline_mode<synchronous>, transform_indices = @transform_4, window_bounds = array<i64: 1, 10>}, {pipeline_mode = #tpu.pipeline_mode<synchronous>, transform_indices = @transform_5, window_bounds = array<i64: 1, 10>}, {pipeline_mode = #tpu.pipeline_mode<synchronous>, transform_indices = @transform_6, window_bounds = array<i64: 140, 10>}, {pipeline_mode = #tpu.pipeline_mode<synchronous>, transform_indices = @transform_7, window_bounds = array<i64: 10, 140>}, {pipeline_mode = #tpu.pipeline_mode<synchronous>, transform_indices = @transform_8, window_bounds = array<i64: 2, 14, 140>}]} {
    %c0 = arith.constant 0 : index
    %c0_0 = arith.constant 0 : index
    %c0_1 = arith.constant 0 : index
    %0 = vector.load %arg1[%c0, %c0_0, %c0_1] : memref<2x16x128xf32, #tpu.memory_space<vmem>>, vector<1x16x128xf32>
    %1 = vector.shape_cast %0 : vector<1x16x128xf32> to vector<16x128xf32>
    %c0_2 = arith.constant 0 : index
    %c0_3 = arith.constant 0 : index
    %c0_4 = arith.constant 0 : index
    %2 = vector.load %arg2[%c0_2, %c0_3, %c0_4] : memref<2x16x128xf32, #tpu.memory_space<vmem>>, vector<1x16x128xf32>
    %3 = vector.shape_cast %2 : vector<1x16x128xf32> to vector<16x128xf32>
    %4 = vector.extract_strided_slice %1 {offsets = [0, 0], sizes = [14, 128], strides = [1, 1]} : vector<16x128xf32> to vector<14x128xf32>
    %5 = vector.extract_strided_slice %3 {offsets = [0, 0], sizes = [14, 128], strides = [1, 1]} : vector<16x128xf32> to vector<14x128xf32>
    %6 = vector.extract_strided_slice %1 {offsets = [1, 0], sizes = [14, 128], strides = [1, 1]} : vector<16x128xf32> to vector<14x128xf32>
    %7 = vector.extract_strided_slice %3 {offsets = [1, 0], sizes = [14, 128], strides = [1, 1]} : vector<16x128xf32> to vector<14x128xf32>
    %8 = vector.extract_strided_slice %1 {offsets = [2, 0], sizes = [14, 128], strides = [1, 1]} : vector<16x128xf32> to vector<14x128xf32>
    %9 = vector.extract_strided_slice %3 {offsets = [2, 0], sizes = [14, 128], strides = [1, 1]} : vector<16x128xf32> to vector<14x128xf32>
    %c0_5 = arith.constant 0 : index
    %c0_6 = arith.constant 0 : index
    %c0_7 = arith.constant 0 : index
    %c0_8 = arith.constant 0 : index
    %10 = vector.load %arg3[%c0_5, %c0_6, %c0_7, %c0_8] : memref<2x5x128x140xf32, #tpu.memory_space<vmem>>, vector<1x1x128x140xf32>
    %11 = vector.shape_cast %10 : vector<1x1x128x140xf32> to vector<128x140xf32>
    %cst = arith.constant dense<0.000000e+00> : vector<14x140xf32>
    %12 = tpu.matmul %4, %11, %cst {dimension_numbers = #tpu.dot_dimension_numbers<[1], [0], [0], [1], [0, 0, 1, 1], [], []>} : vector<14x128xf32>, vector<128x140xf32>, vector<14x140xf32> -> vector<14x140xf32>
    %c0_9 = arith.constant 0 : index
    %c1 = arith.constant 1 : index
    %c0_10 = arith.constant 0 : index
    %c0_11 = arith.constant 0 : index
    %13 = vector.load %arg3[%c0_9, %c1, %c0_10, %c0_11] : memref<2x5x128x140xf32, #tpu.memory_space<vmem>>, vector<1x1x128x140xf32>
    %14 = vector.shape_cast %13 : vector<1x1x128x140xf32> to vector<128x140xf32>
    %cst_12 = arith.constant dense<0.000000e+00> : vector<14x140xf32>
    %15 = tpu.matmul %5, %14, %cst_12 {dimension_numbers = #tpu.dot_dimension_numbers<[1], [0], [0], [1], [0, 0, 1, 1], [], []>} : vector<14x128xf32>, vector<128x140xf32>, vector<14x140xf32> -> vector<14x140xf32>
    %16 = arith.addf %12, %15 : vector<14x140xf32>
    %c0_13 = arith.constant 0 : index
    %c2 = arith.constant 2 : index
    %c0_14 = arith.constant 0 : index
    %c0_15 = arith.constant 0 : index
    %17 = vector.load %arg3[%c0_13, %c2, %c0_14, %c0_15] : memref<2x5x128x140xf32, #tpu.memory_space<vmem>>, vector<1x1x128x140xf32>
    %18 = vector.shape_cast %17 : vector<1x1x128x140xf32> to vector<128x140xf32>
    %cst_16 = arith.constant dense<0.000000e+00> : vector<14x140xf32>
    %19 = tpu.matmul %6, %18, %cst_16 {dimension_numbers = #tpu.dot_dimension_numbers<[1], [0], [0], [1], [0, 0, 1, 1], [], []>} : vector<14x128xf32>, vector<128x140xf32>, vector<14x140xf32> -> vector<14x140xf32>
    %20 = arith.addf %16, %19 : vector<14x140xf32>
    %c0_17 = arith.constant 0 : index
    %c3 = arith.constant 3 : index
    %c0_18 = arith.constant 0 : index
    %c0_19 = arith.constant 0 : index
    %21 = vector.load %arg3[%c0_17, %c3, %c0_18, %c0_19] : memref<2x5x128x140xf32, #tpu.memory_space<vmem>>, vector<1x1x128x140xf32>
    %22 = vector.shape_cast %21 : vector<1x1x128x140xf32> to vector<128x140xf32>
    %cst_20 = arith.constant dense<0.000000e+00> : vector<14x140xf32>
    %23 = tpu.matmul %7, %22, %cst_20 {dimension_numbers = #tpu.dot_dimension_numbers<[1], [0], [0], [1], [0, 0, 1, 1], [], []>} : vector<14x128xf32>, vector<128x140xf32>, vector<14x140xf32> -> vector<14x140xf32>
    %24 = arith.addf %20, %23 : vector<14x140xf32>
    %c0_21 = arith.constant 0 : index
    %c4 = arith.constant 4 : index
    %c0_22 = arith.constant 0 : index
    %c0_23 = arith.constant 0 : index
    %25 = vector.load %arg3[%c0_21, %c4, %c0_22, %c0_23] : memref<2x5x128x140xf32, #tpu.memory_space<vmem>>, vector<1x1x128x140xf32>
    %26 = vector.shape_cast %25 : vector<1x1x128x140xf32> to vector<128x140xf32>
    %cst_24 = arith.constant dense<0.000000e+00> : vector<14x140xf32>
    %27 = tpu.matmul %8, %26, %cst_24 {dimension_numbers = #tpu.dot_dimension_numbers<[1], [0], [0], [1], [0, 0, 1, 1], [], []>} : vector<14x128xf32>, vector<128x140xf32>, vector<14x140xf32> -> vector<14x140xf32>
    %28 = arith.addf %24, %27 : vector<14x140xf32>
    %c1_25 = arith.constant 1 : index
    %c0_26 = arith.constant 0 : index
    %c0_27 = arith.constant 0 : index
    %c0_28 = arith.constant 0 : index
    %29 = vector.load %arg3[%c1_25, %c0_26, %c0_27, %c0_28] : memref<2x5x128x140xf32, #tpu.memory_space<vmem>>, vector<1x1x128x140xf32>
    %30 = vector.shape_cast %29 : vector<1x1x128x140xf32> to vector<128x140xf32>
    %cst_29 = arith.constant dense<0.000000e+00> : vector<14x140xf32>
    %31 = tpu.matmul %4, %30, %cst_29 {dimension_numbers = #tpu.dot_dimension_numbers<[1], [0], [0], [1], [0, 0, 1, 1], [], []>} : vector<14x128xf32>, vector<128x140xf32>, vector<14x140xf32> -> vector<14x140xf32>
    %c1_30 = arith.constant 1 : index
    %c1_31 = arith.constant 1 : index
    %c0_32 = arith.constant 0 : index
    %c0_33 = arith.constant 0 : index
    %32 = vector.load %arg3[%c1_30, %c1_31, %c0_32, %c0_33] : memref<2x5x128x140xf32, #tpu.memory_space<vmem>>, vector<1x1x128x140xf32>
    %33 = vector.shape_cast %32 : vector<1x1x128x140xf32> to vector<128x140xf32>
    %cst_34 = arith.constant dense<0.000000e+00> : vector<14x140xf32>
    %34 = tpu.matmul %5, %33, %cst_34 {dimension_numbers = #tpu.dot_dimension_numbers<[1], [0], [0], [1], [0, 0, 1, 1], [], []>} : vector<14x128xf32>, vector<128x140xf32>, vector<14x140xf32> -> vector<14x140xf32>
    %35 = arith.addf %31, %34 : vector<14x140xf32>
    %c1_35 = arith.constant 1 : index
    %c2_36 = arith.constant 2 : index
    %c0_37 = arith.constant 0 : index
    %c0_38 = arith.constant 0 : index
    %36 = vector.load %arg3[%c1_35, %c2_36, %c0_37, %c0_38] : memref<2x5x128x140xf32, #tpu.memory_space<vmem>>, vector<1x1x128x140xf32>
    %37 = vector.shape_cast %36 : vector<1x1x128x140xf32> to vector<128x140xf32>
    %cst_39 = arith.constant dense<0.000000e+00> : vector<14x140xf32>
    %38 = tpu.matmul %6, %37, %cst_39 {dimension_numbers = #tpu.dot_dimension_numbers<[1], [0], [0], [1], [0, 0, 1, 1], [], []>} : vector<14x128xf32>, vector<128x140xf32>, vector<14x140xf32> -> vector<14x140xf32>
    %39 = arith.addf %35, %38 : vector<14x140xf32>
    %c1_40 = arith.constant 1 : index
    %c3_41 = arith.constant 3 : index
    %c0_42 = arith.constant 0 : index
    %c0_43 = arith.constant 0 : index
    %40 = vector.load %arg3[%c1_40, %c3_41, %c0_42, %c0_43] : memref<2x5x128x140xf32, #tpu.memory_space<vmem>>, vector<1x1x128x140xf32>
    %41 = vector.shape_cast %40 : vector<1x1x128x140xf32> to vector<128x140xf32>
    %cst_44 = arith.constant dense<0.000000e+00> : vector<14x140xf32>
    %42 = tpu.matmul %7, %41, %cst_44 {dimension_numbers = #tpu.dot_dimension_numbers<[1], [0], [0], [1], [0, 0, 1, 1], [], []>} : vector<14x128xf32>, vector<128x140xf32>, vector<14x140xf32> -> vector<14x140xf32>
    %43 = arith.addf %39, %42 : vector<14x140xf32>
    %c1_45 = arith.constant 1 : index
    %c4_46 = arith.constant 4 : index
    %c0_47 = arith.constant 0 : index
    %c0_48 = arith.constant 0 : index
    %44 = vector.load %arg3[%c1_45, %c4_46, %c0_47, %c0_48] : memref<2x5x128x140xf32, #tpu.memory_space<vmem>>, vector<1x1x128x140xf32>
    %45 = vector.shape_cast %44 : vector<1x1x128x140xf32> to vector<128x140xf32>
    %cst_49 = arith.constant dense<0.000000e+00> : vector<14x140xf32>
    %46 = tpu.matmul %8, %45, %cst_49 {dimension_numbers = #tpu.dot_dimension_numbers<[1], [0], [0], [1], [0, 0, 1, 1], [], []>} : vector<14x128xf32>, vector<128x140xf32>, vector<14x140xf32> -> vector<14x140xf32>
    %47 = arith.addf %43, %46 : vector<14x140xf32>
    %c0_50 = arith.constant 0 : index
    %c0_51 = arith.constant 0 : index
    %c0_52 = arith.constant 0 : index
    %c0_53 = arith.constant 0 : index
    %48 = vector.load %arg3[%c0_50, %c0_51, %c0_52, %c0_53] : memref<2x5x128x140xf32, #tpu.memory_space<vmem>>, vector<1x1x128x140xf32>
    %49 = vector.shape_cast %48 : vector<1x1x128x140xf32> to vector<128x140xf32>
    %cst_54 = arith.constant dense<0.000000e+00> : vector<14x140xf32>
    %50 = tpu.matmul %5, %49, %cst_54 {dimension_numbers = #tpu.dot_dimension_numbers<[1], [0], [0], [1], [0, 0, 1, 1], [], []>} : vector<14x128xf32>, vector<128x140xf32>, vector<14x140xf32> -> vector<14x140xf32>
    %c0_55 = arith.constant 0 : index
    %c1_56 = arith.constant 1 : index
    %c0_57 = arith.constant 0 : index
    %c0_58 = arith.constant 0 : index
    %51 = vector.load %arg3[%c0_55, %c1_56, %c0_57, %c0_58] : memref<2x5x128x140xf32, #tpu.memory_space<vmem>>, vector<1x1x128x140xf32>
    %52 = vector.shape_cast %51 : vector<1x1x128x140xf32> to vector<128x140xf32>
    %cst_59 = arith.constant dense<0.000000e+00> : vector<14x140xf32>
    %53 = tpu.matmul %6, %52, %cst_59 {dimension_numbers = #tpu.dot_dimension_numbers<[1], [0], [0], [1], [0, 0, 1, 1], [], []>} : vector<14x128xf32>, vector<128x140xf32>, vector<14x140xf32> -> vector<14x140xf32>
    %54 = arith.addf %50, %53 : vector<14x140xf32>
    %c0_60 = arith.constant 0 : index
    %c2_61 = arith.constant 2 : index
    %c0_62 = arith.constant 0 : index
    %c0_63 = arith.constant 0 : index
    %55 = vector.load %arg3[%c0_60, %c2_61, %c0_62, %c0_63] : memref<2x5x128x140xf32, #tpu.memory_space<vmem>>, vector<1x1x128x140xf32>
    %56 = vector.shape_cast %55 : vector<1x1x128x140xf32> to vector<128x140xf32>
    %cst_64 = arith.constant dense<0.000000e+00> : vector<14x140xf32>
    %57 = tpu.matmul %7, %56, %cst_64 {dimension_numbers = #tpu.dot_dimension_numbers<[1], [0], [0], [1], [0, 0, 1, 1], [], []>} : vector<14x128xf32>, vector<128x140xf32>, vector<14x140xf32> -> vector<14x140xf32>
    %58 = arith.addf %54, %57 : vector<14x140xf32>
    %c0_65 = arith.constant 0 : index
    %c3_66 = arith.constant 3 : index
    %c0_67 = arith.constant 0 : index
    %c0_68 = arith.constant 0 : index
    %59 = vector.load %arg3[%c0_65, %c3_66, %c0_67, %c0_68] : memref<2x5x128x140xf32, #tpu.memory_space<vmem>>, vector<1x1x128x140xf32>
    %60 = vector.shape_cast %59 : vector<1x1x128x140xf32> to vector<128x140xf32>
    %cst_69 = arith.constant dense<0.000000e+00> : vector<14x140xf32>
    %61 = tpu.matmul %8, %60, %cst_69 {dimension_numbers = #tpu.dot_dimension_numbers<[1], [0], [0], [1], [0, 0, 1, 1], [], []>} : vector<14x128xf32>, vector<128x140xf32>, vector<14x140xf32> -> vector<14x140xf32>
    %62 = arith.addf %58, %61 : vector<14x140xf32>
    %c0_70 = arith.constant 0 : index
    %c4_71 = arith.constant 4 : index
    %c0_72 = arith.constant 0 : index
    %c0_73 = arith.constant 0 : index
    %63 = vector.load %arg3[%c0_70, %c4_71, %c0_72, %c0_73] : memref<2x5x128x140xf32, #tpu.memory_space<vmem>>, vector<1x1x128x140xf32>
    %64 = vector.shape_cast %63 : vector<1x1x128x140xf32> to vector<128x140xf32>
    %cst_74 = arith.constant dense<0.000000e+00> : vector<14x140xf32>
    %65 = tpu.matmul %9, %64, %cst_74 {dimension_numbers = #tpu.dot_dimension_numbers<[1], [0], [0], [1], [0, 0, 1, 1], [], []>} : vector<14x128xf32>, vector<128x140xf32>, vector<14x140xf32> -> vector<14x140xf32>
    %66 = arith.addf %62, %65 : vector<14x140xf32>
    %c1_75 = arith.constant 1 : index
    %c0_76 = arith.constant 0 : index
    %c0_77 = arith.constant 0 : index
    %c0_78 = arith.constant 0 : index
    %67 = vector.load %arg3[%c1_75, %c0_76, %c0_77, %c0_78] : memref<2x5x128x140xf32, #tpu.memory_space<vmem>>, vector<1x1x128x140xf32>
    %68 = vector.shape_cast %67 : vector<1x1x128x140xf32> to vector<128x140xf32>
    %cst_79 = arith.constant dense<0.000000e+00> : vector<14x140xf32>
    %69 = tpu.matmul %5, %68, %cst_79 {dimension_numbers = #tpu.dot_dimension_numbers<[1], [0], [0], [1], [0, 0, 1, 1], [], []>} : vector<14x128xf32>, vector<128x140xf32>, vector<14x140xf32> -> vector<14x140xf32>
    %c1_80 = arith.constant 1 : index
    %c1_81 = arith.constant 1 : index
    %c0_82 = arith.constant 0 : index
    %c0_83 = arith.constant 0 : index
    %70 = vector.load %arg3[%c1_80, %c1_81, %c0_82, %c0_83] : memref<2x5x128x140xf32, #tpu.memory_space<vmem>>, vector<1x1x128x140xf32>
    %71 = vector.shape_cast %70 : vector<1x1x128x140xf32> to vector<128x140xf32>
    %cst_84 = arith.constant dense<0.000000e+00> : vector<14x140xf32>
    %72 = tpu.matmul %6, %71, %cst_84 {dimension_numbers = #tpu.dot_dimension_numbers<[1], [0], [0], [1], [0, 0, 1, 1], [], []>} : vector<14x128xf32>, vector<128x140xf32>, vector<14x140xf32> -> vector<14x140xf32>
    %73 = arith.addf %69, %72 : vector<14x140xf32>
    %c1_85 = arith.constant 1 : index
    %c2_86 = arith.constant 2 : index
    %c0_87 = arith.constant 0 : index
    %c0_88 = arith.constant 0 : index
    %74 = vector.load %arg3[%c1_85, %c2_86, %c0_87, %c0_88] : memref<2x5x128x140xf32, #tpu.memory_space<vmem>>, vector<1x1x128x140xf32>
    %75 = vector.shape_cast %74 : vector<1x1x128x140xf32> to vector<128x140xf32>
    %cst_89 = arith.constant dense<0.000000e+00> : vector<14x140xf32>
    %76 = tpu.matmul %7, %75, %cst_89 {dimension_numbers = #tpu.dot_dimension_numbers<[1], [0], [0], [1], [0, 0, 1, 1], [], []>} : vector<14x128xf32>, vector<128x140xf32>, vector<14x140xf32> -> vector<14x140xf32>
    %77 = arith.addf %73, %76 : vector<14x140xf32>
    %c1_90 = arith.constant 1 : index
    %c3_91 = arith.constant 3 : index
    %c0_92 = arith.constant 0 : index
    %c0_93 = arith.constant 0 : index
    %78 = vector.load %arg3[%c1_90, %c3_91, %c0_92, %c0_93] : memref<2x5x128x140xf32, #tpu.memory_space<vmem>>, vector<1x1x128x140xf32>
    %79 = vector.shape_cast %78 : vector<1x1x128x140xf32> to vector<128x140xf32>
    %cst_94 = arith.constant dense<0.000000e+00> : vector<14x140xf32>
    %80 = tpu.matmul %8, %79, %cst_94 {dimension_numbers = #tpu.dot_dimension_numbers<[1], [0], [0], [1], [0, 0, 1, 1], [], []>} : vector<14x128xf32>, vector<128x140xf32>, vector<14x140xf32> -> vector<14x140xf32>
    %81 = arith.addf %77, %80 : vector<14x140xf32>
    %c1_95 = arith.constant 1 : index
    %c4_96 = arith.constant 4 : index
    %c0_97 = arith.constant 0 : index
    %c0_98 = arith.constant 0 : index
    %82 = vector.load %arg3[%c1_95, %c4_96, %c0_97, %c0_98] : memref<2x5x128x140xf32, #tpu.memory_space<vmem>>, vector<1x1x128x140xf32>
    %83 = vector.shape_cast %82 : vector<1x1x128x140xf32> to vector<128x140xf32>
    %cst_99 = arith.constant dense<0.000000e+00> : vector<14x140xf32>
    %84 = tpu.matmul %9, %83, %cst_99 {dimension_numbers = #tpu.dot_dimension_numbers<[1], [0], [0], [1], [0, 0, 1, 1], [], []>} : vector<14x128xf32>, vector<128x140xf32>, vector<14x140xf32> -> vector<14x140xf32>
    %85 = arith.addf %81, %84 : vector<14x140xf32>
    %86 = arith.maximumf %28, %47 : vector<14x140xf32>
    %87 = arith.maximumf %66, %85 : vector<14x140xf32>
    %88 = arith.maximumf %86, %87 : vector<14x140xf32>
    %c0_100 = arith.constant 0 : index
    %c0_101 = arith.constant 0 : index
    %89 = vector.load %arg4[%c0_100, %c0_101] : memref<1x140xf32, #tpu.memory_space<vmem>>, vector<1x140xf32>
    %90 = vector.broadcast %89 : vector<1x140xf32> to vector<14x140xf32>
    %91 = arith.addf %88, %90 : vector<14x140xf32>
    %cst_102 = arith.constant 0.000000e+00 : f32
    %92 = vector.broadcast %cst_102 : f32 to vector<14x140xf32>
    %93 = arith.maximumf %91, %92 : vector<14x140xf32>
    %cst_103 = arith.constant dense<0.000000e+00> : vector<140xf32>
    %94 = vector.multi_reduction <add>, %93, %cst_103 [0] : vector<14x140xf32> to vector<140xf32>
    %95 = vector.shape_cast %94 : vector<140xf32> to vector<1x140xf32>
    %96 = arith.mulf %93, %93 : vector<14x140xf32>
    %cst_104 = arith.constant dense<0.000000e+00> : vector<140xf32>
    %97 = vector.multi_reduction <add>, %96, %cst_104 [0] : vector<14x140xf32> to vector<140xf32>
    %98 = vector.shape_cast %97 : vector<140xf32> to vector<1x140xf32>
    %c1_105 = arith.constant 1 : index
    %c0_106 = arith.constant 0 : index
    %c0_107 = arith.constant 0 : index
    %99 = vector.load %arg1[%c1_105, %c0_106, %c0_107] : memref<2x16x128xf32, #tpu.memory_space<vmem>>, vector<1x16x128xf32>
    %100 = vector.shape_cast %99 : vector<1x16x128xf32> to vector<16x128xf32>
    %c1_108 = arith.constant 1 : index
    %c0_109 = arith.constant 0 : index
    %c0_110 = arith.constant 0 : index
    %101 = vector.load %arg2[%c1_108, %c0_109, %c0_110] : memref<2x16x128xf32, #tpu.memory_space<vmem>>, vector<1x16x128xf32>
    %102 = vector.shape_cast %101 : vector<1x16x128xf32> to vector<16x128xf32>
    %103 = vector.extract_strided_slice %100 {offsets = [0, 0], sizes = [14, 128], strides = [1, 1]} : vector<16x128xf32> to vector<14x128xf32>
    %104 = vector.extract_strided_slice %102 {offsets = [0, 0], sizes = [14, 128], strides = [1, 1]} : vector<16x128xf32> to vector<14x128xf32>
    %105 = vector.extract_strided_slice %100 {offsets = [1, 0], sizes = [14, 128], strides = [1, 1]} : vector<16x128xf32> to vector<14x128xf32>
    %106 = vector.extract_strided_slice %102 {offsets = [1, 0], sizes = [14, 128], strides = [1, 1]} : vector<16x128xf32> to vector<14x128xf32>
    %107 = vector.extract_strided_slice %100 {offsets = [2, 0], sizes = [14, 128], strides = [1, 1]} : vector<16x128xf32> to vector<14x128xf32>
    %108 = vector.extract_strided_slice %102 {offsets = [2, 0], sizes = [14, 128], strides = [1, 1]} : vector<16x128xf32> to vector<14x128xf32>
    %c0_111 = arith.constant 0 : index
    %c0_112 = arith.constant 0 : index
    %c0_113 = arith.constant 0 : index
    %c0_114 = arith.constant 0 : index
    %109 = vector.load %arg3[%c0_111, %c0_112, %c0_113, %c0_114] : memref<2x5x128x140xf32, #tpu.memory_space<vmem>>, vector<1x1x128x140xf32>
    %110 = vector.shape_cast %109 : vector<1x1x128x140xf32> to vector<128x140xf32>
    %cst_115 = arith.constant dense<0.000000e+00> : vector<14x140xf32>
    %111 = tpu.matmul %103, %110, %cst_115 {dimension_numbers = #tpu.dot_dimension_numbers<[1], [0], [0], [1], [0, 0, 1, 1], [], []>} : vector<14x128xf32>, vector<128x140xf32>, vector<14x140xf32> -> vector<14x140xf32>
    %c0_116 = arith.constant 0 : index
    %c1_117 = arith.constant 1 : index
    %c0_118 = arith.constant 0 : index
    %c0_119 = arith.constant 0 : index
    %112 = vector.load %arg3[%c0_116, %c1_117, %c0_118, %c0_119] : memref<2x5x128x140xf32, #tpu.memory_space<vmem>>, vector<1x1x128x140xf32>
    %113 = vector.shape_cast %112 : vector<1x1x128x140xf32> to vector<128x140xf32>
    %cst_120 = arith.constant dense<0.000000e+00> : vector<14x140xf32>
    %114 = tpu.matmul %104, %113, %cst_120 {dimension_numbers = #tpu.dot_dimension_numbers<[1], [0], [0], [1], [0, 0, 1, 1], [], []>} : vector<14x128xf32>, vector<128x140xf32>, vector<14x140xf32> -> vector<14x140xf32>
    %115 = arith.addf %111, %114 : vector<14x140xf32>
    %c0_121 = arith.constant 0 : index
    %c2_122 = arith.constant 2 : index
    %c0_123 = arith.constant 0 : index
    %c0_124 = arith.constant 0 : index
    %116 = vector.load %arg3[%c0_121, %c2_122, %c0_123, %c0_124] : memref<2x5x128x140xf32, #tpu.memory_space<vmem>>, vector<1x1x128x140xf32>
    %117 = vector.shape_cast %116 : vector<1x1x128x140xf32> to vector<128x140xf32>
    %cst_125 = arith.constant dense<0.000000e+00> : vector<14x140xf32>
    %118 = tpu.matmul %105, %117, %cst_125 {dimension_numbers = #tpu.dot_dimension_numbers<[1], [0], [0], [1], [0, 0, 1, 1], [], []>} : vector<14x128xf32>, vector<128x140xf32>, vector<14x140xf32> -> vector<14x140xf32>
    %119 = arith.addf %115, %118 : vector<14x140xf32>
    %c0_126 = arith.constant 0 : index
    %c3_127 = arith.constant 3 : index
    %c0_128 = arith.constant 0 : index
    %c0_129 = arith.constant 0 : index
    %120 = vector.load %arg3[%c0_126, %c3_127, %c0_128, %c0_129] : memref<2x5x128x140xf32, #tpu.memory_space<vmem>>, vector<1x1x128x140xf32>
    %121 = vector.shape_cast %120 : vector<1x1x128x140xf32> to vector<128x140xf32>
    %cst_130 = arith.constant dense<0.000000e+00> : vector<14x140xf32>
    %122 = tpu.matmul %106, %121, %cst_130 {dimension_numbers = #tpu.dot_dimension_numbers<[1], [0], [0], [1], [0, 0, 1, 1], [], []>} : vector<14x128xf32>, vector<128x140xf32>, vector<14x140xf32> -> vector<14x140xf32>
    %123 = arith.addf %119, %122 : vector<14x140xf32>
    %c0_131 = arith.constant 0 : index
    %c4_132 = arith.constant 4 : index
    %c0_133 = arith.constant 0 : index
    %c0_134 = arith.constant 0 : index
    %124 = vector.load %arg3[%c0_131, %c4_132, %c0_133, %c0_134] : memref<2x5x128x140xf32, #tpu.memory_space<vmem>>, vector<1x1x128x140xf32>
    %125 = vector.shape_cast %124 : vector<1x1x128x140xf32> to vector<128x140xf32>
    %cst_135 = arith.constant dense<0.000000e+00> : vector<14x140xf32>
    %126 = tpu.matmul %107, %125, %cst_135 {dimension_numbers = #tpu.dot_dimension_numbers<[1], [0], [0], [1], [0, 0, 1, 1], [], []>} : vector<14x128xf32>, vector<128x140xf32>, vector<14x140xf32> -> vector<14x140xf32>
    %127 = arith.addf %123, %126 : vector<14x140xf32>
    %c1_136 = arith.constant 1 : index
    %c0_137 = arith.constant 0 : index
    %c0_138 = arith.constant 0 : index
    %c0_139 = arith.constant 0 : index
    %128 = vector.load %arg3[%c1_136, %c0_137, %c0_138, %c0_139] : memref<2x5x128x140xf32, #tpu.memory_space<vmem>>, vector<1x1x128x140xf32>
    %129 = vector.shape_cast %128 : vector<1x1x128x140xf32> to vector<128x140xf32>
    %cst_140 = arith.constant dense<0.000000e+00> : vector<14x140xf32>
    %130 = tpu.matmul %103, %129, %cst_140 {dimension_numbers = #tpu.dot_dimension_numbers<[1], [0], [0], [1], [0, 0, 1, 1], [], []>} : vector<14x128xf32>, vector<128x140xf32>, vector<14x140xf32> -> vector<14x140xf32>
    %c1_141 = arith.constant 1 : index
    %c1_142 = arith.constant 1 : index
    %c0_143 = arith.constant 0 : index
    %c0_144 = arith.constant 0 : index
    %131 = vector.load %arg3[%c1_141, %c1_142, %c0_143, %c0_144] : memref<2x5x128x140xf32, #tpu.memory_space<vmem>>, vector<1x1x128x140xf32>
    %132 = vector.shape_cast %131 : vector<1x1x128x140xf32> to vector<128x140xf32>
    %cst_145 = arith.constant dense<0.000000e+00> : vector<14x140xf32>
    %133 = tpu.matmul %104, %132, %cst_145 {dimension_numbers = #tpu.dot_dimension_numbers<[1], [0], [0], [1], [0, 0, 1, 1], [], []>} : vector<14x128xf32>, vector<128x140xf32>, vector<14x140xf32> -> vector<14x140xf32>
    %134 = arith.addf %130, %133 : vector<14x140xf32>
    %c1_146 = arith.constant 1 : index
    %c2_147 = arith.constant 2 : index
    %c0_148 = arith.constant 0 : index
    %c0_149 = arith.constant 0 : index
    %135 = vector.load %arg3[%c1_146, %c2_147, %c0_148, %c0_149] : memref<2x5x128x140xf32, #tpu.memory_space<vmem>>, vector<1x1x128x140xf32>
    %136 = vector.shape_cast %135 : vector<1x1x128x140xf32> to vector<128x140xf32>
    %cst_150 = arith.constant dense<0.000000e+00> : vector<14x140xf32>
    %137 = tpu.matmul %105, %136, %cst_150 {dimension_numbers = #tpu.dot_dimension_numbers<[1], [0], [0], [1], [0, 0, 1, 1], [], []>} : vector<14x128xf32>, vector<128x140xf32>, vector<14x140xf32> -> vector<14x140xf32>
    %138 = arith.addf %134, %137 : vector<14x140xf32>
    %c1_151 = arith.constant 1 : index
    %c3_152 = arith.constant 3 : index
    %c0_153 = arith.constant 0 : index
    %c0_154 = arith.constant 0 : index
    %139 = vector.load %arg3[%c1_151, %c3_152, %c0_153, %c0_154] : memref<2x5x128x140xf32, #tpu.memory_space<vmem>>, vector<1x1x128x140xf32>
    %140 = vector.shape_cast %139 : vector<1x1x128x140xf32> to vector<128x140xf32>
    %cst_155 = arith.constant dense<0.000000e+00> : vector<14x140xf32>
    %141 = tpu.matmul %106, %140, %cst_155 {dimension_numbers = #tpu.dot_dimension_numbers<[1], [0], [0], [1], [0, 0, 1, 1], [], []>} : vector<14x128xf32>, vector<128x140xf32>, vector<14x140xf32> -> vector<14x140xf32>
    %142 = arith.addf %138, %141 : vector<14x140xf32>
    %c1_156 = arith.constant 1 : index
    %c4_157 = arith.constant 4 : index
    %c0_158 = arith.constant 0 : index
    %c0_159 = arith.constant 0 : index
    %143 = vector.load %arg3[%c1_156, %c4_157, %c0_158, %c0_159] : memref<2x5x128x140xf32, #tpu.memory_space<vmem>>, vector<1x1x128x140xf32>
    %144 = vector.shape_cast %143 : vector<1x1x128x140xf32> to vector<128x140xf32>
    %cst_160 = arith.constant dense<0.000000e+00> : vector<14x140xf32>
    %145 = tpu.matmul %107, %144, %cst_160 {dimension_numbers = #tpu.dot_dimension_numbers<[1], [0], [0], [1], [0, 0, 1, 1], [], []>} : vector<14x128xf32>, vector<128x140xf32>, vector<14x140xf32> -> vector<14x140xf32>
    %146 = arith.addf %142, %145 : vector<14x140xf32>
    %c0_161 = arith.constant 0 : index
    %c0_162 = arith.constant 0 : index
    %c0_163 = arith.constant 0 : index
    %c0_164 = arith.constant 0 : index
    %147 = vector.load %arg3[%c0_161, %c0_162, %c0_163, %c0_164] : memref<2x5x128x140xf32, #tpu.memory_space<vmem>>, vector<1x1x128x140xf32>
    %148 = vector.shape_cast %147 : vector<1x1x128x140xf32> to vector<128x140xf32>
    %cst_165 = arith.constant dense<0.000000e+00> : vector<14x140xf32>
    %149 = tpu.matmul %104, %148, %cst_165 {dimension_numbers = #tpu.dot_dimension_numbers<[1], [0], [0], [1], [0, 0, 1, 1], [], []>} : vector<14x128xf32>, vector<128x140xf32>, vector<14x140xf32> -> vector<14x140xf32>
    %c0_166 = arith.constant 0 : index
    %c1_167 = arith.constant 1 : index
    %c0_168 = arith.constant 0 : index
    %c0_169 = arith.constant 0 : index
    %150 = vector.load %arg3[%c0_166, %c1_167, %c0_168, %c0_169] : memref<2x5x128x140xf32, #tpu.memory_space<vmem>>, vector<1x1x128x140xf32>
    %151 = vector.shape_cast %150 : vector<1x1x128x140xf32> to vector<128x140xf32>
    %cst_170 = arith.constant dense<0.000000e+00> : vector<14x140xf32>
    %152 = tpu.matmul %105, %151, %cst_170 {dimension_numbers = #tpu.dot_dimension_numbers<[1], [0], [0], [1], [0, 0, 1, 1], [], []>} : vector<14x128xf32>, vector<128x140xf32>, vector<14x140xf32> -> vector<14x140xf32>
    %153 = arith.addf %149, %152 : vector<14x140xf32>
    %c0_171 = arith.constant 0 : index
    %c2_172 = arith.constant 2 : index
    %c0_173 = arith.constant 0 : index
    %c0_174 = arith.constant 0 : index
    %154 = vector.load %arg3[%c0_171, %c2_172, %c0_173, %c0_174] : memref<2x5x128x140xf32, #tpu.memory_space<vmem>>, vector<1x1x128x140xf32>
    %155 = vector.shape_cast %154 : vector<1x1x128x140xf32> to vector<128x140xf32>
    %cst_175 = arith.constant dense<0.000000e+00> : vector<14x140xf32>
    %156 = tpu.matmul %106, %155, %cst_175 {dimension_numbers = #tpu.dot_dimension_numbers<[1], [0], [0], [1], [0, 0, 1, 1], [], []>} : vector<14x128xf32>, vector<128x140xf32>, vector<14x140xf32> -> vector<14x140xf32>
    %157 = arith.addf %153, %156 : vector<14x140xf32>
    %c0_176 = arith.constant 0 : index
    %c3_177 = arith.constant 3 : index
    %c0_178 = arith.constant 0 : index
    %c0_179 = arith.constant 0 : index
    %158 = vector.load %arg3[%c0_176, %c3_177, %c0_178, %c0_179] : memref<2x5x128x140xf32, #tpu.memory_space<vmem>>, vector<1x1x128x140xf32>
    %159 = vector.shape_cast %158 : vector<1x1x128x140xf32> to vector<128x140xf32>
    %cst_180 = arith.constant dense<0.000000e+00> : vector<14x140xf32>
    %160 = tpu.matmul %107, %159, %cst_180 {dimension_numbers = #tpu.dot_dimension_numbers<[1], [0], [0], [1], [0, 0, 1, 1], [], []>} : vector<14x128xf32>, vector<128x140xf32>, vector<14x140xf32> -> vector<14x140xf32>
    %161 = arith.addf %157, %160 : vector<14x140xf32>
    %c0_181 = arith.constant 0 : index
    %c4_182 = arith.constant 4 : index
    %c0_183 = arith.constant 0 : index
    %c0_184 = arith.constant 0 : index
    %162 = vector.load %arg3[%c0_181, %c4_182, %c0_183, %c0_184] : memref<2x5x128x140xf32, #tpu.memory_space<vmem>>, vector<1x1x128x140xf32>
    %163 = vector.shape_cast %162 : vector<1x1x128x140xf32> to vector<128x140xf32>
    %cst_185 = arith.constant dense<0.000000e+00> : vector<14x140xf32>
    %164 = tpu.matmul %108, %163, %cst_185 {dimension_numbers = #tpu.dot_dimension_numbers<[1], [0], [0], [1], [0, 0, 1, 1], [], []>} : vector<14x128xf32>, vector<128x140xf32>, vector<14x140xf32> -> vector<14x140xf32>
    %165 = arith.addf %161, %164 : vector<14x140xf32>
    %c1_186 = arith.constant 1 : index
    %c0_187 = arith.constant 0 : index
    %c0_188 = arith.constant 0 : index
    %c0_189 = arith.constant 0 : index
    %166 = vector.load %arg3[%c1_186, %c0_187, %c0_188, %c0_189] : memref<2x5x128x140xf32, #tpu.memory_space<vmem>>, vector<1x1x128x140xf32>
    %167 = vector.shape_cast %166 : vector<1x1x128x140xf32> to vector<128x140xf32>
    %cst_190 = arith.constant dense<0.000000e+00> : vector<14x140xf32>
    %168 = tpu.matmul %104, %167, %cst_190 {dimension_numbers = #tpu.dot_dimension_numbers<[1], [0], [0], [1], [0, 0, 1, 1], [], []>} : vector<14x128xf32>, vector<128x140xf32>, vector<14x140xf32> -> vector<14x140xf32>
    %c1_191 = arith.constant 1 : index
    %c1_192 = arith.constant 1 : index
    %c0_193 = arith.constant 0 : index
    %c0_194 = arith.constant 0 : index
    %169 = vector.load %arg3[%c1_191, %c1_192, %c0_193, %c0_194] : memref<2x5x128x140xf32, #tpu.memory_space<vmem>>, vector<1x1x128x140xf32>
    %170 = vector.shape_cast %169 : vector<1x1x128x140xf32> to vector<128x140xf32>
    %cst_195 = arith.constant dense<0.000000e+00> : vector<14x140xf32>
    %171 = tpu.matmul %105, %170, %cst_195 {dimension_numbers = #tpu.dot_dimension_numbers<[1], [0], [0], [1], [0, 0, 1, 1], [], []>} : vector<14x128xf32>, vector<128x140xf32>, vector<14x140xf32> -> vector<14x140xf32>
    %172 = arith.addf %168, %171 : vector<14x140xf32>
    %c1_196 = arith.constant 1 : index
    %c2_197 = arith.constant 2 : index
    %c0_198 = arith.constant 0 : index
    %c0_199 = arith.constant 0 : index
    %173 = vector.load %arg3[%c1_196, %c2_197, %c0_198, %c0_199] : memref<2x5x128x140xf32, #tpu.memory_space<vmem>>, vector<1x1x128x140xf32>
    %174 = vector.shape_cast %173 : vector<1x1x128x140xf32> to vector<128x140xf32>
    %cst_200 = arith.constant dense<0.000000e+00> : vector<14x140xf32>
    %175 = tpu.matmul %106, %174, %cst_200 {dimension_numbers = #tpu.dot_dimension_numbers<[1], [0], [0], [1], [0, 0, 1, 1], [], []>} : vector<14x128xf32>, vector<128x140xf32>, vector<14x140xf32> -> vector<14x140xf32>
    %176 = arith.addf %172, %175 : vector<14x140xf32>
    %c1_201 = arith.constant 1 : index
    %c3_202 = arith.constant 3 : index
    %c0_203 = arith.constant 0 : index
    %c0_204 = arith.constant 0 : index
    %177 = vector.load %arg3[%c1_201, %c3_202, %c0_203, %c0_204] : memref<2x5x128x140xf32, #tpu.memory_space<vmem>>, vector<1x1x128x140xf32>
    %178 = vector.shape_cast %177 : vector<1x1x128x140xf32> to vector<128x140xf32>
    %cst_205 = arith.constant dense<0.000000e+00> : vector<14x140xf32>
    %179 = tpu.matmul %107, %178, %cst_205 {dimension_numbers = #tpu.dot_dimension_numbers<[1], [0], [0], [1], [0, 0, 1, 1], [], []>} : vector<14x128xf32>, vector<128x140xf32>, vector<14x140xf32> -> vector<14x140xf32>
    %180 = arith.addf %176, %179 : vector<14x140xf32>
    %c1_206 = arith.constant 1 : index
    %c4_207 = arith.constant 4 : index
    %c0_208 = arith.constant 0 : index
    %c0_209 = arith.constant 0 : index
    %181 = vector.load %arg3[%c1_206, %c4_207, %c0_208, %c0_209] : memref<2x5x128x140xf32, #tpu.memory_space<vmem>>, vector<1x1x128x140xf32>
    %182 = vector.shape_cast %181 : vector<1x1x128x140xf32> to vector<128x140xf32>
    %cst_210 = arith.constant dense<0.000000e+00> : vector<14x140xf32>
    %183 = tpu.matmul %108, %182, %cst_210 {dimension_numbers = #tpu.dot_dimension_numbers<[1], [0], [0], [1], [0, 0, 1, 1], [], []>} : vector<14x128xf32>, vector<128x140xf32>, vector<14x140xf32> -> vector<14x140xf32>
    %184 = arith.addf %180, %183 : vector<14x140xf32>
    %185 = arith.maximumf %127, %146 : vector<14x140xf32>
    %186 = arith.maximumf %165, %184 : vector<14x140xf32>
    %187 = arith.maximumf %185, %186 : vector<14x140xf32>
    %c0_211 = arith.constant 0 : index
    %c0_212 = arith.constant 0 : index
    %188 = vector.load %arg4[%c0_211, %c0_212] : memref<1x140xf32, #tpu.memory_space<vmem>>, vector<1x140xf32>
    %189 = vector.broadcast %188 : vector<1x140xf32> to vector<14x140xf32>
    %190 = arith.addf %187, %189 : vector<14x140xf32>
    %cst_213 = arith.constant 0.000000e+00 : f32
    %191 = vector.broadcast %cst_213 : f32 to vector<14x140xf32>
    %192 = arith.maximumf %190, %191 : vector<14x140xf32>
    %cst_214 = arith.constant dense<0.000000e+00> : vector<140xf32>
    %193 = vector.multi_reduction <add>, %192, %cst_214 [0] : vector<14x140xf32> to vector<140xf32>
    %194 = vector.shape_cast %193 : vector<140xf32> to vector<1x140xf32>
    %195 = arith.mulf %192, %192 : vector<14x140xf32>
    %cst_215 = arith.constant dense<0.000000e+00> : vector<140xf32>
    %196 = vector.multi_reduction <add>, %195, %cst_215 [0] : vector<14x140xf32> to vector<140xf32>
    %197 = vector.shape_cast %196 : vector<140xf32> to vector<1x140xf32>
    %198 = arith.addf %95, %194 : vector<1x140xf32>
    %199 = arith.addf %98, %197 : vector<1x140xf32>
    %c0_216 = arith.constant 0 : index
    %c0_217 = arith.constant 0 : index
    %200 = vector.load %arg7[%c0_216, %c0_217] : memref<140x10xf32, #tpu.memory_space<vmem>>, vector<140x10xf32>
    %cst_218 = arith.constant dense<0.000000e+00> : vector<1x10xf32>
    %201 = tpu.matmul %198, %200, %cst_218 {dimension_numbers = #tpu.dot_dimension_numbers<[1], [0], [0], [1], [0, 0, 1, 1], [], []>} : vector<1x140xf32>, vector<140x10xf32>, vector<1x10xf32> -> vector<1x10xf32>
    %cst_219 = arith.constant 3.920000e+02 : f32
    %202 = vector.broadcast %cst_219 : f32 to vector<1x10xf32>
    %203 = arith.divf %201, %202 : vector<1x10xf32>
    %c0_220 = arith.constant 0 : index
    %c0_221 = arith.constant 0 : index
    %204 = vector.load %arg7[%c0_220, %c0_221] : memref<140x10xf32, #tpu.memory_space<vmem>>, vector<140x10xf32>
    %cst_222 = arith.constant dense<0.000000e+00> : vector<1x10xf32>
    %205 = tpu.matmul %199, %204, %cst_222 {dimension_numbers = #tpu.dot_dimension_numbers<[1], [0], [0], [1], [0, 0, 1, 1], [], []>} : vector<1x140xf32>, vector<140x10xf32>, vector<1x10xf32> -> vector<1x10xf32>
    %cst_223 = arith.constant 3.920000e+02 : f32
    %206 = vector.broadcast %cst_223 : f32 to vector<1x10xf32>
    %207 = arith.divf %205, %206 : vector<1x10xf32>
    %208 = arith.mulf %203, %203 : vector<1x10xf32>
    %209 = arith.subf %207, %208 : vector<1x10xf32>
    %c0_224 = arith.constant 0 : index
    %c0_225 = arith.constant 0 : index
    %210 = vector.load %arg5[%c0_224, %c0_225] : memref<1x10xf32, #tpu.memory_space<vmem>>, vector<1x10xf32>
    %cst_226 = arith.constant 9.99999974E-6 : f32
    %211 = vector.broadcast %cst_226 : f32 to vector<1x10xf32>
    %212 = arith.addf %209, %211 : vector<1x10xf32>
    %213 = math.rsqrt %212 : vector<1x10xf32>
    %214 = arith.mulf %210, %213 : vector<1x10xf32>
    %c0_227 = arith.constant 0 : index
    %c0_228 = arith.constant 0 : index
    %215 = vector.load %arg6[%c0_227, %c0_228] : memref<1x10xf32, #tpu.memory_space<vmem>>, vector<1x10xf32>
    %216 = arith.mulf %203, %214 : vector<1x10xf32>
    %217 = arith.subf %215, %216 : vector<1x10xf32>
    %c0_229 = arith.constant 0 : index
    %c0_230 = arith.constant 0 : index
    %218 = vector.load %arg8[%c0_229, %c0_230] : memref<10x140xf32, #tpu.memory_space<vmem>>, vector<10x140xf32>
    %cst_231 = arith.constant dense<0.000000e+00> : vector<1x140xf32>
    %219 = tpu.matmul %214, %218, %cst_231 {dimension_numbers = #tpu.dot_dimension_numbers<[1], [0], [0], [1], [0, 0, 1, 1], [], []>} : vector<1x10xf32>, vector<10x140xf32>, vector<1x140xf32> -> vector<1x140xf32>
    %c0_232 = arith.constant 0 : index
    %c0_233 = arith.constant 0 : index
    %220 = vector.load %arg8[%c0_232, %c0_233] : memref<10x140xf32, #tpu.memory_space<vmem>>, vector<10x140xf32>
    %cst_234 = arith.constant dense<0.000000e+00> : vector<1x140xf32>
    %221 = tpu.matmul %217, %220, %cst_234 {dimension_numbers = #tpu.dot_dimension_numbers<[1], [0], [0], [1], [0, 0, 1, 1], [], []>} : vector<1x10xf32>, vector<10x140xf32>, vector<1x140xf32> -> vector<1x140xf32>
    %222 = vector.broadcast %219 : vector<1x140xf32> to vector<14x140xf32>
    %223 = arith.mulf %93, %222 : vector<14x140xf32>
    %224 = vector.broadcast %221 : vector<1x140xf32> to vector<14x140xf32>
    %225 = arith.addf %223, %224 : vector<14x140xf32>
    %c0_235 = arith.constant 0 : index
    %c0_236 = arith.constant 0 : index
    %c0_237 = arith.constant 0 : index
    %226 = vector.load %arg9[%c0_235, %c0_236, %c0_237] : memref<2x14x140xf32, #tpu.memory_space<vmem>>, vector<1x14x140xf32>
    %227 = vector.shape_cast %226 : vector<1x14x140xf32> to vector<14x140xf32>
    %228 = vector.shape_cast %225 : vector<14x140xf32> to vector<1x14x140xf32>
    tpu.vector_store %arg9[%c0_235, %c0_236, %c0_237], %228 {strides = array<i32>} : memref<2x14x140xf32, #tpu.memory_space<vmem>>, vector<1x14x140xf32>,
    %229 = vector.broadcast %219 : vector<1x140xf32> to vector<14x140xf32>
    %230 = arith.mulf %192, %229 : vector<14x140xf32>
    %231 = vector.broadcast %221 : vector<1x140xf32> to vector<14x140xf32>
    %232 = arith.addf %230, %231 : vector<14x140xf32>
    %c1_238 = arith.constant 1 : index
    %c0_239 = arith.constant 0 : index
    %c0_240 = arith.constant 0 : index
    %233 = vector.load %arg9[%c1_238, %c0_239, %c0_240] : memref<2x14x140xf32, #tpu.memory_space<vmem>>, vector<1x14x140xf32>
    %234 = vector.shape_cast %233 : vector<1x14x140xf32> to vector<14x140xf32>
    %235 = vector.shape_cast %232 : vector<14x140xf32> to vector<1x14x140xf32>
    tpu.vector_store %arg9[%c1_238, %c0_239, %c0_240], %235 {strides = array<i32>} : memref<2x14x140xf32, #tpu.memory_space<vmem>>, vector<1x14x140xf32>,
    return
  }
  func.func @transform_0(%arg0: i32) -> (i32, i32, i32) {
    %c0_i32 = arith.constant 0 : i32
    %c0_i32_0 = arith.constant 0 : i32
    %c0_i32_1 = arith.constant 0 : i32
    %c0_i32_2 = arith.constant 0 : i32
    return %c0_i32, %c0_i32_0, %c0_i32_1 : i32, i32, i32
  }
  func.func @transform_1(%arg0: i32) -> (i32, i32, i32) {
    %c0_i32 = arith.constant 0 : i32
    %c0_i32_0 = arith.constant 0 : i32
    %c0_i32_1 = arith.constant 0 : i32
    %c0_i32_2 = arith.constant 0 : i32
    return %c0_i32, %c0_i32_0, %c0_i32_1 : i32, i32, i32
  }
  func.func @transform_2(%arg0: i32) -> (i32, i32, i32, i32) {
    %c0_i32 = arith.constant 0 : i32
    %c0_i32_0 = arith.constant 0 : i32
    %c0_i32_1 = arith.constant 0 : i32
    %c0_i32_2 = arith.constant 0 : i32
    %c0_i32_3 = arith.constant 0 : i32
    return %c0_i32, %c0_i32_0, %c0_i32_1, %c0_i32_2 : i32, i32, i32, i32
  }
  func.func @transform_3(%arg0: i32) -> (i32, i32) {
    %c0_i32 = arith.constant 0 : i32
    %c0_i32_0 = arith.constant 0 : i32
    %c0_i32_1 = arith.constant 0 : i32
    return %c0_i32, %c0_i32_0 : i32, i32
  }
  func.func @transform_4(%arg0: i32) -> (i32, i32) {
    %c0_i32 = arith.constant 0 : i32
    %c0_i32_0 = arith.constant 0 : i32
    %c0_i32_1 = arith.constant 0 : i32
    return %c0_i32, %c0_i32_0 : i32, i32
  }
  func.func @transform_5(%arg0: i32) -> (i32, i32) {
    %c0_i32 = arith.constant 0 : i32
    %c0_i32_0 = arith.constant 0 : i32
    %c0_i32_1 = arith.constant 0 : i32
    return %c0_i32, %c0_i32_0 : i32, i32
  }
  func.func @transform_6(%arg0: i32) -> (i32, i32) {
    %c0_i32 = arith.constant 0 : i32
    %c0_i32_0 = arith.constant 0 : i32
    %c0_i32_1 = arith.constant 0 : i32
    return %c0_i32, %c0_i32_0 : i32, i32
  }
  func.func @transform_7(%arg0: i32) -> (i32, i32) {
    %c0_i32 = arith.constant 0 : i32
    %c0_i32_0 = arith.constant 0 : i32
    %c0_i32_1 = arith.constant 0 : i32
    return %c0_i32, %c0_i32_0 : i32, i32
  }
  func.func @transform_8(%arg0: i32) -> (i32, i32, i32) {
    %c0_i32 = arith.constant 0 : i32
    %c0_i32_0 = arith.constant 0 : i32
    %c0_i32_1 = arith.constant 0 : i32
    %c0_i32_2 = arith.constant 0 : i32
    return %c0_i32, %c0_i32_0, %c0_i32_1 : i32, i32, i32
  }
}

module attributes {stable_mosaic.version = 11 : i64} {
  func.func @_conv_pool_bn_kernel(%arg0: i32, %arg1: memref<2x7x140xf32, #tpu.memory_space<vmem>>, %arg2: memref<2x7x140xf32, #tpu.memory_space<vmem>>, %arg3: memref<2x5x140x100xf32, #tpu.memory_space<vmem>>, %arg4: memref<1x100xf32, #tpu.memory_space<vmem>>, %arg5: memref<1x20xf32, #tpu.memory_space<vmem>>, %arg6: memref<1x20xf32, #tpu.memory_space<vmem>>, %arg7: memref<100x20xf32, #tpu.memory_space<vmem>>, %arg8: memref<20x100xf32, #tpu.memory_space<vmem>>, %arg9: memref<2x5x100xf32, #tpu.memory_space<vmem>>) attributes {dimension_semantics = [#tpu.dimension_semantics<arbitrary>], iteration_bounds = array<i64: 1>, scalar_prefetch = 0 : i64, scratch_operands = 0 : i64, tpu.core_type = #tpu.core_type<tc>, window_params = [{pipeline_mode = #tpu.pipeline_mode<synchronous>, transform_indices = @transform_0, window_bounds = array<i64: 2, 7, 140>}, {pipeline_mode = #tpu.pipeline_mode<synchronous>, transform_indices = @transform_1, window_bounds = array<i64: 2, 7, 140>}, {pipeline_mode = #tpu.pipeline_mode<synchronous>, transform_indices = @transform_2, window_bounds = array<i64: 2, 5, 140, 100>}, {pipeline_mode = #tpu.pipeline_mode<synchronous>, transform_indices = @transform_3, window_bounds = array<i64: 1, 100>}, {pipeline_mode = #tpu.pipeline_mode<synchronous>, transform_indices = @transform_4, window_bounds = array<i64: 1, 20>}, {pipeline_mode = #tpu.pipeline_mode<synchronous>, transform_indices = @transform_5, window_bounds = array<i64: 1, 20>}, {pipeline_mode = #tpu.pipeline_mode<synchronous>, transform_indices = @transform_6, window_bounds = array<i64: 100, 20>}, {pipeline_mode = #tpu.pipeline_mode<synchronous>, transform_indices = @transform_7, window_bounds = array<i64: 20, 100>}, {pipeline_mode = #tpu.pipeline_mode<synchronous>, transform_indices = @transform_8, window_bounds = array<i64: 2, 5, 100>}]} {
    %c0 = arith.constant 0 : index
    %c0_0 = arith.constant 0 : index
    %c0_1 = arith.constant 0 : index
    %0 = vector.load %arg1[%c0, %c0_0, %c0_1] : memref<2x7x140xf32, #tpu.memory_space<vmem>>, vector<1x7x140xf32>
    %1 = vector.shape_cast %0 : vector<1x7x140xf32> to vector<7x140xf32>
    %c0_2 = arith.constant 0 : index
    %c0_3 = arith.constant 0 : index
    %c0_4 = arith.constant 0 : index
    %2 = vector.load %arg2[%c0_2, %c0_3, %c0_4] : memref<2x7x140xf32, #tpu.memory_space<vmem>>, vector<1x7x140xf32>
    %3 = vector.shape_cast %2 : vector<1x7x140xf32> to vector<7x140xf32>
    %4 = vector.extract_strided_slice %1 {offsets = [0, 0], sizes = [5, 140], strides = [1, 1]} : vector<7x140xf32> to vector<5x140xf32>
    %5 = vector.extract_strided_slice %3 {offsets = [0, 0], sizes = [5, 140], strides = [1, 1]} : vector<7x140xf32> to vector<5x140xf32>
    %6 = vector.extract_strided_slice %1 {offsets = [1, 0], sizes = [5, 140], strides = [1, 1]} : vector<7x140xf32> to vector<5x140xf32>
    %7 = vector.extract_strided_slice %3 {offsets = [1, 0], sizes = [5, 140], strides = [1, 1]} : vector<7x140xf32> to vector<5x140xf32>
    %8 = vector.extract_strided_slice %1 {offsets = [2, 0], sizes = [5, 140], strides = [1, 1]} : vector<7x140xf32> to vector<5x140xf32>
    %9 = vector.extract_strided_slice %3 {offsets = [2, 0], sizes = [5, 140], strides = [1, 1]} : vector<7x140xf32> to vector<5x140xf32>
    %c0_5 = arith.constant 0 : index
    %c0_6 = arith.constant 0 : index
    %c0_7 = arith.constant 0 : index
    %c0_8 = arith.constant 0 : index
    %10 = vector.load %arg3[%c0_5, %c0_6, %c0_7, %c0_8] : memref<2x5x140x100xf32, #tpu.memory_space<vmem>>, vector<1x1x140x100xf32>
    %11 = vector.shape_cast %10 : vector<1x1x140x100xf32> to vector<140x100xf32>
    %cst = arith.constant dense<0.000000e+00> : vector<5x100xf32>
    %12 = tpu.matmul %4, %11, %cst {dimension_numbers = #tpu.dot_dimension_numbers<[1], [0], [0], [1], [0, 0, 1, 1], [], []>} : vector<5x140xf32>, vector<140x100xf32>, vector<5x100xf32> -> vector<5x100xf32>
    %c0_9 = arith.constant 0 : index
    %c1 = arith.constant 1 : index
    %c0_10 = arith.constant 0 : index
    %c0_11 = arith.constant 0 : index
    %13 = vector.load %arg3[%c0_9, %c1, %c0_10, %c0_11] : memref<2x5x140x100xf32, #tpu.memory_space<vmem>>, vector<1x1x140x100xf32>
    %14 = vector.shape_cast %13 : vector<1x1x140x100xf32> to vector<140x100xf32>
    %cst_12 = arith.constant dense<0.000000e+00> : vector<5x100xf32>
    %15 = tpu.matmul %5, %14, %cst_12 {dimension_numbers = #tpu.dot_dimension_numbers<[1], [0], [0], [1], [0, 0, 1, 1], [], []>} : vector<5x140xf32>, vector<140x100xf32>, vector<5x100xf32> -> vector<5x100xf32>
    %16 = arith.addf %12, %15 : vector<5x100xf32>
    %c0_13 = arith.constant 0 : index
    %c2 = arith.constant 2 : index
    %c0_14 = arith.constant 0 : index
    %c0_15 = arith.constant 0 : index
    %17 = vector.load %arg3[%c0_13, %c2, %c0_14, %c0_15] : memref<2x5x140x100xf32, #tpu.memory_space<vmem>>, vector<1x1x140x100xf32>
    %18 = vector.shape_cast %17 : vector<1x1x140x100xf32> to vector<140x100xf32>
    %cst_16 = arith.constant dense<0.000000e+00> : vector<5x100xf32>
    %19 = tpu.matmul %6, %18, %cst_16 {dimension_numbers = #tpu.dot_dimension_numbers<[1], [0], [0], [1], [0, 0, 1, 1], [], []>} : vector<5x140xf32>, vector<140x100xf32>, vector<5x100xf32> -> vector<5x100xf32>
    %20 = arith.addf %16, %19 : vector<5x100xf32>
    %c0_17 = arith.constant 0 : index
    %c3 = arith.constant 3 : index
    %c0_18 = arith.constant 0 : index
    %c0_19 = arith.constant 0 : index
    %21 = vector.load %arg3[%c0_17, %c3, %c0_18, %c0_19] : memref<2x5x140x100xf32, #tpu.memory_space<vmem>>, vector<1x1x140x100xf32>
    %22 = vector.shape_cast %21 : vector<1x1x140x100xf32> to vector<140x100xf32>
    %cst_20 = arith.constant dense<0.000000e+00> : vector<5x100xf32>
    %23 = tpu.matmul %7, %22, %cst_20 {dimension_numbers = #tpu.dot_dimension_numbers<[1], [0], [0], [1], [0, 0, 1, 1], [], []>} : vector<5x140xf32>, vector<140x100xf32>, vector<5x100xf32> -> vector<5x100xf32>
    %24 = arith.addf %20, %23 : vector<5x100xf32>
    %c0_21 = arith.constant 0 : index
    %c4 = arith.constant 4 : index
    %c0_22 = arith.constant 0 : index
    %c0_23 = arith.constant 0 : index
    %25 = vector.load %arg3[%c0_21, %c4, %c0_22, %c0_23] : memref<2x5x140x100xf32, #tpu.memory_space<vmem>>, vector<1x1x140x100xf32>
    %26 = vector.shape_cast %25 : vector<1x1x140x100xf32> to vector<140x100xf32>
    %cst_24 = arith.constant dense<0.000000e+00> : vector<5x100xf32>
    %27 = tpu.matmul %8, %26, %cst_24 {dimension_numbers = #tpu.dot_dimension_numbers<[1], [0], [0], [1], [0, 0, 1, 1], [], []>} : vector<5x140xf32>, vector<140x100xf32>, vector<5x100xf32> -> vector<5x100xf32>
    %28 = arith.addf %24, %27 : vector<5x100xf32>
    %c1_25 = arith.constant 1 : index
    %c0_26 = arith.constant 0 : index
    %c0_27 = arith.constant 0 : index
    %c0_28 = arith.constant 0 : index
    %29 = vector.load %arg3[%c1_25, %c0_26, %c0_27, %c0_28] : memref<2x5x140x100xf32, #tpu.memory_space<vmem>>, vector<1x1x140x100xf32>
    %30 = vector.shape_cast %29 : vector<1x1x140x100xf32> to vector<140x100xf32>
    %cst_29 = arith.constant dense<0.000000e+00> : vector<5x100xf32>
    %31 = tpu.matmul %4, %30, %cst_29 {dimension_numbers = #tpu.dot_dimension_numbers<[1], [0], [0], [1], [0, 0, 1, 1], [], []>} : vector<5x140xf32>, vector<140x100xf32>, vector<5x100xf32> -> vector<5x100xf32>
    %c1_30 = arith.constant 1 : index
    %c1_31 = arith.constant 1 : index
    %c0_32 = arith.constant 0 : index
    %c0_33 = arith.constant 0 : index
    %32 = vector.load %arg3[%c1_30, %c1_31, %c0_32, %c0_33] : memref<2x5x140x100xf32, #tpu.memory_space<vmem>>, vector<1x1x140x100xf32>
    %33 = vector.shape_cast %32 : vector<1x1x140x100xf32> to vector<140x100xf32>
    %cst_34 = arith.constant dense<0.000000e+00> : vector<5x100xf32>
    %34 = tpu.matmul %5, %33, %cst_34 {dimension_numbers = #tpu.dot_dimension_numbers<[1], [0], [0], [1], [0, 0, 1, 1], [], []>} : vector<5x140xf32>, vector<140x100xf32>, vector<5x100xf32> -> vector<5x100xf32>
    %35 = arith.addf %31, %34 : vector<5x100xf32>
    %c1_35 = arith.constant 1 : index
    %c2_36 = arith.constant 2 : index
    %c0_37 = arith.constant 0 : index
    %c0_38 = arith.constant 0 : index
    %36 = vector.load %arg3[%c1_35, %c2_36, %c0_37, %c0_38] : memref<2x5x140x100xf32, #tpu.memory_space<vmem>>, vector<1x1x140x100xf32>
    %37 = vector.shape_cast %36 : vector<1x1x140x100xf32> to vector<140x100xf32>
    %cst_39 = arith.constant dense<0.000000e+00> : vector<5x100xf32>
    %38 = tpu.matmul %6, %37, %cst_39 {dimension_numbers = #tpu.dot_dimension_numbers<[1], [0], [0], [1], [0, 0, 1, 1], [], []>} : vector<5x140xf32>, vector<140x100xf32>, vector<5x100xf32> -> vector<5x100xf32>
    %39 = arith.addf %35, %38 : vector<5x100xf32>
    %c1_40 = arith.constant 1 : index
    %c3_41 = arith.constant 3 : index
    %c0_42 = arith.constant 0 : index
    %c0_43 = arith.constant 0 : index
    %40 = vector.load %arg3[%c1_40, %c3_41, %c0_42, %c0_43] : memref<2x5x140x100xf32, #tpu.memory_space<vmem>>, vector<1x1x140x100xf32>
    %41 = vector.shape_cast %40 : vector<1x1x140x100xf32> to vector<140x100xf32>
    %cst_44 = arith.constant dense<0.000000e+00> : vector<5x100xf32>
    %42 = tpu.matmul %7, %41, %cst_44 {dimension_numbers = #tpu.dot_dimension_numbers<[1], [0], [0], [1], [0, 0, 1, 1], [], []>} : vector<5x140xf32>, vector<140x100xf32>, vector<5x100xf32> -> vector<5x100xf32>
    %43 = arith.addf %39, %42 : vector<5x100xf32>
    %c1_45 = arith.constant 1 : index
    %c4_46 = arith.constant 4 : index
    %c0_47 = arith.constant 0 : index
    %c0_48 = arith.constant 0 : index
    %44 = vector.load %arg3[%c1_45, %c4_46, %c0_47, %c0_48] : memref<2x5x140x100xf32, #tpu.memory_space<vmem>>, vector<1x1x140x100xf32>
    %45 = vector.shape_cast %44 : vector<1x1x140x100xf32> to vector<140x100xf32>
    %cst_49 = arith.constant dense<0.000000e+00> : vector<5x100xf32>
    %46 = tpu.matmul %8, %45, %cst_49 {dimension_numbers = #tpu.dot_dimension_numbers<[1], [0], [0], [1], [0, 0, 1, 1], [], []>} : vector<5x140xf32>, vector<140x100xf32>, vector<5x100xf32> -> vector<5x100xf32>
    %47 = arith.addf %43, %46 : vector<5x100xf32>
    %c0_50 = arith.constant 0 : index
    %c0_51 = arith.constant 0 : index
    %c0_52 = arith.constant 0 : index
    %c0_53 = arith.constant 0 : index
    %48 = vector.load %arg3[%c0_50, %c0_51, %c0_52, %c0_53] : memref<2x5x140x100xf32, #tpu.memory_space<vmem>>, vector<1x1x140x100xf32>
    %49 = vector.shape_cast %48 : vector<1x1x140x100xf32> to vector<140x100xf32>
    %cst_54 = arith.constant dense<0.000000e+00> : vector<5x100xf32>
    %50 = tpu.matmul %5, %49, %cst_54 {dimension_numbers = #tpu.dot_dimension_numbers<[1], [0], [0], [1], [0, 0, 1, 1], [], []>} : vector<5x140xf32>, vector<140x100xf32>, vector<5x100xf32> -> vector<5x100xf32>
    %c0_55 = arith.constant 0 : index
    %c1_56 = arith.constant 1 : index
    %c0_57 = arith.constant 0 : index
    %c0_58 = arith.constant 0 : index
    %51 = vector.load %arg3[%c0_55, %c1_56, %c0_57, %c0_58] : memref<2x5x140x100xf32, #tpu.memory_space<vmem>>, vector<1x1x140x100xf32>
    %52 = vector.shape_cast %51 : vector<1x1x140x100xf32> to vector<140x100xf32>
    %cst_59 = arith.constant dense<0.000000e+00> : vector<5x100xf32>
    %53 = tpu.matmul %6, %52, %cst_59 {dimension_numbers = #tpu.dot_dimension_numbers<[1], [0], [0], [1], [0, 0, 1, 1], [], []>} : vector<5x140xf32>, vector<140x100xf32>, vector<5x100xf32> -> vector<5x100xf32>
    %54 = arith.addf %50, %53 : vector<5x100xf32>
    %c0_60 = arith.constant 0 : index
    %c2_61 = arith.constant 2 : index
    %c0_62 = arith.constant 0 : index
    %c0_63 = arith.constant 0 : index
    %55 = vector.load %arg3[%c0_60, %c2_61, %c0_62, %c0_63] : memref<2x5x140x100xf32, #tpu.memory_space<vmem>>, vector<1x1x140x100xf32>
    %56 = vector.shape_cast %55 : vector<1x1x140x100xf32> to vector<140x100xf32>
    %cst_64 = arith.constant dense<0.000000e+00> : vector<5x100xf32>
    %57 = tpu.matmul %7, %56, %cst_64 {dimension_numbers = #tpu.dot_dimension_numbers<[1], [0], [0], [1], [0, 0, 1, 1], [], []>} : vector<5x140xf32>, vector<140x100xf32>, vector<5x100xf32> -> vector<5x100xf32>
    %58 = arith.addf %54, %57 : vector<5x100xf32>
    %c0_65 = arith.constant 0 : index
    %c3_66 = arith.constant 3 : index
    %c0_67 = arith.constant 0 : index
    %c0_68 = arith.constant 0 : index
    %59 = vector.load %arg3[%c0_65, %c3_66, %c0_67, %c0_68] : memref<2x5x140x100xf32, #tpu.memory_space<vmem>>, vector<1x1x140x100xf32>
    %60 = vector.shape_cast %59 : vector<1x1x140x100xf32> to vector<140x100xf32>
    %cst_69 = arith.constant dense<0.000000e+00> : vector<5x100xf32>
    %61 = tpu.matmul %8, %60, %cst_69 {dimension_numbers = #tpu.dot_dimension_numbers<[1], [0], [0], [1], [0, 0, 1, 1], [], []>} : vector<5x140xf32>, vector<140x100xf32>, vector<5x100xf32> -> vector<5x100xf32>
    %62 = arith.addf %58, %61 : vector<5x100xf32>
    %c0_70 = arith.constant 0 : index
    %c4_71 = arith.constant 4 : index
    %c0_72 = arith.constant 0 : index
    %c0_73 = arith.constant 0 : index
    %63 = vector.load %arg3[%c0_70, %c4_71, %c0_72, %c0_73] : memref<2x5x140x100xf32, #tpu.memory_space<vmem>>, vector<1x1x140x100xf32>
    %64 = vector.shape_cast %63 : vector<1x1x140x100xf32> to vector<140x100xf32>
    %cst_74 = arith.constant dense<0.000000e+00> : vector<5x100xf32>
    %65 = tpu.matmul %9, %64, %cst_74 {dimension_numbers = #tpu.dot_dimension_numbers<[1], [0], [0], [1], [0, 0, 1, 1], [], []>} : vector<5x140xf32>, vector<140x100xf32>, vector<5x100xf32> -> vector<5x100xf32>
    %66 = arith.addf %62, %65 : vector<5x100xf32>
    %c1_75 = arith.constant 1 : index
    %c0_76 = arith.constant 0 : index
    %c0_77 = arith.constant 0 : index
    %c0_78 = arith.constant 0 : index
    %67 = vector.load %arg3[%c1_75, %c0_76, %c0_77, %c0_78] : memref<2x5x140x100xf32, #tpu.memory_space<vmem>>, vector<1x1x140x100xf32>
    %68 = vector.shape_cast %67 : vector<1x1x140x100xf32> to vector<140x100xf32>
    %cst_79 = arith.constant dense<0.000000e+00> : vector<5x100xf32>
    %69 = tpu.matmul %5, %68, %cst_79 {dimension_numbers = #tpu.dot_dimension_numbers<[1], [0], [0], [1], [0, 0, 1, 1], [], []>} : vector<5x140xf32>, vector<140x100xf32>, vector<5x100xf32> -> vector<5x100xf32>
    %c1_80 = arith.constant 1 : index
    %c1_81 = arith.constant 1 : index
    %c0_82 = arith.constant 0 : index
    %c0_83 = arith.constant 0 : index
    %70 = vector.load %arg3[%c1_80, %c1_81, %c0_82, %c0_83] : memref<2x5x140x100xf32, #tpu.memory_space<vmem>>, vector<1x1x140x100xf32>
    %71 = vector.shape_cast %70 : vector<1x1x140x100xf32> to vector<140x100xf32>
    %cst_84 = arith.constant dense<0.000000e+00> : vector<5x100xf32>
    %72 = tpu.matmul %6, %71, %cst_84 {dimension_numbers = #tpu.dot_dimension_numbers<[1], [0], [0], [1], [0, 0, 1, 1], [], []>} : vector<5x140xf32>, vector<140x100xf32>, vector<5x100xf32> -> vector<5x100xf32>
    %73 = arith.addf %69, %72 : vector<5x100xf32>
    %c1_85 = arith.constant 1 : index
    %c2_86 = arith.constant 2 : index
    %c0_87 = arith.constant 0 : index
    %c0_88 = arith.constant 0 : index
    %74 = vector.load %arg3[%c1_85, %c2_86, %c0_87, %c0_88] : memref<2x5x140x100xf32, #tpu.memory_space<vmem>>, vector<1x1x140x100xf32>
    %75 = vector.shape_cast %74 : vector<1x1x140x100xf32> to vector<140x100xf32>
    %cst_89 = arith.constant dense<0.000000e+00> : vector<5x100xf32>
    %76 = tpu.matmul %7, %75, %cst_89 {dimension_numbers = #tpu.dot_dimension_numbers<[1], [0], [0], [1], [0, 0, 1, 1], [], []>} : vector<5x140xf32>, vector<140x100xf32>, vector<5x100xf32> -> vector<5x100xf32>
    %77 = arith.addf %73, %76 : vector<5x100xf32>
    %c1_90 = arith.constant 1 : index
    %c3_91 = arith.constant 3 : index
    %c0_92 = arith.constant 0 : index
    %c0_93 = arith.constant 0 : index
    %78 = vector.load %arg3[%c1_90, %c3_91, %c0_92, %c0_93] : memref<2x5x140x100xf32, #tpu.memory_space<vmem>>, vector<1x1x140x100xf32>
    %79 = vector.shape_cast %78 : vector<1x1x140x100xf32> to vector<140x100xf32>
    %cst_94 = arith.constant dense<0.000000e+00> : vector<5x100xf32>
    %80 = tpu.matmul %8, %79, %cst_94 {dimension_numbers = #tpu.dot_dimension_numbers<[1], [0], [0], [1], [0, 0, 1, 1], [], []>} : vector<5x140xf32>, vector<140x100xf32>, vector<5x100xf32> -> vector<5x100xf32>
    %81 = arith.addf %77, %80 : vector<5x100xf32>
    %c1_95 = arith.constant 1 : index
    %c4_96 = arith.constant 4 : index
    %c0_97 = arith.constant 0 : index
    %c0_98 = arith.constant 0 : index
    %82 = vector.load %arg3[%c1_95, %c4_96, %c0_97, %c0_98] : memref<2x5x140x100xf32, #tpu.memory_space<vmem>>, vector<1x1x140x100xf32>
    %83 = vector.shape_cast %82 : vector<1x1x140x100xf32> to vector<140x100xf32>
    %cst_99 = arith.constant dense<0.000000e+00> : vector<5x100xf32>
    %84 = tpu.matmul %9, %83, %cst_99 {dimension_numbers = #tpu.dot_dimension_numbers<[1], [0], [0], [1], [0, 0, 1, 1], [], []>} : vector<5x140xf32>, vector<140x100xf32>, vector<5x100xf32> -> vector<5x100xf32>
    %85 = arith.addf %81, %84 : vector<5x100xf32>
    %86 = arith.maximumf %28, %47 : vector<5x100xf32>
    %87 = arith.maximumf %66, %85 : vector<5x100xf32>
    %88 = arith.maximumf %86, %87 : vector<5x100xf32>
    %c0_100 = arith.constant 0 : index
    %c0_101 = arith.constant 0 : index
    %89 = vector.load %arg4[%c0_100, %c0_101] : memref<1x100xf32, #tpu.memory_space<vmem>>, vector<1x100xf32>
    %90 = vector.broadcast %89 : vector<1x100xf32> to vector<5x100xf32>
    %91 = arith.addf %88, %90 : vector<5x100xf32>
    %cst_102 = arith.constant 0.000000e+00 : f32
    %92 = vector.broadcast %cst_102 : f32 to vector<5x100xf32>
    %93 = arith.maximumf %91, %92 : vector<5x100xf32>
    %cst_103 = arith.constant dense<0.000000e+00> : vector<100xf32>
    %94 = vector.multi_reduction <add>, %93, %cst_103 [0] : vector<5x100xf32> to vector<100xf32>
    %95 = vector.shape_cast %94 : vector<100xf32> to vector<1x100xf32>
    %96 = arith.mulf %93, %93 : vector<5x100xf32>
    %cst_104 = arith.constant dense<0.000000e+00> : vector<100xf32>
    %97 = vector.multi_reduction <add>, %96, %cst_104 [0] : vector<5x100xf32> to vector<100xf32>
    %98 = vector.shape_cast %97 : vector<100xf32> to vector<1x100xf32>
    %c1_105 = arith.constant 1 : index
    %c0_106 = arith.constant 0 : index
    %c0_107 = arith.constant 0 : index
    %99 = vector.load %arg1[%c1_105, %c0_106, %c0_107] : memref<2x7x140xf32, #tpu.memory_space<vmem>>, vector<1x7x140xf32>
    %100 = vector.shape_cast %99 : vector<1x7x140xf32> to vector<7x140xf32>
    %c1_108 = arith.constant 1 : index
    %c0_109 = arith.constant 0 : index
    %c0_110 = arith.constant 0 : index
    %101 = vector.load %arg2[%c1_108, %c0_109, %c0_110] : memref<2x7x140xf32, #tpu.memory_space<vmem>>, vector<1x7x140xf32>
    %102 = vector.shape_cast %101 : vector<1x7x140xf32> to vector<7x140xf32>
    %103 = vector.extract_strided_slice %100 {offsets = [0, 0], sizes = [5, 140], strides = [1, 1]} : vector<7x140xf32> to vector<5x140xf32>
    %104 = vector.extract_strided_slice %102 {offsets = [0, 0], sizes = [5, 140], strides = [1, 1]} : vector<7x140xf32> to vector<5x140xf32>
    %105 = vector.extract_strided_slice %100 {offsets = [1, 0], sizes = [5, 140], strides = [1, 1]} : vector<7x140xf32> to vector<5x140xf32>
    %106 = vector.extract_strided_slice %102 {offsets = [1, 0], sizes = [5, 140], strides = [1, 1]} : vector<7x140xf32> to vector<5x140xf32>
    %107 = vector.extract_strided_slice %100 {offsets = [2, 0], sizes = [5, 140], strides = [1, 1]} : vector<7x140xf32> to vector<5x140xf32>
    %108 = vector.extract_strided_slice %102 {offsets = [2, 0], sizes = [5, 140], strides = [1, 1]} : vector<7x140xf32> to vector<5x140xf32>
    %c0_111 = arith.constant 0 : index
    %c0_112 = arith.constant 0 : index
    %c0_113 = arith.constant 0 : index
    %c0_114 = arith.constant 0 : index
    %109 = vector.load %arg3[%c0_111, %c0_112, %c0_113, %c0_114] : memref<2x5x140x100xf32, #tpu.memory_space<vmem>>, vector<1x1x140x100xf32>
    %110 = vector.shape_cast %109 : vector<1x1x140x100xf32> to vector<140x100xf32>
    %cst_115 = arith.constant dense<0.000000e+00> : vector<5x100xf32>
    %111 = tpu.matmul %103, %110, %cst_115 {dimension_numbers = #tpu.dot_dimension_numbers<[1], [0], [0], [1], [0, 0, 1, 1], [], []>} : vector<5x140xf32>, vector<140x100xf32>, vector<5x100xf32> -> vector<5x100xf32>
    %c0_116 = arith.constant 0 : index
    %c1_117 = arith.constant 1 : index
    %c0_118 = arith.constant 0 : index
    %c0_119 = arith.constant 0 : index
    %112 = vector.load %arg3[%c0_116, %c1_117, %c0_118, %c0_119] : memref<2x5x140x100xf32, #tpu.memory_space<vmem>>, vector<1x1x140x100xf32>
    %113 = vector.shape_cast %112 : vector<1x1x140x100xf32> to vector<140x100xf32>
    %cst_120 = arith.constant dense<0.000000e+00> : vector<5x100xf32>
    %114 = tpu.matmul %104, %113, %cst_120 {dimension_numbers = #tpu.dot_dimension_numbers<[1], [0], [0], [1], [0, 0, 1, 1], [], []>} : vector<5x140xf32>, vector<140x100xf32>, vector<5x100xf32> -> vector<5x100xf32>
    %115 = arith.addf %111, %114 : vector<5x100xf32>
    %c0_121 = arith.constant 0 : index
    %c2_122 = arith.constant 2 : index
    %c0_123 = arith.constant 0 : index
    %c0_124 = arith.constant 0 : index
    %116 = vector.load %arg3[%c0_121, %c2_122, %c0_123, %c0_124] : memref<2x5x140x100xf32, #tpu.memory_space<vmem>>, vector<1x1x140x100xf32>
    %117 = vector.shape_cast %116 : vector<1x1x140x100xf32> to vector<140x100xf32>
    %cst_125 = arith.constant dense<0.000000e+00> : vector<5x100xf32>
    %118 = tpu.matmul %105, %117, %cst_125 {dimension_numbers = #tpu.dot_dimension_numbers<[1], [0], [0], [1], [0, 0, 1, 1], [], []>} : vector<5x140xf32>, vector<140x100xf32>, vector<5x100xf32> -> vector<5x100xf32>
    %119 = arith.addf %115, %118 : vector<5x100xf32>
    %c0_126 = arith.constant 0 : index
    %c3_127 = arith.constant 3 : index
    %c0_128 = arith.constant 0 : index
    %c0_129 = arith.constant 0 : index
    %120 = vector.load %arg3[%c0_126, %c3_127, %c0_128, %c0_129] : memref<2x5x140x100xf32, #tpu.memory_space<vmem>>, vector<1x1x140x100xf32>
    %121 = vector.shape_cast %120 : vector<1x1x140x100xf32> to vector<140x100xf32>
    %cst_130 = arith.constant dense<0.000000e+00> : vector<5x100xf32>
    %122 = tpu.matmul %106, %121, %cst_130 {dimension_numbers = #tpu.dot_dimension_numbers<[1], [0], [0], [1], [0, 0, 1, 1], [], []>} : vector<5x140xf32>, vector<140x100xf32>, vector<5x100xf32> -> vector<5x100xf32>
    %123 = arith.addf %119, %122 : vector<5x100xf32>
    %c0_131 = arith.constant 0 : index
    %c4_132 = arith.constant 4 : index
    %c0_133 = arith.constant 0 : index
    %c0_134 = arith.constant 0 : index
    %124 = vector.load %arg3[%c0_131, %c4_132, %c0_133, %c0_134] : memref<2x5x140x100xf32, #tpu.memory_space<vmem>>, vector<1x1x140x100xf32>
    %125 = vector.shape_cast %124 : vector<1x1x140x100xf32> to vector<140x100xf32>
    %cst_135 = arith.constant dense<0.000000e+00> : vector<5x100xf32>
    %126 = tpu.matmul %107, %125, %cst_135 {dimension_numbers = #tpu.dot_dimension_numbers<[1], [0], [0], [1], [0, 0, 1, 1], [], []>} : vector<5x140xf32>, vector<140x100xf32>, vector<5x100xf32> -> vector<5x100xf32>
    %127 = arith.addf %123, %126 : vector<5x100xf32>
    %c1_136 = arith.constant 1 : index
    %c0_137 = arith.constant 0 : index
    %c0_138 = arith.constant 0 : index
    %c0_139 = arith.constant 0 : index
    %128 = vector.load %arg3[%c1_136, %c0_137, %c0_138, %c0_139] : memref<2x5x140x100xf32, #tpu.memory_space<vmem>>, vector<1x1x140x100xf32>
    %129 = vector.shape_cast %128 : vector<1x1x140x100xf32> to vector<140x100xf32>
    %cst_140 = arith.constant dense<0.000000e+00> : vector<5x100xf32>
    %130 = tpu.matmul %103, %129, %cst_140 {dimension_numbers = #tpu.dot_dimension_numbers<[1], [0], [0], [1], [0, 0, 1, 1], [], []>} : vector<5x140xf32>, vector<140x100xf32>, vector<5x100xf32> -> vector<5x100xf32>
    %c1_141 = arith.constant 1 : index
    %c1_142 = arith.constant 1 : index
    %c0_143 = arith.constant 0 : index
    %c0_144 = arith.constant 0 : index
    %131 = vector.load %arg3[%c1_141, %c1_142, %c0_143, %c0_144] : memref<2x5x140x100xf32, #tpu.memory_space<vmem>>, vector<1x1x140x100xf32>
    %132 = vector.shape_cast %131 : vector<1x1x140x100xf32> to vector<140x100xf32>
    %cst_145 = arith.constant dense<0.000000e+00> : vector<5x100xf32>
    %133 = tpu.matmul %104, %132, %cst_145 {dimension_numbers = #tpu.dot_dimension_numbers<[1], [0], [0], [1], [0, 0, 1, 1], [], []>} : vector<5x140xf32>, vector<140x100xf32>, vector<5x100xf32> -> vector<5x100xf32>
    %134 = arith.addf %130, %133 : vector<5x100xf32>
    %c1_146 = arith.constant 1 : index
    %c2_147 = arith.constant 2 : index
    %c0_148 = arith.constant 0 : index
    %c0_149 = arith.constant 0 : index
    %135 = vector.load %arg3[%c1_146, %c2_147, %c0_148, %c0_149] : memref<2x5x140x100xf32, #tpu.memory_space<vmem>>, vector<1x1x140x100xf32>
    %136 = vector.shape_cast %135 : vector<1x1x140x100xf32> to vector<140x100xf32>
    %cst_150 = arith.constant dense<0.000000e+00> : vector<5x100xf32>
    %137 = tpu.matmul %105, %136, %cst_150 {dimension_numbers = #tpu.dot_dimension_numbers<[1], [0], [0], [1], [0, 0, 1, 1], [], []>} : vector<5x140xf32>, vector<140x100xf32>, vector<5x100xf32> -> vector<5x100xf32>
    %138 = arith.addf %134, %137 : vector<5x100xf32>
    %c1_151 = arith.constant 1 : index
    %c3_152 = arith.constant 3 : index
    %c0_153 = arith.constant 0 : index
    %c0_154 = arith.constant 0 : index
    %139 = vector.load %arg3[%c1_151, %c3_152, %c0_153, %c0_154] : memref<2x5x140x100xf32, #tpu.memory_space<vmem>>, vector<1x1x140x100xf32>
    %140 = vector.shape_cast %139 : vector<1x1x140x100xf32> to vector<140x100xf32>
    %cst_155 = arith.constant dense<0.000000e+00> : vector<5x100xf32>
    %141 = tpu.matmul %106, %140, %cst_155 {dimension_numbers = #tpu.dot_dimension_numbers<[1], [0], [0], [1], [0, 0, 1, 1], [], []>} : vector<5x140xf32>, vector<140x100xf32>, vector<5x100xf32> -> vector<5x100xf32>
    %142 = arith.addf %138, %141 : vector<5x100xf32>
    %c1_156 = arith.constant 1 : index
    %c4_157 = arith.constant 4 : index
    %c0_158 = arith.constant 0 : index
    %c0_159 = arith.constant 0 : index
    %143 = vector.load %arg3[%c1_156, %c4_157, %c0_158, %c0_159] : memref<2x5x140x100xf32, #tpu.memory_space<vmem>>, vector<1x1x140x100xf32>
    %144 = vector.shape_cast %143 : vector<1x1x140x100xf32> to vector<140x100xf32>
    %cst_160 = arith.constant dense<0.000000e+00> : vector<5x100xf32>
    %145 = tpu.matmul %107, %144, %cst_160 {dimension_numbers = #tpu.dot_dimension_numbers<[1], [0], [0], [1], [0, 0, 1, 1], [], []>} : vector<5x140xf32>, vector<140x100xf32>, vector<5x100xf32> -> vector<5x100xf32>
    %146 = arith.addf %142, %145 : vector<5x100xf32>
    %c0_161 = arith.constant 0 : index
    %c0_162 = arith.constant 0 : index
    %c0_163 = arith.constant 0 : index
    %c0_164 = arith.constant 0 : index
    %147 = vector.load %arg3[%c0_161, %c0_162, %c0_163, %c0_164] : memref<2x5x140x100xf32, #tpu.memory_space<vmem>>, vector<1x1x140x100xf32>
    %148 = vector.shape_cast %147 : vector<1x1x140x100xf32> to vector<140x100xf32>
    %cst_165 = arith.constant dense<0.000000e+00> : vector<5x100xf32>
    %149 = tpu.matmul %104, %148, %cst_165 {dimension_numbers = #tpu.dot_dimension_numbers<[1], [0], [0], [1], [0, 0, 1, 1], [], []>} : vector<5x140xf32>, vector<140x100xf32>, vector<5x100xf32> -> vector<5x100xf32>
    %c0_166 = arith.constant 0 : index
    %c1_167 = arith.constant 1 : index
    %c0_168 = arith.constant 0 : index
    %c0_169 = arith.constant 0 : index
    %150 = vector.load %arg3[%c0_166, %c1_167, %c0_168, %c0_169] : memref<2x5x140x100xf32, #tpu.memory_space<vmem>>, vector<1x1x140x100xf32>
    %151 = vector.shape_cast %150 : vector<1x1x140x100xf32> to vector<140x100xf32>
    %cst_170 = arith.constant dense<0.000000e+00> : vector<5x100xf32>
    %152 = tpu.matmul %105, %151, %cst_170 {dimension_numbers = #tpu.dot_dimension_numbers<[1], [0], [0], [1], [0, 0, 1, 1], [], []>} : vector<5x140xf32>, vector<140x100xf32>, vector<5x100xf32> -> vector<5x100xf32>
    %153 = arith.addf %149, %152 : vector<5x100xf32>
    %c0_171 = arith.constant 0 : index
    %c2_172 = arith.constant 2 : index
    %c0_173 = arith.constant 0 : index
    %c0_174 = arith.constant 0 : index
    %154 = vector.load %arg3[%c0_171, %c2_172, %c0_173, %c0_174] : memref<2x5x140x100xf32, #tpu.memory_space<vmem>>, vector<1x1x140x100xf32>
    %155 = vector.shape_cast %154 : vector<1x1x140x100xf32> to vector<140x100xf32>
    %cst_175 = arith.constant dense<0.000000e+00> : vector<5x100xf32>
    %156 = tpu.matmul %106, %155, %cst_175 {dimension_numbers = #tpu.dot_dimension_numbers<[1], [0], [0], [1], [0, 0, 1, 1], [], []>} : vector<5x140xf32>, vector<140x100xf32>, vector<5x100xf32> -> vector<5x100xf32>
    %157 = arith.addf %153, %156 : vector<5x100xf32>
    %c0_176 = arith.constant 0 : index
    %c3_177 = arith.constant 3 : index
    %c0_178 = arith.constant 0 : index
    %c0_179 = arith.constant 0 : index
    %158 = vector.load %arg3[%c0_176, %c3_177, %c0_178, %c0_179] : memref<2x5x140x100xf32, #tpu.memory_space<vmem>>, vector<1x1x140x100xf32>
    %159 = vector.shape_cast %158 : vector<1x1x140x100xf32> to vector<140x100xf32>
    %cst_180 = arith.constant dense<0.000000e+00> : vector<5x100xf32>
    %160 = tpu.matmul %107, %159, %cst_180 {dimension_numbers = #tpu.dot_dimension_numbers<[1], [0], [0], [1], [0, 0, 1, 1], [], []>} : vector<5x140xf32>, vector<140x100xf32>, vector<5x100xf32> -> vector<5x100xf32>
    %161 = arith.addf %157, %160 : vector<5x100xf32>
    %c0_181 = arith.constant 0 : index
    %c4_182 = arith.constant 4 : index
    %c0_183 = arith.constant 0 : index
    %c0_184 = arith.constant 0 : index
    %162 = vector.load %arg3[%c0_181, %c4_182, %c0_183, %c0_184] : memref<2x5x140x100xf32, #tpu.memory_space<vmem>>, vector<1x1x140x100xf32>
    %163 = vector.shape_cast %162 : vector<1x1x140x100xf32> to vector<140x100xf32>
    %cst_185 = arith.constant dense<0.000000e+00> : vector<5x100xf32>
    %164 = tpu.matmul %108, %163, %cst_185 {dimension_numbers = #tpu.dot_dimension_numbers<[1], [0], [0], [1], [0, 0, 1, 1], [], []>} : vector<5x140xf32>, vector<140x100xf32>, vector<5x100xf32> -> vector<5x100xf32>
    %165 = arith.addf %161, %164 : vector<5x100xf32>
    %c1_186 = arith.constant 1 : index
    %c0_187 = arith.constant 0 : index
    %c0_188 = arith.constant 0 : index
    %c0_189 = arith.constant 0 : index
    %166 = vector.load %arg3[%c1_186, %c0_187, %c0_188, %c0_189] : memref<2x5x140x100xf32, #tpu.memory_space<vmem>>, vector<1x1x140x100xf32>
    %167 = vector.shape_cast %166 : vector<1x1x140x100xf32> to vector<140x100xf32>
    %cst_190 = arith.constant dense<0.000000e+00> : vector<5x100xf32>
    %168 = tpu.matmul %104, %167, %cst_190 {dimension_numbers = #tpu.dot_dimension_numbers<[1], [0], [0], [1], [0, 0, 1, 1], [], []>} : vector<5x140xf32>, vector<140x100xf32>, vector<5x100xf32> -> vector<5x100xf32>
    %c1_191 = arith.constant 1 : index
    %c1_192 = arith.constant 1 : index
    %c0_193 = arith.constant 0 : index
    %c0_194 = arith.constant 0 : index
    %169 = vector.load %arg3[%c1_191, %c1_192, %c0_193, %c0_194] : memref<2x5x140x100xf32, #tpu.memory_space<vmem>>, vector<1x1x140x100xf32>
    %170 = vector.shape_cast %169 : vector<1x1x140x100xf32> to vector<140x100xf32>
    %cst_195 = arith.constant dense<0.000000e+00> : vector<5x100xf32>
    %171 = tpu.matmul %105, %170, %cst_195 {dimension_numbers = #tpu.dot_dimension_numbers<[1], [0], [0], [1], [0, 0, 1, 1], [], []>} : vector<5x140xf32>, vector<140x100xf32>, vector<5x100xf32> -> vector<5x100xf32>
    %172 = arith.addf %168, %171 : vector<5x100xf32>
    %c1_196 = arith.constant 1 : index
    %c2_197 = arith.constant 2 : index
    %c0_198 = arith.constant 0 : index
    %c0_199 = arith.constant 0 : index
    %173 = vector.load %arg3[%c1_196, %c2_197, %c0_198, %c0_199] : memref<2x5x140x100xf32, #tpu.memory_space<vmem>>, vector<1x1x140x100xf32>
    %174 = vector.shape_cast %173 : vector<1x1x140x100xf32> to vector<140x100xf32>
    %cst_200 = arith.constant dense<0.000000e+00> : vector<5x100xf32>
    %175 = tpu.matmul %106, %174, %cst_200 {dimension_numbers = #tpu.dot_dimension_numbers<[1], [0], [0], [1], [0, 0, 1, 1], [], []>} : vector<5x140xf32>, vector<140x100xf32>, vector<5x100xf32> -> vector<5x100xf32>
    %176 = arith.addf %172, %175 : vector<5x100xf32>
    %c1_201 = arith.constant 1 : index
    %c3_202 = arith.constant 3 : index
    %c0_203 = arith.constant 0 : index
    %c0_204 = arith.constant 0 : index
    %177 = vector.load %arg3[%c1_201, %c3_202, %c0_203, %c0_204] : memref<2x5x140x100xf32, #tpu.memory_space<vmem>>, vector<1x1x140x100xf32>
    %178 = vector.shape_cast %177 : vector<1x1x140x100xf32> to vector<140x100xf32>
    %cst_205 = arith.constant dense<0.000000e+00> : vector<5x100xf32>
    %179 = tpu.matmul %107, %178, %cst_205 {dimension_numbers = #tpu.dot_dimension_numbers<[1], [0], [0], [1], [0, 0, 1, 1], [], []>} : vector<5x140xf32>, vector<140x100xf32>, vector<5x100xf32> -> vector<5x100xf32>
    %180 = arith.addf %176, %179 : vector<5x100xf32>
    %c1_206 = arith.constant 1 : index
    %c4_207 = arith.constant 4 : index
    %c0_208 = arith.constant 0 : index
    %c0_209 = arith.constant 0 : index
    %181 = vector.load %arg3[%c1_206, %c4_207, %c0_208, %c0_209] : memref<2x5x140x100xf32, #tpu.memory_space<vmem>>, vector<1x1x140x100xf32>
    %182 = vector.shape_cast %181 : vector<1x1x140x100xf32> to vector<140x100xf32>
    %cst_210 = arith.constant dense<0.000000e+00> : vector<5x100xf32>
    %183 = tpu.matmul %108, %182, %cst_210 {dimension_numbers = #tpu.dot_dimension_numbers<[1], [0], [0], [1], [0, 0, 1, 1], [], []>} : vector<5x140xf32>, vector<140x100xf32>, vector<5x100xf32> -> vector<5x100xf32>
    %184 = arith.addf %180, %183 : vector<5x100xf32>
    %185 = arith.maximumf %127, %146 : vector<5x100xf32>
    %186 = arith.maximumf %165, %184 : vector<5x100xf32>
    %187 = arith.maximumf %185, %186 : vector<5x100xf32>
    %c0_211 = arith.constant 0 : index
    %c0_212 = arith.constant 0 : index
    %188 = vector.load %arg4[%c0_211, %c0_212] : memref<1x100xf32, #tpu.memory_space<vmem>>, vector<1x100xf32>
    %189 = vector.broadcast %188 : vector<1x100xf32> to vector<5x100xf32>
    %190 = arith.addf %187, %189 : vector<5x100xf32>
    %cst_213 = arith.constant 0.000000e+00 : f32
    %191 = vector.broadcast %cst_213 : f32 to vector<5x100xf32>
    %192 = arith.maximumf %190, %191 : vector<5x100xf32>
    %cst_214 = arith.constant dense<0.000000e+00> : vector<100xf32>
    %193 = vector.multi_reduction <add>, %192, %cst_214 [0] : vector<5x100xf32> to vector<100xf32>
    %194 = vector.shape_cast %193 : vector<100xf32> to vector<1x100xf32>
    %195 = arith.mulf %192, %192 : vector<5x100xf32>
    %cst_215 = arith.constant dense<0.000000e+00> : vector<100xf32>
    %196 = vector.multi_reduction <add>, %195, %cst_215 [0] : vector<5x100xf32> to vector<100xf32>
    %197 = vector.shape_cast %196 : vector<100xf32> to vector<1x100xf32>
    %198 = arith.addf %95, %194 : vector<1x100xf32>
    %199 = arith.addf %98, %197 : vector<1x100xf32>
    %c0_216 = arith.constant 0 : index
    %c0_217 = arith.constant 0 : index
    %200 = vector.load %arg7[%c0_216, %c0_217] : memref<100x20xf32, #tpu.memory_space<vmem>>, vector<100x20xf32>
    %cst_218 = arith.constant dense<0.000000e+00> : vector<1x20xf32>
    %201 = tpu.matmul %198, %200, %cst_218 {dimension_numbers = #tpu.dot_dimension_numbers<[1], [0], [0], [1], [0, 0, 1, 1], [], []>} : vector<1x100xf32>, vector<100x20xf32>, vector<1x20xf32> -> vector<1x20xf32>
    %cst_219 = arith.constant 5.000000e+01 : f32
    %202 = vector.broadcast %cst_219 : f32 to vector<1x20xf32>
    %203 = arith.divf %201, %202 : vector<1x20xf32>
    %c0_220 = arith.constant 0 : index
    %c0_221 = arith.constant 0 : index
    %204 = vector.load %arg7[%c0_220, %c0_221] : memref<100x20xf32, #tpu.memory_space<vmem>>, vector<100x20xf32>
    %cst_222 = arith.constant dense<0.000000e+00> : vector<1x20xf32>
    %205 = tpu.matmul %199, %204, %cst_222 {dimension_numbers = #tpu.dot_dimension_numbers<[1], [0], [0], [1], [0, 0, 1, 1], [], []>} : vector<1x100xf32>, vector<100x20xf32>, vector<1x20xf32> -> vector<1x20xf32>
    %cst_223 = arith.constant 5.000000e+01 : f32
    %206 = vector.broadcast %cst_223 : f32 to vector<1x20xf32>
    %207 = arith.divf %205, %206 : vector<1x20xf32>
    %208 = arith.mulf %203, %203 : vector<1x20xf32>
    %209 = arith.subf %207, %208 : vector<1x20xf32>
    %c0_224 = arith.constant 0 : index
    %c0_225 = arith.constant 0 : index
    %210 = vector.load %arg5[%c0_224, %c0_225] : memref<1x20xf32, #tpu.memory_space<vmem>>, vector<1x20xf32>
    %cst_226 = arith.constant 9.99999974E-6 : f32
    %211 = vector.broadcast %cst_226 : f32 to vector<1x20xf32>
    %212 = arith.addf %209, %211 : vector<1x20xf32>
    %213 = math.rsqrt %212 : vector<1x20xf32>
    %214 = arith.mulf %210, %213 : vector<1x20xf32>
    %c0_227 = arith.constant 0 : index
    %c0_228 = arith.constant 0 : index
    %215 = vector.load %arg6[%c0_227, %c0_228] : memref<1x20xf32, #tpu.memory_space<vmem>>, vector<1x20xf32>
    %216 = arith.mulf %203, %214 : vector<1x20xf32>
    %217 = arith.subf %215, %216 : vector<1x20xf32>
    %c0_229 = arith.constant 0 : index
    %c0_230 = arith.constant 0 : index
    %218 = vector.load %arg8[%c0_229, %c0_230] : memref<20x100xf32, #tpu.memory_space<vmem>>, vector<20x100xf32>
    %cst_231 = arith.constant dense<0.000000e+00> : vector<1x100xf32>
    %219 = tpu.matmul %214, %218, %cst_231 {dimension_numbers = #tpu.dot_dimension_numbers<[1], [0], [0], [1], [0, 0, 1, 1], [], []>} : vector<1x20xf32>, vector<20x100xf32>, vector<1x100xf32> -> vector<1x100xf32>
    %c0_232 = arith.constant 0 : index
    %c0_233 = arith.constant 0 : index
    %220 = vector.load %arg8[%c0_232, %c0_233] : memref<20x100xf32, #tpu.memory_space<vmem>>, vector<20x100xf32>
    %cst_234 = arith.constant dense<0.000000e+00> : vector<1x100xf32>
    %221 = tpu.matmul %217, %220, %cst_234 {dimension_numbers = #tpu.dot_dimension_numbers<[1], [0], [0], [1], [0, 0, 1, 1], [], []>} : vector<1x20xf32>, vector<20x100xf32>, vector<1x100xf32> -> vector<1x100xf32>
    %222 = vector.broadcast %219 : vector<1x100xf32> to vector<5x100xf32>
    %223 = arith.mulf %93, %222 : vector<5x100xf32>
    %224 = vector.broadcast %221 : vector<1x100xf32> to vector<5x100xf32>
    %225 = arith.addf %223, %224 : vector<5x100xf32>
    %c0_235 = arith.constant 0 : index
    %c0_236 = arith.constant 0 : index
    %c0_237 = arith.constant 0 : index
    %226 = vector.load %arg9[%c0_235, %c0_236, %c0_237] : memref<2x5x100xf32, #tpu.memory_space<vmem>>, vector<1x5x100xf32>
    %227 = vector.shape_cast %226 : vector<1x5x100xf32> to vector<5x100xf32>
    %228 = vector.shape_cast %225 : vector<5x100xf32> to vector<1x5x100xf32>
    tpu.vector_store %arg9[%c0_235, %c0_236, %c0_237], %228 {strides = array<i32>} : memref<2x5x100xf32, #tpu.memory_space<vmem>>, vector<1x5x100xf32>,
    %229 = vector.broadcast %219 : vector<1x100xf32> to vector<5x100xf32>
    %230 = arith.mulf %192, %229 : vector<5x100xf32>
    %231 = vector.broadcast %221 : vector<1x100xf32> to vector<5x100xf32>
    %232 = arith.addf %230, %231 : vector<5x100xf32>
    %c1_238 = arith.constant 1 : index
    %c0_239 = arith.constant 0 : index
    %c0_240 = arith.constant 0 : index
    %233 = vector.load %arg9[%c1_238, %c0_239, %c0_240] : memref<2x5x100xf32, #tpu.memory_space<vmem>>, vector<1x5x100xf32>
    %234 = vector.shape_cast %233 : vector<1x5x100xf32> to vector<5x100xf32>
    %235 = vector.shape_cast %232 : vector<5x100xf32> to vector<1x5x100xf32>
    tpu.vector_store %arg9[%c1_238, %c0_239, %c0_240], %235 {strides = array<i32>} : memref<2x5x100xf32, #tpu.memory_space<vmem>>, vector<1x5x100xf32>,
    return
  }
  func.func @transform_0(%arg0: i32) -> (i32, i32, i32) {
    %c0_i32 = arith.constant 0 : i32
    %c0_i32_0 = arith.constant 0 : i32
    %c0_i32_1 = arith.constant 0 : i32
    %c0_i32_2 = arith.constant 0 : i32
    return %c0_i32, %c0_i32_0, %c0_i32_1 : i32, i32, i32
  }
  func.func @transform_1(%arg0: i32) -> (i32, i32, i32) {
    %c0_i32 = arith.constant 0 : i32
    %c0_i32_0 = arith.constant 0 : i32
    %c0_i32_1 = arith.constant 0 : i32
    %c0_i32_2 = arith.constant 0 : i32
    return %c0_i32, %c0_i32_0, %c0_i32_1 : i32, i32, i32
  }
  func.func @transform_2(%arg0: i32) -> (i32, i32, i32, i32) {
    %c0_i32 = arith.constant 0 : i32
    %c0_i32_0 = arith.constant 0 : i32
    %c0_i32_1 = arith.constant 0 : i32
    %c0_i32_2 = arith.constant 0 : i32
    %c0_i32_3 = arith.constant 0 : i32
    return %c0_i32, %c0_i32_0, %c0_i32_1, %c0_i32_2 : i32, i32, i32, i32
  }
  func.func @transform_3(%arg0: i32) -> (i32, i32) {
    %c0_i32 = arith.constant 0 : i32
    %c0_i32_0 = arith.constant 0 : i32
    %c0_i32_1 = arith.constant 0 : i32
    return %c0_i32, %c0_i32_0 : i32, i32
  }
  func.func @transform_4(%arg0: i32) -> (i32, i32) {
    %c0_i32 = arith.constant 0 : i32
    %c0_i32_0 = arith.constant 0 : i32
    %c0_i32_1 = arith.constant 0 : i32
    return %c0_i32, %c0_i32_0 : i32, i32
  }
  func.func @transform_5(%arg0: i32) -> (i32, i32) {
    %c0_i32 = arith.constant 0 : i32
    %c0_i32_0 = arith.constant 0 : i32
    %c0_i32_1 = arith.constant 0 : i32
    return %c0_i32, %c0_i32_0 : i32, i32
  }
  func.func @transform_6(%arg0: i32) -> (i32, i32) {
    %c0_i32 = arith.constant 0 : i32
    %c0_i32_0 = arith.constant 0 : i32
    %c0_i32_1 = arith.constant 0 : i32
    return %c0_i32, %c0_i32_0 : i32, i32
  }
  func.func @transform_7(%arg0: i32) -> (i32, i32) {
    %c0_i32 = arith.constant 0 : i32
    %c0_i32_0 = arith.constant 0 : i32
    %c0_i32_1 = arith.constant 0 : i32
    return %c0_i32, %c0_i32_0 : i32, i32
  }
  func.func @transform_8(%arg0: i32) -> (i32, i32, i32) {
    %c0_i32 = arith.constant 0 : i32
    %c0_i32_0 = arith.constant 0 : i32
    %c0_i32_1 = arith.constant 0 : i32
    %c0_i32_2 = arith.constant 0 : i32
    return %c0_i32, %c0_i32_0, %c0_i32_1 : i32, i32, i32
  }
}

module attributes {stable_mosaic.version = 11 : i64} {
  func.func @_loc_sample_kernel(%arg0: i32, %arg1: memref<1x1x500xf32, #tpu.memory_space<vmem>>, %arg2: memref<500x32xf32, #tpu.memory_space<vmem>>, %arg3: memref<1x32xf32, #tpu.memory_space<vmem>>, %arg4: memref<32x6xf32, #tpu.memory_space<vmem>>, %arg5: memref<1x6xf32, #tpu.memory_space<vmem>>, %arg6: memref<1x1024xf32, #tpu.memory_space<vmem>>, %arg7: memref<1x1024xf32, #tpu.memory_space<vmem>>, %arg8: memref<32x1xf32, #tpu.memory_space<vmem>>, %arg9: memref<32x1xf32, #tpu.memory_space<vmem>>, %arg10: memref<4x128xf32, #tpu.memory_space<vmem>>, %arg11: memref<1x128x32xf32, #tpu.memory_space<vmem>>, %arg12: memref<1x4x1024xf32, #tpu.memory_space<vmem>>) attributes {dimension_semantics = [#tpu.dimension_semantics<parallel>], iteration_bounds = array<i64: 2>, scalar_prefetch = 0 : i64, scratch_operands = 0 : i64, tpu.core_type = #tpu.core_type<tc>, window_params = [{transform_indices = @transform_0, window_bounds = array<i64: 1, 1, 500>}, {pipeline_mode = #tpu.pipeline_mode<synchronous>, transform_indices = @transform_1, window_bounds = array<i64: 500, 32>}, {pipeline_mode = #tpu.pipeline_mode<synchronous>, transform_indices = @transform_2, window_bounds = array<i64: 1, 32>}, {pipeline_mode = #tpu.pipeline_mode<synchronous>, transform_indices = @transform_3, window_bounds = array<i64: 32, 6>}, {pipeline_mode = #tpu.pipeline_mode<synchronous>, transform_indices = @transform_4, window_bounds = array<i64: 1, 6>}, {pipeline_mode = #tpu.pipeline_mode<synchronous>, transform_indices = @transform_5, window_bounds = array<i64: 1, 1024>}, {pipeline_mode = #tpu.pipeline_mode<synchronous>, transform_indices = @transform_6, window_bounds = array<i64: 1, 1024>}, {pipeline_mode = #tpu.pipeline_mode<synchronous>, transform_indices = @transform_7, window_bounds = array<i64: 32, 1>}, {pipeline_mode = #tpu.pipeline_mode<synchronous>, transform_indices = @transform_8, window_bounds = array<i64: 32, 1>}, {pipeline_mode = #tpu.pipeline_mode<synchronous>, transform_indices = @transform_9, window_bounds = array<i64: 4, 128>}, {transform_indices = @transform_10, window_bounds = array<i64: 1, 128, 32>}, {transform_indices = @transform_11, window_bounds = array<i64: 1, 4, 1024>}]} {
    %c0 = arith.constant 0 : index
    %c0_0 = arith.constant 0 : index
    %c0_1 = arith.constant 0 : index
    %0 = vector.load %arg1[%c0, %c0_0, %c0_1] : memref<1x1x500xf32, #tpu.memory_space<vmem>>, vector<1x1x500xf32>
    %1 = vector.shape_cast %0 : vector<1x1x500xf32> to vector<1x500xf32>
    %c0_2 = arith.constant 0 : index
    %c0_3 = arith.constant 0 : index
    %2 = vector.load %arg2[%c0_2, %c0_3] : memref<500x32xf32, #tpu.memory_space<vmem>>, vector<500x32xf32>
    %cst = arith.constant dense<0.000000e+00> : vector<1x32xf32>
    %3 = tpu.matmul %1, %2, %cst {dimension_numbers = #tpu.dot_dimension_numbers<[1], [0], [0], [1], [0, 0, 1, 1], [], []>} : vector<1x500xf32>, vector<500x32xf32>, vector<1x32xf32> -> vector<1x32xf32>
    %c0_4 = arith.constant 0 : index
    %c0_5 = arith.constant 0 : index
    %4 = vector.load %arg3[%c0_4, %c0_5] : memref<1x32xf32, #tpu.memory_space<vmem>>, vector<1x32xf32>
    %5 = arith.addf %3, %4 : vector<1x32xf32>
    %cst_6 = arith.constant 0.000000e+00 : f32
    %6 = vector.broadcast %cst_6 : f32 to vector<1x32xf32>
    %7 = arith.maximumf %5, %6 : vector<1x32xf32>
    %c0_7 = arith.constant 0 : index
    %c0_8 = arith.constant 0 : index
    %8 = vector.load %arg4[%c0_7, %c0_8] : memref<32x6xf32, #tpu.memory_space<vmem>>, vector<32x6xf32>
    %cst_9 = arith.constant dense<0.000000e+00> : vector<1x6xf32>
    %9 = tpu.matmul %7, %8, %cst_9 {dimension_numbers = #tpu.dot_dimension_numbers<[1], [0], [0], [1], [0, 0, 1, 1], [], []>} : vector<1x32xf32>, vector<32x6xf32>, vector<1x6xf32> -> vector<1x6xf32>
    %c0_10 = arith.constant 0 : index
    %c0_11 = arith.constant 0 : index
    %10 = vector.load %arg5[%c0_10, %c0_11] : memref<1x6xf32, #tpu.memory_space<vmem>>, vector<1x6xf32>
    %11 = arith.addf %9, %10 : vector<1x6xf32>
    %12 = vector.extract_strided_slice %11 {offsets = [0, 0], sizes = [1, 1], strides = [1, 1]} : vector<1x6xf32> to vector<1x1xf32>
    %13 = vector.extract_strided_slice %11 {offsets = [0, 1], sizes = [1, 1], strides = [1, 1]} : vector<1x6xf32> to vector<1x1xf32>
    %14 = vector.extract_strided_slice %11 {offsets = [0, 2], sizes = [1, 1], strides = [1, 1]} : vector<1x6xf32> to vector<1x1xf32>
    %15 = vector.extract_strided_slice %11 {offsets = [0, 3], sizes = [1, 1], strides = [1, 1]} : vector<1x6xf32> to vector<1x1xf32>
    %16 = vector.extract_strided_slice %11 {offsets = [0, 4], sizes = [1, 1], strides = [1, 1]} : vector<1x6xf32> to vector<1x1xf32>
    %17 = vector.extract_strided_slice %11 {offsets = [0, 5], sizes = [1, 1], strides = [1, 1]} : vector<1x6xf32> to vector<1x1xf32>
    %c0_12 = arith.constant 0 : index
    %c0_13 = arith.constant 0 : index
    %18 = vector.load %arg6[%c0_12, %c0_13] : memref<1x1024xf32, #tpu.memory_space<vmem>>, vector<1x1024xf32>
    %c0_14 = arith.constant 0 : index
    %c0_15 = arith.constant 0 : index
    %19 = vector.load %arg7[%c0_14, %c0_15] : memref<1x1024xf32, #tpu.memory_space<vmem>>, vector<1x1024xf32>
    %20 = vector.broadcast %12 : vector<1x1xf32> to vector<1x1024xf32>
    %21 = arith.mulf %18, %20 : vector<1x1024xf32>
    %22 = vector.broadcast %13 : vector<1x1xf32> to vector<1x1024xf32>
    %23 = arith.mulf %19, %22 : vector<1x1024xf32>
    %24 = arith.addf %21, %23 : vector<1x1024xf32>
    %25 = vector.broadcast %14 : vector<1x1xf32> to vector<1x1024xf32>
    %26 = arith.addf %24, %25 : vector<1x1024xf32>
    %27 = vector.broadcast %15 : vector<1x1xf32> to vector<1x1024xf32>
    %28 = arith.mulf %18, %27 : vector<1x1024xf32>
    %29 = vector.broadcast %16 : vector<1x1xf32> to vector<1x1024xf32>
    %30 = arith.mulf %19, %29 : vector<1x1024xf32>
    %31 = arith.addf %28, %30 : vector<1x1024xf32>
    %32 = vector.broadcast %17 : vector<1x1xf32> to vector<1x1024xf32>
    %33 = arith.addf %31, %32 : vector<1x1024xf32>
    %cst_16 = arith.constant 1.000000e+00 : f32
    %34 = vector.broadcast %cst_16 : f32 to vector<1x1024xf32>
    %35 = arith.addf %26, %34 : vector<1x1024xf32>
    %cst_17 = arith.constant 3.200000e+01 : f32
    %36 = vector.broadcast %cst_17 : f32 to vector<1x1024xf32>
    %37 = arith.mulf %35, %36 : vector<1x1024xf32>
    %cst_18 = arith.constant 1.000000e+00 : f32
    %38 = vector.broadcast %cst_18 : f32 to vector<1x1024xf32>
    %39 = arith.subf %37, %38 : vector<1x1024xf32>
    %cst_19 = arith.constant 5.000000e-01 : f32
    %40 = vector.broadcast %cst_19 : f32 to vector<1x1024xf32>
    %41 = arith.mulf %39, %40 : vector<1x1024xf32>
    %cst_20 = arith.constant 1.000000e+00 : f32
    %42 = vector.broadcast %cst_20 : f32 to vector<1x1024xf32>
    %43 = arith.addf %33, %42 : vector<1x1024xf32>
    %cst_21 = arith.constant 3.200000e+01 : f32
    %44 = vector.broadcast %cst_21 : f32 to vector<1x1024xf32>
    %45 = arith.mulf %43, %44 : vector<1x1024xf32>
    %cst_22 = arith.constant 1.000000e+00 : f32
    %46 = vector.broadcast %cst_22 : f32 to vector<1x1024xf32>
    %47 = arith.subf %45, %46 : vector<1x1024xf32>
    %cst_23 = arith.constant 5.000000e-01 : f32
    %48 = vector.broadcast %cst_23 : f32 to vector<1x1024xf32>
    %49 = arith.mulf %47, %48 : vector<1x1024xf32>
    %50 = math.floor %41 : vector<1x1024xf32>
    %51 = math.floor %49 : vector<1x1024xf32>
    %52 = arith.subf %41, %50 : vector<1x1024xf32>
    %cst_24 = arith.constant 1.000000e+00 : f32
    %53 = vector.broadcast %cst_24 : f32 to vector<1x1024xf32>
    %54 = arith.subf %53, %52 : vector<1x1024xf32>
    %55 = arith.subf %49, %51 : vector<1x1024xf32>
    %cst_25 = arith.constant 1.000000e+00 : f32
    %56 = vector.broadcast %cst_25 : f32 to vector<1x1024xf32>
    %57 = arith.subf %56, %55 : vector<1x1024xf32>
    %c0_26 = arith.constant 0 : index
    %c0_27 = arith.constant 0 : index
    %58 = vector.load %arg8[%c0_26, %c0_27] : memref<32x1xf32, #tpu.memory_space<vmem>>, vector<32x1xf32>
    %59 = vector.broadcast %58 : vector<32x1xf32> to vector<32x1024xf32>
    %60 = vector.broadcast %51 : vector<1x1024xf32> to vector<32x1024xf32>
    %61 = arith.cmpf oeq, %59, %60 : vector<32x1024xf32>
    %cst_28 = arith.constant 0.000000e+00 : f32
    %62 = vector.shape_cast %57 : vector<1x1024xf32> to vector<1x1024xf32>
    %63 = vector.broadcast %62 : vector<1x1024xf32> to vector<32x1024xf32>
    %64 = vector.broadcast %cst_28 : f32 to vector<32x1024xf32>
    %65 = arith.select %61, %63, %64 : vector<32x1024xi1>, vector<32x1024xf32>
    %cst_29 = arith.constant 1.000000e+00 : f32
    %66 = vector.broadcast %cst_29 : f32 to vector<1x1024xf32>
    %67 = arith.addf %51, %66 : vector<1x1024xf32>
    %68 = vector.broadcast %58 : vector<32x1xf32> to vector<32x1024xf32>
    %69 = vector.broadcast %67 : vector<1x1024xf32> to vector<32x1024xf32>
    %70 = arith.cmpf oeq, %68, %69 : vector<32x1024xf32>
    %cst_30 = arith.constant 0.000000e+00 : f32
    %71 = vector.shape_cast %55 : vector<1x1024xf32> to vector<1x1024xf32>
    %72 = vector.broadcast %71 : vector<1x1024xf32> to vector<32x1024xf32>
    %73 = vector.broadcast %cst_30 : f32 to vector<32x1024xf32>
    %74 = arith.select %70, %72, %73 : vector<32x1024xi1>, vector<32x1024xf32>
    %75 = arith.addf %65, %74 : vector<32x1024xf32>
    %c0_31 = arith.constant 0 : index
    %c0_32 = arith.constant 0 : index
    %c0_33 = arith.constant 0 : index
    %76 = vector.load %arg11[%c0_31, %c0_32, %c0_33] : memref<1x128x32xf32, #tpu.memory_space<vmem>>, vector<1x128x32xf32>
    %77 = vector.shape_cast %76 : vector<1x128x32xf32> to vector<128x32xf32>
    %cst_34 = arith.constant dense<0.000000e+00> : vector<128x1024xf32>
    %78 = tpu.matmul %77, %75, %cst_34 {dimension_numbers = #tpu.dot_dimension_numbers<[1], [0], [0], [1], [0, 0, 1, 1], [], []>} : vector<128x32xf32>, vector<32x1024xf32>, vector<128x1024xf32> -> vector<128x1024xf32>
    %c0_35 = arith.constant 0 : index
    %c0_36 = arith.constant 0 : index
    %79 = vector.load %arg9[%c0_35, %c0_36] : memref<32x1xf32, #tpu.memory_space<vmem>>, vector<32x1xf32>
    %80 = vector.broadcast %79 : vector<32x1xf32> to vector<32x1024xf32>
    %81 = vector.broadcast %50 : vector<1x1024xf32> to vector<32x1024xf32>
    %82 = arith.cmpf oeq, %80, %81 : vector<32x1024xf32>
    %cst_37 = arith.constant 0.000000e+00 : f32
    %83 = vector.shape_cast %54 : vector<1x1024xf32> to vector<1x1024xf32>
    %84 = vector.broadcast %83 : vector<1x1024xf32> to vector<32x1024xf32>
    %85 = vector.broadcast %cst_37 : f32 to vector<32x1024xf32>
    %86 = arith.select %82, %84, %85 : vector<32x1024xi1>, vector<32x1024xf32>
    %cst_38 = arith.constant 1.000000e+00 : f32
    %87 = vector.broadcast %cst_38 : f32 to vector<1x1024xf32>
    %88 = arith.addf %50, %87 : vector<1x1024xf32>
    %89 = vector.broadcast %79 : vector<32x1xf32> to vector<32x1024xf32>
    %90 = vector.broadcast %88 : vector<1x1024xf32> to vector<32x1024xf32>
    %91 = arith.cmpf oeq, %89, %90 : vector<32x1024xf32>
    %cst_39 = arith.constant 0.000000e+00 : f32
    %92 = vector.shape_cast %52 : vector<1x1024xf32> to vector<1x1024xf32>
    %93 = vector.broadcast %92 : vector<1x1024xf32> to vector<32x1024xf32>
    %94 = vector.broadcast %cst_39 : f32 to vector<32x1024xf32>
    %95 = arith.select %91, %93, %94 : vector<32x1024xi1>, vector<32x1024xf32>
    %96 = arith.addf %86, %95 : vector<32x1024xf32>
    %97 = tpu.concatenate %96, %96, %96, %96 in 0 : vector<32x1024xf32>, vector<32x1024xf32>, vector<32x1024xf32>, vector<32x1024xf32> -> vector<128x1024xf32>
    %c0_40 = arith.constant 0 : index
    %c0_41 = arith.constant 0 : index
    %98 = vector.load %arg10[%c0_40, %c0_41] : memref<4x128xf32, #tpu.memory_space<vmem>>, vector<4x128xf32>
    %99 = arith.mulf %78, %97 : vector<128x1024xf32>
    %cst_42 = arith.constant dense<0.000000e+00> : vector<4x1024xf32>
    %100 = tpu.matmul %98, %99, %cst_42 {dimension_numbers = #tpu.dot_dimension_numbers<[1], [0], [0], [1], [0, 0, 1, 1], [], []>} : vector<4x128xf32>, vector<128x1024xf32>, vector<4x1024xf32> -> vector<4x1024xf32>
    %c0_43 = arith.constant 0 : index
    %c0_44 = arith.constant 0 : index
    %c0_45 = arith.constant 0 : index
    %101 = vector.load %arg12[%c0_43, %c0_44, %c0_45] : memref<1x4x1024xf32, #tpu.memory_space<vmem>>, vector<1x4x1024xf32>
    %102 = vector.shape_cast %101 : vector<1x4x1024xf32> to vector<4x1024xf32>
    %103 = vector.shape_cast %100 : vector<4x1024xf32> to vector<1x4x1024xf32>
    tpu.vector_store %arg12[%c0_43, %c0_44, %c0_45], %103 {strides = array<i32>} : memref<1x4x1024xf32, #tpu.memory_space<vmem>>, vector<1x4x1024xf32>,
    return
  }
  func.func @transform_0(%arg0: i32) -> (i32, i32, i32) {
    %c0_i32 = arith.constant 0 : i32
    %c0_i32_0 = arith.constant 0 : i32
    %c0_i32_1 = arith.constant 0 : i32
    return %arg0, %c0_i32, %c0_i32_0 : i32, i32, i32
  }
  func.func @transform_1(%arg0: i32) -> (i32, i32) {
    %c0_i32 = arith.constant 0 : i32
    %c0_i32_0 = arith.constant 0 : i32
    %c0_i32_1 = arith.constant 0 : i32
    return %c0_i32, %c0_i32_0 : i32, i32
  }
  func.func @transform_2(%arg0: i32) -> (i32, i32) {
    %c0_i32 = arith.constant 0 : i32
    %c0_i32_0 = arith.constant 0 : i32
    %c0_i32_1 = arith.constant 0 : i32
    return %c0_i32, %c0_i32_0 : i32, i32
  }
  func.func @transform_3(%arg0: i32) -> (i32, i32) {
    %c0_i32 = arith.constant 0 : i32
    %c0_i32_0 = arith.constant 0 : i32
    %c0_i32_1 = arith.constant 0 : i32
    return %c0_i32, %c0_i32_0 : i32, i32
  }
  func.func @transform_4(%arg0: i32) -> (i32, i32) {
    %c0_i32 = arith.constant 0 : i32
    %c0_i32_0 = arith.constant 0 : i32
    %c0_i32_1 = arith.constant 0 : i32
    return %c0_i32, %c0_i32_0 : i32, i32
  }
  func.func @transform_5(%arg0: i32) -> (i32, i32) {
    %c0_i32 = arith.constant 0 : i32
    %c0_i32_0 = arith.constant 0 : i32
    %c0_i32_1 = arith.constant 0 : i32
    return %c0_i32, %c0_i32_0 : i32, i32
  }
  func.func @transform_6(%arg0: i32) -> (i32, i32) {
    %c0_i32 = arith.constant 0 : i32
    %c0_i32_0 = arith.constant 0 : i32
    %c0_i32_1 = arith.constant 0 : i32
    return %c0_i32, %c0_i32_0 : i32, i32
  }
  func.func @transform_7(%arg0: i32) -> (i32, i32) {
    %c0_i32 = arith.constant 0 : i32
    %c0_i32_0 = arith.constant 0 : i32
    %c0_i32_1 = arith.constant 0 : i32
    return %c0_i32, %c0_i32_0 : i32, i32
  }
  func.func @transform_8(%arg0: i32) -> (i32, i32) {
    %c0_i32 = arith.constant 0 : i32
    %c0_i32_0 = arith.constant 0 : i32
    %c0_i32_1 = arith.constant 0 : i32
    return %c0_i32, %c0_i32_0 : i32, i32
  }
  func.func @transform_9(%arg0: i32) -> (i32, i32) {
    %c0_i32 = arith.constant 0 : i32
    %c0_i32_0 = arith.constant 0 : i32
    %c0_i32_1 = arith.constant 0 : i32
    return %c0_i32, %c0_i32_0 : i32, i32
  }
  func.func @transform_10(%arg0: i32) -> (i32, i32, i32) {
    %c0_i32 = arith.constant 0 : i32
    %c0_i32_0 = arith.constant 0 : i32
    %c0_i32_1 = arith.constant 0 : i32
    return %arg0, %c0_i32, %c0_i32_0 : i32, i32, i32
  }
  func.func @transform_11(%arg0: i32) -> (i32, i32, i32) {
    %c0_i32 = arith.constant 0 : i32
    %c0_i32_0 = arith.constant 0 : i32
    %c0_i32_1 = arith.constant 0 : i32
    return %arg0, %c0_i32, %c0_i32_0 : i32, i32, i32
  }
}

</mosaic_0001>

<bundles_post_ra>
// kernel: tile.13
= control target key start
LH: loop header
LB: loop body
LE: loop exit
PB: predicated region body
PF: predicated region fallthrough
CT: control target
= control target key end

     0   :  { %s28_s0 = inlined_call_operand.vmem [shape: f32[10], index: 0, kind: input, shape index: {}]   ;;  %s29_s1 = inlined_call_operand.vmem [shape: f32[14,10], index: 1, kind: output, shape index: {}]  }
   0x1   :  { %v4_v0 = vld [vmem:[%s28_s0] ss:$0 sm:$0xff] }
   0x2   :  { %5 = vst [vmem:[%s29_s1] sm:$0xff] %v4_v0  ;;  %8 = vst [vmem:[%s29_s1 + $0x8] sm:$0xff] %v4_v0 }

// kernel: tile.14
= control target key start
LH: loop header
LB: loop body
LE: loop exit
PB: predicated region body
PF: predicated region fallthrough
CT: control target
= control target key end

     0   :  { %vm9_vm0 = vcmask 64512   ;;  %s130_s12 = smov 120   ;;  %s131_s13 = smov 100   ;;  %vm3_vm1 = vcmask 80896   ;;  %vm13_vm2 = vcmask 15360   ;;  %vm16_vm3 = vcmask 1048512   ;;  %s204_s0 = inlined_call_operand.vmem [shape: f32[14,10], index: 0, kind: input, shape index: {}]   ;;  %s205_s1 = inlined_call_operand.vmem [shape: f32[1,140], index: 1, kind: output, shape index: {}]  }
   0x1   :  { %v102_v0 = vld [vmem:[%s204_s0 + $0xc] sm:$0x1]   ;;  %v105_v3 = vld [vmem:[%s204_s0 + $0xa] sm:$0x1]   ;;  %v104_v4 = vld [vmem:[%s204_s0 + $0xb] sm:$0x1]  }
   0x2   :  { %v103_v1 = vld [vmem:[%s204_s0 + $0xc] sm:$0x1]   ;;  %26 = vrot.lane.b32.xlu1 %v105_v3, %s131_s13  ;;  %v106_v5 = vld [vmem:[%s204_s0 + $0x9] sm:$0x1]   ;;  %s132_s18 = smov 110   ;;  %s133_s19 = smov 90  }
   0x3   :  { %v10_v2 = vsel %vm9_vm0, %v103_v1, %v102_v0  ;;  %v107_v6 = vld [vmem:[%s204_s0 + $0x8] sm:$0x1]   ;;  %v108_v7 = vld [vmem:[%s204_s0 + $0x7] sm:$0x1]   ;;  %v2_v8 = vld [vmem:[%s204_s0] sm:$0x1]  }
   0x4   :  { %11 = vrot.lane.b32.xlu0 %v10_v2, %s130_s12  ;;  %4 = vst.msk [vmem:[#allocation0] sm:$0x1] %vm3_vm1, %v2_v8   ;;  %s134_s26 = smov 80   ;;  %s135_s27 = smov 70   ;;  %v109_v9 = vld [vmem:[%s204_s0 + $0x6] sm:$0x1]  }
   0x5   :  { %v110_v10 = vld [vmem:[%s204_s0 + $0x5] sm:$0x1]   ;;  %s136_s3 = smov 60   ;;  %s137_s4 = smov 50   ;;  %v111_v11 = vld [vmem:[%s204_s0 + $0x4] sm:$0x1]  }
   0x6   :  { %32 = vrot.lane.b32.xlu1 %v106_v5, %s133_s19  ;;  %v112_v12 = vld [vmem:[%s204_s0 + $0x3] sm:$0x1]   ;;  %s138_s9 = smov 40   ;;  %s139_s10 = smov 30   ;;  %v113_v13 = vld [vmem:[%s204_s0 + $0x2] sm:$0x1]  }
   0x7   :  { %v114_v14 = vld [vmem:[%s204_s0 + $0x1] sm:$0x1]   ;;  %s140_s15 = smov 20   ;;  %s141_s16 = smov 10   ;;  %v115_v15 = vld [vmem:[%s204_s0 + $0xd] sm:$0x1]  }
   0x8   :  { %20 = vrot.lane.b32.xlu0 %v104_v4, %s132_s18  ;;  %s142_s0 = smov 2   ;;  %vm22_vm4 = vcmask 982896   ;;  %vm28_vm5 = vcmask 900896   ;;  %vm34_vm6 = vcmask 818896   ;;  %vm40_vm7 = vcmask 736896  }
   0x9   :  { %vm46_vm8 = vcmask 654896   ;;  %vm52_vm9 = vcmask 572896   ;;  %vm58_vm10 = vcmask 490896   ;;  %vm64_vm11 = vcmask 408896  }
   0xa   :  { %44 = vrot.lane.b32.xlu1 %v108_v7, %s135_s27  ;;  %vm70_vm12 = vcmask 326896   ;;  %vm76_vm13 = vcmask 244896   ;;  %vm82_vm14 = vcmask 162896   ;;  %vm88_vm15 = vcmask 97296  }
   0xc   :  { %38 = vrot.lane.b32.xlu0 %v107_v6, %s134_s26 }
   0xe   :  { %56 = vrot.lane.b32.xlu1 %v110_v10, %s137_s4 }
  0x10   :  { %50 = vrot.lane.b32.xlu0 %v109_v9, %s136_s3 }
  0x12   :  { %68 = vrot.lane.b32.xlu1 %v112_v12, %s139_s10 }
  0x14   :  { %62 = vrot.lane.b32.xlu0 %v111_v11, %s138_s9 }
  0x16   :  { %80 = vrot.lane.b32.xlu1 %v114_v14, %s141_s16 }
  0x18   :  { %74 = vrot.lane.b32.xlu0 %v113_v13, %s140_s15 }
  0x1c   :  { %86 = vrot.lane.b32.xlu0 %v115_v15, %s142_s0 }
  0x74   :  { %v27_v17 = vpop.permute.xlu1 %26  }
  0x76   :  { %v12_v16 = vpop.permute.xlu0 %11  }
  0x77   :  { %15 = vst.msk [vmem:[#allocation0 + $0x8] sm:$0x1] %vm13_vm2, %v12_v16  }
  0x78   :  { %17 = vst.msk [vmem:[#allocation0] sm:$0x1] %vm16_vm3, %v12_v16   ;;  %v33_v19 = vpop.permute.xlu1 %32  }
  0x7a   :  { %v21_v18 = vpop.permute.xlu0 %20  }
  0x7b   :  { %23 = vst.msk [vmem:[#allocation0] sm:$0x1] %vm22_vm4, %v21_v18  }
  0x7c   :  { %29 = vst.msk [vmem:[#allocation0] sm:$0x1] %vm28_vm5, %v27_v17   ;;  %v45_v21 = vpop.permute.xlu1 %44  }
  0x7d   :  { %35 = vst.msk [vmem:[#allocation0] sm:$0x1] %vm34_vm6, %v33_v19  }
  0x7e   :  { %v39_v20 = vpop.permute.xlu0 %38  }
  0x7f   :  { %41 = vst.msk [vmem:[#allocation0] sm:$0x1] %vm40_vm7, %v39_v20  }
  0x80   :  { %47 = vst.msk [vmem:[#allocation0] sm:$0x1] %vm46_vm8, %v45_v21   ;;  %v57_v23 = vpop.permute.xlu1 %56  }
  0x82   :  { %v51_v22 = vpop.permute.xlu0 %50  }
  0x83   :  { %53 = vst.msk [vmem:[#allocation0] sm:$0x1] %vm52_vm9, %v51_v22  }
  0x84   :  { %59 = vst.msk [vmem:[#allocation0] sm:$0x1] %vm58_vm10, %v57_v23   ;;  %v69_v25 = vpop.permute.xlu1 %68  }
  0x86   :  { %v63_v24 = vpop.permute.xlu0 %62  }
  0x87   :  { %65 = vst.msk [vmem:[#allocation0] sm:$0x1] %vm64_vm11, %v63_v24  }
  0x88   :  { %71 = vst.msk [vmem:[#allocation0] sm:$0x1] %vm70_vm12, %v69_v25   ;;  %v81_v27 = vpop.permute.xlu1 %80  }
  0x8a   :  { %v75_v26 = vpop.permute.xlu0 %74  }
  0x8b   :  { %77 = vst.msk [vmem:[#allocation0] sm:$0x1] %vm76_vm13, %v75_v26  }
  0x8c   :  { %83 = vst.msk [vmem:[#allocation0] sm:$0x1] %vm82_vm14, %v81_v27  }
  0x8e   :  { %v87_v28 = vpop.permute.xlu0 %86  }
  0x8f   :  { %90 = vst.msk [vmem:[#allocation0 + $0x8] sm:$0x1] %vm88_vm15, %v87_v28  }
  0x93   :  { %v94_v29 = vld [vmem:[#allocation0] sm:$0x1] }
  0x94   :  { %96 = vst [vmem:[%s205_s1] sm:$0x1] %v94_v29 }
  0x96   :  { %v98_v30 = vld [vmem:[#allocation0 + $0x8] sm:$0x1] }
  0x97   :  { %116 = vst [vmem:[%s205_s1 + $0x1] sm:$0x1] %v98_v30 }

// kernel: stn_forward.3
= control target key start
LH: loop header
LB: loop body
LE: loop exit
PB: predicated region body
PF: predicated region fallthrough
CT: control target
= control target key end

     0   :  { %v8413_v3 = vmov 0.0   ;;  %vm287_vm0 = vcmask 1046528   ;;  %vm528_vm1 = vcmask 1045504   ;;  %vm3749_vm2 = vcmask 1043456   ;;  %s8404_s2 = inlined_call_operand.vmem [shape: f32[2,5,128,140], index: 2, kind: input, shape index: {}]   ;;  %s8405_s1 = inlined_call_operand.vmem [shape: f32[2,16,128], index: 1, kind: input, shape index: {}]   ;;  %s8406_s0 = inlined_call_operand.vmem [shape: f32[2,16,128], index: 0, kind: input, shape index: {}]   ;;  %s8407_s6 = inlined_call_operand.vmem [shape: f32[140,10], index: 6, kind: input, shape index: {}]   ;;  %s8408_s3 = inlined_call_operand.vmem [shape: f32[1,140], index: 3, kind: input, shape index: {}]   ;;  %s8409_s7 = inlined_call_operand.vmem [shape: f32[10,140], index: 7, kind: input, shape index: {}]   ;;  %s8410_s4 = inlined_call_operand.vmem [shape: f32[1,10], index: 4, kind: input, shape index: {}]   ;;  %s8411_s5 = inlined_call_operand.vmem [shape: f32[1,10], index: 5, kind: input, shape index: {}]   ;;  %s8412_s8 = inlined_call_operand.vmem [shape: f32[2,14,140], index: 8, kind: output, shape index: {}]  }
   0x1   :  { %v4114_v0 = vld [vmem:[%s8404_s2 + $0x108] sm:$0xff]  ;;  %v4116_v1 = vld [vmem:[%s8404_s2 + $0x118] sm:$0xff]  ;;  %162 = vmatprep.mubr.f32.mxu0 %v8413_v3  ;;  %745 = vmatprep.mubr.f32.mxu1 %v8413_v3  ;;  %v4113_v6 = vld [vmem:[%s8404_s2 + $0x100] sm:$0xff]  ;;  %vm5904_vm3 = vmmov 1   ;;  %vm2018_vm5 = vcmask 95232   ;;  %vm2016_vm6 = vcmask 97280  }
   0x2   :  { %v4274_v2 = vld [vmem:[%s8404_s2 + $0x608] sm:$0xff]  ;;  %v5961_v4 = vpack.c.bf16 %v4116_v1, %v4114_v0  ;;  %v4276_v5 = vld [vmem:[%s8404_s2 + $0x618] sm:$0xff]  ;;  %v4115_v7 = vld [vmem:[%s8404_s2 + $0x110] sm:$0xff]  ;;  %vm3916_vm7 = vcmask 1041408   ;;  %vm3912_vm9 = vcmask 80896  }
   0x3   :  { %v5972_v8 = vpack.c.bf16 %v4276_v5, %v4274_v2  ;;  %v5974_v9 = vpack.c.bf16 %v4115_v7, %v4113_v6  ;;  %v4273_v10 = vld [vmem:[%s8404_s2 + $0x600] sm:$0xff]  ;;  %v4275_v11 = vld [vmem:[%s8404_s2 + $0x610] sm:$0xff]  ;;  %v4118_v12 = vld [vmem:[%s8404_s2 + $0x128] sm:$0xff] }
   0x4   :  { %4420 = vmatprep.subr.bf16.mxu0 %v5961_v4  ;;  %v5986_v13 = vpack.c.bf16 %v4275_v11, %v4273_v10  ;;  %v4120_v14 = vld [vmem:[%s8404_s2 + $0x138] sm:$0xff]  ;;  %v4278_v15 = vld [vmem:[%s8404_s2 + $0x628] sm:$0xff]  ;;  %v4117_v19 = vld [vmem:[%s8404_s2 + $0x120] sm:$0xff] }
   0x5   :  { %v4280_v16 = vld [vmem:[%s8404_s2 + $0x638] sm:$0xff]  ;;  %4580 = vmatprep.subr.bf16.mxu1 %v5972_v8  ;;  %4422 = vmatpush1.bf16.msra.mxu0 %v5974_v9  ;;  %v5999_v17 = vpack.c.bf16 %v4120_v14, %v4118_v12  ;;  %v4119_v20 = vld [vmem:[%s8404_s2 + $0x130] sm:$0xff]  ;;  %v4277_v21 = vld [vmem:[%s8404_s2 + $0x620] sm:$0xff] }
   0x6   :  { %v6001_v18 = vpack.c.bf16 %v4280_v16, %v4278_v15  ;;  %4582 = vmatpush1.bf16.msra.mxu1 %v5986_v13  ;;  %v6013_v22 = vpack.c.bf16 %v4119_v20, %v4117_v19  ;;  %v4279_v23 = vld [vmem:[%s8404_s2 + $0x630] sm:$0xff]  ;;  %v4122_v24 = vld [vmem:[%s8404_s2 + $0x148] sm:$0xff]  ;;  %v4124_v25 = vld [vmem:[%s8404_s2 + $0x158] sm:$0xff] }
   0x7   :  { %4424 = vmatprep.subr.bf16.mxu0 %v5999_v17  ;;  %v6026_v26 = vpack.c.bf16 %v4279_v23, %v4277_v21  ;;  %v6028_v27 = vpack.c.bf16 %v4124_v25, %v4122_v24  ;;  %v4282_v28 = vld [vmem:[%s8404_s2 + $0x648] sm:$0xff]  ;;  %v4284_v29 = vld [vmem:[%s8404_s2 + $0x658] sm:$0xff]  ;;  %v4121_v30 = vld [vmem:[%s8404_s2 + $0x140] sm:$0xff] }
   0x8   :  { %4584 = vmatprep.subr.bf16.mxu1 %v6001_v18  ;;  %v6039_v31 = vpack.c.bf16 %v4284_v29, %v4282_v28  ;;  %v4123_v32 = vld [vmem:[%s8404_s2 + $0x150] sm:$0xff]  ;;  %v4281_v33 = vld [vmem:[%s8404_s2 + $0x640] sm:$0xff]  ;;  %v4126_v36 = vld [vmem:[%s8404_s2 + $0x168] sm:$0xff] }
   0x9   :  { %v4283_v34 = vld [vmem:[%s8404_s2 + $0x650] sm:$0xff]  ;;  %4426 = vmatpush1.bf16.msra.mxu0 %v6013_v22  ;;  %v6051_v35 = vpack.c.bf16 %v4123_v32, %v4121_v30  ;;  %v4128_v37 = vld [vmem:[%s8404_s2 + $0x178] sm:$0xff]  ;;  %v4286_v38 = vld [vmem:[%s8404_s2 + $0x668] sm:$0xff] }
   0xa   :  { %4586 = vmatpush1.bf16.msra.mxu1 %v6026_v26  ;;  %4428 = vmatprep.subr.bf16.mxu0 %v6028_v27  ;;  %v6064_v39 = vpack.c.bf16 %v4283_v34, %v4281_v33  ;;  %v6066_v40 = vpack.c.bf16 %v4128_v37, %v4126_v36  ;;  %v4288_v41 = vld [vmem:[%s8404_s2 + $0x678] sm:$0xff]  ;;  %v4125_v42 = vld [vmem:[%s8404_s2 + $0x160] sm:$0xff]  ;;  %v4127_v43 = vld [vmem:[%s8404_s2 + $0x170] sm:$0xff] }
   0xb   :  { %4588 = vmatprep.subr.bf16.mxu1 %v6039_v31  ;;  %v6078_v44 = vpack.c.bf16 %v4288_v41, %v4286_v38  ;;  %v4285_v45 = vld [vmem:[%s8404_s2 + $0x660] sm:$0xff]  ;;  %v4287_v46 = vld [vmem:[%s8404_s2 + $0x670] sm:$0xff]  ;;  %v4130_v47 = vld [vmem:[%s8404_s2 + $0x188] sm:$0xff]  ;;  %v6099_v51 = vpack.c.bf16 %v4127_v43, %v4125_v42 }
   0xc   :  { %v4132_v48 = vld [vmem:[%s8404_s2 + $0x198] sm:$0xff]  ;;  %v4290_v49 = vld [vmem:[%s8404_s2 + $0x688] sm:$0xff]  ;;  %v6103_v52 = vpack.c.bf16 %v4287_v46, %v4285_v45  ;;  %v4129_v54 = vld [vmem:[%s8404_s2 + $0x180] sm:$0xff] }
   0xd   :  { %v4292_v50 = vld [vmem:[%s8404_s2 + $0x698] sm:$0xff]  ;;  %4430 = vmatpush1.bf16.msra.mxu0 %v6051_v35  ;;  %v6105_v53 = vpack.c.bf16 %v4132_v48, %v4130_v47  ;;  %v4131_v55 = vld [vmem:[%s8404_s2 + $0x190] sm:$0xff]  ;;  %v4289_v56 = vld [vmem:[%s8404_s2 + $0x680] sm:$0xff] }
   0xe   :  { %4590 = vmatpush1.bf16.msra.mxu1 %v6064_v39  ;;  %4432 = vmatprep.subr.bf16.mxu0 %v6066_v40  ;;  %v6117_v57 = vpack.c.bf16 %v4292_v50, %v4290_v49  ;;  %v4291_v58 = vld [vmem:[%s8404_s2 + $0x690] sm:$0xff]  ;;  %v4134_v59 = vld [vmem:[%s8404_s2 + $0x1a8] sm:$0xff]  ;;  %v4136_v60 = vld [vmem:[%s8404_s2 + $0x1b8] sm:$0xff]  ;;  %v6135_v63 = vpack.c.bf16 %v4131_v55, %v4129_v54 }
   0xf   :  { %4592 = vmatprep.subr.bf16.mxu1 %v6078_v44  ;;  %v4294_v61 = vld [vmem:[%s8404_s2 + $0x6a8] sm:$0xff]  ;;  %v4296_v62 = vld [vmem:[%s8404_s2 + $0x6b8] sm:$0xff]  ;;  %v6139_v0 = vpack.c.bf16 %v4291_v58, %v4289_v56  ;;  %v6141_v1 = vpack.c.bf16 %v4136_v60, %v4134_v59  ;;  %v4133_v2 = vld [vmem:[%s8404_s2 + $0x1a0] sm:$0xff] }
  0x10   :  { %v4135_v5 = vld [vmem:[%s8404_s2 + $0x1b0] sm:$0xff]  ;;  %v4293_v6 = vld [vmem:[%s8404_s2 + $0x6a0] sm:$0xff]  ;;  %v6153_v7 = vpack.c.bf16 %v4296_v62, %v4294_v61  ;;  %v4138_v11 = vld [vmem:[%s8404_s2 + $0x1c8] sm:$0xff] }
  0x11   :  { %4434 = vmatpush1.bf16.msra.mxu0 %v6099_v51  ;;  %v4295_v10 = vld [vmem:[%s8404_s2 + $0x6b0] sm:$0xff]  ;;  %v4140_v12 = vld [vmem:[%s8404_s2 + $0x1d8] sm:$0xff]  ;;  %v4298_v14 = vld [vmem:[%s8404_s2 + $0x6c8] sm:$0xff]  ;;  %v6171_v16 = vpack.c.bf16 %v4135_v5, %v4133_v2 }
  0x12   :  { %4594 = vmatpush1.bf16.msra.mxu1 %v6103_v52  ;;  %4436 = vmatprep.subr.bf16.mxu0 %v6105_v53  ;;  %v4300_v15 = vld [vmem:[%s8404_s2 + $0x6d8] sm:$0xff]  ;;  %v6175_v19 = vpack.c.bf16 %v4295_v10, %v4293_v6  ;;  %v6177_v20 = vpack.c.bf16 %v4140_v12, %v4138_v11  ;;  %v4137_v21 = vld [vmem:[%s8404_s2 + $0x1c0] sm:$0xff]  ;;  %v4139_v23 = vld [vmem:[%s8404_s2 + $0x1d0] sm:$0xff] }
  0x13   :  { %4596 = vmatprep.subr.bf16.mxu1 %v6117_v57  ;;  %v4297_v24 = vld [vmem:[%s8404_s2 + $0x6c0] sm:$0xff]  ;;  %v6189_v25 = vpack.c.bf16 %v4300_v15, %v4298_v14  ;;  %v4299_v28 = vld [vmem:[%s8404_s2 + $0x6d0] sm:$0xff]  ;;  %v4142_v29 = vld [vmem:[%s8404_s2 + $0x1e8] sm:$0xff]  ;;  %v6207_v34 = vpack.c.bf16 %v4139_v23, %v4137_v21 }
  0x14   :  { %v4144_v30 = vld [vmem:[%s8404_s2 + $0x1f8] sm:$0xff]  ;;  %v4302_v32 = vld [vmem:[%s8404_s2 + $0x6e8] sm:$0xff]  ;;  %v6211_v36 = vpack.c.bf16 %v4299_v28, %v4297_v24  ;;  %v4141_v38 = vld [vmem:[%s8404_s2 + $0x1e0] sm:$0xff] }
  0x15   :  { %4438 = vmatpush1.bf16.msra.mxu0 %v6135_v63  ;;  %8673 = vst [vmem:[#allocation2_spill] sm:$0xff] %v6189_v25  ;;  %v4304_v33 = vld [vmem:[%s8404_s2 + $0x6f8] sm:$0xff]  ;;  %8674 = vst [vmem:[#allocation3_spill] sm:$0xff] %v6207_v34  ;;  %v6213_v37 = vpack.c.bf16 %v4144_v30, %v4142_v29  ;;  %v4143_v41 = vld [vmem:[%s8404_s2 + $0x1f0] sm:$0xff] }
  0x16   :  { %4598 = vmatpush1.bf16.msra.mxu1 %v6139_v0  ;;  %4440 = vmatprep.subr.bf16.mxu0 %v6141_v1  ;;  %8675 = vst [vmem:[#allocation4_spill] sm:$0xff] %v6211_v36  ;;  %v4301_v42 = vld [vmem:[%s8404_s2 + $0x6e0] sm:$0xff]  ;;  %v6225_v43 = vpack.c.bf16 %v4304_v33, %v4302_v32  ;;  %v4303_v45 = vld [vmem:[%s8404_s2 + $0x6f0] sm:$0xff]  ;;  %v34_v46 = vld [vmem:[%s8404_s2 + $0x8] sm:$0xff]  ;;  %v6243_v50 = vpack.c.bf16 %v4143_v41, %v4141_v38 }
  0x17   :  { %4600 = vmatprep.subr.bf16.mxu1 %v6153_v7  ;;  %8676 = vst [vmem:[#allocation5_spill] sm:$0xff] %v6213_v37  ;;  %v36_v47 = vld [vmem:[%s8404_s2 + $0x18] sm:$0xff]  ;;  %v4242_v48 = vld [vmem:[%s8404_s2 + $0x508] sm:$0xff]  ;;  %v6247_v54 = vpack.c.bf16 %v4303_v45, %v4301_v42  ;;  %v33_v56 = vld [vmem:[%s8404_s2] sm:$0xff] }
  0x18   :  { %8677 = vst [vmem:[#allocation6_spill] sm:$0xff] %v6225_v43  ;;  %v4244_v49 = vld [vmem:[%s8404_s2 + $0x518] sm:$0xff]  ;;  %8678 = vst [vmem:[#allocation7_spill] sm:$0xff] %v6243_v50  ;;  %v6249_v55 = vpack.c.bf16 %v36_v47, %v34_v46  ;;  %v35_v58 = vld [vmem:[%s8404_s2 + $0x10] sm:$0xff] }
  0x19   :  { %4442 = vmatpush1.bf16.msra.mxu0 %v6171_v16  ;;  %8679 = vst [vmem:[#allocation8_spill] sm:$0xff] %v6247_v54  ;;  %v4241_v59 = vld [vmem:[%s8404_s2 + $0x500] sm:$0xff]  ;;  %v6261_v60 = vpack.c.bf16 %v4244_v49, %v4242_v48  ;;  %v4243_v61 = vld [vmem:[%s8404_s2 + $0x510] sm:$0xff]  ;;  %v38_v62 = vld [vmem:[%s8404_s2 + $0x28] sm:$0xff]  ;;  %v6284_v11 = vpack.c.bf16 %v35_v58, %v33_v56 }
  0x1a   :  { %4602 = vmatpush1.bf16.msra.mxu1 %v6175_v19  ;;  %4444 = vmatprep.subr.bf16.mxu0 %v6177_v20  ;;  %8680 = vst [vmem:[#allocation9_spill] sm:$0xff] %v6249_v55  ;;  %v40_v2 = vld [vmem:[%s8404_s2 + $0x38] sm:$0xff]  ;;  %v4246_v5 = vld [vmem:[%s8404_s2 + $0x528] sm:$0xff]  ;;  %v6282_v10 = vld [vmem:[%s8405_s1] sm:$0xff]  ;;  %v6288_v12 = vpack.c.bf16 %v4243_v61, %v4241_v59 }
  0x1b   :  { %4604 = vmatprep.subr.bf16.mxu1 %v6189_v25  ;;  %8681 = vst [vmem:[#allocation10_spill] sm:$0xff] %v6261_v60  ;;  %v4248_v6 = vld [vmem:[%s8404_s2 + $0x538] sm:$0xff]  ;;  %8682 = vst [vmem:[#allocation11_spill] sm:$0xff] %v6284_v11  ;;  %v6290_v14 = vpack.c.bf16 %v40_v2, %v38_v62  ;;  %v37_v15 = vld [vmem:[%s8404_s2 + $0x20] sm:$0xff] }
  0x1c   :  { %8683 = vst [vmem:[#allocation12_spill] sm:$0xff] %v6288_v12  ;;  %v39_v21 = vld [vmem:[%s8404_s2 + $0x30] sm:$0xff]  ;;  %v4245_v23 = vld [vmem:[%s8404_s2 + $0x520] sm:$0xff]  ;;  %v6302_v24 = vpack.c.bf16 %v4248_v6, %v4246_v5  ;;  %v42_v29 = vld [vmem:[%s8404_s2 + $0x48] sm:$0xff] }
  0x1d   :  { %4446 = vmatpush1.bf16.msra.mxu0 %v6207_v34  ;;  %8684 = vst [vmem:[#allocation13_spill] sm:$0xff] %v6290_v14  ;;  %v4247_v28 = vld [vmem:[%s8404_s2 + $0x530] sm:$0xff]  ;;  %v44_v30 = vld [vmem:[%s8404_s2 + $0x58] sm:$0xff]  ;;  %v4250_v32 = vld [vmem:[%s8404_s2 + $0x548] sm:$0xff]  ;;  %v6322_v38 = vpack.c.bf16 %v39_v21, %v37_v15 }
  0x1e   :  { %4606 = vmatpush1.bf16.msra.mxu1 %v6211_v36  ;;  %4448 = vmatprep.subr.bf16.mxu0 %v6213_v37  ;;  %8685 = vst [vmem:[#allocation14_spill] sm:$0xff] %v6302_v24  ;;  %v4252_v33 = vld [vmem:[%s8404_s2 + $0x558] sm:$0xff]  ;;  %v6326_v41 = vpack.c.bf16 %v4247_v28, %v4245_v23  ;;  %v6328_v42 = vpack.c.bf16 %v44_v30, %v42_v29  ;;  %v41_v45 = vld [vmem:[%s8404_s2 + $0x40] sm:$0xff]  ;;  %v43_v46 = vld [vmem:[%s8404_s2 + $0x50] sm:$0xff] }
  0x1f   :  { %4608 = vmatprep.subr.bf16.mxu1 %v6225_v43  ;;  %8686 = vst [vmem:[#allocation15_spill] sm:$0xff] %v6322_v38  ;;  %v4249_v47 = vld [vmem:[%s8404_s2 + $0x540] sm:$0xff]  ;;  %v6340_v48 = vpack.c.bf16 %v4252_v33, %v4250_v32  ;;  %v4251_v49 = vld [vmem:[%s8404_s2 + $0x550] sm:$0xff]  ;;  %v46_v56 = vld [vmem:[%s8404_s2 + $0x68] sm:$0xff]  ;;  %v6360_v62 = vpack.c.bf16 %v43_v46, %v41_v45 }
  0x20   :  { %8687 = vst [vmem:[#allocation16_spill] sm:$0xff] %v6326_v41  ;;  %8688 = vst [vmem:[#allocation17_spill] sm:$0xff] %v6328_v42  ;;  %v48_v58 = vld [vmem:[%s8404_s2 + $0x78] sm:$0xff]  ;;  %v4254_v59 = vld [vmem:[%s8404_s2 + $0x568] sm:$0xff]  ;;  %v6367_v5 = vpack.c.bf16 %v4251_v49, %v4249_v47 }
  0x21   :  { %4450 = vmatpush1.bf16.msra.mxu0 %v6243_v50  ;;  %8689 = vst [vmem:[#allocation18_spill] sm:$0xff] %v6340_v48  ;;  %v4256_v61 = vld [vmem:[%s8404_s2 + $0x578] sm:$0xff]  ;;  %8690 = vst [vmem:[#allocation19_spill] sm:$0xff] %v6360_v62  ;;  %v45_v2 = vld [vmem:[%s8404_s2 + $0x60] sm:$0xff]  ;;  %v6369_v6 = vpack.c.bf16 %v48_v58, %v46_v56 }
  0x22   :  { %4610 = vmatpush1.bf16.msra.mxu1 %v6247_v54  ;;  %4452 = vmatprep.subr.bf16.mxu0 %v6249_v55  ;;  %8691 = vst [vmem:[#allocation20_spill] sm:$0xff] %v6367_v5  ;;  %v47_v15 = vld [vmem:[%s8404_s2 + $0x70] sm:$0xff]  ;;  %v4253_v21 = vld [vmem:[%s8404_s2 + $0x560] sm:$0xff]  ;;  %v6380_v23 = vld [vmem:[%s8405_s1 + $0x8] sm:$0xff]  ;;  %v6383_v28 = vpack.c.bf16 %v4256_v61, %v4254_v59 }
  0x23   :  { %4612 = vmatprep.subr.bf16.mxu1 %v6261_v60  ;;  %8692 = vst [vmem:[#allocation21_spill] sm:$0xff] %v6369_v6  ;;  %v4255_v29 = vld [vmem:[%s8404_s2 + $0x570] sm:$0xff]  ;;  %v50_v30 = vld [vmem:[%s8404_s2 + $0x88] sm:$0xff]  ;;  %v52_v32 = vld [vmem:[%s8404_s2 + $0x98] sm:$0xff]  ;;  %v6404_v46 = vpack.c.bf16 %v47_v15, %v45_v2 }
  0x24   :  { %163 = vmatmul.mubr.f32.vlgmr.msra.gmra.mrb[0].mxu0 %v6282_v10  ;;  %8693 = vst [vmem:[#allocation22_spill] sm:$0xff] %v6383_v28  ;;  %v4258_v33 = vld [vmem:[%s8404_s2 + $0x588] sm:$0xff]  ;;  %v4260_v45 = vld [vmem:[%s8404_s2 + $0x598] sm:$0xff]  ;;  %v6409_v47 = vpack.c.bf16 %v4255_v29, %v4253_v21  ;;  %v6411_v49 = vpack.c.bf16 %v52_v32, %v50_v30  ;;  %v49_v56 = vld [vmem:[%s8404_s2 + $0x80] sm:$0xff] }
  0x25   :  { %4454 = vmatpush1.bf16.msra.mxu0 %v6284_v11  ;;  %746 = vmatmul.mubr.f32.vlgmr.msra.gmra.mrb[0].mxu1 %v6282_v10  ;;  %8694 = vst [vmem:[#allocation23_spill] sm:$0xff] %v6404_v46  ;;  %v51_v58 = vld [vmem:[%s8404_s2 + $0x90] sm:$0xff]  ;;  %v4257_v59 = vld [vmem:[%s8404_s2 + $0x580] sm:$0xff]  ;;  %v6423_v61 = vpack.c.bf16 %v4260_v45, %v4258_v33  ;;  %v54_v15 = vld [vmem:[%s8404_s2 + $0xa8] sm:$0xff] }
  0x26   :  { %4614 = vmatpush1.bf16.msra.mxu1 %v6288_v12  ;;  %4456 = vmatprep.subr.bf16.mxu0 %v6290_v14  ;;  %8695 = vst [vmem:[#allocation24_spill] sm:$0xff] %v6409_v47  ;;  %8696 = vst [vmem:[#allocation25_spill] sm:$0xff] %v6411_v49  ;;  %v4259_v2 = vld [vmem:[%s8404_s2 + $0x590] sm:$0xff]  ;;  %v56_v21 = vld [vmem:[%s8404_s2 + $0xb8] sm:$0xff]  ;;  %v6441_v32 = vpack.c.bf16 %v51_v58, %v49_v56 }
  0x27   :  { %4616 = vmatprep.subr.bf16.mxu1 %v6302_v24  ;;  %168 = vmatprep.mubr.f32.mxu0 %v8413_v3  ;;  %8697 = vst [vmem:[#allocation26_spill] sm:$0xff] %v6423_v61  ;;  %v4262_v29 = vld [vmem:[%s8404_s2 + $0x5a8] sm:$0xff]  ;;  %v4264_v30 = vld [vmem:[%s8404_s2 + $0x5b8] sm:$0xff]  ;;  %v6445_v33 = vpack.c.bf16 %v4259_v2, %v4257_v59  ;;  %v6447_v45 = vpack.c.bf16 %v56_v21, %v54_v15  ;;  %v4261_v56 = vld [vmem:[%s8404_s2 + $0x5a0] sm:$0xff] }
  0x28   :  { %751 = vmatprep.mubr.f32.mxu1 %v8413_v3  ;;  %169 = vmatmul.mubr.f32.gmra.mrb[2].mxu0 %v6380_v23  ;;  %8698 = vst [vmem:[#allocation27_spill] sm:$0xff] %v6441_v32  ;;  %v6459_v58 = vpack.c.bf16 %v4264_v30, %v4262_v29  ;;  %v4263_v59 = vld [vmem:[%s8404_s2 + $0x5b0] sm:$0xff]  ;;  %v58_v2 = vld [vmem:[%s8404_s2 + $0xc8] sm:$0xff]  ;;  %v60_v15 = vld [vmem:[%s8404_s2 + $0xd8] sm:$0xff] }
  0x29   :  { %4458 = vmatpush1.bf16.msra.mxu0 %v6322_v38  ;;  %752 = vmatmul.mubr.f32.gmra.mrb[2].mxu1 %v6380_v23  ;;  %8699 = vst [vmem:[#allocation28_spill] sm:$0xff] %v6445_v33  ;;  %8700 = vst [vmem:[#allocation29_spill] sm:$0xff] %v6447_v45  ;;  %v4266_v21 = vld [vmem:[%s8404_s2 + $0x5c8] sm:$0xff]  ;;  %v4268_v29 = vld [vmem:[%s8404_s2 + $0x5d8] sm:$0xff] }
  0x2a   :  { %4618 = vmatpush1.bf16.msra.mxu1 %v6326_v41  ;;  %4460 = vmatprep.subr.bf16.mxu0 %v6328_v42  ;;  %8701 = vst [vmem:[#allocation30_spill] sm:$0xff] %v6459_v58  ;;  %v4181_v42 = vld [vmem:[%s8404_s2 + $0x320] sm:$0xff]  ;;  %vm5725_vm4 = vmpackc.low %vm3749_vm2, %vm5904_vm3 }
  0x2b   :  { %4620 = vmatprep.subr.bf16.mxu1 %v6340_v48  ;;  %239 = vmatprep.mubr.f32.mxu0 %v8413_v3  ;;  %v4177_v48 = vld [vmem:[%s8404_s2 + $0x300] sm:$0xff]  ;;  %vm5756_vm8 = vmpackc.low %vm3916_vm7, %vm5904_vm3 }
  0x2c   :  { %822 = vmatprep.mubr.f32.mxu1 %v8413_v3  ;;  %v53_v3 = vld [vmem:[%s8404_s2 + $0xa0] sm:$0xff] }
  0x2d   :  { %4462 = vmatpush1.bf16.msra.mxu0 %v6360_v62  ;;  %v4163_v62 = vld [vmem:[%s8404_s2 + $0x290] sm:$0xff]  ;;  %v4209_v41 = vld [vmem:[%s8404_s2 + $0x400] sm:$0xff] }
  0x2e   :  { %4622 = vmatpush1.bf16.msra.mxu1 %v6367_v5  ;;  %4464 = vmatprep.subr.bf16.mxu0 %v6369_v6  ;;  %v4157_v5 = vld [vmem:[%s8404_s2 + $0x260] sm:$0xff] }
  0x2f   :  { %4624 = vmatprep.subr.bf16.mxu1 %v6383_v28  ;;  %v55_v28 = vld [vmem:[%s8404_s2 + $0xb0] sm:$0xff] }
  0x30   :  { %v6477_v30 = vpack.c.bf16 %v55_v28, %v53_v3  ;;  %v4265_v3 = vld [vmem:[%s8404_s2 + $0x5c0] sm:$0xff]  ;;  %v6495_v28 = vpack.c.bf16 %v4268_v29, %v4266_v21  ;;  %v4272_v21 = vld [vmem:[%s8404_s2 + $0x5f8] sm:$0xff] }
  0x31   :  { %4466 = vmatpush1.bf16.msra.mxu0 %v6404_v46  ;;  %v59_v46 = vld [vmem:[%s8404_s2 + $0xd0] sm:$0xff] }
  0x32   :  { %4626 = vmatpush1.bf16.msra.mxu1 %v6409_v47  ;;  %4468 = vmatprep.subr.bf16.mxu0 %v6411_v49  ;;  %8702 = vst [vmem:[#allocation31_spill] sm:$0xff] %v6477_v30  ;;  %v6483_v49 = vpack.c.bf16 %v60_v15, %v58_v2  ;;  %v57_v47 = vld [vmem:[%s8404_s2 + $0xc0] sm:$0xff]  ;;  %8705 = vst [vmem:[#allocation34_spill] sm:$0xff] %v6495_v28  ;;  %v64_v2 = vld [vmem:[%s8404_s2 + $0xf8] sm:$0xff] }
  0x33   :  { %4628 = vmatprep.subr.bf16.mxu1 %v6423_v61  ;;  %v6481_v61 = vpack.c.bf16 %v4263_v59, %v4261_v56  ;;  %v4267_v56 = vld [vmem:[%s8404_s2 + $0x5d0] sm:$0xff]  ;;  %v62_v59 = vld [vmem:[%s8404_s2 + $0xe8] sm:$0xff]  ;;  %v6513_v29 = vpack.c.bf16 %v59_v46, %v57_v47  ;;  %v4269_v46 = vld [vmem:[%s8404_s2 + $0x5e0] sm:$0xff] }
  0x34   :  { %8704 = vst [vmem:[#allocation33_spill] sm:$0xff] %v6483_v49  ;;  %v4270_v15 = vld [vmem:[%s8404_s2 + $0x5e8] sm:$0xff] }
  0x35   :  { %4470 = vmatpush1.bf16.msra.mxu0 %v6441_v32  ;;  %8703 = vst [vmem:[#allocation32_spill] sm:$0xff] %v6481_v61  ;;  %8706 = vst [vmem:[#allocation35_spill] sm:$0xff] %v6513_v29  ;;  %v63_v32 = vld [vmem:[%s8404_s2 + $0xf0] sm:$0xff]  ;;  %v6531_v47 = vpack.c.bf16 %v4272_v21, %v4270_v15  ;;  %v4308_v15 = vld [vmem:[%s8404_s2 + $0x718] sm:$0xff] }
  0x36   :  { %4630 = vmatpush1.bf16.msra.mxu1 %v6445_v33  ;;  %4472 = vmatprep.subr.bf16.mxu0 %v6447_v45  ;;  %v6519_v45 = vpack.c.bf16 %v64_v2, %v62_v59  ;;  %v61_v33 = vld [vmem:[%s8404_s2 + $0xe0] sm:$0xff]  ;;  %v4148_v59 = vld [vmem:[%s8404_s2 + $0x218] sm:$0xff]  ;;  %v4306_v2 = vld [vmem:[%s8404_s2 + $0x708] sm:$0xff] }
  0x37   :  { %4632 = vmatprep.subr.bf16.mxu1 %v6459_v58  ;;  %v6517_v58 = vpack.c.bf16 %v4267_v56, %v4265_v3  ;;  %8709 = vst [vmem:[#allocation38_spill] sm:$0xff] %v6531_v47  ;;  %v4271_v3 = vld [vmem:[%s8404_s2 + $0x5f0] sm:$0xff]  ;;  %v4146_v56 = vld [vmem:[%s8404_s2 + $0x208] sm:$0xff]  ;;  %v6549_v21 = vpack.c.bf16 %v63_v32, %v61_v33  ;;  %v4305_v32 = vld [vmem:[%s8404_s2 + $0x700] sm:$0xff]  ;;  %v6567_v33 = vpack.c.bf16 %v4308_v15, %v4306_v2 }
  0x38   :  { %8708 = vst [vmem:[#allocation37_spill] sm:$0xff] %v6519_v45  ;;  %v4312_v2 = vld [vmem:[%s8404_s2 + $0x738] sm:$0xff]  ;;  %v6588_v15 = vld [vmem:[%s8406_s0] sm:$0xff] }
  0x39   :  { %4474 = vmatpush1.bf16.msra.mxu0 %v6477_v30  ;;  %8707 = vst [vmem:[#allocation36_spill] sm:$0xff] %v6517_v58  ;;  %8710 = vst [vmem:[#allocation39_spill] sm:$0xff] %v6549_v21  ;;  %v4147_v30 = vld [vmem:[%s8404_s2 + $0x210] sm:$0xff] }
  0x3a   :  { %4634 = vmatpush1.bf16.msra.mxu1 %v6481_v61  ;;  %4476 = vmatprep.subr.bf16.mxu0 %v6483_v49  ;;  %v6555_v49 = vpack.c.bf16 %v4148_v59, %v4146_v56  ;;  %v4145_v61 = vld [vmem:[%s8404_s2 + $0x200] sm:$0xff]  ;;  %8713 = vst [vmem:[#allocation42_spill] sm:$0xff] %v6567_v33  ;;  %v4152_v56 = vld [vmem:[%s8404_s2 + $0x238] sm:$0xff]  ;;  %v4310_v59 = vld [vmem:[%s8404_s2 + $0x728] sm:$0xff] }
  0x3b   :  { %4636 = vmatprep.subr.bf16.mxu1 %v6495_v28  ;;  %v6553_v28 = vpack.c.bf16 %v4271_v3, %v4269_v46  ;;  %v4307_v46 = vld [vmem:[%s8404_s2 + $0x710] sm:$0xff]  ;;  %v4150_v3 = vld [vmem:[%s8404_s2 + $0x228] sm:$0xff] }
  0x3c   :  { %8712 = vst [vmem:[#allocation41_spill] sm:$0xff] %v6555_v49 }
  0x3d   :  { %4478 = vmatpush1.bf16.msra.mxu0 %v6513_v29  ;;  %8711 = vst [vmem:[#allocation40_spill] sm:$0xff] %v6553_v28  ;;  %v4149_v29 = vld [vmem:[%s8404_s2 + $0x220] sm:$0xff] }
  0x3e   :  { %4638 = vmatpush1.bf16.msra.mxu1 %v6517_v58  ;;  %4480 = vmatprep.subr.bf16.mxu0 %v6519_v45  ;;  %v6594_v45 = vpack.c.bf16 %v4307_v46, %v4305_v32  ;;  %v6596_v58 = vpack.c.bf16 %v4152_v56, %v4150_v3  ;;  %v4311_v32 = vld [vmem:[%s8404_s2 + $0x730] sm:$0xff]  ;;  %v4154_v46 = vld [vmem:[%s8404_s2 + $0x248] sm:$0xff]  ;;  %v4156_v3 = vld [vmem:[%s8404_s2 + $0x258] sm:$0xff] }
  0x3f   :  { %4640 = vmatprep.subr.bf16.mxu1 %v6531_v47  ;;  %v6590_v47 = vpack.c.bf16 %v4147_v30, %v4145_v61  ;;  %v4309_v61 = vld [vmem:[%s8404_s2 + $0x720] sm:$0xff]  ;;  %v6608_v30 = vpack.c.bf16 %v4312_v2, %v4310_v59  ;;  %v4314_v56 = vld [vmem:[%s8404_s2 + $0x748] sm:$0xff]  ;;  %v4316_v59 = vld [vmem:[%s8404_s2 + $0x758] sm:$0xff] }
  0x40   :  { %8715 = vst [vmem:[#allocation44_spill] sm:$0xff] %v6594_v45  ;;  %8716 = vst [vmem:[#allocation45_spill] sm:$0xff] %v6596_v58 }
  0x41   :  { %4482 = vmatpush1.bf16.msra.mxu0 %v6549_v21  ;;  %8714 = vst [vmem:[#allocation43_spill] sm:$0xff] %v6590_v47  ;;  %v4151_v21 = vld [vmem:[%s8404_s2 + $0x230] sm:$0xff]  ;;  %8717 = vst [vmem:[#allocation46_spill] sm:$0xff] %v6608_v30 }
  0x42   :  { %4642 = vmatpush1.bf16.msra.mxu1 %v6553_v28  ;;  %4484 = vmatprep.subr.bf16.mxu0 %v6555_v49  ;;  %v6628_v2 = vpack.c.bf16 %v4151_v21, %v4149_v29  ;;  %v6637_v49 = vpack.c.bf16 %v4311_v32, %v4309_v61  ;;  %v6639_v28 = vpack.c.bf16 %v4156_v3, %v4154_v46  ;;  %v4155_v29 = vld [vmem:[%s8404_s2 + $0x250] sm:$0xff]  ;;  %v4313_v21 = vld [vmem:[%s8404_s2 + $0x740] sm:$0xff]  ;;  %v4158_v32 = vld [vmem:[%s8404_s2 + $0x268] sm:$0xff]  ;;  %v8722_v3 = vmov 0.0  }
  0x43   :  { %4644 = vmatprep.subr.bf16.mxu1 %v6567_v33  ;;  %v6633_v33 = vld [vmem:[%s8406_s0 + $0x8] sm:$0xff]  ;;  %v4315_v61 = vld [vmem:[%s8404_s2 + $0x750] sm:$0xff]  ;;  %v4160_v46 = vld [vmem:[%s8404_s2 + $0x278] sm:$0xff] }
  0x44   :  { %240 = vmatmul.mubr.f32.vlgmr.msra.gmra.mrb[0].mxu0 %v6588_v15  ;;  %8718 = vst [vmem:[#allocation47_spill] sm:$0xff] %v6628_v2  ;;  %8719 = vst [vmem:[#allocation48_spill] sm:$0xff] %v6637_v49  ;;  %v6679_v6 = vpack.c.bf16 %v4160_v46, %v4158_v32  ;;  %v4164_v32 = vld [vmem:[%s8404_s2 + $0x298] sm:$0xff]  ;;  %v4322_v46 = vld [vmem:[%s8404_s2 + $0x788] sm:$0xff] }
  0x45   :  { %4486 = vmatpush1.bf16.msra.mxu0 %v6590_v47  ;;  %823 = vmatmul.mubr.f32.vlgmr.msra.gmra.mrb[0].mxu1 %v6588_v15  ;;  %8720 = vst [vmem:[#allocation49_spill] sm:$0xff] %v6639_v28  ;;  %v4153_v47 = vld [vmem:[%s8404_s2 + $0x240] sm:$0xff] }
  0x46   :  { %4646 = vmatpush1.bf16.msra.mxu1 %v6594_v45  ;;  %4488 = vmatprep.subr.bf16.mxu0 %v6596_v58  ;;  %v6651_v45 = vpack.c.bf16 %v4316_v59, %v4314_v56  ;;  %v4320_v56 = vld [vmem:[%s8404_s2 + $0x778] sm:$0xff]  ;;  %v6672_v59 = vpack.c.bf16 %v4155_v29, %v4153_v47  ;;  %v6677_v58 = vpack.c.bf16 %v4315_v61, %v4313_v21  ;;  %v4317_v47 = vld [vmem:[%s8404_s2 + $0x760] sm:$0xff]  ;;  %v4319_v21 = vld [vmem:[%s8404_s2 + $0x770] sm:$0xff] }
  0x47   :  { %4648 = vmatprep.subr.bf16.mxu1 %v6608_v30  ;;  %245 = vmatprep.mubr.f32.mxu0 %v8722_v3  ;;  %v4318_v30 = vld [vmem:[%s8404_s2 + $0x768] sm:$0xff]  ;;  %8725 = vst [vmem:[#allocation53_spill] sm:$0xff] %v6679_v6 }
  0x48   :  { %8721 = vst [vmem:[#allocation50_spill] sm:$0xff] %v6651_v45  ;;  %828 = vmatprep.mubr.f32.mxu1 %v8722_v3  ;;  %246 = vmatmul.mubr.f32.gmra.mrb[2].mxu0 %v6633_v33  ;;  %8723 = vst [vmem:[#allocation51_spill] sm:$0xff] %v6672_v59  ;;  %v6691_v29 = vpack.c.bf16 %v4320_v56, %v4318_v30  ;;  %v4162_v61 = vld [vmem:[%s8404_s2 + $0x288] sm:$0xff]  ;;  %v4324_v30 = vld [vmem:[%s8404_s2 + $0x798] sm:$0xff] }
  0x49   :  { %4490 = vmatpush1.bf16.msra.mxu0 %v6628_v2  ;;  %829 = vmatmul.mubr.f32.gmra.mrb[2].mxu1 %v6633_v33  ;;  %8724 = vst [vmem:[#allocation52_spill] sm:$0xff] %v6677_v58  ;;  %v4159_v2 = vld [vmem:[%s8404_s2 + $0x270] sm:$0xff] }
  0x4a   :  { %4650 = vmatpush1.bf16.msra.mxu1 %v6637_v49  ;;  %4492 = vmatprep.subr.bf16.mxu0 %v6639_v28  ;;  %8726 = vst [vmem:[#allocation54_spill] sm:$0xff] %v6691_v29  ;;  %v6711_v56 = vpack.c.bf16 %v4159_v2, %v4157_v5  ;;  %v6717_v28 = vpack.c.bf16 %v4164_v32, %v4162_v61  ;;  %v4161_v49 = vld [vmem:[%s8404_s2 + $0x280] sm:$0xff]  ;;  %v4168_v61 = vld [vmem:[%s8404_s2 + $0x2b8] sm:$0xff]  ;;  %v4326_v32 = vld [vmem:[%s8404_s2 + $0x7a8] sm:$0xff] }
  0x4b   :  { %4652 = vmatprep.subr.bf16.mxu1 %v6651_v45  ;;  %357 = vmatprep.mubr.f32.mxu0 %v8722_v3  ;;  %v6715_v45 = vpack.c.bf16 %v4319_v21, %v4317_v47  ;;  %v4321_v5 = vld [vmem:[%s8404_s2 + $0x780] sm:$0xff]  ;;  %v6729_v2 = vpack.c.bf16 %v4324_v30, %v4322_v46  ;;  %v4323_v47 = vld [vmem:[%s8404_s2 + $0x790] sm:$0xff]  ;;  %v4166_v21 = vld [vmem:[%s8404_s2 + $0x2a8] sm:$0xff]  ;;  %v6747_v30 = vpack.c.bf16 %v4163_v62, %v4161_v49 }
  0x4c   :  { %932 = vmatprep.mubr.f32.mxu1 %v8722_v3  ;;  %8727 = vst [vmem:[#allocation55_spill] sm:$0xff] %v6711_v56  ;;  %8729 = vst [vmem:[#allocation57_spill] sm:$0xff] %v6717_v28  ;;  %v4328_v46 = vld [vmem:[%s8404_s2 + $0x7b8] sm:$0xff]  ;;  %v4325_v62 = vld [vmem:[%s8404_s2 + $0x7a0] sm:$0xff] }
  0x4d   :  { %4494 = vmatpush1.bf16.msra.mxu0 %v6672_v59  ;;  %8728 = vst [vmem:[#allocation56_spill] sm:$0xff] %v6715_v45  ;;  %8730 = vst [vmem:[#allocation58_spill] sm:$0xff] %v6729_v2  ;;  %v4167_v59 = vld [vmem:[%s8404_s2 + $0x2b0] sm:$0xff]  ;;  %v6765_v49 = vpack.c.bf16 %v4328_v46, %v4326_v32  ;;  %v4332_v32 = vld [vmem:[%s8404_s2 + $0x7d8] sm:$0xff] }
  0x4e   :  { %4654 = vmatpush1.bf16.msra.mxu1 %v6677_v58  ;;  %4496 = vmatprep.subr.bf16.mxu0 %v6679_v6  ;;  %8731 = vst [vmem:[#allocation59_spill] sm:$0xff] %v6747_v30  ;;  %v6753_v6 = vpack.c.bf16 %v4168_v61, %v4166_v21  ;;  %v4165_v58 = vld [vmem:[%s8404_s2 + $0x2a0] sm:$0xff]  ;;  %v4172_v21 = vld [vmem:[%s8404_s2 + $0x2d8] sm:$0xff]  ;;  %v4330_v61 = vld [vmem:[%s8404_s2 + $0x7c8] sm:$0xff] }
  0x4f   :  { %4656 = vmatprep.subr.bf16.mxu1 %v6691_v29  ;;  %v6751_v29 = vpack.c.bf16 %v4323_v47, %v4321_v5  ;;  %8734 = vst [vmem:[#allocation62_spill] sm:$0xff] %v6765_v49  ;;  %v4327_v5 = vld [vmem:[%s8404_s2 + $0x7b0] sm:$0xff]  ;;  %v4170_v47 = vld [vmem:[%s8404_s2 + $0x2c8] sm:$0xff]  ;;  %v6783_v46 = vpack.c.bf16 %v4167_v59, %v4165_v58  ;;  %v4329_v58 = vld [vmem:[%s8404_s2 + $0x7c0] sm:$0xff]  ;;  %v6801_v59 = vpack.c.bf16 %v4332_v32, %v4330_v61 }
  0x50   :  { %8733 = vst [vmem:[#allocation61_spill] sm:$0xff] %v6753_v6  ;;  %v4336_v61 = vld [vmem:[%s8404_s2 + $0x7f8] sm:$0xff] }
  0x51   :  { %4498 = vmatpush1.bf16.msra.mxu0 %v6711_v56  ;;  %8732 = vst [vmem:[#allocation60_spill] sm:$0xff] %v6751_v29  ;;  %8735 = vst [vmem:[#allocation63_spill] sm:$0xff] %v6783_v46  ;;  %v4171_v56 = vld [vmem:[%s8404_s2 + $0x2d0] sm:$0xff] }
  0x52   :  { %4658 = vmatpush1.bf16.msra.mxu1 %v6715_v45  ;;  %4500 = vmatprep.subr.bf16.mxu0 %v6717_v28  ;;  %v6789_v28 = vpack.c.bf16 %v4172_v21, %v4170_v47  ;;  %v4169_v45 = vld [vmem:[%s8404_s2 + $0x2c0] sm:$0xff]  ;;  %8738 = vst [vmem:[#allocation66_spill] sm:$0xff] %v6801_v59  ;;  %v4176_v47 = vld [vmem:[%s8404_s2 + $0x2f8] sm:$0xff]  ;;  %v4334_v21 = vld [vmem:[%s8404_s2 + $0x7e8] sm:$0xff] }
  0x53   :  { %4660 = vmatprep.subr.bf16.mxu1 %v6729_v2  ;;  %v6787_v2 = vpack.c.bf16 %v4327_v5, %v4325_v62  ;;  %v4331_v62 = vld [vmem:[%s8404_s2 + $0x7d0] sm:$0xff]  ;;  %v4174_v5 = vld [vmem:[%s8404_s2 + $0x2e8] sm:$0xff]  ;;  %v6819_v32 = vpack.c.bf16 %v4171_v56, %v4169_v45  ;;  %v4333_v45 = vld [vmem:[%s8404_s2 + $0x7e0] sm:$0xff]  ;;  %v6837_v56 = vpack.c.bf16 %v4336_v61, %v4334_v21  ;;  %v288_v61 = vrot.slane %v6588_v15, 1 }
  0x54   :  { %8737 = vst [vmem:[#allocation65_spill] sm:$0xff] %v6789_v28  ;;  %v4340_v21 = vld [vmem:[%s8404_s2 + $0x818] sm:$0xff] }
  0x55   :  { %4502 = vmatpush1.bf16.msra.mxu0 %v6747_v30  ;;  %8736 = vst [vmem:[#allocation64_spill] sm:$0xff] %v6787_v2  ;;  %8739 = vst [vmem:[#allocation67_spill] sm:$0xff] %v6819_v32  ;;  %v4175_v30 = vld [vmem:[%s8404_s2 + $0x2f0] sm:$0xff] }
  0x56   :  { %4662 = vmatpush1.bf16.msra.mxu1 %v6751_v29  ;;  %4504 = vmatprep.subr.bf16.mxu0 %v6753_v6  ;;  %v6825_v6 = vpack.c.bf16 %v4176_v47, %v4174_v5  ;;  %v4173_v29 = vld [vmem:[%s8404_s2 + $0x2e0] sm:$0xff]  ;;  %8742 = vst [vmem:[#allocation70_spill] sm:$0xff] %v6837_v56  ;;  %v4180_v5 = vld [vmem:[%s8404_s2 + $0x318] sm:$0xff]  ;;  %v4338_v47 = vld [vmem:[%s8404_s2 + $0x808] sm:$0xff] }
  0x57   :  { %4664 = vmatprep.subr.bf16.mxu1 %v6765_v49  ;;  %v6823_v49 = vpack.c.bf16 %v4331_v62, %v4329_v58  ;;  %v4335_v58 = vld [vmem:[%s8404_s2 + $0x7f0] sm:$0xff]  ;;  %v4178_v62 = vld [vmem:[%s8404_s2 + $0x308] sm:$0xff] }
  0x58   :  { %8741 = vst [vmem:[#allocation69_spill] sm:$0xff] %v6825_v6 }
  0x59   :  { %4506 = vmatpush1.bf16.msra.mxu0 %v6783_v46  ;;  %8740 = vst [vmem:[#allocation68_spill] sm:$0xff] %v6823_v49  ;;  %v6865_v46 = vpack.c.bf16 %v4180_v5, %v4178_v62  ;;  %v4184_v62 = vld [vmem:[%s8404_s2 + $0x338] sm:$0xff]  ;;  %v4342_v5 = vld [vmem:[%s8404_s2 + $0x828] sm:$0xff] }
  0x5a   :  { %4666 = vmatpush1.bf16.msra.mxu1 %v6787_v2  ;;  %4508 = vmatprep.subr.bf16.mxu0 %v6789_v28  ;;  %v6859_v28 = vpack.c.bf16 %v4175_v30, %v4173_v29  ;;  %v6863_v2 = vpack.c.bf16 %v4335_v58, %v4333_v45  ;;  %v4337_v29 = vld [vmem:[%s8404_s2 + $0x800] sm:$0xff]  ;;  %v6877_v30 = vpack.c.bf16 %v4340_v21, %v4338_v47  ;;  %v4339_v45 = vld [vmem:[%s8404_s2 + $0x810] sm:$0xff]  ;;  %v4182_v58 = vld [vmem:[%s8404_s2 + $0x328] sm:$0xff] }
  0x5b   :  { %4668 = vmatprep.subr.bf16.mxu1 %v6801_v59  ;;  %v6857_v59 = vrot.slane %v6633_v33, 1  ;;  %8745 = vst [vmem:[#allocation73_spill] sm:$0xff] %v6865_v46  ;;  %v4344_v47 = vld [vmem:[%s8404_s2 + $0x838] sm:$0xff] }
  0x5c   :  { %8743 = vst [vmem:[#allocation71_spill] sm:$0xff] %v6859_v28  ;;  %8744 = vst [vmem:[#allocation72_spill] sm:$0xff] %v6863_v2 }
  0x5d   :  { %4510 = vmatpush1.bf16.msra.mxu0 %v6819_v32  ;;  %v4179_v32 = vld [vmem:[%s8404_s2 + $0x310] sm:$0xff]  ;;  %8746 = vst [vmem:[#allocation74_spill] sm:$0xff] %v6877_v30  ;;  %v6897_v21 = vsel %vm287_vm0, %v288_v61, %v6857_v59 }
  0x5e   :  { %4670 = vmatpush1.bf16.msra.mxu1 %v6823_v49  ;;  %4512 = vmatprep.subr.bf16.mxu0 %v6825_v6  ;;  %v6903_v6 = vpack.c.bf16 %v4339_v45, %v4337_v29  ;;  %v6905_v49 = vpack.c.bf16 %v4184_v62, %v4182_v58  ;;  %v4343_v61 = vld [vmem:[%s8404_s2 + $0x830] sm:$0xff]  ;;  %v4186_v29 = vld [vmem:[%s8404_s2 + $0x348] sm:$0xff]  ;;  %v4188_v45 = vld [vmem:[%s8404_s2 + $0x358] sm:$0xff] }
  0x5f   :  { %4672 = vmatprep.subr.bf16.mxu1 %v6837_v56  ;;  %v6899_v56 = vpack.c.bf16 %v4179_v32, %v4177_v48  ;;  %v4341_v48 = vld [vmem:[%s8404_s2 + $0x820] sm:$0xff]  ;;  %v6917_v32 = vpack.c.bf16 %v4344_v47, %v4342_v5  ;;  %v4346_v58 = vld [vmem:[%s8404_s2 + $0x848] sm:$0xff]  ;;  %v4348_v62 = vld [vmem:[%s8404_s2 + $0x858] sm:$0xff] }
  0x60   :  { %8748 = vst [vmem:[#allocation76_spill] sm:$0xff] %v6903_v6  ;;  %8749 = vst [vmem:[#allocation77_spill] sm:$0xff] %v6905_v49  ;;  %v6941_v47 = vpack.c.bf16 %v4343_v61, %v4341_v48  ;;  %v4347_v48 = vld [vmem:[%s8404_s2 + $0x850] sm:$0xff]  ;;  %v4190_v61 = vld [vmem:[%s8404_s2 + $0x368] sm:$0xff] }
  0x61   :  { %4514 = vmatpush1.bf16.msra.mxu0 %v6859_v28  ;;  %8747 = vst [vmem:[#allocation75_spill] sm:$0xff] %v6899_v56  ;;  %v4183_v28 = vld [vmem:[%s8404_s2 + $0x330] sm:$0xff]  ;;  %8750 = vst [vmem:[#allocation78_spill] sm:$0xff] %v6917_v32 }
  0x62   :  { %4674 = vmatpush1.bf16.msra.mxu1 %v6863_v2  ;;  %4516 = vmatprep.subr.bf16.mxu0 %v6865_v46  ;;  %v6937_v5 = vpack.c.bf16 %v4183_v28, %v4181_v42  ;;  %8752 = vst [vmem:[#allocation80_spill] sm:$0xff] %v6941_v47  ;;  %v4185_v46 = vld [vmem:[%s8404_s2 + $0x340] sm:$0xff]  ;;  %v6955_v28 = vpack.c.bf16 %v4348_v62, %v4346_v58  ;;  %v4352_v58 = vld [vmem:[%s8404_s2 + $0x878] sm:$0xff]  ;;  %v4195_v2 = vld [vmem:[%s8404_s2 + $0x390] sm:$0xff] }
  0x63   :  { %4676 = vmatprep.subr.bf16.mxu1 %v6877_v30  ;;  %v6943_v30 = vpack.c.bf16 %v4188_v45, %v4186_v29  ;;  %v4345_v42 = vld [vmem:[%s8404_s2 + $0x840] sm:$0xff]  ;;  %v4192_v29 = vld [vmem:[%s8404_s2 + $0x378] sm:$0xff]  ;;  %v4350_v45 = vld [vmem:[%s8404_s2 + $0x868] sm:$0xff] }
  0x64   :  { %358 = vmatmul.mubr.f32.vlgmr.msra.gmra.mrb[0].mxu0 %v6897_v21  ;;  %8751 = vst [vmem:[#allocation79_spill] sm:$0xff] %v6937_v5  ;;  %8754 = vst [vmem:[#allocation82_spill] sm:$0xff] %v6955_v28 }
  0x65   :  { %4518 = vmatpush1.bf16.msra.mxu0 %v6899_v56  ;;  %933 = vmatmul.mubr.f32.vlgmr.msra.gmra.mrb[0].mxu1 %v6897_v21  ;;  %8753 = vst [vmem:[#allocation81_spill] sm:$0xff] %v6943_v30  ;;  %v4187_v56 = vld [vmem:[%s8404_s2 + $0x350] sm:$0xff] }
  0x66   :  { %4678 = vmatpush1.bf16.msra.mxu1 %v6903_v6  ;;  %4520 = vmatprep.subr.bf16.mxu0 %v6905_v49  ;;  %v6976_v62 = vpack.c.bf16 %v4187_v56, %v4185_v46  ;;  %v6983_v49 = vpack.c.bf16 %v4192_v29, %v4190_v61  ;;  %v4189_v6 = vld [vmem:[%s8404_s2 + $0x360] sm:$0xff]  ;;  %v6995_v56 = vpack.c.bf16 %v4352_v58, %v4350_v45  ;;  %v4196_v61 = vld [vmem:[%s8404_s2 + $0x398] sm:$0xff]  ;;  %v4354_v29 = vld [vmem:[%s8404_s2 + $0x888] sm:$0xff] }
  0x67   :  { %4680 = vmatprep.subr.bf16.mxu1 %v6917_v32  ;;  %363 = vmatprep.mubr.f32.mxu0 %v8722_v3  ;;  %v6981_v32 = vpack.c.bf16 %v4347_v48, %v4345_v42  ;;  %v4349_v46 = vld [vmem:[%s8404_s2 + $0x860] sm:$0xff]  ;;  %v4351_v42 = vld [vmem:[%s8404_s2 + $0x870] sm:$0xff]  ;;  %v4194_v48 = vld [vmem:[%s8404_s2 + $0x388] sm:$0xff] }
  0x68   :  { %938 = vmatprep.mubr.f32.mxu1 %v8722_v3  ;;  %364 = vmatmul.mubr.f32.gmra.mrb[2].mxu0 %v6857_v59  ;;  %8755 = vst [vmem:[#allocation83_spill] sm:$0xff] %v6976_v62  ;;  %8757 = vst [vmem:[#allocation85_spill] sm:$0xff] %v6983_v49  ;;  %v4356_v45 = vld [vmem:[%s8404_s2 + $0x898] sm:$0xff] }
  0x69   :  { %4522 = vmatpush1.bf16.msra.mxu0 %v6937_v5  ;;  %939 = vmatmul.mubr.f32.gmra.mrb[2].mxu1 %v6857_v59  ;;  %8756 = vst [vmem:[#allocation84_spill] sm:$0xff] %v6981_v32  ;;  %v4191_v5 = vld [vmem:[%s8404_s2 + $0x370] sm:$0xff]  ;;  %8758 = vst [vmem:[#allocation86_spill] sm:$0xff] %v6995_v56 }
  0x6a   :  { %4682 = vmatpush1.bf16.msra.mxu1 %v6941_v47  ;;  %4524 = vmatprep.subr.bf16.mxu0 %v6943_v30  ;;  %v7015_v58 = vpack.c.bf16 %v4191_v5, %v4189_v6  ;;  %v7021_v30 = vpack.c.bf16 %v4196_v61, %v4194_v48  ;;  %v4193_v47 = vld [vmem:[%s8404_s2 + $0x380] sm:$0xff]  ;;  %v7033_v5 = vpack.c.bf16 %v4356_v45, %v4354_v29  ;;  %v4200_v48 = vld [vmem:[%s8404_s2 + $0x3b8] sm:$0xff]  ;;  %v4358_v61 = vld [vmem:[%s8404_s2 + $0x8a8] sm:$0xff] }
  0x6b   :  { %4684 = vmatprep.subr.bf16.mxu1 %v6955_v28  ;;  %478 = vmatprep.mubr.f32.mxu0 %v8722_v3  ;;  %v7019_v28 = vpack.c.bf16 %v4351_v42, %v4349_v46  ;;  %v4353_v6 = vld [vmem:[%s8404_s2 + $0x880] sm:$0xff]  ;;  %v4355_v46 = vld [vmem:[%s8404_s2 + $0x890] sm:$0xff]  ;;  %v4198_v42 = vld [vmem:[%s8404_s2 + $0x3a8] sm:$0xff]  ;;  %v7051_v45 = vpack.c.bf16 %v4195_v2, %v4193_v47 }
  0x6c   :  { %1046 = vmatprep.mubr.f32.mxu1 %v8722_v3  ;;  %8759 = vst [vmem:[#allocation87_spill] sm:$0xff] %v7015_v58  ;;  %8761 = vst [vmem:[#allocation89_spill] sm:$0xff] %v7021_v30  ;;  %v4360_v29 = vld [vmem:[%s8404_s2 + $0x8b8] sm:$0xff]  ;;  %v4357_v2 = vld [vmem:[%s8404_s2 + $0x8a0] sm:$0xff] }
  0x6d   :  { %4526 = vmatpush1.bf16.msra.mxu0 %v6976_v62  ;;  %8760 = vst [vmem:[#allocation88_spill] sm:$0xff] %v7019_v28  ;;  %8762 = vst [vmem:[#allocation90_spill] sm:$0xff] %v7033_v5  ;;  %v4199_v62 = vld [vmem:[%s8404_s2 + $0x3b0] sm:$0xff]  ;;  %v7069_v47 = vpack.c.bf16 %v4360_v29, %v4358_v61  ;;  %v4364_v61 = vld [vmem:[%s8404_s2 + $0x8d8] sm:$0xff] }
  0x6e   :  { %4686 = vmatpush1.bf16.msra.mxu1 %v6981_v32  ;;  %4528 = vmatprep.subr.bf16.mxu0 %v6983_v49  ;;  %8763 = vst [vmem:[#allocation91_spill] sm:$0xff] %v7051_v45  ;;  %v7057_v49 = vpack.c.bf16 %v4200_v48, %v4198_v42  ;;  %v4197_v32 = vld [vmem:[%s8404_s2 + $0x3a0] sm:$0xff]  ;;  %v4204_v42 = vld [vmem:[%s8404_s2 + $0x3d8] sm:$0xff]  ;;  %v4362_v48 = vld [vmem:[%s8404_s2 + $0x8c8] sm:$0xff] }
  0x6f   :  { %4688 = vmatprep.subr.bf16.mxu1 %v6995_v56  ;;  %v7055_v56 = vpack.c.bf16 %v4355_v46, %v4353_v6  ;;  %8766 = vst [vmem:[#allocation94_spill] sm:$0xff] %v7069_v47  ;;  %v4359_v6 = vld [vmem:[%s8404_s2 + $0x8b0] sm:$0xff]  ;;  %v4202_v46 = vld [vmem:[%s8404_s2 + $0x3c8] sm:$0xff]  ;;  %v7087_v29 = vpack.c.bf16 %v4199_v62, %v4197_v32  ;;  %v4361_v32 = vld [vmem:[%s8404_s2 + $0x8c0] sm:$0xff]  ;;  %v7105_v62 = vpack.c.bf16 %v4364_v61, %v4362_v48 }
  0x70   :  { %8765 = vst [vmem:[#allocation93_spill] sm:$0xff] %v7057_v49  ;;  %v4368_v48 = vld [vmem:[%s8404_s2 + $0x8f8] sm:$0xff] }
  0x71   :  { %4530 = vmatpush1.bf16.msra.mxu0 %v7015_v58  ;;  %8764 = vst [vmem:[#allocation92_spill] sm:$0xff] %v7055_v56  ;;  %8767 = vst [vmem:[#allocation95_spill] sm:$0xff] %v7087_v29  ;;  %v4203_v58 = vld [vmem:[%s8404_s2 + $0x3d0] sm:$0xff] }
  0x72   :  { %4690 = vmatpush1.bf16.msra.mxu1 %v7019_v28  ;;  %4532 = vmatprep.subr.bf16.mxu0 %v7021_v30  ;;  %v7093_v30 = vpack.c.bf16 %v4204_v42, %v4202_v46  ;;  %v4201_v28 = vld [vmem:[%s8404_s2 + $0x3c0] sm:$0xff]  ;;  %8770 = vst [vmem:[#allocation98_spill] sm:$0xff] %v7105_v62  ;;  %v4208_v46 = vld [vmem:[%s8404_s2 + $0x3f8] sm:$0xff]  ;;  %v4366_v42 = vld [vmem:[%s8404_s2 + $0x8e8] sm:$0xff] }
  0x73   :  { %4692 = vmatprep.subr.bf16.mxu1 %v7033_v5  ;;  %v7091_v5 = vpack.c.bf16 %v4359_v6, %v4357_v2  ;;  %v4363_v2 = vld [vmem:[%s8404_s2 + $0x8d0] sm:$0xff]  ;;  %v4206_v6 = vld [vmem:[%s8404_s2 + $0x3e8] sm:$0xff]  ;;  %v7123_v61 = vpack.c.bf16 %v4203_v58, %v4201_v28  ;;  %v4365_v28 = vld [vmem:[%s8404_s2 + $0x8e0] sm:$0xff]  ;;  %v7141_v58 = vpack.c.bf16 %v4368_v48, %v4366_v42  ;;  %v7159_v48 = vrot.slane %v6380_v23, 1 }
  0x74   :  { %8769 = vst [vmem:[#allocation97_spill] sm:$0xff] %v7093_v30  ;;  %v4372_v42 = vld [vmem:[%s8404_s2 + $0x918] sm:$0xff]  ;;  %v4211_v23 = vld [vmem:[%s8404_s2 + $0x410] sm:$0xff] }
  0x75   :  { %4534 = vmatpush1.bf16.msra.mxu0 %v7051_v45  ;;  %8768 = vst [vmem:[#allocation96_spill] sm:$0xff] %v7091_v5  ;;  %8771 = vst [vmem:[#allocation99_spill] sm:$0xff] %v7123_v61  ;;  %v4207_v45 = vld [vmem:[%s8404_s2 + $0x3f0] sm:$0xff] }
  0x76   :  { %4694 = vmatpush1.bf16.msra.mxu1 %v7055_v56  ;;  %4536 = vmatprep.subr.bf16.mxu0 %v7057_v49  ;;  %v7129_v49 = vpack.c.bf16 %v4208_v46, %v4206_v6  ;;  %v4205_v56 = vld [vmem:[%s8404_s2 + $0x3e0] sm:$0xff]  ;;  %8774 = vst [vmem:[#allocation102_spill] sm:$0xff] %v7141_v58  ;;  %v4212_v6 = vld [vmem:[%s8404_s2 + $0x418] sm:$0xff]  ;;  %v4370_v46 = vld [vmem:[%s8404_s2 + $0x908] sm:$0xff] }
  0x77   :  { %4696 = vmatprep.subr.bf16.mxu1 %v7069_v47  ;;  %v7127_v47 = vpack.c.bf16 %v4363_v2, %v4361_v32  ;;  %v4367_v32 = vld [vmem:[%s8404_s2 + $0x8f0] sm:$0xff]  ;;  %v4210_v2 = vld [vmem:[%s8404_s2 + $0x408] sm:$0xff] }
  0x78   :  { %8773 = vst [vmem:[#allocation101_spill] sm:$0xff] %v7129_v49 }
  0x79   :  { %4538 = vmatpush1.bf16.msra.mxu0 %v7087_v29  ;;  %8772 = vst [vmem:[#allocation100_spill] sm:$0xff] %v7127_v47  ;;  %v7169_v29 = vpack.c.bf16 %v4212_v6, %v4210_v2  ;;  %v4374_v2 = vld [vmem:[%s8404_s2 + $0x928] sm:$0xff]  ;;  %v4376_v6 = vld [vmem:[%s8404_s2 + $0x938] sm:$0xff] }
  0x7a   :  { %4698 = vmatpush1.bf16.msra.mxu1 %v7091_v5  ;;  %4540 = vmatprep.subr.bf16.mxu0 %v7093_v30  ;;  %v409_v30 = vrot.slane %v6282_v10, 1  ;;  %v7167_v5 = vpack.c.bf16 %v4367_v32, %v4365_v28  ;;  %v4369_v10 = vld [vmem:[%s8404_s2 + $0x900] sm:$0xff]  ;;  %v4214_v28 = vld [vmem:[%s8404_s2 + $0x428] sm:$0xff]  ;;  %v4216_v32 = vld [vmem:[%s8404_s2 + $0x438] sm:$0xff] }
  0x7b   :  { %4700 = vmatprep.subr.bf16.mxu1 %v7105_v62  ;;  %v7162_v62 = vpack.c.bf16 %v4207_v45, %v4205_v56  ;;  %8777 = vst [vmem:[#allocation105_spill] sm:$0xff] %v7169_v29  ;;  %v7181_v56 = vpack.c.bf16 %v4372_v42, %v4370_v46  ;;  %v4371_v45 = vld [vmem:[%s8404_s2 + $0x910] sm:$0xff]  ;;  %v7203_v42 = vpack.c.bf16 %v4211_v23, %v4209_v41  ;;  %v4373_v41 = vld [vmem:[%s8404_s2 + $0x920] sm:$0xff] }
  0x7c   :  { %8776 = vst [vmem:[#allocation104_spill] sm:$0xff] %v7167_v5  ;;  %v7201_v46 = vsel %vm287_vm0, %v409_v30, %v7159_v48  ;;  %v7221_v30 = vpack.c.bf16 %v4376_v6, %v4374_v2  ;;  %v4375_v23 = vld [vmem:[%s8404_s2 + $0x930] sm:$0xff] }
  0x7d   :  { %4542 = vmatpush1.bf16.msra.mxu0 %v7123_v61  ;;  %8775 = vst [vmem:[#allocation103_spill] sm:$0xff] %v7162_v62  ;;  %8778 = vst [vmem:[#allocation106_spill] sm:$0xff] %v7181_v56  ;;  %v7245_v6 = vpack.c.bf16 %v4375_v23, %v4373_v41  ;;  %v4379_v41 = vld [vmem:[%s8404_s2 + $0x950] sm:$0xff]  ;;  %v4222_v23 = vld [vmem:[%s8404_s2 + $0x468] sm:$0xff] }
  0x7e   :  { %4702 = vmatpush1.bf16.msra.mxu1 %v7127_v47  ;;  %4544 = vmatprep.subr.bf16.mxu0 %v7129_v49  ;;  %8779 = vst [vmem:[#allocation107_spill] sm:$0xff] %v7203_v42  ;;  %v7209_v49 = vpack.c.bf16 %v4216_v32, %v4214_v28  ;;  %v4213_v47 = vld [vmem:[%s8404_s2 + $0x420] sm:$0xff]  ;;  %8782 = vst [vmem:[#allocation110_spill] sm:$0xff] %v7221_v30  ;;  %v4378_v28 = vld [vmem:[%s8404_s2 + $0x948] sm:$0xff] }
  0x7f   :  { %4704 = vmatprep.subr.bf16.mxu1 %v7141_v58  ;;  %v7207_v58 = vpack.c.bf16 %v4371_v45, %v4369_v10  ;;  %v4218_v10 = vld [vmem:[%s8404_s2 + $0x448] sm:$0xff]  ;;  %v4220_v45 = vld [vmem:[%s8404_s2 + $0x458] sm:$0xff]  ;;  %8784 = vst [vmem:[#allocation112_spill] sm:$0xff] %v7245_v6 }
  0x80   :  { %8781 = vst [vmem:[#allocation109_spill] sm:$0xff] %v7209_v49  ;;  %v4380_v32 = vld [vmem:[%s8404_s2 + $0x958] sm:$0xff] }
  0x81   :  { %4546 = vmatpush1.bf16.msra.mxu0 %v7162_v62  ;;  %8780 = vst [vmem:[#allocation108_spill] sm:$0xff] %v7207_v58  ;;  %v4215_v62 = vld [vmem:[%s8404_s2 + $0x430] sm:$0xff] }
  0x82   :  { %4706 = vmatpush1.bf16.msra.mxu1 %v7167_v5  ;;  %4548 = vmatprep.subr.bf16.mxu0 %v7169_v29  ;;  %v7241_v2 = vpack.c.bf16 %v4215_v62, %v4213_v47  ;;  %v4217_v29 = vld [vmem:[%s8404_s2 + $0x440] sm:$0xff]  ;;  %v7259_v62 = vpack.c.bf16 %v4380_v32, %v4378_v28  ;;  %v4384_v28 = vld [vmem:[%s8404_s2 + $0x978] sm:$0xff]  ;;  %v4227_v5 = vld [vmem:[%s8404_s2 + $0x490] sm:$0xff] }
  0x83   :  { %4708 = vmatprep.subr.bf16.mxu1 %v7181_v56  ;;  %v7247_v56 = vpack.c.bf16 %v4220_v45, %v4218_v10  ;;  %v4377_v47 = vld [vmem:[%s8404_s2 + $0x940] sm:$0xff]  ;;  %v4224_v10 = vld [vmem:[%s8404_s2 + $0x478] sm:$0xff]  ;;  %v4382_v45 = vld [vmem:[%s8404_s2 + $0x968] sm:$0xff] }
  0x84   :  { %479 = vmatmul.mubr.f32.vlgmr.msra.gmra.mrb[0].mxu0 %v7201_v46  ;;  %8783 = vst [vmem:[#allocation111_spill] sm:$0xff] %v7241_v2  ;;  %8786 = vst [vmem:[#allocation114_spill] sm:$0xff] %v7259_v62 }
  0x85   :  { %4550 = vmatpush1.bf16.msra.mxu0 %v7203_v42  ;;  %1047 = vmatmul.mubr.f32.vlgmr.msra.gmra.mrb[0].mxu1 %v7201_v46  ;;  %8785 = vst [vmem:[#allocation113_spill] sm:$0xff] %v7247_v56  ;;  %v4219_v42 = vld [vmem:[%s8404_s2 + $0x450] sm:$0xff] }
  0x86   :  { %4710 = vmatpush1.bf16.msra.mxu1 %v7207_v58  ;;  %4552 = vmatprep.subr.bf16.mxu0 %v7209_v49  ;;  %v7280_v32 = vpack.c.bf16 %v4219_v42, %v4217_v29  ;;  %v7287_v49 = vpack.c.bf16 %v4224_v10, %v4222_v23  ;;  %v4221_v58 = vld [vmem:[%s8404_s2 + $0x460] sm:$0xff]  ;;  %v7299_v42 = vpack.c.bf16 %v4384_v28, %v4382_v45  ;;  %v4228_v23 = vld [vmem:[%s8404_s2 + $0x498] sm:$0xff]  ;;  %v4386_v10 = vld [vmem:[%s8404_s2 + $0x988] sm:$0xff] }
  0x87   :  { %4712 = vmatprep.subr.bf16.mxu1 %v7221_v30  ;;  %484 = vmatprep.mubr.f32.mxu0 %v8722_v3  ;;  %v7285_v30 = vpack.c.bf16 %v4379_v41, %v4377_v47  ;;  %v4381_v29 = vld [vmem:[%s8404_s2 + $0x960] sm:$0xff]  ;;  %v4383_v47 = vld [vmem:[%s8404_s2 + $0x970] sm:$0xff]  ;;  %v4226_v41 = vld [vmem:[%s8404_s2 + $0x488] sm:$0xff] }
  0x88   :  { %1052 = vmatprep.mubr.f32.mxu1 %v8722_v3  ;;  %485 = vmatmul.mubr.f32.gmra.mrb[2].mxu0 %v7159_v48  ;;  %8787 = vst [vmem:[#allocation115_spill] sm:$0xff] %v7280_v32  ;;  %8789 = vst [vmem:[#allocation117_spill] sm:$0xff] %v7287_v49  ;;  %v4388_v45 = vld [vmem:[%s8404_s2 + $0x998] sm:$0xff] }
  0x89   :  { %4554 = vmatpush1.bf16.msra.mxu0 %v7241_v2  ;;  %1053 = vmatmul.mubr.f32.gmra.mrb[2].mxu1 %v7159_v48  ;;  %8788 = vst [vmem:[#allocation116_spill] sm:$0xff] %v7285_v30  ;;  %v4223_v2 = vld [vmem:[%s8404_s2 + $0x470] sm:$0xff]  ;;  %8790 = vst [vmem:[#allocation118_spill] sm:$0xff] %v7299_v42 }
  0x8a   :  { %4714 = vmatpush1.bf16.msra.mxu1 %v7245_v6  ;;  %4556 = vmatprep.subr.bf16.mxu0 %v7247_v56  ;;  %v7319_v28 = vpack.c.bf16 %v4223_v2, %v4221_v58  ;;  %v7325_v56 = vpack.c.bf16 %v4228_v23, %v4226_v41  ;;  %v4225_v6 = vld [vmem:[%s8404_s2 + $0x480] sm:$0xff]  ;;  %v7337_v2 = vpack.c.bf16 %v4388_v45, %v4386_v10  ;;  %v4232_v41 = vld [vmem:[%s8404_s2 + $0x4b8] sm:$0xff]  ;;  %v4390_v23 = vld [vmem:[%s8404_s2 + $0x9a8] sm:$0xff] }
  0x8b   :  { %4716 = vmatprep.subr.bf16.mxu1 %v7259_v62  ;;  %598 = vmatprep.mubr.f32.mxu0 %v8722_v3  ;;  %v7323_v62 = vpack.c.bf16 %v4383_v47, %v4381_v29  ;;  %v4385_v58 = vld [vmem:[%s8404_s2 + $0x980] sm:$0xff]  ;;  %v4387_v29 = vld [vmem:[%s8404_s2 + $0x990] sm:$0xff]  ;;  %v4230_v47 = vld [vmem:[%s8404_s2 + $0x4a8] sm:$0xff]  ;;  %v7355_v45 = vpack.c.bf16 %v4227_v5, %v4225_v6 }
  0x8c   :  { %1160 = vmatprep.mubr.f32.mxu1 %v8722_v3  ;;  %8791 = vst [vmem:[#allocation119_spill] sm:$0xff] %v7319_v28  ;;  %8793 = vst [vmem:[#allocation121_spill] sm:$0xff] %v7325_v56  ;;  %v4392_v10 = vld [vmem:[%s8404_s2 + $0x9b8] sm:$0xff]  ;;  %v4389_v5 = vld [vmem:[%s8404_s2 + $0x9a0] sm:$0xff] }
  0x8d   :  { %4558 = vmatpush1.bf16.msra.mxu0 %v7280_v32  ;;  %8792 = vst [vmem:[#allocation120_spill] sm:$0xff] %v7323_v62  ;;  %8794 = vst [vmem:[#allocation122_spill] sm:$0xff] %v7337_v2  ;;  %v4231_v32 = vld [vmem:[%s8404_s2 + $0x4b0] sm:$0xff]  ;;  %v7373_v6 = vpack.c.bf16 %v4392_v10, %v4390_v23  ;;  %v4396_v23 = vld [vmem:[%s8404_s2 + $0x9d8] sm:$0xff] }
  0x8e   :  { %4718 = vmatpush1.bf16.msra.mxu1 %v7285_v30  ;;  %4560 = vmatprep.subr.bf16.mxu0 %v7287_v49  ;;  %8795 = vst [vmem:[#allocation123_spill] sm:$0xff] %v7355_v45  ;;  %v7361_v49 = vpack.c.bf16 %v4232_v41, %v4230_v47  ;;  %v4229_v30 = vld [vmem:[%s8404_s2 + $0x4a0] sm:$0xff]  ;;  %v4236_v47 = vld [vmem:[%s8404_s2 + $0x4d8] sm:$0xff]  ;;  %v4394_v41 = vld [vmem:[%s8404_s2 + $0x9c8] sm:$0xff] }
  0x8f   :  { %4720 = vmatprep.subr.bf16.mxu1 %v7299_v42  ;;  %v7359_v42 = vpack.c.bf16 %v4387_v29, %v4385_v58  ;;  %8798 = vst [vmem:[#allocation126_spill] sm:$0xff] %v7373_v6  ;;  %v4391_v58 = vld [vmem:[%s8404_s2 + $0x9b0] sm:$0xff]  ;;  %v4234_v29 = vld [vmem:[%s8404_s2 + $0x4c8] sm:$0xff]  ;;  %v7391_v10 = vpack.c.bf16 %v4231_v32, %v4229_v30  ;;  %v4393_v30 = vld [vmem:[%s8404_s2 + $0x9c0] sm:$0xff]  ;;  %v7409_v32 = vpack.c.bf16 %v4396_v23, %v4394_v41 }
  0x90   :  { %8797 = vst [vmem:[#allocation125_spill] sm:$0xff] %v7361_v49  ;;  %v4400_v41 = vld [vmem:[%s8404_s2 + $0x9f8] sm:$0xff] }
  0x91   :  { %4562 = vmatpush1.bf16.msra.mxu0 %v7319_v28  ;;  %8796 = vst [vmem:[#allocation124_spill] sm:$0xff] %v7359_v42  ;;  %v4235_v28 = vld [vmem:[%s8404_s2 + $0x4d0] sm:$0xff] }
  0x92   :  { %4722 = vmatpush1.bf16.msra.mxu1 %v7323_v62  ;;  %4564 = vmatprep.subr.bf16.mxu0 %v7325_v56  ;;  %v7397_v56 = vpack.c.bf16 %v4236_v47, %v4234_v29  ;;  %v4233_v62 = vld [vmem:[%s8404_s2 + $0x4c0] sm:$0xff]  ;;  %v4240_v29 = vld [vmem:[%s8404_s2 + $0x4f8] sm:$0xff]  ;;  %v4398_v47 = vld [vmem:[%s8404_s2 + $0x9e8] sm:$0xff] }
  0x93   :  { %4724 = vmatprep.subr.bf16.mxu1 %v7337_v2  ;;  %v7395_v2 = vpack.c.bf16 %v4391_v58, %v4389_v5  ;;  %v4395_v5 = vld [vmem:[%s8404_s2 + $0x9d0] sm:$0xff]  ;;  %v4238_v58 = vld [vmem:[%s8404_s2 + $0x4e8] sm:$0xff]  ;;  %v7427_v23 = vpack.c.bf16 %v4235_v28, %v4233_v62  ;;  %v7442_v62 = vpack.c.bf16 %v4400_v41, %v4398_v47  ;;  %v4397_v28 = vld [vmem:[%s8404_s2 + $0x9e0] sm:$0xff] }
  0x94   :  { %8800 = vst [vmem:[#allocation128_spill] sm:$0xff] %v7397_v56  ;;  %v8805_v41 = vld [vmem:[#allocation20_spill] sm:$0xff] }
  0x95   :  { %4566 = vmatpush1.bf16.msra.mxu0 %v7355_v45  ;;  %8799 = vst [vmem:[#allocation127_spill] sm:$0xff] %v7395_v2  ;;  %v4239_v45 = vld [vmem:[%s8404_s2 + $0x4f0] sm:$0xff] }
  0x96   :  { %4726 = vmatpush1.bf16.msra.mxu1 %v7359_v42  ;;  %4568 = vmatprep.subr.bf16.mxu0 %v7361_v49  ;;  %v7433_v49 = vpack.c.bf16 %v4240_v29, %v4238_v58  ;;  %v4237_v42 = vld [vmem:[%s8404_s2 + $0x4e0] sm:$0xff]  ;;  %v7452_v58 = vrot.slane %v6633_v33, 2  ;;  %v8801_v33 = vld [vmem:[#allocation16_spill] sm:$0xff] }
  0x97   :  { %4728 = vmatprep.subr.bf16.mxu1 %v7373_v6  ;;  %v7431_v6 = vpack.c.bf16 %v4395_v5, %v4393_v30  ;;  %v4399_v30 = vld [vmem:[%s8404_s2 + $0x9f0] sm:$0xff]  ;;  %v529_v5 = vrot.slane %v6588_v15, 2  ;;  %v7455_v29 = vpack.c.bf16 %v4239_v45, %v4237_v42  ;;  %v8802_v42 = vld [vmem:[#allocation17_spill] sm:$0xff]  ;;  %v8804_v45 = vld [vmem:[#allocation19_spill] sm:$0xff] }
  0x98   :  { %v7459_v47 = vpack.c.bf16 %v4399_v30, %v4397_v28  ;;  %v8806_v28 = vld [vmem:[#allocation21_spill] sm:$0xff]  ;;  %v8807_v30 = vld [vmem:[#allocation22_spill] sm:$0xff] }
  0x99   :  { %4570 = vmatpush1.bf16.msra.mxu0 %v7391_v10  ;;  %v7465_v15 = vsel %vm528_vm1, %v529_v5, %v7452_v58  ;;  %v8808_v5 = vld [vmem:[#allocation23_spill] sm:$0xff] }
  0x9a   :  { %4730 = vmatpush1.bf16.msra.mxu1 %v7395_v2  ;;  %4572 = vmatprep.subr.bf16.mxu0 %v7397_v56 }
  0x9b   :  { %4732 = vmatprep.subr.bf16.mxu1 %v7409_v32 }
  0x9d   :  { %4574 = vmatpush1.bf16.msra.mxu0 %v7427_v23 }
  0x9e   :  { %4734 = vmatpush1.bf16.msra.mxu1 %v7431_v6  ;;  %4576 = vmatprep.subr.bf16.mxu0 %v7433_v49 }
  0x9f   :  { %4736 = vmatprep.subr.bf16.mxu1 %v7442_v62 }
  0xa1   :  { %4578 = vmatpush1.bf16.msra.mxu0 %v7455_v29 }
  0xa2   :  { %4738 = vmatpush1.bf16.msra.mxu1 %v7459_v47  ;;  %4740 = vmatprep.subr.bf16.mxu0 %v5961_v4 }
  0xa3   :  { %4900 = vmatprep.subr.bf16.mxu1 %v5972_v8 }
  0xa4   :  { %599 = vmatmul.mubr.f32.vlgmr.msra.gmra.mrb[0].mxu0 %v7465_v15 }
  0xa5   :  { %1161 = vmatmul.mubr.f32.vlgmr.msra.gmra.mrb[0].mxu1 %v7465_v15  ;;  %4742 = vmatpush1.bf16.msra.mxu0 %v5974_v9 }
  0xa6   :  { %4902 = vmatpush1.bf16.msra.mxu1 %v5986_v13  ;;  %604 = vmatprep.mubr.f32.mxu0 %v8722_v3 }
  0xa7   :  { %1166 = vmatprep.mubr.f32.mxu1 %v8722_v3  ;;  %4744 = vmatprep.subr.bf16.mxu0 %v5999_v17 }
  0xa8   :  { %605 = vmatmul.mubr.f32.gmra.mrb[2].mxu0 %v7452_v58  ;;  %4904 = vmatprep.subr.bf16.mxu1 %v6001_v18 }
  0xa9   :  { %1167 = vmatmul.mubr.f32.gmra.mrb[2].mxu1 %v7452_v58  ;;  %4746 = vmatpush1.bf16.msra.mxu0 %v6013_v22 }
  0xaa   :  { %4906 = vmatpush1.bf16.msra.mxu1 %v6026_v26  ;;  %4748 = vmatprep.subr.bf16.mxu0 %v6028_v27 }
  0xab   :  { %4908 = vmatprep.subr.bf16.mxu1 %v6039_v31  ;;  %1241 = vmatprep.mubr.f32.mxu0 %v8722_v3 }
  0xac   :  { %1643 = vmatprep.mubr.f32.mxu1 %v8722_v3 }
  0xad   :  { %4750 = vmatpush1.bf16.msra.mxu0 %v6051_v35 }
  0xae   :  { %4910 = vmatpush1.bf16.msra.mxu1 %v6064_v39  ;;  %4752 = vmatprep.subr.bf16.mxu0 %v6066_v40 }
  0xaf   :  { %4912 = vmatprep.subr.bf16.mxu1 %v6078_v44 }
  0xb1   :  { %4754 = vmatpush1.bf16.msra.mxu0 %v6099_v51 }
  0xb2   :  { %4914 = vmatpush1.bf16.msra.mxu1 %v6103_v52  ;;  %4756 = vmatprep.subr.bf16.mxu0 %v6105_v53 }
  0xb3   :  { %4916 = vmatprep.subr.bf16.mxu1 %v6117_v57 }
  0xb5   :  { %4758 = vmatpush1.bf16.msra.mxu0 %v6135_v63 }
  0xb6   :  { %4918 = vmatpush1.bf16.msra.mxu1 %v6139_v0  ;;  %4760 = vmatprep.subr.bf16.mxu0 %v6141_v1 }
  0xb7   :  { %4920 = vmatprep.subr.bf16.mxu1 %v6153_v7 }
  0xb9   :  { %4762 = vmatpush1.bf16.msra.mxu0 %v6171_v16 }
  0xba   :  { %4922 = vmatpush1.bf16.msra.mxu1 %v6175_v19  ;;  %4764 = vmatprep.subr.bf16.mxu0 %v6177_v20 }
  0xbb   :  { %4924 = vmatprep.subr.bf16.mxu1 %v6189_v25 }
  0xbd   :  { %4766 = vmatpush1.bf16.msra.mxu0 %v6207_v34 }
  0xbe   :  { %4926 = vmatpush1.bf16.msra.mxu1 %v6211_v36  ;;  %4768 = vmatprep.subr.bf16.mxu0 %v6213_v37 }
  0xbf   :  { %4928 = vmatprep.subr.bf16.mxu1 %v6225_v43 }
  0xc1   :  { %4770 = vmatpush1.bf16.msra.mxu0 %v6243_v50 }
  0xc2   :  { %4930 = vmatpush1.bf16.msra.mxu1 %v6247_v54  ;;  %4772 = vmatprep.subr.bf16.mxu0 %v6249_v55 }
  0xc3   :  { %4932 = vmatprep.subr.bf16.mxu1 %v6261_v60 }
  0xc4   :  { %1242 = vmatmul.mubr.f32.vlgmr.msra.gmra.mrb[4].mxu0 %v6897_v21 }
  0xc5   :  { %4774 = vmatpush1.bf16.msra.mxu0 %v6284_v11  ;;  %1644 = vmatmul.mubr.f32.vlgmr.msra.gmra.mrb[4].mxu1 %v6897_v21  ;;  %v8803_v21 = vld [vmem:[#allocation18_spill] sm:$0xff] }
  0xc6   :  { %4934 = vmatpush1.bf16.msra.mxu1 %v6288_v12  ;;  %4776 = vmatprep.subr.bf16.mxu0 %v6290_v14  ;;  %v8845_v14 = vld [vmem:[#allocation60_spill] sm:$0xff]  ;;  %v8846_v12 = vld [vmem:[#allocation61_spill] sm:$0xff] }
  0xc7   :  { %4936 = vmatprep.subr.bf16.mxu1 %v6302_v24  ;;  %1247 = vmatprep.mubr.f32.mxu0 %v8722_v3  ;;  %v8814_v24 = vld [vmem:[#allocation29_spill] sm:$0xff] }
  0xc8   :  { %1649 = vmatprep.mubr.f32.mxu1 %v8722_v3  ;;  %1248 = vmatmul.mubr.f32.gmra.mrb[6].mxu0 %v6857_v59 }
  0xc9   :  { %4778 = vmatpush1.bf16.msra.mxu0 %v6322_v38  ;;  %1650 = vmatmul.mubr.f32.gmra.mrb[6].mxu1 %v6857_v59  ;;  %v8809_v59 = vld [vmem:[#allocation24_spill] sm:$0xff] }
  0xca   :  { %4938 = vmatpush1.bf16.msra.mxu1 %v8801_v33  ;;  %4780 = vmatprep.subr.bf16.mxu0 %v8802_v42  ;;  %v8810_v33 = vld [vmem:[#allocation25_spill] sm:$0xff]  ;;  %v8811_v42 = vld [vmem:[#allocation26_spill] sm:$0xff]  ;;  %v8813_v38 = vld [vmem:[#allocation28_spill] sm:$0xff] }
  0xcb   :  { %4940 = vmatprep.subr.bf16.mxu1 %v8803_v21  ;;  %1318 = vmatprep.mubr.f32.mxu0 %v8722_v3  ;;  %v8812_v21 = vld [vmem:[#allocation27_spill] sm:$0xff] }
  0xcc   :  { %1720 = vmatprep.mubr.f32.mxu1 %v8722_v3 }
  0xcd   :  { %4782 = vmatpush1.bf16.msra.mxu0 %v8804_v45  ;;  %v8815_v45 = vld [vmem:[#allocation30_spill] sm:$0xff] }
  0xce   :  { %4942 = vmatpush1.bf16.msra.mxu1 %v8805_v41  ;;  %4784 = vmatprep.subr.bf16.mxu0 %v8806_v28  ;;  %v8816_v41 = vld [vmem:[#allocation31_spill] sm:$0xff]  ;;  %v8817_v28 = vld [vmem:[#allocation32_spill] sm:$0xff] }
  0xcf   :  { %4944 = vmatprep.subr.bf16.mxu1 %v8807_v30  ;;  %v8818_v30 = vld [vmem:[#allocation33_spill] sm:$0xff] }
  0xd1   :  { %4786 = vmatpush1.bf16.msra.mxu0 %v8808_v5  ;;  %v8819_v5 = vld [vmem:[#allocation34_spill] sm:$0xff] }
  0xd2   :  { %4946 = vmatpush1.bf16.msra.mxu1 %v8809_v59  ;;  %4788 = vmatprep.subr.bf16.mxu0 %v8810_v33  ;;  %v8820_v59 = vld [vmem:[#allocation35_spill] sm:$0xff]  ;;  %v8821_v33 = vld [vmem:[#allocation36_spill] sm:$0xff] }
  0xd3   :  { %4948 = vmatprep.subr.bf16.mxu1 %v8811_v42  ;;  %v8822_v42 = vld [vmem:[#allocation37_spill] sm:$0xff] }
  0xd5   :  { %4790 = vmatpush1.bf16.msra.mxu0 %v8812_v21  ;;  %v8823_v21 = vld [vmem:[#allocation38_spill] sm:$0xff] }
  0xd6   :  { %4950 = vmatpush1.bf16.msra.mxu1 %v8813_v38  ;;  %4792 = vmatprep.subr.bf16.mxu0 %v8814_v24  ;;  %v8824_v38 = vld [vmem:[#allocation39_spill] sm:$0xff]  ;;  %v8825_v24 = vld [vmem:[#allocation40_spill] sm:$0xff] }
  0xd7   :  { %4952 = vmatprep.subr.bf16.mxu1 %v8815_v45  ;;  %v8826_v45 = vld [vmem:[#allocation41_spill] sm:$0xff] }
  0xd9   :  { %4794 = vmatpush1.bf16.msra.mxu0 %v8816_v41  ;;  %v8827_v41 = vld [vmem:[#allocation42_spill] sm:$0xff] }
  0xda   :  { %4954 = vmatpush1.bf16.msra.mxu1 %v8817_v28  ;;  %4796 = vmatprep.subr.bf16.mxu0 %v8818_v30  ;;  %v8839_v30 = vld [vmem:[#allocation54_spill] sm:$0xff]  ;;  %v8841_v28 = vld [vmem:[#allocation56_spill] sm:$0xff] }
  0xdb   :  { %4956 = vmatprep.subr.bf16.mxu1 %v8819_v5  ;;  %v7553_v5 = vld [vmem:[%s8405_s1] sm:$0xff] }
  0xdd   :  { %4798 = vmatpush1.bf16.msra.mxu0 %v8820_v59  ;;  %v8838_v59 = vld [vmem:[#allocation53_spill] sm:$0xff] }
  0xde   :  { %4958 = vmatpush1.bf16.msra.mxu1 %v8821_v33  ;;  %4800 = vmatprep.subr.bf16.mxu0 %v8822_v42  ;;  %v8828_v33 = vld [vmem:[#allocation43_spill] sm:$0xff]  ;;  %v8837_v42 = vld [vmem:[#allocation52_spill] sm:$0xff] }
  0xdf   :  { %4960 = vmatprep.subr.bf16.mxu1 %v8823_v21  ;;  %v8829_v21 = vld [vmem:[#allocation44_spill] sm:$0xff] }
  0xe1   :  { %4802 = vmatpush1.bf16.msra.mxu0 %v8824_v38  ;;  %v8830_v38 = vld [vmem:[#allocation45_spill] sm:$0xff] }
  0xe2   :  { %4962 = vmatpush1.bf16.msra.mxu1 %v8825_v24  ;;  %4804 = vmatprep.subr.bf16.mxu0 %v8826_v45  ;;  %v8831_v24 = vld [vmem:[#allocation46_spill] sm:$0xff]  ;;  %v8836_v45 = vld [vmem:[#allocation51_spill] sm:$0xff] }
  0xe3   :  { %4964 = vmatprep.subr.bf16.mxu1 %v8827_v41  ;;  %v7566_v41 = vld [vmem:[%s8405_s1 + $0x8] sm:$0xff] }
  0xe4   :  { %1319 = vmatmul.mubr.f32.vlgmr.msra.gmra.mrb[4].mxu0 %v7553_v5 }
  0xe5   :  { %4806 = vmatpush1.bf16.msra.mxu0 %v8828_v33  ;;  %1721 = vmatmul.mubr.f32.vlgmr.msra.gmra.mrb[4].mxu1 %v7553_v5  ;;  %v8832_v33 = vld [vmem:[#allocation47_spill] sm:$0xff] }
  0xe6   :  { %4966 = vmatpush1.bf16.msra.mxu1 %v8829_v21  ;;  %4808 = vmatprep.subr.bf16.mxu0 %v8830_v38  ;;  %v8833_v21 = vld [vmem:[#allocation48_spill] sm:$0xff]  ;;  %v8834_v38 = vld [vmem:[#allocation49_spill] sm:$0xff] }
  0xe7   :  { %4968 = vmatprep.subr.bf16.mxu1 %v8831_v24  ;;  %1324 = vmatprep.mubr.f32.mxu0 %v8722_v3  ;;  %v8835_v24 = vld [vmem:[#allocation50_spill] sm:$0xff] }
  0xe8   :  { %1726 = vmatprep.mubr.f32.mxu1 %v8722_v3  ;;  %1325 = vmatmul.mubr.f32.gmra.mrb[6].mxu0 %v7566_v41 }
  0xe9   :  { %4810 = vmatpush1.bf16.msra.mxu0 %v8832_v33  ;;  %1727 = vmatmul.mubr.f32.gmra.mrb[6].mxu1 %v7566_v41  ;;  %v8840_v33 = vld [vmem:[#allocation55_spill] sm:$0xff] }
  0xea   :  { %4970 = vmatpush1.bf16.msra.mxu1 %v8833_v21  ;;  %4812 = vmatprep.subr.bf16.mxu0 %v8834_v38  ;;  %v8842_v21 = vld [vmem:[#allocation57_spill] sm:$0xff]  ;;  %v8843_v38 = vld [vmem:[#allocation58_spill] sm:$0xff] }
  0xeb   :  { %4972 = vmatprep.subr.bf16.mxu1 %v8835_v24  ;;  %1395 = vmatprep.mubr.f32.mxu0 %v8722_v3  ;;  %v8844_v24 = vld [vmem:[#allocation59_spill] sm:$0xff] }
  0xec   :  { %1797 = vmatprep.mubr.f32.mxu1 %v8722_v3 }
  0xed   :  { %4814 = vmatpush1.bf16.msra.mxu0 %v8836_v45  ;;  %v8847_v45 = vld [vmem:[#allocation62_spill] sm:$0xff] }
  0xee   :  { %4974 = vmatpush1.bf16.msra.mxu1 %v8837_v42  ;;  %4816 = vmatprep.subr.bf16.mxu0 %v8838_v59  ;;  %v8848_v42 = vld [vmem:[#allocation63_spill] sm:$0xff]  ;;  %v8849_v59 = vld [vmem:[#allocation64_spill] sm:$0xff] }
  0xef   :  { %4976 = vmatprep.subr.bf16.mxu1 %v8839_v30  ;;  %v8850_v30 = vld [vmem:[#allocation65_spill] sm:$0xff] }
  0xf1   :  { %4818 = vmatpush1.bf16.msra.mxu0 %v8840_v33  ;;  %v8851_v33 = vld [vmem:[#allocation66_spill] sm:$0xff] }
  0xf2   :  { %4978 = vmatpush1.bf16.msra.mxu1 %v8841_v28  ;;  %4820 = vmatprep.subr.bf16.mxu0 %v8842_v21  ;;  %v8852_v28 = vld [vmem:[#allocation67_spill] sm:$0xff]  ;;  %v8853_v21 = vld [vmem:[#allocation68_spill] sm:$0xff] }
  0xf3   :  { %4980 = vmatprep.subr.bf16.mxu1 %v8843_v38  ;;  %v8854_v38 = vld [vmem:[#allocation69_spill] sm:$0xff] }
  0xf5   :  { %4822 = vmatpush1.bf16.msra.mxu0 %v8844_v24  ;;  %v8855_v24 = vld [vmem:[#allocation70_spill] sm:$0xff] }
  0xf6   :  { %4982 = vmatpush1.bf16.msra.mxu1 %v8845_v14  ;;  %4824 = vmatprep.subr.bf16.mxu0 %v8846_v12  ;;  %v8856_v14 = vld [vmem:[#allocation71_spill] sm:$0xff]  ;;  %v8857_v12 = vld [vmem:[#allocation72_spill] sm:$0xff] }
  0xf7   :  { %4984 = vmatprep.subr.bf16.mxu1 %v8847_v45  ;;  %v8858_v45 = vld [vmem:[#allocation73_spill] sm:$0xff] }
  0xf9   :  { %4826 = vmatpush1.bf16.msra.mxu0 %v8848_v42  ;;  %v8859_v42 = vld [vmem:[#allocation74_spill] sm:$0xff] }
  0xfa   :  { %4986 = vmatpush1.bf16.msra.mxu1 %v8849_v59  ;;  %4828 = vmatprep.subr.bf16.mxu0 %v8850_v30  ;;  %v8860_v30 = vld [vmem:[#allocation75_spill] sm:$0xff] }
  0xfb   :  { %4988 = vmatprep.subr.bf16.mxu1 %v8851_v33 }
  0xfd   :  { %4830 = vmatpush1.bf16.msra.mxu0 %v8852_v28  ;;  %v8861_v28 = vld [vmem:[#allocation76_spill] sm:$0xff] }
  0xfe   :  { %4990 = vmatpush1.bf16.msra.mxu1 %v8853_v21  ;;  %4832 = vmatprep.subr.bf16.mxu0 %v8854_v38  ;;  %v8862_v21 = vld [vmem:[#allocation77_spill] sm:$0xff]  ;;  %v8863_v38 = vld [vmem:[#allocation78_spill] sm:$0xff] }
  0xff   :  { %4992 = vmatprep.subr.bf16.mxu1 %v8855_v24  ;;  %v8878_v24 = vld [vmem:[#allocation93_spill] sm:$0xff] }
 0x101   :  { %4834 = vmatpush1.bf16.msra.mxu0 %v8856_v14  ;;  %v8877_v14 = vld [vmem:[#allocation92_spill] sm:$0xff] }
 0x102   :  { %4994 = vmatpush1.bf16.msra.mxu1 %v8857_v12  ;;  %4836 = vmatprep.subr.bf16.mxu0 %v8858_v45  ;;  %v8864_v45 = vld [vmem:[#allocation79_spill] sm:$0xff]  ;;  %v8871_v12 = vld [vmem:[#allocation86_spill] sm:$0xff] }
 0x103   :  { %4996 = vmatprep.subr.bf16.mxu1 %v8859_v42  ;;  %v8865_v42 = vld [vmem:[#allocation80_spill] sm:$0xff] }
 0x104   :  { %1396 = vmatmul.mubr.f32.vlgmr.msra.gmra.mrb[4].mxu0 %v7201_v46 }
 0x105   :  { %4838 = vmatpush1.bf16.msra.mxu0 %v8860_v30  ;;  %1798 = vmatmul.mubr.f32.vlgmr.msra.gmra.mrb[4].mxu1 %v7201_v46  ;;  %v8866_v30 = vld [vmem:[#allocation81_spill] sm:$0xff]  ;;  %v8867_v46 = vld [vmem:[#allocation82_spill] sm:$0xff] }
 0x106   :  { %4998 = vmatpush1.bf16.msra.mxu1 %v8861_v28  ;;  %4840 = vmatprep.subr.bf16.mxu0 %v8862_v21  ;;  %v8869_v21 = vld [vmem:[#allocation84_spill] sm:$0xff]  ;;  %v8870_v28 = vld [vmem:[#allocation85_spill] sm:$0xff] }
 0x107   :  { %5000 = vmatprep.subr.bf16.mxu1 %v8863_v38  ;;  %1401 = vmatprep.mubr.f32.mxu0 %v8722_v3  ;;  %v8868_v38 = vld [vmem:[#allocation83_spill] sm:$0xff] }
 0x108   :  { %1803 = vmatprep.mubr.f32.mxu1 %v8722_v3  ;;  %1402 = vmatmul.mubr.f32.gmra.mrb[6].mxu0 %v7159_v48 }
 0x109   :  { %4842 = vmatpush1.bf16.msra.mxu0 %v8864_v45  ;;  %1804 = vmatmul.mubr.f32.gmra.mrb[6].mxu1 %v7159_v48  ;;  %v8872_v45 = vld [vmem:[#allocation87_spill] sm:$0xff]  ;;  %v8873_v48 = vld [vmem:[#allocation88_spill] sm:$0xff] }
 0x10a   :  { %5002 = vmatpush1.bf16.msra.mxu1 %v8865_v42  ;;  %4844 = vmatprep.subr.bf16.mxu0 %v8866_v30  ;;  %v8874_v42 = vld [vmem:[#allocation89_spill] sm:$0xff]  ;;  %v8875_v30 = vld [vmem:[#allocation90_spill] sm:$0xff] }
 0x10b   :  { %5004 = vmatprep.subr.bf16.mxu1 %v8867_v46  ;;  %1476 = vmatprep.mubr.f32.mxu0 %v8722_v3  ;;  %v8876_v46 = vld [vmem:[#allocation91_spill] sm:$0xff] }
 0x10c   :  { %1878 = vmatprep.mubr.f32.mxu1 %v8722_v3 }
 0x10d   :  { %4846 = vmatpush1.bf16.msra.mxu0 %v8868_v38  ;;  %v8879_v38 = vld [vmem:[#allocation94_spill] sm:$0xff] }
 0x10e   :  { %5006 = vmatpush1.bf16.msra.mxu1 %v8869_v21  ;;  %4848 = vmatprep.subr.bf16.mxu0 %v8870_v28  ;;  %v8880_v21 = vld [vmem:[#allocation95_spill] sm:$0xff]  ;;  %v8881_v28 = vld [vmem:[#allocation96_spill] sm:$0xff] }
 0x10f   :  { %5008 = vmatprep.subr.bf16.mxu1 %v8871_v12  ;;  %v8882_v12 = vld [vmem:[#allocation97_spill] sm:$0xff] }
 0x111   :  { %4850 = vmatpush1.bf16.msra.mxu0 %v8872_v45  ;;  %v8883_v45 = vld [vmem:[#allocation98_spill] sm:$0xff] }
 0x112   :  { %5010 = vmatpush1.bf16.msra.mxu1 %v8873_v48  ;;  %4852 = vmatprep.subr.bf16.mxu0 %v8874_v42  ;;  %v8884_v42 = vld [vmem:[#allocation100_spill] sm:$0xff] }
 0x113   :  { %5012 = vmatprep.subr.bf16.mxu1 %v8875_v30  ;;  %v8885_v30 = vld [vmem:[#allocation101_spill] sm:$0xff] }
 0x115   :  { %4854 = vmatpush1.bf16.msra.mxu0 %v8876_v46  ;;  %v8886_v46 = vld [vmem:[#allocation102_spill] sm:$0xff] }
 0x116   :  { %5014 = vmatpush1.bf16.msra.mxu1 %v8877_v14  ;;  %4856 = vmatprep.subr.bf16.mxu0 %v8878_v24  ;;  %v8887_v14 = vld [vmem:[#allocation103_spill] sm:$0xff]  ;;  %v8888_v24 = vld [vmem:[#allocation104_spill] sm:$0xff] }
 0x117   :  { %5016 = vmatprep.subr.bf16.mxu1 %v8879_v38  ;;  %v8889_v38 = vld [vmem:[#allocation105_spill] sm:$0xff] }
 0x119   :  { %4858 = vmatpush1.bf16.msra.mxu0 %v8880_v21  ;;  %v8890_v21 = vld [vmem:[#allocation106_spill] sm:$0xff] }
 0x11a   :  { %5018 = vmatpush1.bf16.msra.mxu1 %v8881_v28  ;;  %4860 = vmatprep.subr.bf16.mxu0 %v8882_v12  ;;  %v8891_v12 = vld [vmem:[#allocation107_spill] sm:$0xff] }
 0x11b   :  { %5020 = vmatprep.subr.bf16.mxu1 %v8883_v45 }
 0x11d   :  { %4862 = vmatpush1.bf16.msra.mxu0 %v7123_v61  ;;  %v8892_v61 = vld [vmem:[#allocation108_spill] sm:$0xff] }
 0x11e   :  { %5022 = vmatpush1.bf16.msra.mxu1 %v8884_v42  ;;  %4864 = vmatprep.subr.bf16.mxu0 %v8885_v30  ;;  %v8893_v42 = vld [vmem:[#allocation109_spill] sm:$0xff]  ;;  %v8894_v30 = vld [vmem:[#allocation110_spill] sm:$0xff] }
 0x11f   :  { %5024 = vmatprep.subr.bf16.mxu1 %v8886_v46  ;;  %v8909_v46 = vld [vmem:[#allocation125_spill] sm:$0xff] }
 0x121   :  { %4866 = vmatpush1.bf16.msra.mxu0 %v8887_v14  ;;  %v8908_v14 = vld [vmem:[#allocation124_spill] sm:$0xff] }
 0x122   :  { %5026 = vmatpush1.bf16.msra.mxu1 %v8888_v24  ;;  %4868 = vmatprep.subr.bf16.mxu0 %v8889_v38  ;;  %v8895_v38 = vld [vmem:[#allocation111_spill] sm:$0xff]  ;;  %v8902_v24 = vld [vmem:[#allocation118_spill] sm:$0xff] }
 0x123   :  { %5028 = vmatprep.subr.bf16.mxu1 %v8890_v21  ;;  %v8896_v21 = vld [vmem:[#allocation112_spill] sm:$0xff] }
 0x124   :  { %1477 = vmatmul.mubr.f32.vlgmr.msra.gmra.mrb[4].mxu0 %v7465_v15 }
 0x125   :  { %4870 = vmatpush1.bf16.msra.mxu0 %v8891_v12  ;;  %1879 = vmatmul.mubr.f32.vlgmr.msra.gmra.mrb[4].mxu1 %v7465_v15  ;;  %v8897_v12 = vld [vmem:[#allocation113_spill] sm:$0xff]  ;;  %v8898_v15 = vld [vmem:[#allocation114_spill] sm:$0xff] }
 0x126   :  { %5030 = vmatpush1.bf16.msra.mxu1 %v8892_v61  ;;  %4872 = vmatprep.subr.bf16.mxu0 %v8893_v42  ;;  %v8900_v42 = vld [vmem:[#allocation116_spill] sm:$0xff]  ;;  %v8901_v61 = vld [vmem:[#allocation117_spill] sm:$0xff] }
 0x127   :  { %5032 = vmatprep.subr.bf16.mxu1 %v8894_v30  ;;  %1482 = vmatprep.mubr.f32.mxu0 %v8722_v3  ;;  %v8899_v30 = vld [vmem:[#allocation115_spill] sm:$0xff] }
 0x128   :  { %1884 = vmatprep.mubr.f32.mxu1 %v8722_v3  ;;  %1483 = vmatmul.mubr.f32.gmra.mrb[6].mxu0 %v7452_v58 }
 0x129   :  { %4874 = vmatpush1.bf16.msra.mxu0 %v8895_v38  ;;  %1885 = vmatmul.mubr.f32.gmra.mrb[6].mxu1 %v7452_v58  ;;  %v8903_v38 = vld [vmem:[#allocation119_spill] sm:$0xff]  ;;  %v8904_v58 = vld [vmem:[#allocation120_spill] sm:$0xff] }
 0x12a   :  { %5034 = vmatpush1.bf16.msra.mxu1 %v8896_v21  ;;  %4876 = vmatprep.subr.bf16.mxu0 %v8897_v12  ;;  %v8905_v21 = vld [vmem:[#allocation121_spill] sm:$0xff]  ;;  %v8906_v12 = vld [vmem:[#allocation122_spill] sm:$0xff] }
 0x12b   :  { %5036 = vmatprep.subr.bf16.mxu1 %v8898_v15  ;;  %1562 = vmatprep.mubr.f32.mxu0 %v8722_v3  ;;  %v8907_v15 = vld [vmem:[#allocation123_spill] sm:$0xff] }
 0x12c   :  { %1959 = vmatprep.mubr.f32.mxu1 %v8722_v3 }
 0x12d   :  { %4878 = vmatpush1.bf16.msra.mxu0 %v8899_v30  ;;  %v8910_v30 = vld [vmem:[#allocation126_spill] sm:$0xff] }
 0x12e   :  { %5038 = vmatpush1.bf16.msra.mxu1 %v8900_v42  ;;  %4880 = vmatprep.subr.bf16.mxu0 %v8901_v61 }
 0x12f   :  { %5040 = vmatprep.subr.bf16.mxu1 %v8902_v24 }
 0x131   :  { %4882 = vmatpush1.bf16.msra.mxu0 %v8903_v38 }
 0x132   :  { %5042 = vmatpush1.bf16.msra.mxu1 %v8904_v58  ;;  %4884 = vmatprep.subr.bf16.mxu0 %v8905_v21 }
 0x133   :  { %5044 = vmatprep.subr.bf16.mxu1 %v8906_v12  ;;  %v1493_v12 = vrot.slane %v7553_v5, 2  ;;  %v8912_v5 = vld [vmem:[#allocation13_spill] sm:$0xff] }
 0x135   :  { %4886 = vmatpush1.bf16.msra.mxu0 %v8907_v15  ;;  %v1494_v15 = vrot.slane %v7566_v41, 2  ;;  %v8911_v41 = vld [vmem:[#allocation12_spill] sm:$0xff] }
 0x136   :  { %5046 = vmatpush1.bf16.msra.mxu1 %v8908_v14  ;;  %4888 = vmatprep.subr.bf16.mxu0 %v8909_v46 }
 0x137   :  { %5048 = vmatprep.subr.bf16.mxu1 %v8910_v30 }
 0x139   :  { %4890 = vmatpush1.bf16.msra.mxu0 %v7391_v10 }
 0x13a   :  { %5050 = vmatpush1.bf16.msra.mxu1 %v7395_v2  ;;  %4892 = vmatprep.subr.bf16.mxu0 %v7397_v56  ;;  %v1495_v2 = vsel %vm528_vm1, %v1493_v12, %v1494_v15  ;;  %v7719_v12 = vld [vmem:[%s8405_s1 + $0x10] sm:$0xff] }
 0x13b   :  { %5052 = vmatprep.subr.bf16.mxu1 %v7409_v32 }
 0x13d   :  { %4894 = vmatpush1.bf16.msra.mxu0 %v7427_v23 }
 0x13e   :  { %5054 = vmatpush1.bf16.msra.mxu1 %v7431_v6  ;;  %4896 = vmatprep.subr.bf16.mxu0 %v7433_v49 }
 0x13f   :  { %5056 = vmatprep.subr.bf16.mxu1 %v7442_v62 }
 0x141   :  { %4898 = vmatpush1.bf16.msra.mxu0 %v7455_v29 }
 0x142   :  { %5058 = vmatpush1.bf16.msra.mxu1 %v7459_v47  ;;  %5060 = vmatprep.subr.bf16.mxu0 %v5961_v4 }
 0x143   :  { %5220 = vmatprep.subr.bf16.mxu1 %v5972_v8 }
 0x144   :  { %1563 = vmatmul.mubr.f32.vlgmr.msra.gmra.mrb[4].mxu0 %v1495_v2 }
 0x145   :  { %1960 = vmatmul.mubr.f32.vlgmr.msra.gmra.mrb[4].mxu1 %v1495_v2  ;;  %5062 = vmatpush1.bf16.msra.mxu0 %v5974_v9  ;;  %v7730_v2 = vld [vmem:[%s8405_s1 + $0x18] sm:$0xff] }
 0x146   :  { %5222 = vmatpush1.bf16.msra.mxu1 %v5986_v13  ;;  %1568 = vmatprep.mubr.f32.mxu0 %v8722_v3 }
 0x147   :  { %1965 = vmatprep.mubr.f32.mxu1 %v8722_v3  ;;  %5064 = vmatprep.subr.bf16.mxu0 %v5999_v17 }
 0x148   :  { %1569 = vmatmul.mubr.f32.gmra.mrb[6].mxu0 %v1494_v15  ;;  %5224 = vmatprep.subr.bf16.mxu1 %v6001_v18 }
 0x149   :  { %1966 = vmatmul.mubr.f32.gmra.mrb[6].mxu1 %v1494_v15  ;;  %5066 = vmatpush1.bf16.msra.mxu0 %v6013_v22  ;;  %v8913_v15 = vld [vmem:[#allocation14_spill] sm:$0xff] }
 0x14a   :  { %5226 = vmatpush1.bf16.msra.mxu1 %v6026_v26  ;;  %5068 = vmatprep.subr.bf16.mxu0 %v6028_v27 }
 0x14b   :  { %5228 = vmatprep.subr.bf16.mxu1 %v6039_v31  ;;  %2118 = vmatprep.mubr.f32.mxu0 %v8722_v3 }
 0x14c   :  { %2534 = vmatprep.mubr.f32.mxu1 %v8722_v3 }
 0x14d   :  { %5070 = vmatpush1.bf16.msra.mxu0 %v6051_v35 }
 0x14e   :  { %5230 = vmatpush1.bf16.msra.mxu1 %v6064_v39  ;;  %5072 = vmatprep.subr.bf16.mxu0 %v6066_v40 }
 0x14f   :  { %5232 = vmatprep.subr.bf16.mxu1 %v6078_v44 }
 0x151   :  { %5074 = vmatpush1.bf16.msra.mxu0 %v6099_v51 }
 0x152   :  { %5234 = vmatpush1.bf16.msra.mxu1 %v6103_v52  ;;  %5076 = vmatprep.subr.bf16.mxu0 %v6105_v53 }
 0x153   :  { %5236 = vmatprep.subr.bf16.mxu1 %v6117_v57 }
 0x155   :  { %5078 = vmatpush1.bf16.msra.mxu0 %v6135_v63 }
 0x156   :  { %5238 = vmatpush1.bf16.msra.mxu1 %v6139_v0  ;;  %5080 = vmatprep.subr.bf16.mxu0 %v6141_v1 }
 0x157   :  { %5240 = vmatprep.subr.bf16.mxu1 %v6153_v7 }
 0x159   :  { %5082 = vmatpush1.bf16.msra.mxu0 %v6171_v16 }
 0x15a   :  { %5242 = vmatpush1.bf16.msra.mxu1 %v6175_v19  ;;  %5084 = vmatprep.subr.bf16.mxu0 %v6177_v20 }
 0x15b   :  { %5244 = vmatprep.subr.bf16.mxu1 %v6189_v25 }
 0x15d   :  { %5086 = vmatpush1.bf16.msra.mxu0 %v6207_v34 }
 0x15e   :  { %5246 = vmatpush1.bf16.msra.mxu1 %v6211_v36  ;;  %5088 = vmatprep.subr.bf16.mxu0 %v6213_v37  ;;  %v8927_v37 = vld [vmem:[#allocation28_spill] sm:$0xff]  ;;  %v8928_v36 = vld [vmem:[#allocation29_spill] sm:$0xff] }
 0x15f   :  { %5248 = vmatprep.subr.bf16.mxu1 %v6225_v43  ;;  %v8923_v43 = vld [vmem:[#allocation24_spill] sm:$0xff] }
 0x161   :  { %5090 = vmatpush1.bf16.msra.mxu0 %v6243_v50  ;;  %v8921_v50 = vld [vmem:[#allocation22_spill] sm:$0xff] }
 0x162   :  { %5250 = vmatpush1.bf16.msra.mxu1 %v6247_v54  ;;  %5092 = vmatprep.subr.bf16.mxu0 %v6249_v55  ;;  %v8916_v55 = vld [vmem:[#allocation17_spill] sm:$0xff]  ;;  %v8917_v54 = vld [vmem:[#allocation18_spill] sm:$0xff] }
 0x163   :  { %5252 = vmatprep.subr.bf16.mxu1 %v6261_v60  ;;  %v8915_v60 = vld [vmem:[#allocation16_spill] sm:$0xff] }
 0x164   :  { %2119 = vmatmul.mubr.f32.vlgmr.msra.gmra.mrb[8].mxu0 %v7719_v12 }
 0x165   :  { %5094 = vmatpush1.bf16.msra.mxu0 %v6284_v11  ;;  %2535 = vmatmul.mubr.f32.vlgmr.msra.gmra.mrb[8].mxu1 %v7719_v12  ;;  %v8914_v11 = vld [vmem:[#allocation15_spill] sm:$0xff] }
 0x166   :  { %5254 = vmatpush1.bf16.msra.mxu1 %v8911_v41  ;;  %5096 = vmatprep.subr.bf16.mxu0 %v8912_v5  ;;  %v8919_v5 = vld [vmem:[#allocation20_spill] sm:$0xff]  ;;  %v8920_v41 = vld [vmem:[#allocation21_spill] sm:$0xff] }
 0x167   :  { %5256 = vmatprep.subr.bf16.mxu1 %v8913_v15  ;;  %2124 = vmatprep.mubr.f32.mxu0 %v8722_v3  ;;  %v8918_v15 = vld [vmem:[#allocation19_spill] sm:$0xff] }
 0x168   :  { %2540 = vmatprep.mubr.f32.mxu1 %v8722_v3  ;;  %2125 = vmatmul.mubr.f32.gmra.mrb[10].mxu0 %v7730_v2 }
 0x169   :  { %5098 = vmatpush1.bf16.msra.mxu0 %v8914_v11  ;;  %2541 = vmatmul.mubr.f32.gmra.mrb[10].mxu1 %v7730_v2  ;;  %v8922_v11 = vld [vmem:[#allocation23_spill] sm:$0xff] }
 0x16a   :  { %5258 = vmatpush1.bf16.msra.mxu1 %v8915_v60  ;;  %5100 = vmatprep.subr.bf16.mxu0 %v8916_v55  ;;  %v8924_v60 = vld [vmem:[#allocation25_spill] sm:$0xff]  ;;  %v8925_v55 = vld [vmem:[#allocation26_spill] sm:$0xff] }
 0x16b   :  { %5260 = vmatprep.subr.bf16.mxu1 %v8917_v54  ;;  %2195 = vmatprep.mubr.f32.mxu0 %v8722_v3  ;;  %v8926_v54 = vld [vmem:[#allocation27_spill] sm:$0xff] }
 0x16c   :  { %2611 = vmatprep.mubr.f32.mxu1 %v8722_v3 }
 0x16d   :  { %5102 = vmatpush1.bf16.msra.mxu0 %v8918_v15 }
 0x16e   :  { %5262 = vmatpush1.bf16.msra.mxu1 %v8919_v5  ;;  %5104 = vmatprep.subr.bf16.mxu0 %v8920_v41  ;;  %v8930_v5 = vld [vmem:[#allocation30_spill] sm:$0xff] }
 0x16f   :  { %5264 = vmatprep.subr.bf16.mxu1 %v8921_v50 }
 0x171   :  { %5106 = vmatpush1.bf16.msra.mxu0 %v8922_v11 }
 0x172   :  { %5266 = vmatpush1.bf16.msra.mxu1 %v8923_v43  ;;  %5108 = vmatprep.subr.bf16.mxu0 %v8924_v60  ;;  %v8947_v43 = vld [vmem:[#allocation40_spill] sm:$0xff] }
 0x173   :  { %5268 = vmatprep.subr.bf16.mxu1 %v8925_v55  ;;  %v8934_v55 = vld [vmem:[#allocation31_spill] sm:$0xff] }
 0x175   :  { %5110 = vmatpush1.bf16.msra.mxu0 %v8926_v54  ;;  %v8935_v54 = vld [vmem:[#allocation32_spill] sm:$0xff] }
 0x176   :  { %5270 = vmatpush1.bf16.msra.mxu1 %v8927_v37  ;;  %5112 = vmatprep.subr.bf16.mxu0 %v8928_v36  ;;  %v8936_v36 = vld [vmem:[#allocation33_spill] sm:$0xff]  ;;  %v8950_v37 = vld [vmem:[#allocation43_spill] sm:$0xff] }
 0x177   :  { %v7756_v15 = vpop.f32.mrb[0].mxu0  ;;  %5272 = vmatprep.subr.bf16.mxu1 %v8930_v5  ;;  %v8938_v5 = vld [vmem:[#allocation34_spill] sm:$0xff] }
 0x178   :  { %8929 = vst [vmem:[#allocation116_spill] sm:$0xff] %v7756_v15  ;;  %v7759_v41 = vpop.f32.mrb[0].mxu1  ;;  %v7761_v50 = vpop.f32.mrb[1].mxu0  ;;  %v8942_v15 = vld [vmem:[#allocation35_spill] sm:$0xff] }
 0x179   :  { %8931 = vst [vmem:[#allocation118_spill] sm:$0xff] %v7759_v41  ;;  %8932 = vst [vmem:[#allocation119_spill] sm:$0xff] %v7761_v50  ;;  %v7765_v60 = vpop.f32.mrb[1].mxu1  ;;  %5114 = vmatpush1.bf16.msra.mxu0 %v8934_v55  ;;  %v8944_v50 = vld [vmem:[#allocation37_spill] sm:$0xff] }
 0x17a   :  { %8933 = vst [vmem:[#allocation120_spill] sm:$0xff] %v7765_v60  ;;  %5274 = vmatpush1.bf16.msra.mxu1 %v8935_v54  ;;  %5116 = vmatprep.subr.bf16.mxu0 %v8936_v36  ;;  %v8943_v60 = vld [vmem:[#allocation36_spill] sm:$0xff]  ;;  %v8945_v36 = vld [vmem:[#allocation38_spill] sm:$0xff]  ;;  %v8968_v55 = vld [vmem:[#allocation61_spill] sm:$0xff] }
 0x17b   :  { %v7772_v11 = vpop.f32.mrb[2].mxu0  ;;  %5276 = vmatprep.subr.bf16.mxu1 %v8938_v5  ;;  %v8946_v5 = vld [vmem:[#allocation39_spill] sm:$0xff]  ;;  %v7793_v54 = vld [vmem:[%s8406_s0 + $0x10] sm:$0xff] }
 0x17c   :  { %8937 = vst [vmem:[#allocation124_spill] sm:$0xff] %v7772_v11  ;;  %v7775_v34 = vpop.f32.mrb[2].mxu1  ;;  %v7777_v25 = vpop.f32.mrb[3].mxu0  ;;  %v8949_v11 = vld [vmem:[#allocation42_spill] sm:$0xff] }
 0x17d   :  { %8939 = vst [vmem:[#allocation125_spill] sm:$0xff] %v7775_v34  ;;  %8940 = vst [vmem:[#allocation126_spill] sm:$0xff] %v7777_v25  ;;  %v7781_v41 = vpop.f32.mrb[3].mxu1  ;;  %5118 = vmatpush1.bf16.msra.mxu0 %v8942_v15  ;;  %v8948_v34 = vld [vmem:[#allocation41_spill] sm:$0xff]  ;;  %v8967_v15 = vld [vmem:[#allocation60_spill] sm:$0xff] }
 0x17e   :  { %8941 = vst [vmem:[#allocation129_spill] sm:$0xff] %v7781_v41  ;;  %5278 = vmatpush1.bf16.msra.mxu1 %v8943_v60  ;;  %5120 = vmatprep.subr.bf16.mxu0 %v8944_v50  ;;  %v8951_v41 = vld [vmem:[#allocation44_spill] sm:$0xff]  ;;  %v8952_v25 = vld [vmem:[#allocation45_spill] sm:$0xff]  ;;  %v8961_v50 = vld [vmem:[#allocation54_spill] sm:$0xff] }
 0x17f   :  { %5280 = vmatprep.subr.bf16.mxu1 %v8945_v36  ;;  %v8957_v36 = vld [vmem:[#allocation50_spill] sm:$0xff]  ;;  %v8963_v60 = vld [vmem:[#allocation56_spill] sm:$0xff] }
 0x181   :  { %5122 = vmatpush1.bf16.msra.mxu0 %v8946_v5  ;;  %v7804_v5 = vld [vmem:[%s8406_s0 + $0x18] sm:$0xff] }
 0x182   :  { %5282 = vmatpush1.bf16.msra.mxu1 %v8947_v43  ;;  %5124 = vmatprep.subr.bf16.mxu0 %v8948_v34  ;;  %v8953_v43 = vld [vmem:[#allocation46_spill] sm:$0xff]  ;;  %v8956_v34 = vld [vmem:[#allocation49_spill] sm:$0xff] }
 0x183   :  { %5284 = vmatprep.subr.bf16.mxu1 %v8949_v11  ;;  %v8955_v11 = vld [vmem:[#allocation48_spill] sm:$0xff] }
 0x184   :  { %2196 = vmatmul.mubr.f32.vlgmr.msra.gmra.mrb[8].mxu0 %v7793_v54 }
 0x185   :  { %5126 = vmatpush1.bf16.msra.mxu0 %v8950_v37  ;;  %2612 = vmatmul.mubr.f32.vlgmr.msra.gmra.mrb[8].mxu1 %v7793_v54  ;;  %v8954_v37 = vld [vmem:[#allocation47_spill] sm:$0xff] }
 0x186   :  { %5286 = vmatpush1.bf16.msra.mxu1 %v8951_v41  ;;  %5128 = vmatprep.subr.bf16.mxu0 %v8952_v25  ;;  %v8959_v25 = vld [vmem:[#allocation52_spill] sm:$0xff]  ;;  %v8960_v41 = vld [vmem:[#allocation53_spill] sm:$0xff] }
 0x187   :  { %5288 = vmatprep.subr.bf16.mxu1 %v8953_v43  ;;  %2201 = vmatprep.mubr.f32.mxu0 %v8722_v3  ;;  %v8958_v43 = vld [vmem:[#allocation51_spill] sm:$0xff] }
 0x188   :  { %2617 = vmatprep.mubr.f32.mxu1 %v8722_v3  ;;  %2202 = vmatmul.mubr.f32.gmra.mrb[10].mxu0 %v7804_v5 }
 0x189   :  { %5130 = vmatpush1.bf16.msra.mxu0 %v8954_v37  ;;  %2618 = vmatmul.mubr.f32.gmra.mrb[10].mxu1 %v7804_v5  ;;  %v8962_v37 = vld [vmem:[#allocation55_spill] sm:$0xff] }
 0x18a   :  { %5290 = vmatpush1.bf16.msra.mxu1 %v8955_v11  ;;  %5132 = vmatprep.subr.bf16.mxu0 %v8956_v34  ;;  %v8964_v11 = vld [vmem:[#allocation57_spill] sm:$0xff]  ;;  %v8965_v34 = vld [vmem:[#allocation58_spill] sm:$0xff] }
 0x18b   :  { %5292 = vmatprep.subr.bf16.mxu1 %v8957_v36  ;;  %2279 = vmatprep.mubr.f32.mxu0 %v8722_v3  ;;  %v8966_v36 = vld [vmem:[#allocation59_spill] sm:$0xff] }
 0x18c   :  { %2688 = vmatprep.mubr.f32.mxu1 %v8722_v3 }
 0x18d   :  { %5134 = vmatpush1.bf16.msra.mxu0 %v8958_v43  ;;  %v8969_v43 = vld [vmem:[#allocation62_spill] sm:$0xff] }
 0x18e   :  { %5294 = vmatpush1.bf16.msra.mxu1 %v8959_v25  ;;  %5136 = vmatprep.subr.bf16.mxu0 %v8960_v41  ;;  %v8970_v25 = vld [vmem:[#allocation63_spill] sm:$0xff] }
 0x18f   :  { %5296 = vmatprep.subr.bf16.mxu1 %v8961_v50  ;;  %v8971_v50 = vld [vmem:[#allocation65_spill] sm:$0xff] }
 0x191   :  { %5138 = vmatpush1.bf16.msra.mxu0 %v8962_v37  ;;  %v8997_v37 = vld [vmem:[#allocation93_spill] sm:$0xff] }
 0x192   :  { %5298 = vmatpush1.bf16.msra.mxu1 %v8963_v60  ;;  %5140 = vmatprep.subr.bf16.mxu0 %v8964_v11  ;;  %v2210_v11 = vrot.slane %v7793_v54, 1  ;;  %v8972_v60 = vld [vmem:[#allocation67_spill] sm:$0xff] }
 0x193   :  { %5300 = vmatprep.subr.bf16.mxu1 %v8965_v34  ;;  %v8980_v34 = vld [vmem:[#allocation75_spill] sm:$0xff] }
 0x195   :  { %5142 = vmatpush1.bf16.msra.mxu0 %v8966_v36  ;;  %v7838_v36 = vrot.slane %v7804_v5, 1 }
 0x196   :  { %5302 = vmatpush1.bf16.msra.mxu1 %v8967_v15  ;;  %5144 = vmatprep.subr.bf16.mxu0 %v8968_v55  ;;  %v8973_v15 = vld [vmem:[#allocation68_spill] sm:$0xff]  ;;  %v8974_v55 = vld [vmem:[#allocation69_spill] sm:$0xff] }
 0x197   :  { %5304 = vmatprep.subr.bf16.mxu1 %v8969_v43  ;;  %v8975_v43 = vld [vmem:[#allocation70_spill] sm:$0xff] }
 0x199   :  { %5146 = vmatpush1.bf16.msra.mxu0 %v8970_v25  ;;  %v8976_v25 = vld [vmem:[#allocation71_spill] sm:$0xff] }
 0x19a   :  { %5306 = vmatpush1.bf16.msra.mxu1 %v8849_v59  ;;  %5148 = vmatprep.subr.bf16.mxu0 %v8971_v50  ;;  %v7846_v50 = vsel %vm287_vm0, %v2210_v11, %v7838_v36  ;;  %v8978_v59 = vld [vmem:[#allocation73_spill] sm:$0xff]  ;;  %v8984_v11 = vld [vmem:[#allocation79_spill] sm:$0xff] }
 0x19b   :  { %5308 = vmatprep.subr.bf16.mxu1 %v8851_v33  ;;  %v8977_v33 = vld [vmem:[#allocation72_spill] sm:$0xff] }
 0x19d   :  { %5150 = vmatpush1.bf16.msra.mxu0 %v8972_v60  ;;  %v8979_v60 = vld [vmem:[#allocation74_spill] sm:$0xff] }
 0x19e   :  { %5310 = vmatpush1.bf16.msra.mxu1 %v8973_v15  ;;  %5152 = vmatprep.subr.bf16.mxu0 %v8974_v55  ;;  %v8981_v55 = vld [vmem:[#allocation76_spill] sm:$0xff] }
 0x19f   :  { %5312 = vmatprep.subr.bf16.mxu1 %v8975_v43  ;;  %v8982_v43 = vld [vmem:[#allocation77_spill] sm:$0xff]  ;;  %v8996_v15 = vld [vmem:[#allocation92_spill] sm:$0xff] }
 0x1a1   :  { %5154 = vmatpush1.bf16.msra.mxu0 %v8976_v25  ;;  %v8983_v25 = vld [vmem:[#allocation78_spill] sm:$0xff] }
 0x1a2   :  { %5314 = vmatpush1.bf16.msra.mxu1 %v8977_v33  ;;  %5156 = vmatprep.subr.bf16.mxu0 %v8978_v59  ;;  %v8987_v59 = vld [vmem:[#allocation82_spill] sm:$0xff] }
 0x1a3   :  { %5316 = vmatprep.subr.bf16.mxu1 %v8979_v60  ;;  %v8985_v60 = vld [vmem:[#allocation80_spill] sm:$0xff]  ;;  %v8991_v33 = vld [vmem:[#allocation86_spill] sm:$0xff] }
 0x1a4   :  { %2280 = vmatmul.mubr.f32.vlgmr.msra.gmra.mrb[8].mxu0 %v7846_v50 }
 0x1a5   :  { %5158 = vmatpush1.bf16.msra.mxu0 %v8980_v34  ;;  %2689 = vmatmul.mubr.f32.vlgmr.msra.gmra.mrb[8].mxu1 %v7846_v50  ;;  %v8986_v34 = vld [vmem:[#allocation81_spill] sm:$0xff] }
 0x1a6   :  { %5318 = vmatpush1.bf16.msra.mxu1 %v8981_v55  ;;  %5160 = vmatprep.subr.bf16.mxu0 %v8982_v43  ;;  %v8989_v43 = vld [vmem:[#allocation84_spill] sm:$0xff]  ;;  %v8990_v55 = vld [vmem:[#allocation85_spill] sm:$0xff] }
 0x1a7   :  { %5320 = vmatprep.subr.bf16.mxu1 %v8983_v25  ;;  %2285 = vmatprep.mubr.f32.mxu0 %v8722_v3  ;;  %v8988_v25 = vld [vmem:[#allocation83_spill] sm:$0xff] }
 0x1a8   :  { %2694 = vmatprep.mubr.f32.mxu1 %v8722_v3  ;;  %2286 = vmatmul.mubr.f32.gmra.mrb[10].mxu0 %v7838_v36 }
 0x1a9   :  { %5162 = vmatpush1.bf16.msra.mxu0 %v8984_v11  ;;  %2695 = vmatmul.mubr.f32.gmra.mrb[10].mxu1 %v7838_v36  ;;  %v8992_v11 = vld [vmem:[#allocation87_spill] sm:$0xff] }
 0x1aa   :  { %5322 = vmatpush1.bf16.msra.mxu1 %v8985_v60  ;;  %5164 = vmatprep.subr.bf16.mxu0 %v8986_v34  ;;  %v8993_v60 = vld [vmem:[#allocation89_spill] sm:$0xff]  ;;  %v8994_v34 = vld [vmem:[#allocation90_spill] sm:$0xff] }
 0x1ab   :  { %5324 = vmatprep.subr.bf16.mxu1 %v8987_v59  ;;  %2367 = vmatprep.mubr.f32.mxu0 %v8722_v3  ;;  %v8995_v59 = vld [vmem:[#allocation91_spill] sm:$0xff] }
 0x1ac   :  { %2769 = vmatprep.mubr.f32.mxu1 %v8722_v3 }
 0x1ad   :  { %5166 = vmatpush1.bf16.msra.mxu0 %v8988_v25  ;;  %v8998_v25 = vld [vmem:[#allocation94_spill] sm:$0xff] }
 0x1ae   :  { %5326 = vmatpush1.bf16.msra.mxu1 %v8989_v43  ;;  %5168 = vmatprep.subr.bf16.mxu0 %v8990_v55  ;;  %v8999_v43 = vld [vmem:[#allocation95_spill] sm:$0xff] }
 0x1af   :  { %5328 = vmatprep.subr.bf16.mxu1 %v8991_v33  ;;  %v9000_v33 = vld [vmem:[#allocation97_spill] sm:$0xff] }
 0x1b1   :  { %5170 = vmatpush1.bf16.msra.mxu0 %v8992_v11 }
 0x1b2   :  { %5330 = vmatpush1.bf16.msra.mxu1 %v8873_v48  ;;  %5172 = vmatprep.subr.bf16.mxu0 %v8993_v60  ;;  %v7884_v60 = vrot.slane %v7730_v2, 1  ;;  %v9008_v48 = vld [vmem:[#allocation106_spill] sm:$0xff] }
 0x1b3   :  { %5332 = vmatprep.subr.bf16.mxu1 %v8994_v34  ;;  %v9001_v34 = vld [vmem:[#allocation99_spill] sm:$0xff] }
 0x1b5   :  { %5174 = vmatpush1.bf16.msra.mxu0 %v8995_v59  ;;  %v2298_v59 = vrot.slane %v7719_v12, 1 }
 0x1b6   :  { %5334 = vmatpush1.bf16.msra.mxu1 %v8996_v15  ;;  %5176 = vmatprep.subr.bf16.mxu0 %v8997_v37  ;;  %v9002_v15 = vld [vmem:[#allocation100_spill] sm:$0xff]  ;;  %v9003_v37 = vld [vmem:[#allocation101_spill] sm:$0xff] }
 0x1b7   :  { %5336 = vmatprep.subr.bf16.mxu1 %v8998_v25  ;;  %v9004_v25 = vld [vmem:[#allocation102_spill] sm:$0xff] }
 0x1b9   :  { %5178 = vmatpush1.bf16.msra.mxu0 %v8999_v43  ;;  %v9005_v43 = vld [vmem:[#allocation103_spill] sm:$0xff] }
 0x1ba   :  { %5338 = vmatpush1.bf16.msra.mxu1 %v8881_v28  ;;  %5180 = vmatprep.subr.bf16.mxu0 %v9000_v33  ;;  %v7894_v33 = vsel %vm287_vm0, %v2298_v59, %v7884_v60  ;;  %v9007_v28 = vld [vmem:[#allocation105_spill] sm:$0xff]  ;;  %v9013_v59 = vld [vmem:[#allocation111_spill] sm:$0xff] }
 0x1bb   :  { %5340 = vmatprep.subr.bf16.mxu1 %v8883_v45  ;;  %v9006_v45 = vld [vmem:[#allocation104_spill] sm:$0xff] }
 0x1bd   :  { %5182 = vmatpush1.bf16.msra.mxu0 %v9001_v34  ;;  %v9009_v34 = vld [vmem:[#allocation107_spill] sm:$0xff] }
 0x1be   :  { %5342 = vmatpush1.bf16.msra.mxu1 %v9002_v15  ;;  %5184 = vmatprep.subr.bf16.mxu0 %v9003_v37  ;;  %v9010_v37 = vld [vmem:[#allocation108_spill] sm:$0xff] }
 0x1bf   :  { %5344 = vmatprep.subr.bf16.mxu1 %v9004_v25  ;;  %v9011_v25 = vld [vmem:[#allocation109_spill] sm:$0xff] }
 0x1c1   :  { %5186 = vmatpush1.bf16.msra.mxu0 %v9005_v43  ;;  %v9012_v43 = vld [vmem:[#allocation110_spill] sm:$0xff] }
 0x1c2   :  { %5346 = vmatpush1.bf16.msra.mxu1 %v9006_v45  ;;  %5188 = vmatprep.subr.bf16.mxu0 %v9007_v28  ;;  %v9016_v28 = vld [vmem:[#allocation114_spill] sm:$0xff] }
 0x1c3   :  { %5348 = vmatprep.subr.bf16.mxu1 %v9008_v48  ;;  %v9014_v48 = vld [vmem:[#allocation112_spill] sm:$0xff] }
 0x1c4   :  { %2368 = vmatmul.mubr.f32.vlgmr.msra.gmra.mrb[8].mxu0 %v7894_v33 }
 0x1c5   :  { %5190 = vmatpush1.bf16.msra.mxu0 %v9009_v34  ;;  %2770 = vmatmul.mubr.f32.vlgmr.msra.gmra.mrb[8].mxu1 %v7894_v33  ;;  %v9015_v34 = vld [vmem:[#allocation113_spill] sm:$0xff] }
 0x1c6   :  { %5350 = vmatpush1.bf16.msra.mxu1 %v9010_v37  ;;  %5192 = vmatprep.subr.bf16.mxu0 %v9011_v25 }
 0x1c7   :  { %5352 = vmatprep.subr.bf16.mxu1 %v9012_v43  ;;  %2373 = vmatprep.mubr.f32.mxu0 %v8722_v3  ;;  %v9017_v43 = vld [vmem:[#allocation115_spill] sm:$0xff] }
 0x1c8   :  { %2775 = vmatprep.mubr.f32.mxu1 %v8722_v3  ;;  %2374 = vmatmul.mubr.f32.gmra.mrb[10].mxu0 %v7884_v60 }
 0x1c9   :  { %5194 = vmatpush1.bf16.msra.mxu0 %v9013_v59  ;;  %2776 = vmatmul.mubr.f32.gmra.mrb[10].mxu1 %v7884_v60 }
 0x1ca   :  { %5354 = vmatpush1.bf16.msra.mxu1 %v9014_v48  ;;  %5196 = vmatprep.subr.bf16.mxu0 %v9015_v34  ;;  %v9018_v34 = vld [vmem:[#allocation122_spill] sm:$0xff] }
 0x1cb   :  { %5356 = vmatprep.subr.bf16.mxu1 %v9016_v28  ;;  %2453 = vmatprep.mubr.f32.mxu0 %v8722_v3  ;;  %v9019_v28 = vld [vmem:[#allocation123_spill] sm:$0xff] }
 0x1cc   :  { %2850 = vmatprep.mubr.f32.mxu1 %v8722_v3 }
 0x1cd   :  { %5198 = vmatpush1.bf16.msra.mxu0 %v9017_v43 }
 0x1ce   :  { %5358 = vmatpush1.bf16.msra.mxu1 %v8900_v42  ;;  %5200 = vmatprep.subr.bf16.mxu0 %v8901_v61  ;;  %v9020_v61 = vld [vmem:[#allocation127_spill] sm:$0xff] }
 0x1cf   :  { %5360 = vmatprep.subr.bf16.mxu1 %v8902_v24 }
 0x1d1   :  { %5202 = vmatpush1.bf16.msra.mxu0 %v8903_v38 }
 0x1d2   :  { %5362 = vmatpush1.bf16.msra.mxu1 %v8904_v58  ;;  %5204 = vmatprep.subr.bf16.mxu0 %v8905_v21  ;;  %v2384_v21 = vrot.slane %v7793_v54, 2  ;;  %v9048_v54 = vld [vmem:[#allocation29_spill] sm:$0xff] }
 0x1d3   :  { %5364 = vmatprep.subr.bf16.mxu1 %v9018_v34  ;;  %v7933_v34 = vrot.slane %v7804_v5, 2  ;;  %v9049_v5 = vld [vmem:[#allocation30_spill] sm:$0xff] }
 0x1d5   :  { %5206 = vmatpush1.bf16.msra.mxu0 %v9019_v28 }
 0x1d6   :  { %5366 = vmatpush1.bf16.msra.mxu1 %v8908_v14  ;;  %5208 = vmatprep.subr.bf16.mxu0 %v8909_v46 }
 0x1d7   :  { %5368 = vmatprep.subr.bf16.mxu1 %v8910_v30 }
 0x1d9   :  { %5210 = vmatpush1.bf16.msra.mxu0 %v7391_v10 }
 0x1da   :  { %5370 = vmatpush1.bf16.msra.mxu1 %v9020_v61  ;;  %5212 = vmatprep.subr.bf16.mxu0 %v7397_v56  ;;  %v7942_v56 = vsel %vm528_vm1, %v2384_v21, %v7933_v34 }
 0x1db   :  { %5372 = vmatprep.subr.bf16.mxu1 %v7409_v32 }
 0x1dd   :  { %5214 = vmatpush1.bf16.msra.mxu0 %v7427_v23 }
 0x1de   :  { %5374 = vmatpush1.bf16.msra.mxu1 %v7431_v6  ;;  %5216 = vmatprep.subr.bf16.mxu0 %v7433_v49 }
 0x1df   :  { %5376 = vmatprep.subr.bf16.mxu1 %v7442_v62 }
 0x1e1   :  { %5218 = vmatpush1.bf16.msra.mxu0 %v7455_v29 }
 0x1e2   :  { %5378 = vmatpush1.bf16.msra.mxu1 %v7459_v47  ;;  %5380 = vmatprep.subr.bf16.mxu0 %v5961_v4  ;;  %v9021_v4 = vld [vmem:[#allocation2_spill] sm:$0xff] }
 0x1e3   :  { %5540 = vmatprep.subr.bf16.mxu1 %v5972_v8  ;;  %v9022_v8 = vld [vmem:[#allocation3_spill] sm:$0xff] }
 0x1e4   :  { %2454 = vmatmul.mubr.f32.vlgmr.msra.gmra.mrb[8].mxu0 %v7942_v56 }
 0x1e5   :  { %2851 = vmatmul.mubr.f32.vlgmr.msra.gmra.mrb[8].mxu1 %v7942_v56  ;;  %5382 = vmatpush1.bf16.msra.mxu0 %v5974_v9  ;;  %v9023_v9 = vld [vmem:[#allocation4_spill] sm:$0xff] }
 0x1e6   :  { %5542 = vmatpush1.bf16.msra.mxu1 %v5986_v13  ;;  %2459 = vmatprep.mubr.f32.mxu0 %v8722_v3  ;;  %v9024_v13 = vld [vmem:[#allocation5_spill] sm:$0xff] }
 0x1e7   :  { %2856 = vmatprep.mubr.f32.mxu1 %v8722_v3  ;;  %5384 = vmatprep.subr.bf16.mxu0 %v5999_v17  ;;  %v9025_v17 = vld [vmem:[#allocation6_spill] sm:$0xff] }
 0x1e8   :  { %2460 = vmatmul.mubr.f32.gmra.mrb[10].mxu0 %v7933_v34  ;;  %5544 = vmatprep.subr.bf16.mxu1 %v6001_v18  ;;  %v9026_v18 = vld [vmem:[#allocation7_spill] sm:$0xff] }
 0x1e9   :  { %2857 = vmatmul.mubr.f32.gmra.mrb[10].mxu1 %v7933_v34  ;;  %5386 = vmatpush1.bf16.msra.mxu0 %v6013_v22  ;;  %v9027_v22 = vld [vmem:[#allocation8_spill] sm:$0xff] }
 0x1ea   :  { %5546 = vmatpush1.bf16.msra.mxu1 %v6026_v26  ;;  %5388 = vmatprep.subr.bf16.mxu0 %v6028_v27  ;;  %v9028_v26 = vld [vmem:[#allocation9_spill] sm:$0xff]  ;;  %v9029_v27 = vld [vmem:[#allocation10_spill] sm:$0xff] }
 0x1eb   :  { %5548 = vmatprep.subr.bf16.mxu1 %v6039_v31  ;;  %2931 = vmatprep.mubr.f32.mxu0 %v8722_v3  ;;  %v9030_v31 = vld [vmem:[#allocation11_spill] sm:$0xff] }
 0x1ec   :  { %3333 = vmatprep.mubr.f32.mxu1 %v8722_v3 }
 0x1ed   :  { %5390 = vmatpush1.bf16.msra.mxu0 %v6051_v35  ;;  %v9031_v35 = vld [vmem:[#allocation12_spill] sm:$0xff] }
 0x1ee   :  { %5550 = vmatpush1.bf16.msra.mxu1 %v6064_v39  ;;  %5392 = vmatprep.subr.bf16.mxu0 %v6066_v40  ;;  %v9032_v39 = vld [vmem:[#allocation13_spill] sm:$0xff]  ;;  %v9033_v40 = vld [vmem:[#allocation14_spill] sm:$0xff] }
 0x1ef   :  { %5552 = vmatprep.subr.bf16.mxu1 %v6078_v44  ;;  %v9034_v44 = vld [vmem:[#allocation15_spill] sm:$0xff] }
 0x1f1   :  { %5394 = vmatpush1.bf16.msra.mxu0 %v6099_v51  ;;  %v9035_v51 = vld [vmem:[#allocation16_spill] sm:$0xff] }
 0x1f2   :  { %5554 = vmatpush1.bf16.msra.mxu1 %v6103_v52  ;;  %5396 = vmatprep.subr.bf16.mxu0 %v6105_v53  ;;  %v9036_v52 = vld [vmem:[#allocation17_spill] sm:$0xff]  ;;  %v9037_v53 = vld [vmem:[#allocation18_spill] sm:$0xff] }
 0x1f3   :  { %5556 = vmatprep.subr.bf16.mxu1 %v6117_v57  ;;  %v9038_v57 = vld [vmem:[#allocation19_spill] sm:$0xff] }
 0x1f5   :  { %5398 = vmatpush1.bf16.msra.mxu0 %v6135_v63  ;;  %v9039_v63 = vld [vmem:[#allocation20_spill] sm:$0xff] }
 0x1f6   :  { %5558 = vmatpush1.bf16.msra.mxu1 %v6139_v0  ;;  %5400 = vmatprep.subr.bf16.mxu0 %v6141_v1  ;;  %v9040_v0 = vld [vmem:[#allocation21_spill] sm:$0xff]  ;;  %v9041_v1 = vld [vmem:[#allocation22_spill] sm:$0xff] }
 0x1f7   :  { %5560 = vmatprep.subr.bf16.mxu1 %v6153_v7  ;;  %v9042_v7 = vld [vmem:[#allocation23_spill] sm:$0xff] }
 0x1f9   :  { %5402 = vmatpush1.bf16.msra.mxu0 %v6171_v16  ;;  %v9043_v16 = vld [vmem:[#allocation24_spill] sm:$0xff] }
 0x1fa   :  { %5562 = vmatpush1.bf16.msra.mxu1 %v6175_v19  ;;  %5404 = vmatprep.subr.bf16.mxu0 %v6177_v20  ;;  %v9044_v19 = vld [vmem:[#allocation25_spill] sm:$0xff]  ;;  %v9045_v20 = vld [vmem:[#allocation26_spill] sm:$0xff] }
 0x1fb   :  { %5564 = vmatprep.subr.bf16.mxu1 %v9021_v4 }
 0x1fd   :  { %5406 = vmatpush1.bf16.msra.mxu0 %v9022_v8 }
 0x1fe   :  { %5566 = vmatpush1.bf16.msra.mxu1 %v9023_v9  ;;  %5408 = vmatprep.subr.bf16.mxu0 %v9024_v13 }
 0x1ff   :  { %5568 = vmatprep.subr.bf16.mxu1 %v9025_v17  ;;  %v9050_v17 = vld [vmem:[#allocation31_spill] sm:$0xff] }
 0x201   :  { %5410 = vmatpush1.bf16.msra.mxu0 %v9026_v18 }
 0x202   :  { %5570 = vmatpush1.bf16.msra.mxu1 %v9027_v22  ;;  %5412 = vmatprep.subr.bf16.mxu0 %v9028_v26  ;;  %v9051_v22 = vld [vmem:[#allocation32_spill] sm:$0xff]  ;;  %v9052_v26 = vld [vmem:[#allocation33_spill] sm:$0xff] }
 0x203   :  { %5572 = vmatprep.subr.bf16.mxu1 %v9029_v27  ;;  %v9053_v27 = vld [vmem:[#allocation116_spill] sm:$0xff] }
 0x204   :  { %2932 = vmatmul.mubr.f32.vlgmr.msra.gmra.mrb[12].mxu0 %v7846_v50 }
 0x205   :  { %5414 = vmatpush1.bf16.msra.mxu0 %v9030_v31  ;;  %3334 = vmatmul.mubr.f32.vlgmr.msra.gmra.mrb[12].mxu1 %v7846_v50  ;;  %v9047_v50 = vld [vmem:[#allocation28_spill] sm:$0xff]  ;;  %v9054_v31 = vld [vmem:[#allocation118_spill] sm:$0xff] }
 0x206   :  { %5574 = vmatpush1.bf16.msra.mxu1 %v9031_v35  ;;  %5416 = vmatprep.subr.bf16.mxu0 %v9032_v39  ;;  %v9055_v35 = vmax.f32 %v9053_v27, %v9054_v31  ;;  %v9073_v27 = vld [vmem:[#allocation42_spill] sm:$0xff]  ;;  %v9074_v31 = vld [vmem:[#allocation43_spill] sm:$0xff] }
 0x207   :  { %5576 = vmatprep.subr.bf16.mxu1 %v9033_v40  ;;  %2937 = vmatprep.mubr.f32.mxu0 %v8722_v3 }
 0x208   :  { %3339 = vmatprep.mubr.f32.mxu1 %v8722_v3  ;;  %2938 = vmatmul.mubr.f32.gmra.mrb[14].mxu0 %v7838_v36 }
 0x209   :  { %5418 = vmatpush1.bf16.msra.mxu0 %v9034_v44  ;;  %3340 = vmatmul.mubr.f32.gmra.mrb[14].mxu1 %v7838_v36  ;;  %v9046_v36 = vld [vmem:[#allocation27_spill] sm:$0xff]  ;;  %v9056_v44 = vld [vmem:[#allocation34_spill] sm:$0xff] }
 0x20a   :  { %5578 = vmatpush1.bf16.msra.mxu1 %v9035_v51  ;;  %5420 = vmatprep.subr.bf16.mxu0 %v9036_v52  ;;  %v9057_v51 = vld [vmem:[#allocation119_spill] sm:$0xff]  ;;  %v9058_v52 = vld [vmem:[#allocation120_spill] sm:$0xff] }
 0x20b   :  { %5580 = vmatprep.subr.bf16.mxu1 %v9037_v53  ;;  %3008 = vmatprep.mubr.f32.mxu0 %v8722_v3  ;;  %v9059_v53 = vmax.f32 %v9057_v51, %v9058_v52  ;;  %v9078_v51 = vld [vmem:[#allocation47_spill] sm:$0xff]  ;;  %v9079_v52 = vld [vmem:[#allocation48_spill] sm:$0xff] }
 0x20c   :  { %3410 = vmatprep.mubr.f32.mxu1 %v8722_v3 }
 0x20d   :  { %5422 = vmatpush1.bf16.msra.mxu0 %v9038_v57 }
 0x20e   :  { %5582 = vmatpush1.bf16.msra.mxu1 %v9039_v63  ;;  %5424 = vmatprep.subr.bf16.mxu0 %v9040_v0 }
 0x20f   :  { %5584 = vmatprep.subr.bf16.mxu1 %v9041_v1 }
 0x211   :  { %5426 = vmatpush1.bf16.msra.mxu0 %v9042_v7 }
 0x212   :  { %5586 = vmatpush1.bf16.msra.mxu1 %v9043_v16  ;;  %5428 = vmatprep.subr.bf16.mxu0 %v9044_v19  ;;  %v9060_v16 = vld [vmem:[#allocation35_spill] sm:$0xff] }
 0x213   :  { %5588 = vmatprep.subr.bf16.mxu1 %v9045_v20  ;;  %v9061_v20 = vld [vmem:[#allocation36_spill] sm:$0xff] }
 0x215   :  { %5430 = vmatpush1.bf16.msra.mxu0 %v9046_v36  ;;  %v9062_v36 = vld [vmem:[#allocation37_spill] sm:$0xff] }
 0x216   :  { %5590 = vmatpush1.bf16.msra.mxu1 %v9047_v50  ;;  %5432 = vmatprep.subr.bf16.mxu0 %v9048_v54  ;;  %v9063_v50 = vld [vmem:[#allocation124_spill] sm:$0xff]  ;;  %v9064_v54 = vld [vmem:[#allocation125_spill] sm:$0xff] }
 0x217   :  { %v1564_v21 = vpop.f32.mrb[4].mxu0  ;;  %5592 = vmatprep.subr.bf16.mxu1 %v9049_v5 }
 0x218   :  { %v1961_v4 = vpop.f32.mrb[4].mxu1  ;;  %v1566_v8 = vpop.f32.mrb[5].mxu0 }
 0x219   :  { %v1980_v9 = vmax.f32 %v1564_v21, %v1961_v4  ;;  %v1963_v13 = vpop.f32.mrb[5].mxu1  ;;  %5434 = vmatpush1.bf16.msra.mxu0 %v9050_v17  ;;  %v9065_v21 = vmax.f32 %v9063_v50, %v9064_v54  ;;  %v9066_v4 = vld [vmem:[#allocation38_spill] sm:$0xff]  ;;  %v9089_v50 = vld [vmem:[#allocation59_spill] sm:$0xff]  ;;  %v9090_v54 = vld [vmem:[#allocation60_spill] sm:$0xff] }
 0x21a   :  { %v1981_v18 = vmax.f32 %v1566_v8, %v1963_v13  ;;  %5594 = vmatpush1.bf16.msra.mxu1 %v9051_v22  ;;  %5436 = vmatprep.subr.bf16.mxu0 %v9052_v26  ;;  %v9067_v8 = vld [vmem:[#allocation126_spill] sm:$0xff]  ;;  %v9071_v22 = vld [vmem:[#allocation40_spill] sm:$0xff]  ;;  %v9072_v26 = vld [vmem:[#allocation41_spill] sm:$0xff] }
 0x21b   :  { %v8021_v39 = vmax.f32 %v9055_v35, %v1980_v9  ;;  %v1570_v40 = vpop.f32.mrb[6].mxu0  ;;  %5596 = vmatprep.subr.bf16.mxu1 %v9056_v44  ;;  %v9068_v9 = vld [vmem:[#allocation129_spill] sm:$0xff]  ;;  %v9075_v35 = vld [vmem:[#allocation44_spill] sm:$0xff]  ;;  %v9077_v44 = vld [vmem:[#allocation46_spill] sm:$0xff] }
 0x21c   :  { %v8027_v57 = vmax.f32 %v9059_v53, %v1981_v18  ;;  %v1967_v63 = vpop.f32.mrb[6].mxu1  ;;  %v1572_v0 = vpop.f32.mrb[7].mxu0  ;;  %v9069_v13 = vmax.f32 %v9067_v8, %v9068_v9  ;;  %v9070_v18 = vld [vmem:[#allocation39_spill] sm:$0xff]  ;;  %v9080_v53 = vld [vmem:[#allocation49_spill] sm:$0xff] }
 0x21d   :  { %v1982_v1 = vmax.f32 %v1570_v40, %v1967_v63  ;;  %v1969_v7 = vpop.f32.mrb[7].mxu1  ;;  %5438 = vmatpush1.bf16.msra.mxu0 %v9060_v16  ;;  %v9076_v40 = vld [vmem:[#allocation45_spill] sm:$0xff]  ;;  %v9081_v63 = vld [vmem:[#allocation50_spill] sm:$0xff]  ;;  %v9085_v16 = vld [vmem:[#allocation55_spill] sm:$0xff] }
 0x21e   :  { %v1983_v19 = vmax.f32 %v1572_v0, %v1969_v7  ;;  %5598 = vmatpush1.bf16.msra.mxu1 %v9061_v20  ;;  %5440 = vmatprep.subr.bf16.mxu0 %v9062_v36  ;;  %v9082_v0 = vld [vmem:[#allocation51_spill] sm:$0xff]  ;;  %v9084_v7 = vld [vmem:[#allocation54_spill] sm:$0xff]  ;;  %v9087_v20 = vld [vmem:[#allocation57_spill] sm:$0xff] }
 0x21f   :  { %v8035_v5 = vmax.f32 %v9065_v21, %v1982_v1  ;;  %5600 = vmatprep.subr.bf16.mxu1 %v9066_v4  ;;  %v9083_v1 = vld [vmem:[#allocation52_spill] sm:$0xff]  ;;  %v9088_v36 = vld [vmem:[#allocation58_spill] sm:$0xff]  ;;  %v9091_v21 = vld [vmem:[#allocation61_spill] sm:$0xff] }
 0x220   :  { %v8041_v17 = vmax.f32 %v9069_v13, %v1983_v19  ;;  %v9086_v19 = vld [vmem:[#allocation56_spill] sm:$0xff]  ;;  %v9092_v4 = vld [vmem:[#allocation62_spill] sm:$0xff]  ;;  %v9093_v8 = vld [vmem:[#allocation63_spill] sm:$0xff] }
 0x221   :  { %5442 = vmatpush1.bf16.msra.mxu0 %v9070_v18  ;;  %v9095_v9 = vld [vmem:[#allocation65_spill] sm:$0xff]  ;;  %v9096_v13 = vld [vmem:[#allocation66_spill] sm:$0xff]  ;;  %v9097_v18 = vld [vmem:[#allocation67_spill] sm:$0xff] }
 0x222   :  { %5602 = vmatpush1.bf16.msra.mxu1 %v9071_v22  ;;  %5444 = vmatprep.subr.bf16.mxu0 %v9072_v26  ;;  %v9098_v22 = vld [vmem:[#allocation68_spill] sm:$0xff]  ;;  %v9099_v26 = vld [vmem:[#allocation69_spill] sm:$0xff] }
 0x223   :  { %5604 = vmatprep.subr.bf16.mxu1 %v9073_v27  ;;  %v9100_v27 = vld [vmem:[#allocation70_spill] sm:$0xff] }
 0x224   :  { %3009 = vmatmul.mubr.f32.vlgmr.msra.gmra.mrb[12].mxu0 %v7719_v12 }
 0x225   :  { %5446 = vmatpush1.bf16.msra.mxu0 %v9074_v31  ;;  %3411 = vmatmul.mubr.f32.vlgmr.msra.gmra.mrb[12].mxu1 %v7719_v12  ;;  %v9101_v31 = vld [vmem:[#allocation71_spill] sm:$0xff] }
 0x226   :  { %5606 = vmatpush1.bf16.msra.mxu1 %v9075_v35  ;;  %5448 = vmatprep.subr.bf16.mxu0 %v9076_v40  ;;  %v9102_v35 = vld [vmem:[#allocation72_spill] sm:$0xff]  ;;  %v9103_v40 = vld [vmem:[#allocation73_spill] sm:$0xff] }
 0x227   :  { %5608 = vmatprep.subr.bf16.mxu1 %v9077_v44  ;;  %3014 = vmatprep.mubr.f32.mxu0 %v8722_v3  ;;  %v9104_v44 = vld [vmem:[#allocation74_spill] sm:$0xff] }
 0x228   :  { %3416 = vmatprep.mubr.f32.mxu1 %v8722_v3  ;;  %3015 = vmatmul.mubr.f32.gmra.mrb[14].mxu0 %v7730_v2 }
 0x229   :  { %5450 = vmatpush1.bf16.msra.mxu0 %v9078_v51  ;;  %3417 = vmatmul.mubr.f32.gmra.mrb[14].mxu1 %v7730_v2  ;;  %v9105_v51 = vld [vmem:[#allocation75_spill] sm:$0xff] }
 0x22a   :  { %5610 = vmatpush1.bf16.msra.mxu1 %v9079_v52  ;;  %5452 = vmatprep.subr.bf16.mxu0 %v9080_v53  ;;  %v9106_v52 = vld [vmem:[#allocation76_spill] sm:$0xff]  ;;  %v9107_v53 = vld [vmem:[#allocation77_spill] sm:$0xff] }
 0x22b   :  { %5612 = vmatprep.subr.bf16.mxu1 %v9081_v63  ;;  %3085 = vmatprep.mubr.f32.mxu0 %v8722_v3  ;;  %v9108_v63 = vld [vmem:[#allocation78_spill] sm:$0xff] }
 0x22c   :  { %3487 = vmatprep.mubr.f32.mxu1 %v8722_v3 }
 0x22d   :  { %5454 = vmatpush1.bf16.msra.mxu0 %v9082_v0  ;;  %v9109_v0 = vld [vmem:[#allocation79_spill] sm:$0xff] }
 0x22e   :  { %5614 = vmatpush1.bf16.msra.mxu1 %v9083_v1  ;;  %5456 = vmatprep.subr.bf16.mxu0 %v8960_v41  ;;  %v9094_v41 = vld [vmem:[#allocation64_spill] sm:$0xff] }
 0x22f   :  { %5616 = vmatprep.subr.bf16.mxu1 %v9084_v7  ;;  %v9110_v1 = vld [vmem:[#allocation80_spill] sm:$0xff]  ;;  %v9111_v7 = vld [vmem:[#allocation81_spill] sm:$0xff] }
 0x231   :  { %5458 = vmatpush1.bf16.msra.mxu0 %v9085_v16  ;;  %v9113_v16 = vld [vmem:[#allocation83_spill] sm:$0xff] }
 0x232   :  { %5618 = vmatpush1.bf16.msra.mxu1 %v9086_v19  ;;  %5460 = vmatprep.subr.bf16.mxu0 %v9087_v20  ;;  %v9114_v19 = vld [vmem:[#allocation84_spill] sm:$0xff]  ;;  %v9115_v20 = vld [vmem:[#allocation86_spill] sm:$0xff] }
 0x233   :  { %5620 = vmatprep.subr.bf16.mxu1 %v9088_v36  ;;  %v9117_v36 = vld [vmem:[#allocation89_spill] sm:$0xff] }
 0x235   :  { %5462 = vmatpush1.bf16.msra.mxu0 %v9089_v50  ;;  %v9118_v50 = vld [vmem:[#allocation90_spill] sm:$0xff] }
 0x236   :  { %5622 = vmatpush1.bf16.msra.mxu1 %v9090_v54  ;;  %5464 = vmatprep.subr.bf16.mxu0 %v9091_v21  ;;  %v9119_v54 = vld [vmem:[#allocation91_spill] sm:$0xff]  ;;  %v9120_v21 = vld [vmem:[#allocation92_spill] sm:$0xff] }
 0x237   :  { %5624 = vmatprep.subr.bf16.mxu1 %v9092_v4  ;;  %v9121_v4 = vld [vmem:[#allocation93_spill] sm:$0xff] }
 0x239   :  { %5466 = vmatpush1.bf16.msra.mxu0 %v9093_v8  ;;  %v9122_v8 = vld [vmem:[#allocation94_spill] sm:$0xff] }
 0x23a   :  { %5626 = vmatpush1.bf16.msra.mxu1 %v9094_v41  ;;  %5468 = vmatprep.subr.bf16.mxu0 %v9095_v9  ;;  %v9123_v41 = vld [vmem:[#allocation95_spill] sm:$0xff]  ;;  %v9125_v9 = vld [vmem:[#allocation97_spill] sm:$0xff] }
 0x23b   :  { %5628 = vmatprep.subr.bf16.mxu1 %v9096_v13  ;;  %v9127_v13 = vld [vmem:[#allocation99_spill] sm:$0xff] }
 0x23d   :  { %5470 = vmatpush1.bf16.msra.mxu0 %v9097_v18  ;;  %v9128_v18 = vld [vmem:[#allocation101_spill] sm:$0xff] }
 0x23e   :  { %5630 = vmatpush1.bf16.msra.mxu1 %v9098_v22  ;;  %5472 = vmatprep.subr.bf16.mxu0 %v9099_v26  ;;  %v9129_v22 = vld [vmem:[#allocation102_spill] sm:$0xff]  ;;  %v9130_v26 = vld [vmem:[#allocation103_spill] sm:$0xff] }
 0x23f   :  { %5632 = vmatprep.subr.bf16.mxu1 %v9100_v27  ;;  %v9131_v27 = vld [vmem:[#allocation105_spill] sm:$0xff] }
 0x241   :  { %5474 = vmatpush1.bf16.msra.mxu0 %v9101_v31  ;;  %v9132_v31 = vld [vmem:[#allocation106_spill] sm:$0xff] }
 0x242   :  { %5634 = vmatpush1.bf16.msra.mxu1 %v9102_v35  ;;  %5476 = vmatprep.subr.bf16.mxu0 %v9103_v40  ;;  %v9133_v35 = vld [vmem:[#allocation107_spill] sm:$0xff] }
 0x243   :  { %5636 = vmatprep.subr.bf16.mxu1 %v9104_v44  ;;  %v3732_v44 = vld [vmem:[%s8407_s6 + $0x20] sm:$0xff] }
 0x244   :  { %3086 = vmatmul.mubr.f32.vlgmr.msra.gmra.mrb[12].mxu0 %v7894_v33 }
 0x245   :  { %5478 = vmatpush1.bf16.msra.mxu0 %v9105_v51  ;;  %3488 = vmatmul.mubr.f32.vlgmr.msra.gmra.mrb[12].mxu1 %v7894_v33  ;;  %v9112_v33 = vld [vmem:[#allocation82_spill] sm:$0xff]  ;;  %v3733_v51 = vld [vmem:[%s8407_s6 + $0x28] sm:$0xff] }
 0x246   :  { %5638 = vmatpush1.bf16.msra.mxu1 %v9106_v52  ;;  %5480 = vmatprep.subr.bf16.mxu0 %v9107_v53  ;;  %v5706_v52 = vpack.c.bf16 %v3733_v51, %v3732_v44  ;;  %v3734_v53 = vld [vmem:[%s8407_s6 + $0x30] sm:$0xff] }
 0x247   :  { %5640 = vmatprep.subr.bf16.mxu1 %v9108_v63  ;;  %3091 = vmatprep.mubr.f32.mxu0 %v8722_v3  ;;  %v3735_v63 = vld [vmem:[%s8407_s6 + $0x38] sm:$0xff] }
 0x248   :  { %3493 = vmatprep.mubr.f32.mxu1 %v8722_v3  ;;  %3092 = vmatmul.mubr.f32.gmra.mrb[14].mxu0 %v7884_v60 }
 0x249   :  { %5482 = vmatpush1.bf16.msra.mxu0 %v9109_v0  ;;  %3494 = vmatmul.mubr.f32.gmra.mrb[14].mxu1 %v7884_v60  ;;  %v9116_v60 = vld [vmem:[#allocation88_spill] sm:$0xff]  ;;  %v5709_v0 = vpack.c.bf16 %v3735_v63, %v3734_v53 }
 0x24a   :  { %5642 = vmatpush1.bf16.msra.mxu1 %v9110_v1  ;;  %5484 = vmatprep.subr.bf16.mxu0 %v9111_v7  ;;  %v3736_v1 = vld [vmem:[%s8407_s6 + $0x40] sm:$0xff]  ;;  %v3737_v7 = vld [vmem:[%s8407_s6 + $0x48] sm:$0xff] }
 0x24b   :  { %5644 = vmatprep.subr.bf16.mxu1 %v9112_v33  ;;  %3166 = vmatprep.mubr.f32.mxu0 %v8722_v3  ;;  %v5712_v33 = vpack.c.bf16 %v3737_v7, %v3736_v1 }
 0x24c   :  { %3568 = vmatprep.mubr.f32.mxu1 %v8722_v3 }
 0x24d   :  { %5486 = vmatpush1.bf16.msra.mxu0 %v9113_v16  ;;  %v3738_v16 = vld [vmem:[%s8407_s6 + $0x50] sm:$0xff] }
 0x24e   :  { %5646 = vmatpush1.bf16.msra.mxu1 %v9114_v19  ;;  %5488 = vmatprep.subr.bf16.mxu0 %v8990_v55  ;;  %v9124_v55 = vld [vmem:[#allocation96_spill] sm:$0xff]  ;;  %v3739_v19 = vld [vmem:[%s8407_s6 + $0x58] sm:$0xff] }
 0x24f   :  { %5648 = vmatprep.subr.bf16.mxu1 %v9115_v20  ;;  %v5715_v20 = vpack.c.bf16 %v3739_v19, %v3738_v16 }
 0x251   :  { %5490 = vmatpush1.bf16.msra.mxu0 %v8992_v11  ;;  %v9126_v11 = vld [vmem:[#allocation98_spill] sm:$0xff] }
 0x252   :  { %5650 = vmatpush1.bf16.msra.mxu1 %v9116_v60  ;;  %5492 = vmatprep.subr.bf16.mxu0 %v9117_v36  ;;  %v3740_v60 = vld [vmem:[%s8407_s6 + $0x60] sm:$0xff]  ;;  %v3741_v36 = vld [vmem:[%s8407_s6 + $0x68] sm:$0xff] }
 0x253   :  { %5652 = vmatprep.subr.bf16.mxu1 %v9118_v50  ;;  %v5718_v50 = vpack.c.bf16 %v3741_v36, %v3740_v60 }
 0x255   :  { %5494 = vmatpush1.bf16.msra.mxu0 %v9119_v54  ;;  %v3742_v54 = vld [vmem:[%s8407_s6 + $0x70] sm:$0xff] }
 0x256   :  { %5654 = vmatpush1.bf16.msra.mxu1 %v9120_v21  ;;  %5496 = vmatprep.subr.bf16.mxu0 %v9121_v4  ;;  %v3743_v21 = vld [vmem:[%s8407_s6 + $0x78] sm:$0xff]  ;;  %v3744_v4 = vld [vmem:[%s8407_s6 + $0x80] sm:$0xff] }
 0x257   :  { %5656 = vmatprep.subr.bf16.mxu1 %v9122_v8  ;;  %v5721_v8 = vpack.c.bf16 %v3743_v21, %v3742_v54 }
 0x259   :  { %5498 = vmatpush1.bf16.msra.mxu0 %v9123_v41  ;;  %v3745_v41 = vld [vmem:[%s8407_s6 + $0x88] sm:$0xf] }
 0x25a   :  { %5658 = vmatpush1.bf16.msra.mxu1 %v9124_v55  ;;  %5500 = vmatprep.subr.bf16.mxu0 %v9125_v9  ;;  %v5724_v55 = vpack.c.bf16 %v3745_v41, %v3744_v4  ;;  %v1990_v9 = vlaneseq }
 0x25b   :  { %5660 = vmatprep.subr.bf16.mxu1 %v9126_v11 }
 0x25c   :  { %v1991_v11 = vshrl.u32 %v1990_v9, 7 }
 0x25d   :  { %5502 = vmatpush1.bf16.msra.mxu0 %v9127_v13 }
 0x25e   :  { %5662 = vmatpush1.bf16.msra.mxu1 %v9002_v15  ;;  %5504 = vmatprep.subr.bf16.mxu0 %v9128_v18  ;;  %v9134_v15 = vld [vmem:[#allocation110_spill] sm:$0xff]  ;;  %v8267_v13 = vsub.s32 0, %v1991_v11 }
 0x25f   :  { %5664 = vmatprep.subr.bf16.mxu1 %v9129_v22  ;;  %v1988_v18 = vld [vmem:[%s8408_s3] sm:$0x3]  ;;  %v1996_v22 = vsub.s32 1, %v1991_v11 }
 0x261   :  { %5506 = vmatpush1.bf16.msra.mxu0 %v9130_v26  ;;  %v1993_v26 = vrot.slane %v1988_v18, %v8267_v13 }
 0x262   :  { %5666 = vmatpush1.bf16.msra.mxu1 %v9006_v45  ;;  %5508 = vmatprep.subr.bf16.mxu0 %v9131_v27  ;;  %v9135_v45 = vld [vmem:[#allocation113_spill] sm:$0xff]  ;;  %v1997_v27 = vrot.slane %v1988_v18, %v1996_v22 }
 0x263   :  { %5668 = vmatprep.subr.bf16.mxu1 %v9132_v31  ;;  %v2002_v31 = vadd.f32 %v1993_v26, %v8035_v5 }
 0x264   :  { %3167 = vmatmul.mubr.f32.vlgmr.msra.gmra.mrb[12].mxu0 %v7942_v56 }
 0x265   :  { %5510 = vmatpush1.bf16.msra.mxu0 %v9133_v35  ;;  %3569 = vmatmul.mubr.f32.vlgmr.msra.gmra.mrb[12].mxu1 %v7942_v56  ;;  %v9136_v56 = vld [vmem:[#allocation114_spill] sm:$0xff]  ;;  %v2003_v35 = vadd.f32 %v1997_v27, %v8041_v17 }
 0x266   :  { %5670 = vmatpush1.bf16.msra.mxu1 %v9010_v37  ;;  %5512 = vmatprep.subr.bf16.mxu0 %v9011_v25  ;;  %v9137_v25 = vld [vmem:[#allocation117_spill] sm:$0xff]  ;;  %v9139_v37 = vld [vmem:[#allocation122_spill] sm:$0xff] }
 0x267   :  { %5672 = vmatprep.subr.bf16.mxu1 %v9134_v15  ;;  %3172 = vmatprep.mubr.f32.mxu0 %v8722_v3  ;;  %v2001_v15 = vadd.f32 %v1997_v27, %v8027_v57 }
 0x268   :  { %3574 = vmatprep.mubr.f32.mxu1 %v8722_v3  ;;  %3173 = vmatmul.mubr.f32.gmra.mrb[14].mxu0 %v7933_v34 }
 0x269   :  { %5514 = vmatpush1.bf16.msra.mxu0 %v9013_v59  ;;  %3575 = vmatmul.mubr.f32.gmra.mrb[14].mxu1 %v7933_v34  ;;  %v9138_v34 = vld [vmem:[#allocation121_spill] sm:$0xff] }
 0x26a   :  { %5674 = vmatpush1.bf16.msra.mxu1 %v9014_v48  ;;  %5516 = vmatprep.subr.bf16.mxu0 %v9135_v45  ;;  %v3731_v59 = vld [vmem:[%s8407_s6 + $0x18] sm:$0xff]  ;;  %v8276_v45 = vmax.f32 %v2002_v31, 0.0 }
 0x26b   :  { %5676 = vmatprep.subr.bf16.mxu1 %v9136_v56  ;;  %3252 = vmatprep.mubr.f32.mxu0 %v8722_v3  ;;  %v2000_v56 = vadd.f32 %v1993_v26, %v8021_v39 }
 0x26c   :  { %3649 = vmatprep.mubr.f32.mxu1 %v8722_v3  ;;  %v2008_v39 = vsel %vm528_vm1, %v8276_v45, 0.0 }
 0x26d   :  { %5518 = vmatpush1.bf16.msra.mxu0 %v9017_v43  ;;  %v9140_v43 = vld [vmem:[#allocation128_spill] sm:$0xff] }
 0x26e   :  { %5678 = vmatpush1.bf16.msra.mxu1 %v8900_v42  ;;  %5520 = vmatprep.subr.bf16.mxu0 %v9137_v25  ;;  %v8279_v25 = vmax.f32 %v2003_v35, 0.0 }
 0x26f   :  { %5680 = vmatprep.subr.bf16.mxu1 %v8902_v24  ;;  %v3183_v24 = vrot.slane %v7719_v12, 2 }
 0x270   :  { %v2030_v5 = vmul.f32 %v8279_v25, %v8279_v25 }
 0x271   :  { %5522 = vmatpush1.bf16.msra.mxu0 %v8903_v38  ;;  %v3184_v38 = vrot.slane %v7730_v2, 2  ;;  %v3730_v2 = vld [vmem:[%s8407_s6 + $0x10] sm:$0xff] }
 0x272   :  { %5682 = vmatpush1.bf16.msra.mxu1 %v8904_v58  ;;  %5524 = vmatprep.subr.bf16.mxu0 %v9138_v34  ;;  %v5703_v40 = vpack.c.bf16 %v3731_v59, %v3730_v2  ;;  %v8281_v34 = vmax.f32 %v2001_v15, 0.0  ;;  %v2040_v59 = vsel %vm2018_vm5, %v2030_v5, 0.0 }
 0x273   :  { %5684 = vmatprep.subr.bf16.mxu1 %v9139_v37  ;;  %v2029_v37 = vmul.f32 %v8276_v45, %v8276_v45 }
 0x274   :  { %v2028_v57 = vmul.f32 %v8281_v34, %v8281_v34  ;;  %v2017_v2 = vsel %vm2016_vm6, %v8281_v34, 0.0 }
 0x275   :  { %5526 = vmatpush1.bf16.msra.mxu0 %v9019_v28 }
 0x276   :  { %5686 = vmatpush1.bf16.msra.mxu1 %v8908_v14  ;;  %5528 = vmatprep.subr.bf16.mxu0 %v8909_v46  ;;  %v3728_v14 = vld [vmem:[%s8407_s6] sm:$0xff]  ;;  %v2039_v63 = vsel %vm2016_vm6, %v2028_v57, 0.0 }
 0x277   :  { %5688 = vmatprep.subr.bf16.mxu1 %v8910_v30  ;;  %v2041_v16 = vadd.f32 %v2040_v59, %v2039_v63 }
 0x279   :  { %5530 = vmatpush1.bf16.msra.mxu0 %v7391_v10  ;;  %v3185_v10 = vsel %vm528_vm1, %v3183_v24, %v3184_v38  ;;  %v2019_v24 = vsel %vm2018_vm5, %v8279_v25, 0.0 }
 0x27a   :  { %5690 = vmatpush1.bf16.msra.mxu1 %v9020_v61  ;;  %5532 = vmatprep.subr.bf16.mxu0 %v9140_v43  ;;  %v3729_v61 = vld [vmem:[%s8407_s6 + $0x8] sm:$0xff]  ;;  %v8285_v43 = vmax.f32 %v2000_v56, 0.0  ;;  %v2020_v51 = vadd.f32 %v2019_v24, %v2017_v2 }
 0x27b   :  { %5692 = vmatprep.subr.bf16.mxu1 %v7409_v32  ;;  %v5903_v32 = vmov 0.0|0.0  }
 0x27c   :  { %v2009_v44 = vadd.f32 %v2008_v39, %v8285_v43  ;;  %v2021_v21 = vrot.slane %v2020_v51, 4 }
 0x27d   :  { %5534 = vmatpush1.bf16.msra.mxu0 %v7427_v23 }
 0x27e   :  { %5694 = vmatpush1.bf16.msra.mxu1 %v7431_v6  ;;  %5536 = vmatprep.subr.bf16.mxu0 %v7433_v49  ;;  %v5700_v49 = vpack.c.bf16 %v3729_v61, %v3728_v14  ;;  %v2031_v61 = vsel %vm528_vm1, %v2029_v37, 0.0  ;;  %v2010_v54 = vrot.slane %v2009_v44, 4 }
 0x27f   :  { %5696 = vmatprep.subr.bf16.mxu1 %v7442_v62 }
 0x280   :  { %v2011_v41 = vadd.f32 %v2010_v54, %v2009_v44 }
 0x281   :  { %5538 = vmatpush1.bf16.msra.mxu0 %v7455_v29 }
 0x282   :  { %5698 = vmatpush1.bf16.msra.mxu1 %v7459_v47  ;;  %5699 = vmatprep.subr.bf16.mxu0 %v5903_v32  ;;  %v2012_v31 = vrot.slane %v2011_v41, 2 }
 0x283   :  { %5727 = vmatprep.subr.bf16.mxu1 %v5903_v32 }
 0x284   :  { %3253 = vmatmul.mubr.f32.vlgmr.msra.gmra.mrb[12].mxu0 %v3185_v10  ;;  %v2013_v59 = vadd.f32 %v2012_v31, %v2011_v41 }
 0x285   :  { %3650 = vmatmul.mubr.f32.vlgmr.msra.gmra.mrb[12].mxu1 %v3185_v10  ;;  %3258 = vmatprep.mubr.f32.mxu0 %v8722_v3 }
 0x286   :  { %3655 = vmatprep.mubr.f32.mxu1 %v8722_v3  ;;  %5701 = vmatpush1.bf16.msra.mxu0 %v5700_v49 }
 0x287   :  { %5729 = vmatpush1.bf16.msra.mxu1 %v5700_v49  ;;  %5702 = vmatprep.subr.bf16.mxu0 %v5903_v32  ;;  %v2027_v49 = vmul.f32 %v8285_v43, %v8285_v43 }
 0x288   :  { %3259 = vmatmul.mubr.f32.gmra.mrb[14].mxu0 %v3184_v38  ;;  %5730 = vmatprep.subr.bf16.mxu1 %v5903_v32 }
 0x289   :  { %3656 = vmatmul.mubr.f32.gmra.mrb[14].mxu1 %v3184_v38 }
 0x28a   :  { %5704 = vmatpush1.bf16.msra.mxu0 %v5703_v40 }
 0x28b   :  { %5732 = vmatpush1.bf16.msra.mxu1 %v5703_v40  ;;  %5705 = vmatprep.subr.bf16.mxu0 %v5903_v32 }
 0x28c   :  { %5733 = vmatprep.subr.bf16.mxu1 %v5903_v32 }
 0x28e   :  { %5707 = vmatpush1.bf16.msra.mxu0 %v5706_v52 }
 0x28f   :  { %5735 = vmatpush1.bf16.msra.mxu1 %v5706_v52  ;;  %5708 = vmatprep.subr.bf16.mxu0 %v5903_v32 }
 0x290   :  { %5736 = vmatprep.subr.bf16.mxu1 %v5903_v32 }
 0x292   :  { %5710 = vmatpush1.bf16.msra.mxu0 %v5709_v0 }
 0x293   :  { %5738 = vmatpush1.bf16.msra.mxu1 %v5709_v0  ;;  %5711 = vmatprep.subr.bf16.mxu0 %v5903_v32  ;;  %v2032_v0 = vadd.f32 %v2031_v61, %v2027_v49 }
 0x294   :  { %5739 = vmatprep.subr.bf16.mxu1 %v5903_v32 }
 0x296   :  { %5713 = vmatpush1.bf16.msra.mxu0 %v5712_v33 }
 0x297   :  { %5741 = vmatpush1.bf16.msra.mxu1 %v5712_v33  ;;  %5714 = vmatprep.subr.bf16.mxu0 %v5903_v32 }
 0x298   :  { %5742 = vmatprep.subr.bf16.mxu1 %v5903_v32 }
 0x29a   :  { %5716 = vmatpush1.bf16.msra.mxu0 %v5715_v20 }
 0x29b   :  { %5744 = vmatpush1.bf16.msra.mxu1 %v5715_v20  ;;  %5717 = vmatprep.subr.bf16.mxu0 %v5903_v32 }
 0x29c   :  { %5745 = vmatprep.subr.bf16.mxu1 %v5903_v32 }
 0x29e   :  { %5719 = vmatpush1.bf16.msra.mxu0 %v5718_v50 }
 0x29f   :  { %5747 = vmatpush1.bf16.msra.mxu1 %v5718_v50  ;;  %5720 = vmatprep.subr.bf16.mxu0 %v5903_v32 }
 0x2a0   :  { %5748 = vmatprep.subr.bf16.mxu1 %v5903_v32 }
 0x2a2   :  { %5722 = vmatpush1.bf16.msra.mxu0 %v5721_v8 }
 0x2a3   :  { %5750 = vmatpush1.bf16.msra.mxu1 %v5721_v8  ;;  %5723 = vmatprep.subr.bf16.mxu0 %v5903_v32 }
 0x2a4   :  { %5751 = vmatprep.subr.bf16.mxu1 %v5903_v32 }
 0x2a6   :  { %5726 = vmatpush1.bf16.msk.msra.mxu0 %vm5725_vm4, %v5724_v55 }
 0x2a7   :  { %5754 = vmatpush1.bf16.msk.msra.mxu1 %vm5725_vm4, %v5724_v55  ;;  %v2022_v55 = vadd.f32 %v2021_v21, %v2020_v51 }
 0x2a9   :  { %v2023_v56 = vrot.slane %v2022_v55, 2 }
 0x2ab   :  { %v2024_v2 = vadd.f32 %v2023_v56, %v2022_v55 }
 0x2b7   :  { %v8180_v6 = vpop.f32.mrb[8].mxu0 }
 0x2b8   :  { %v8182_v23 = vpop.f32.mrb[8].mxu1  ;;  %v8184_v62 = vpop.f32.mrb[9].mxu0 }
 0x2b9   :  { %v3666_v29 = vmax.f32 %v8180_v6, %v8182_v23  ;;  %v8188_v47 = vpop.f32.mrb[9].mxu1  ;;  %v2033_v23 = vrot.slane %v2032_v0, 4 }
 0x2ba   :  { %v3667_v42 = vmax.f32 %v8184_v62, %v8188_v47  ;;  %v2042_v47 = vrot.slane %v2041_v16, 4 }
 0x2bb   :  { %v8192_v28 = vpop.f32.mrb[10].mxu0  ;;  %v2034_v11 = vadd.f32 %v2033_v23, %v2032_v0 }
 0x2bc   :  { %v8194_v30 = vpop.f32.mrb[10].mxu1  ;;  %v8196_v46 = vpop.f32.mrb[11].mxu0 }
 0x2bd   :  { %v3668_v48 = vmax.f32 %v8192_v28, %v8194_v30  ;;  %v8200_v58 = vpop.f32.mrb[11].mxu1 }
 0x2be   :  { %v3669_v12 = vmax.f32 %v8196_v46, %v8200_v58 }
 0x357   :  { %v3254_v17 = vpop.f32.mrb[12].mxu0 }
 0x358   :  { %v3651_v38 = vpop.f32.mrb[12].mxu1  ;;  %v3256_v14 = vpop.f32.mrb[13].mxu0 }
 0x359   :  { %v3670_v10 = vmax.f32 %v3254_v17, %v3651_v38  ;;  %v3653_v32 = vpop.f32.mrb[13].mxu1 }
 0x35a   :  { %v3671_v40 = vmax.f32 %v3256_v14, %v3653_v32  ;;  %v2035_v14 = vrot.slane %v2034_v11, 2 }
 0x35b   :  { %v3674_v52 = vmax.f32 %v3666_v29, %v3670_v10  ;;  %v3260_v53 = vpop.f32.mrb[14].mxu0 }
 0x35c   :  { %v3675_v1 = vmax.f32 %v3667_v42, %v3671_v40  ;;  %v3657_v7 = vpop.f32.mrb[14].mxu1  ;;  %v3262_v33 = vpop.f32.mrb[15].mxu0 }
 0x35d   :  { %v3678_v19 = vadd.f32 %v3674_v52, %v1993_v26  ;;  %v3672_v20 = vmax.f32 %v3260_v53, %v3657_v7  ;;  %v3659_v60 = vpop.f32.mrb[15].mxu1  ;;  %v2025_v7 = vrot.slane %v2024_v2, 1 }
 0x35e   :  { %v3679_v36 = vadd.f32 %v3675_v1, %v1997_v27  ;;  %v3673_v50 = vmax.f32 %v3262_v33, %v3659_v60  ;;  %v2036_v1 = vadd.f32 %v2035_v14, %v2034_v11 }
 0x35f   :  { %v3676_v6 = vmax.f32 %v3668_v48, %v3672_v20  ;;  %v8317_v42 = vmax.f32 %v3678_v19, 0.0  ;;  %v2014_v19 = vrot.slane %v2013_v59, 1 }
 0x360   :  { %v8312_v29 = vmax.f32 %v3679_v36, 0.0  ;;  %v3677_v62 = vmax.f32 %v3669_v12, %v3673_v50  ;;  %v2043_v12 = vadd.f32 %v2042_v47, %v2041_v16 }
 0x361   :  { %v3680_v4 = vadd.f32 %v3676_v6, %v1993_v26  ;;  %v3703_v48 = vmul.f32 %v8317_v42, %v8317_v42  ;;  %v2037_v6 = vrot.slane %v2036_v1, 1 }
 0x362   :  { %v3681_v8 = vadd.f32 %v3677_v62, %v1997_v27  ;;  %v3704_v28 = vmul.f32 %v8312_v29, %v8312_v29  ;;  %v3694_v18 = vsel %vm2016_vm6, %v8312_v29, 0.0  ;;  %v2044_v38 = vrot.slane %v2043_v12, 2 }
 0x363   :  { %v8319_v9 = vmax.f32 %v3680_v4, 0.0  ;;  %v2026_v62 = vadd.f32 %v2025_v7, %v2024_v2 }
 0x364   :  { %v8323_v30 = vmax.f32 %v3681_v8, 0.0  ;;  %v3715_v37 = vsel %vm2016_vm6, %v3704_v28, 0.0  ;;  %v2045_v52 = vadd.f32 %v2044_v38, %v2043_v12  ;;  %v2015_v8 = vadd.f32 %v2014_v19, %v2013_v59  ;;  %v3901_v38 = vld [vmem:[%s8410_s4] sm:$0x1] }
 0x365   :  { %v3686_v46 = vsel %vm528_vm1, %v8319_v9, 0.0  ;;  %v3705_v58 = vmul.f32 %v8319_v9, %v8319_v9 }
 0x366   :  { %v3687_v22 = vadd.f32 %v3686_v46, %v8317_v42  ;;  %v3695_v26 = vsel %vm2018_vm5, %v8323_v30, 0.0  ;;  %v3706_v27 = vmul.f32 %v8323_v30, %v8323_v30  ;;  %v2046_v50 = vrot.slane %v2045_v52, 1 }
 0x367   :  { %v3707_v35 = vsel %vm528_vm1, %v3705_v58, 0.0  ;;  %v3696_v15 = vadd.f32 %v3695_v26, %v3694_v18  ;;  %v2038_v46 = vadd.f32 %v2037_v6, %v2036_v1  ;;  %v3909_v18 = vld [vmem:[%s8409_s7 + $0x8] sm:$0xff] }
 0x368   :  { %v3688_v5 = vrot.slane %v3687_v22, 4  ;;  %v3708_v17 = vadd.f32 %v3707_v35, %v3703_v48  ;;  %v3716_v57 = vsel %vm2018_vm5, %v3706_v27, 0.0  ;;  %v2047_v28 = vadd.f32 %v2046_v50, %v2045_v52  ;;  %v3908_v27 = vld [vmem:[%s8409_s7] sm:$0xff] }
 0x369   :  { %v3697_v39 = vrot.slane %v3696_v15, 4  ;;  %v3717_v24 = vadd.f32 %v3716_v57, %v3715_v37 }
 0x36a   :  { %v3689_v61 = vadd.f32 %v3688_v5, %v3687_v22  ;;  %v3709_v10 = vrot.slane %v3708_v17, 4  ;;  %v3911_v22 = vld [vmem:[%s8409_s7 + $0x18] sm:$0x3] }
 0x36b   :  { %v3698_v32 = vadd.f32 %v3697_v39, %v3696_v15  ;;  %v3718_v49 = vrot.slane %v3717_v24, 4  ;;  %v5755_v26 = vpack.c.bf16 %v3911_v22, %v3909_v18 }
 0x36c   :  { %v3690_v40 = vrot.slane %v3689_v61, 2  ;;  %v3710_v44 = vadd.f32 %v3709_v10, %v3708_v17  ;;  %v3905_v10 = vld [vmem:[%s8411_s5] sm:$0x1] }
 0x36d   :  { %v3699_v51 = vrot.slane %v3698_v32, 2  ;;  %v3719_v53 = vadd.f32 %v3718_v49, %v3717_v24  ;;  %5757 = vmatprep.subr.msk.bf16.mxu0 %vm5756_vm8, %v5755_v26  ;;  %5763 = vmatprep.subr.msk.bf16.mxu1 %vm5756_vm8, %v5755_v26 }
 0x36e   :  { %v3691_v63 = vadd.f32 %v3690_v40, %v3689_v61  ;;  %v3711_v0 = vrot.slane %v3710_v44, 2 }
 0x36f   :  { %v3700_v33 = vadd.f32 %v3699_v51, %v3698_v32  ;;  %v3720_v16 = vrot.slane %v3719_v53, 2 }
 0x370   :  { %v3692_v20 = vrot.slane %v3691_v63, 1  ;;  %v3712_v60 = vadd.f32 %v3711_v0, %v3710_v44 }
 0x371   :  { %v3701_v36 = vrot.slane %v3700_v33, 1  ;;  %v3721_v54 = vadd.f32 %v3720_v16, %v3719_v53 }
 0x372   :  { %v3693_v21 = vadd.f32 %v3692_v20, %v3691_v63  ;;  %v3713_v23 = vrot.slane %v3712_v60, 1 }
 0x373   :  { %v3702_v47 = vadd.f32 %v3701_v36, %v3700_v33  ;;  %v3722_v4 = vrot.slane %v3721_v54, 1 }
 0x374   :  { %v3714_v41 = vadd.f32 %v3713_v23, %v3712_v60  ;;  %v3724_v48 = vadd.f32 %v3693_v21, %v2015_v8 }
 0x375   :  { %v3725_v55 = vadd.f32 %v3702_v47, %v2026_v62  ;;  %v3723_v11 = vadd.f32 %v3722_v4, %v3721_v54 }
 0x376   :  { %v3726_v12 = vadd.f32 %v3714_v41, %v2038_v46 }
 0x377   :  { %4406 = vmatprep.mubr.msk.f32.mxu0 %vm2016_vm6, %v3725_v55  ;;  %v3727_v58 = vadd.f32 %v3723_v11, %v2047_v28 }
 0x378   :  { %3818 = vmatmul.mubr.f32.vlgmr.msra.gmra.mrb[16].mxu0 %v3724_v48 }
 0x379   :  { %4408 = vmatprep.mubr.msk.f32.mxu1 %vm2016_vm6, %v3727_v58  ;;  %3987 = vmatprep.mubr.f32.mxu0 %v8722_v3 }
 0x37a   :  { %3893 = vmatmul.mubr.f32.vlgmr.msra.gmra.mrb[16].mxu1 %v3726_v12 }
 0x37b   :  { %4061 = vmatprep.mubr.f32.mxu1 %v8722_v3  ;;  %v3910_v3 = vld [vmem:[%s8409_s7 + $0x10] sm:$0x3] }
 0x37c   :  { %v5758_v31 = vpack.c.bf16 %v3910_v3, %v3908_v27 }
 0x37e   :  { %5760 = vmatpush1.bf16.msk.msra.mxu0 %vm5756_vm8, %v5758_v31  ;;  %5766 = vmatpush1.bf16.msk.msra.mxu1 %vm5756_vm8, %v5758_v31 }
 0x44b   :  { %v3819_v35 = vpop.f32.mrb[16].mxu0 }
 0x44c   :  { %v3824_v15 = vmul.f32 0.0025510204, %v3819_v35  ;;  %v3821_v56 = vpop.f32.mrb[17].mxu0 }
 0x44d   :  { %v3894_v37 = vpop.f32.mrb[16].mxu1 }
 0x44e   :  { %v3899_v5 = vmul.f32 %v3824_v15, %v3824_v15  ;;  %v3898_v17 = vmul.f32 0.0025510204, %v3894_v37  ;;  %v3896_v57 = vpop.f32.mrb[17].mxu1 }
 0x450   :  { %v3900_v39 = vsub.f32 %v3898_v17, %v3899_v5 }
 0x452   :  { %v3902_v24 = vadd.f32 1e-05, %v3900_v39 }
 0x454   :  { %5898 = vrsqrt.f32 %v3902_v24 }
 0x45e   :  { %v5899_v14 = vpop.eup %5898 }
 0x45f   :  { %v3904_v61 = vmul.f32 %v5899_v14, %v3901_v38 }
 0x461   :  { %4411 = vmatmul.mubr.msk.f32.vlgmr.msra.gmra.mrb[18].mxu0 %vm3912_vm9, %v3904_v61  ;;  %v3906_v32 = vmul.f32 %v3904_v61, %v3824_v15 }
 0x463   :  { %v3907_v49 = vsub.f32 %v3905_v10, %v3906_v32 }
 0x465   :  { %4414 = vmatmul.mubr.msk.f32.vlgmr.msra.gmra.mrb[18].mxu1 %vm3912_vm9, %v3907_v49 }
 0x534   :  { %v3989_v2 = vpop.f32.mrb[18].mxu0 }
 0x535   :  { %v4071_v59 = vrot.slane %v3989_v2, %v8267_v13  ;;  %v3991_v40 = vpop.f32.mrb[19].mxu0 }
 0x536   :  { %v4075_v44 = vrot.slane %v3991_v40, %v8267_v13 }
 0x537   :  { %v4076_v51 = vmul.f32 %v4071_v59, %v8285_v43  ;;  %v4078_v52 = vmul.f32 %v4071_v59, %v8276_v45  ;;  %v4096_v63 = vmul.f32 %v4071_v59, %v8317_v42  ;;  %v4098_v0 = vmul.f32 %v4071_v59, %v8319_v9 }
 0x538   :  { %v4063_v53 = vpop.f32.mrb[18].mxu1  ;;  %v4077_v1 = vmul.f32 %v4075_v44, %v8281_v34  ;;  %v4079_v16 = vmul.f32 %v4075_v44, %v8279_v25  ;;  %v4097_v19 = vmul.f32 %v4075_v44, %v8312_v29  ;;  %v4099_v20 = vmul.f32 %v4075_v44, %v8323_v30 }
 0x539   :  { %v4083_v7 = vrot.slane %v4063_v53, %v8267_v13  ;;  %v4065_v33 = vpop.f32.mrb[19].mxu1 }
 0x53a   :  { %v4087_v43 = vrot.slane %v4065_v33, %v8267_v13 }
 0x53b   :  { %v4088_v60 = vadd.f32 %v4083_v7, %v4076_v51  ;;  %v4090_v45 = vadd.f32 %v4083_v7, %v4078_v52  ;;  %v4100_v36 = vadd.f32 %v4096_v63, %v4083_v7  ;;  %v4102_v50 = vadd.f32 %v4098_v0, %v4083_v7 }
 0x53c   :  { %v4089_v42 = vadd.f32 %v4087_v43, %v4077_v1  ;;  %v4091_v54 = vadd.f32 %v4087_v43, %v4079_v16  ;;  %v4101_v9 = vadd.f32 %v4097_v19, %v4087_v43  ;;  %v4103_v21 = vadd.f32 %v4099_v20, %v4087_v43 }
 0x53d   :  { %4092 = vst [vmem:[%s8412_s8] sm:$0xff] %v4088_v60  ;;  %4094 = vst [vmem:[%s8412_s8 + $0x10] sm:$0x3f] %v4090_v45 }
 0x53e   :  { %4415 = vst [vmem:[%s8412_s8 + $0x20] sm:$0xff] %v4100_v36  ;;  %4417 = vst [vmem:[%s8412_s8 + $0x30] sm:$0x3f] %v4102_v50 }
 0x53f   :  { %4093 = vst.msk [vmem:[%s8412_s8 + $0x8] sm:$0xff] %vm2016_vm6, %v4089_v42  ;;  %4416 = vst.msk [vmem:[%s8412_s8 + $0x28] sm:$0xff] %vm2016_vm6, %v4101_v9 }
 0x540   :  { %4095 = vst.msk [vmem:[%s8412_s8 + $0x18] sm:$0x3f] %vm2018_vm5, %v4091_v54  ;;  %4418 = vst.msk [vmem:[%s8412_s8 + $0x38] sm:$0x3f] %vm2018_vm5, %v4103_v21 }

// kernel: tile.18
= control target key start
LH: loop header
LB: loop body
LE: loop exit
PB: predicated region body
PF: predicated region fallthrough
CT: control target
= control target key end

     0   :  { %s22_s0 = inlined_call_operand.vmem [shape: f32[20], index: 0, kind: input, shape index: {}]   ;;  %s23_s1 = inlined_call_operand.vmem [shape: f32[5,20], index: 1, kind: output, shape index: {}]  }
   0x1   :  { %v4_v0 = vld [vmem:[%s22_s0] ss:$0 sm:$0xff] }
   0x2   :  { %5 = vst [vmem:[%s23_s1] sm:$0xff] %v4_v0 }

// kernel: tile.19
= control target key start
LH: loop header
LB: loop body
LE: loop exit
PB: predicated region body
PF: predicated region fallthrough
CT: control target
= control target key end

     0   :  { %s43_s10 = smov 80   ;;  %s44_s11 = smov 40   ;;  %vm3_vm0 = vcmask 162816   ;;  %vm9_vm1 = vcmask 818816   ;;  %vm15_vm2 = vcmask 654816   ;;  %vm21_vm3 = vcmask 490816   ;;  %s75_s0 = inlined_call_operand.vmem [shape: f32[5,20], index: 0, kind: input, shape index: {}]   ;;  %s76_s1 = inlined_call_operand.vmem [shape: f32[1,100], index: 1, kind: output, shape index: {}]  }
   0x1   :  { %v35_v0 = vld [vmem:[%s75_s0 + $0x4] sm:$0x1]   ;;  %v37_v1 = vld [vmem:[%s75_s0 + $0x2] sm:$0x1]   ;;  %v36_v2 = vld [vmem:[%s75_s0 + $0x3] sm:$0x1]  }
   0x2   :  { %7 = vrot.lane.b32.xlu0 %v35_v0, %s43_s10  ;;  %19 = vrot.lane.b32.xlu1 %v37_v1, %s44_s11  ;;  %v38_v3 = vld [vmem:[%s75_s0 + $0x1] sm:$0x1]   ;;  %v2_v4 = vld [vmem:[%s75_s0] sm:$0x1]   ;;  %s45_s0 = smov 60   ;;  %s46_s18 = smov 20  }
   0x3   :  { %4 = vst.msk [vmem:[#allocation0] sm:$0x1] %vm3_vm0, %v2_v4   ;;  %vm27_vm4 = vcmask 326816  }
   0x6   :  { %13 = vrot.lane.b32.xlu0 %v36_v2, %s45_s0  ;;  %25 = vrot.lane.b32.xlu1 %v38_v3, %s46_s18 }
  0x74   :  { %v8_v5 = vpop.permute.xlu0 %7   ;;  %v20_v6 = vpop.permute.xlu1 %19  }
  0x75   :  { %10 = vst.msk [vmem:[#allocation0] sm:$0x1] %vm9_vm1, %v8_v5  }
  0x78   :  { %v14_v7 = vpop.permute.xlu0 %13   ;;  %v26_v8 = vpop.permute.xlu1 %25  }
  0x79   :  { %16 = vst.msk [vmem:[#allocation0] sm:$0x1] %vm15_vm2, %v14_v7  }
  0x7a   :  { %22 = vst.msk [vmem:[#allocation0] sm:$0x1] %vm21_vm3, %v20_v6  }
  0x7b   :  { %28 = vst.msk [vmem:[#allocation0] sm:$0x1] %vm27_vm4, %v26_v8  }
  0x82   :  { %v32_v9 = vld [vmem:[#allocation0] sm:$0x1] }
  0x83   :  { %34 = vst [vmem:[%s76_s1] sm:$0x1] %v32_v9 }

// kernel: stn_forward.4
= control target key start
LH: loop header
LB: loop body
LE: loop exit
PB: predicated region body
PF: predicated region fallthrough
CT: control target
= control target key end

     0   :  { %v5139_v0 = vmov 0.0|0.0   ;;  %vm70_vm0 = vcmask 97280   ;;  %vm74_vm1 = vcmask 1043456   ;;  %vm5140_vm2 = vmmov 1   ;;  %s7038_s2 = inlined_call_operand.vmem [shape: f32[2,5,140,100], index: 2, kind: input, shape index: {}]   ;;  %s7039_s1 = inlined_call_operand.vmem [shape: f32[2,7,140], index: 1, kind: input, shape index: {}]   ;;  %s7040_s0 = inlined_call_operand.vmem [shape: f32[2,7,140], index: 0, kind: input, shape index: {}]   ;;  %s7041_s6 = inlined_call_operand.vmem [shape: f32[100,20], index: 6, kind: input, shape index: {}]   ;;  %s7042_s3 = inlined_call_operand.vmem [shape: f32[1,100], index: 3, kind: input, shape index: {}]   ;;  %s7043_s7 = inlined_call_operand.vmem [shape: f32[20,100], index: 7, kind: input, shape index: {}]   ;;  %s7044_s4 = inlined_call_operand.vmem [shape: f32[1,20], index: 4, kind: input, shape index: {}]   ;;  %s7045_s5 = inlined_call_operand.vmem [shape: f32[1,20], index: 5, kind: input, shape index: {}]   ;;  %s7046_s8 = inlined_call_operand.vmem [shape: f32[2,5,100], index: 8, kind: output, shape index: {}]  }
   0x1   :  { %3905 = vmatprep.subr.bf16.mxu0 %v5139_v0  ;;  %4045 = vmatprep.subr.bf16.mxu1 %v5139_v0  ;;  %v3537_v1 = vld [vmem:[%s7038_s2 + $0x90] sm:$0xff]  ;;  %v3538_v2 = vld [vmem:[%s7038_s2 + $0x98] sm:$0xff]  ;;  %v3637_v3 = vld [vmem:[%s7038_s2 + $0x360] sm:$0xff]  ;;  %vm5142_vm4 = vmmov 0   ;;  %vm1706_vm5 = vcmask 815104   ;;  %vm3203_vm6 = vcmask 818176  }
   0x2   :  { %v5199_v4 = vpack.c.bf16 %v3538_v2, %v3537_v1  ;;  %v3638_v5 = vld [vmem:[%s7038_s2 + $0x368] sm:$0xff]  ;;  %v3539_v6 = vld [vmem:[%s7038_s2 + $0xa0] sm:$0xff]  ;;  %v3639_v9 = vld [vmem:[%s7038_s2 + $0x370] sm:$0xff]  ;;  %vm3368_vm7 = vcmask 162816  }
   0x3   :  { %v3540_v7 = vld [vmem:[%s7038_s2 + $0xa8] sm:$0xff]  ;;  %v5210_v8 = vpack.c.bf16 %v3638_v5, %v3637_v3  ;;  %v3640_v10 = vld [vmem:[%s7038_s2 + $0x378] sm:$0xff]  ;;  %v3541_v13 = vld [vmem:[%s7038_s2 + $0xb0] sm:$0xff] }
   0x4   :  { %3907 = vmatpush1.bf16.msra.mxu0 %v5199_v4  ;;  %v5219_v11 = vpack.c.bf16 %v3540_v7, %v3539_v6  ;;  %v5223_v12 = vpack.c.bf16 %v3640_v10, %v3639_v9  ;;  %v3542_v14 = vld [vmem:[%s7038_s2 + $0xb8] sm:$0xff]  ;;  %v3641_v15 = vld [vmem:[%s7038_s2 + $0x380] sm:$0xff]  ;;  %v3642_v16 = vld [vmem:[%s7038_s2 + $0x388] sm:$0xff] }
   0x5   :  { %4047 = vmatpush1.bf16.msra.mxu1 %v5210_v8  ;;  %3908 = vmatprep.subr.bf16.mxu0 %v5139_v0  ;;  %v5239_v17 = vpack.c.bf16 %v3542_v14, %v3541_v13  ;;  %v5243_v18 = vpack.c.bf16 %v3642_v16, %v3641_v15  ;;  %v3543_v19 = vld [vmem:[%s7038_s2 + $0xc0] sm:$0xff]  ;;  %v3544_v20 = vld [vmem:[%s7038_s2 + $0xc8] sm:$0xff]  ;;  %v3643_v21 = vld [vmem:[%s7038_s2 + $0x390] sm:$0xff] }
   0x6   :  { %4048 = vmatprep.subr.bf16.mxu1 %v5139_v0  ;;  %v3644_v22 = vld [vmem:[%s7038_s2 + $0x398] sm:$0xff]  ;;  %v5259_v23 = vpack.c.bf16 %v3544_v20, %v3543_v19  ;;  %v3545_v25 = vld [vmem:[%s7038_s2 + $0xd0] sm:$0xff]  ;;  %v5274_v27 = vld [vmem:[%s7039_s1 + $0x8] sm:$0x7f] }
   0x7   :  { %v5263_v24 = vpack.c.bf16 %v3644_v22, %v3643_v21  ;;  %v3546_v26 = vld [vmem:[%s7038_s2 + $0xd8] sm:$0xff]  ;;  %v3645_v28 = vld [vmem:[%s7038_s2 + $0x3a0] sm:$0xff]  ;;  %v3646_v29 = vld [vmem:[%s7038_s2 + $0x3a8] sm:$0xff]  ;;  %3556 = vmatprep.mubr.msk.f32.mxu0 %vm70_vm0, %v5274_v27  ;;  %3656 = vmatprep.mubr.msk.f32.mxu1 %vm70_vm0, %v5274_v27 }
   0x8   :  { %3910 = vmatpush1.bf16.msra.mxu0 %v5219_v11  ;;  %v5288_v30 = vpack.c.bf16 %v3546_v26, %v3545_v25  ;;  %v5292_v31 = vpack.c.bf16 %v3646_v29, %v3645_v28  ;;  %v3547_v32 = vld [vmem:[%s7038_s2 + $0xe0] sm:$0xff]  ;;  %v3548_v33 = vld [vmem:[%s7038_s2 + $0xe8] sm:$0xff]  ;;  %v3647_v34 = vld [vmem:[%s7038_s2 + $0x3b0] sm:$0xff] }
   0x9   :  { %4050 = vmatpush1.bf16.msra.mxu1 %v5223_v12  ;;  %3911 = vmatprep.subr.bf16.mxu0 %v5139_v0  ;;  %v3648_v35 = vld [vmem:[%s7038_s2 + $0x3b8] sm:$0xff]  ;;  %v5308_v36 = vpack.c.bf16 %v3548_v33, %v3547_v32  ;;  %v3549_v38 = vld [vmem:[%s7038_s2 + $0xf0] sm:$0xff]  ;;  %v3649_v40 = vld [vmem:[%s7038_s2 + $0x3c0] sm:$0xff] }
   0xa   :  { %4051 = vmatprep.subr.bf16.mxu1 %v5139_v0  ;;  %v5312_v37 = vpack.c.bf16 %v3648_v35, %v3647_v34  ;;  %v3550_v39 = vld [vmem:[%s7038_s2 + $0xf8] sm:$0xff]  ;;  %v3650_v41 = vld [vmem:[%s7038_s2 + $0x3c8] sm:$0xff]  ;;  %v3551_v44 = vld [vmem:[%s7038_s2 + $0x100] sm:$0xff] }
   0xb   :  { %v5328_v42 = vpack.c.bf16 %v3550_v39, %v3549_v38  ;;  %v5332_v43 = vpack.c.bf16 %v3650_v41, %v3649_v40  ;;  %v3552_v45 = vld [vmem:[%s7038_s2 + $0x108] sm:$0xff]  ;;  %v3651_v46 = vld [vmem:[%s7038_s2 + $0x3d0] sm:$0xff]  ;;  %v3652_v47 = vld [vmem:[%s7038_s2 + $0x3d8] sm:$0xff] }
   0xc   :  { %3913 = vmatpush1.bf16.msra.mxu0 %v5239_v17  ;;  %7144 = vst [vmem:[#allocation2_spill] sm:$0xff] %v5312_v37  ;;  %v5348_v48 = vpack.c.bf16 %v3552_v45, %v3551_v44  ;;  %v5352_v49 = vpack.c.bf16 %v3652_v47, %v3651_v46  ;;  %v3553_v50 = vld [vmem:[%s7038_s2 + $0x110] sm:$0xff]  ;;  %v3554_v51 = vld [vmem:[%s7038_s2 + $0x118] sm:$0xf]  ;;  %v3653_v52 = vld [vmem:[%s7038_s2 + $0x3e0] sm:$0xff] }
   0xd   :  { %4053 = vmatpush1.bf16.msra.mxu1 %v5243_v18  ;;  %3914 = vmatprep.subr.bf16.mxu0 %v5139_v0  ;;  %7145 = vst [vmem:[#allocation3_spill] sm:$0xff] %v5328_v42  ;;  %7146 = vst [vmem:[#allocation4_spill] sm:$0xff] %v5332_v43  ;;  %v3654_v53 = vld [vmem:[%s7038_s2 + $0x3e8] sm:$0xf]  ;;  %v5368_v54 = vpack.c.bf16 %v3554_v51, %v3553_v50  ;;  %v33_v57 = vld [vmem:[%s7038_s2] sm:$0xff] }
   0xe   :  { %4054 = vmatprep.subr.bf16.mxu1 %v5139_v0  ;;  %7147 = vst [vmem:[#allocation5_spill] sm:$0xff] %v5352_v49  ;;  %vm5373_vm3 = vmpackc.low %vm74_vm1, %vm5140_vm2  ;;  %v5377_v56 = vpack.c.bf16 %v3654_v53, %v3653_v52  ;;  %v34_v58 = vld [vmem:[%s7038_s2 + $0x8] sm:$0xff]  ;;  %v3619_v59 = vld [vmem:[%s7038_s2 + $0x2d0] sm:$0xff] }
   0xf   :  { %v3620_v60 = vld [vmem:[%s7038_s2 + $0x2d8] sm:$0xff]  ;;  %v5398_v61 = vld [vmem:[%s7039_s1] sm:$0x7f]  ;;  %v5400_v62 = vpack.c.bf16 %v34_v58, %v33_v57  ;;  %v35_v1 = vld [vmem:[%s7038_s2 + $0x10] sm:$0xff] }
  0x10   :  { %3916 = vmatpush1.bf16.msra.mxu0 %v5259_v23  ;;  %v5406_v63 = vpack.c.bf16 %v3620_v60, %v3619_v59  ;;  %v36_v2 = vld [vmem:[%s7038_s2 + $0x18] sm:$0xff]  ;;  %v3621_v3 = vld [vmem:[%s7038_s2 + $0x2e0] sm:$0xff]  ;;  %v3622_v5 = vld [vmem:[%s7038_s2 + $0x2e8] sm:$0xff] }
  0x11   :  { %4056 = vmatpush1.bf16.msra.mxu1 %v5263_v24  ;;  %3917 = vmatprep.subr.bf16.mxu0 %v5139_v0  ;;  %v5425_v6 = vld [vmem:[%s7040_s0 + $0x8] sm:$0x7f]  ;;  %v5429_v7 = vpack.c.bf16 %v36_v2, %v35_v1  ;;  %v5433_v9 = vpack.c.bf16 %v3622_v5, %v3621_v3  ;;  %v37_v10 = vld [vmem:[%s7038_s2 + $0x20] sm:$0xff]  ;;  %v3623_v14 = vld [vmem:[%s7038_s2 + $0x2f0] sm:$0xff] }
  0x12   :  { %4057 = vmatprep.subr.bf16.mxu1 %v5139_v0  ;;  %v38_v13 = vld [vmem:[%s7038_s2 + $0x28] sm:$0xff]  ;;  %v3624_v15 = vld [vmem:[%s7038_s2 + $0x2f8] sm:$0xff]  ;;  %v39_v20 = vld [vmem:[%s7038_s2 + $0x30] sm:$0xff] }
  0x13   :  { %v5453_v16 = vpack.c.bf16 %v38_v13, %v37_v10  ;;  %v5457_v19 = vpack.c.bf16 %v3624_v15, %v3623_v14  ;;  %v40_v21 = vld [vmem:[%s7038_s2 + $0x38] sm:$0xff]  ;;  %v3625_v22 = vld [vmem:[%s7038_s2 + $0x300] sm:$0xff]  ;;  %v3626_v25 = vld [vmem:[%s7038_s2 + $0x308] sm:$0xff] }
  0x14   :  { %3919 = vmatpush1.bf16.msra.mxu0 %v5288_v30  ;;  %v5473_v26 = vpack.c.bf16 %v40_v21, %v39_v20  ;;  %v5477_v28 = vpack.c.bf16 %v3626_v25, %v3625_v22  ;;  %v41_v29 = vld [vmem:[%s7038_s2 + $0x40] sm:$0xff]  ;;  %v42_v32 = vld [vmem:[%s7038_s2 + $0x48] sm:$0xff]  ;;  %v3627_v33 = vld [vmem:[%s7038_s2 + $0x310] sm:$0xff] }
  0x15   :  { %4059 = vmatpush1.bf16.msra.mxu1 %v5292_v31  ;;  %3920 = vmatprep.subr.bf16.mxu0 %v5139_v0  ;;  %v3628_v34 = vld [vmem:[%s7038_s2 + $0x318] sm:$0xff]  ;;  %v5493_v35 = vpack.c.bf16 %v42_v32, %v41_v29  ;;  %v43_v39 = vld [vmem:[%s7038_s2 + $0x50] sm:$0xff]  ;;  %v3629_v41 = vld [vmem:[%s7038_s2 + $0x320] sm:$0xff] }
  0x16   :  { %4060 = vmatprep.subr.bf16.mxu1 %v5139_v0  ;;  %v5497_v38 = vpack.c.bf16 %v3628_v34, %v3627_v33  ;;  %v44_v40 = vld [vmem:[%s7038_s2 + $0x58] sm:$0xff]  ;;  %v3630_v44 = vld [vmem:[%s7038_s2 + $0x328] sm:$0xff]  ;;  %v45_v47 = vld [vmem:[%s7038_s2 + $0x60] sm:$0xff] }
  0x17   :  { %v5513_v45 = vpack.c.bf16 %v44_v40, %v43_v39  ;;  %v5517_v46 = vpack.c.bf16 %v3630_v44, %v3629_v41  ;;  %v46_v50 = vld [vmem:[%s7038_s2 + $0x68] sm:$0xff]  ;;  %v3631_v51 = vld [vmem:[%s7038_s2 + $0x330] sm:$0xff]  ;;  %v3632_v52 = vld [vmem:[%s7038_s2 + $0x338] sm:$0xff] }
  0x18   :  { %3922 = vmatpush1.bf16.msra.mxu0 %v5308_v36  ;;  %v5533_v53 = vpack.c.bf16 %v46_v50, %v45_v47  ;;  %v5537_v57 = vpack.c.bf16 %v3632_v52, %v3631_v51  ;;  %v47_v58 = vld [vmem:[%s7038_s2 + $0x70] sm:$0xff]  ;;  %v48_v59 = vld [vmem:[%s7038_s2 + $0x78] sm:$0xff]  ;;  %v3633_v60 = vld [vmem:[%s7038_s2 + $0x340] sm:$0xff]  ;;  %v5622_v47 = vrot.slane %v5425_v6, 1 }
  0x19   :  { %4062 = vmatpush1.bf16.msra.mxu1 %v5312_v37  ;;  %3923 = vmatprep.subr.bf16.mxu0 %v5139_v0  ;;  %v3634_v1 = vld [vmem:[%s7038_s2 + $0x348] sm:$0xff]  ;;  %v5553_v2 = vpack.c.bf16 %v48_v59, %v47_v58  ;;  %v49_v5 = vld [vmem:[%s7038_s2 + $0x80] sm:$0xff]  ;;  %v3635_v13 = vld [vmem:[%s7038_s2 + $0x350] sm:$0xff] }
  0x1a   :  { %4063 = vmatprep.subr.bf16.mxu1 %v5139_v0  ;;  %v5557_v3 = vpack.c.bf16 %v3634_v1, %v3633_v60  ;;  %v50_v10 = vld [vmem:[%s7038_s2 + $0x88] sm:$0xf]  ;;  %v3636_v14 = vld [vmem:[%s7038_s2 + $0x358] sm:$0xf]  ;;  %v3559_v21 = vld [vmem:[%s7038_s2 + $0x120] sm:$0xff] }
  0x1b   :  { %v5573_v15 = vpack.c.bf16 %v50_v10, %v49_v5  ;;  %v5577_v20 = vpack.c.bf16 %v3636_v14, %v3635_v13  ;;  %v3560_v22 = vld [vmem:[%s7038_s2 + $0x128] sm:$0xff]  ;;  %v3659_v25 = vld [vmem:[%s7038_s2 + $0x3f0] sm:$0xff]  ;;  %v3660_v29 = vld [vmem:[%s7038_s2 + $0x3f8] sm:$0xff] }
  0x1c   :  { %3925 = vmatpush1.bf16.msra.mxu0 %v5328_v42  ;;  %v5598_v32 = vld [vmem:[%s7040_s0] sm:$0x7f]  ;;  %v5600_v33 = vpack.c.bf16 %v3560_v22, %v3559_v21  ;;  %v5606_v34 = vpack.c.bf16 %v3660_v29, %v3659_v25  ;;  %v3561_v39 = vld [vmem:[%s7038_s2 + $0x130] sm:$0xff]  ;;  %v3562_v40 = vld [vmem:[%s7038_s2 + $0x138] sm:$0xff] }
  0x1d   :  { %4065 = vmatpush1.bf16.msra.mxu1 %v5332_v43  ;;  %3926 = vmatprep.subr.bf16.mxu0 %v5139_v0  ;;  %v3661_v41 = vld [vmem:[%s7038_s2 + $0x400] sm:$0xff]  ;;  %v3662_v44 = vld [vmem:[%s7038_s2 + $0x408] sm:$0xff]  ;;  %v5627_v50 = vpack.c.bf16 %v3562_v40, %v3561_v39  ;;  %v3663_v59 = vld [vmem:[%s7038_s2 + $0x410] sm:$0xff] }
  0x1e   :  { %4066 = vmatprep.subr.bf16.mxu1 %v5139_v0  ;;  %v5631_v51 = vpack.c.bf16 %v3662_v44, %v3661_v41  ;;  %v3563_v52 = vld [vmem:[%s7038_s2 + $0x140] sm:$0xff]  ;;  %v3564_v58 = vld [vmem:[%s7038_s2 + $0x148] sm:$0xff]  ;;  %v3664_v60 = vld [vmem:[%s7038_s2 + $0x418] sm:$0xff] }
  0x1f   :  { %v5651_v1 = vpack.c.bf16 %v3564_v58, %v3563_v52  ;;  %v5655_v5 = vpack.c.bf16 %v3664_v60, %v3663_v59  ;;  %v3565_v10 = vld [vmem:[%s7038_s2 + $0x150] sm:$0xff]  ;;  %v3566_v13 = vld [vmem:[%s7038_s2 + $0x158] sm:$0xff]  ;;  %v3665_v14 = vld [vmem:[%s7038_s2 + $0x420] sm:$0xff] }
  0x20   :  { %3928 = vmatpush1.bf16.msra.mxu0 %v5348_v48  ;;  %v3666_v21 = vld [vmem:[%s7038_s2 + $0x428] sm:$0xff]  ;;  %v5671_v22 = vpack.c.bf16 %v3566_v13, %v3565_v10  ;;  %v3567_v29 = vld [vmem:[%s7038_s2 + $0x160] sm:$0xff]  ;;  %v3667_v40 = vld [vmem:[%s7038_s2 + $0x430] sm:$0xff] }
  0x21   :  { %4068 = vmatpush1.bf16.msra.mxu1 %v5352_v49  ;;  %3929 = vmatprep.subr.bf16.mxu0 %v5139_v0  ;;  %v5675_v25 = vpack.c.bf16 %v3666_v21, %v3665_v14  ;;  %v3568_v39 = vld [vmem:[%s7038_s2 + $0x168] sm:$0xff]  ;;  %v3668_v41 = vld [vmem:[%s7038_s2 + $0x438] sm:$0xff]  ;;  %v3569_v58 = vld [vmem:[%s7038_s2 + $0x170] sm:$0xff] }
  0x22   :  { %4069 = vmatprep.subr.bf16.mxu1 %v5139_v0  ;;  %7150 = vst [vmem:[#allocation6_spill] sm:$0xff] %v5671_v22  ;;  %v5691_v44 = vpack.c.bf16 %v3568_v39, %v3567_v29  ;;  %v5695_v52 = vpack.c.bf16 %v3668_v41, %v3667_v40  ;;  %v3570_v59 = vld [vmem:[%s7038_s2 + $0x178] sm:$0xff]  ;;  %v3669_v60 = vld [vmem:[%s7038_s2 + $0x440] sm:$0xff]  ;;  %v3670_v10 = vld [vmem:[%s7038_s2 + $0x448] sm:$0xff] }
  0x23   :  { %7151 = vst [vmem:[#allocation7_spill] sm:$0xff] %v5675_v25  ;;  %v5711_v13 = vpack.c.bf16 %v3570_v59, %v3569_v58  ;;  %v5715_v14 = vpack.c.bf16 %v3670_v10, %v3669_v60  ;;  %v3571_v21 = vld [vmem:[%s7038_s2 + $0x180] sm:$0xff]  ;;  %v3572_v29 = vld [vmem:[%s7038_s2 + $0x188] sm:$0xff]  ;;  %v3671_v39 = vld [vmem:[%s7038_s2 + $0x450] sm:$0xff] }
  0x24   :  { %3932 = vmatpush1.bf16.msk.msra.mxu0 %vm5373_vm3, %v5368_v54  ;;  %7152 = vst [vmem:[#allocation8_spill] sm:$0xff] %v5691_v44  ;;  %7153 = vst [vmem:[#allocation9_spill] sm:$0xff] %v5695_v52  ;;  %v3672_v40 = vld [vmem:[%s7038_s2 + $0x458] sm:$0xff]  ;;  %v5731_v41 = vpack.c.bf16 %v3572_v29, %v3571_v21  ;;  %v3573_v59 = vld [vmem:[%s7038_s2 + $0x190] sm:$0xff] }
  0x25   :  { %4072 = vmatpush1.bf16.msk.msra.mxu1 %vm5373_vm3, %v5377_v56  ;;  %3933 = vmatprep.subr.bf16.mxu0 %v5139_v0  ;;  %7154 = vst [vmem:[#allocation10_spill] sm:$0xff] %v5711_v13  ;;  %7155 = vst [vmem:[#allocation11_spill] sm:$0xff] %v5715_v14  ;;  %v5735_v58 = vpack.c.bf16 %v3672_v40, %v3671_v39  ;;  %v3574_v60 = vld [vmem:[%s7038_s2 + $0x198] sm:$0xff]  ;;  %v3673_v10 = vld [vmem:[%s7038_s2 + $0x460] sm:$0xff] }
  0x26   :  { %4073 = vmatprep.subr.bf16.mxu1 %v5139_v0  ;;  %7156 = vst [vmem:[#allocation12_spill] sm:$0xff] %v5731_v41  ;;  %v3674_v21 = vld [vmem:[%s7038_s2 + $0x468] sm:$0xff]  ;;  %v5751_v29 = vpack.c.bf16 %v3574_v60, %v3573_v59  ;;  %v3575_v40 = vld [vmem:[%s7038_s2 + $0x1a0] sm:$0xff]  ;;  %v3675_v59 = vld [vmem:[%s7038_s2 + $0x470] sm:$0xff] }
  0x27   :  { %143 = vmatmul.mubr.f32.vlgmr.msra.gmra.mrb[0].mxu0 %v5398_v61  ;;  %7157 = vst [vmem:[#allocation13_spill] sm:$0xff] %v5735_v58  ;;  %v5755_v39 = vpack.c.bf16 %v3674_v21, %v3673_v10  ;;  %v3676_v60 = vld [vmem:[%s7038_s2 + $0x478] sm:$0xf] }
  0x28   :  { %3935 = vmatpush1.bf16.msra.mxu0 %v5400_v62  ;;  %626 = vmatmul.mubr.f32.vlgmr.msra.gmra.mrb[0].mxu1 %v5398_v61  ;;  %7158 = vst [vmem:[#allocation14_spill] sm:$0xff] %v5751_v29  ;;  %v5775_v21 = vpack.c.bf16 %v3676_v60, %v3675_v59  ;;  %v5791_v59 = vrot.slane %v5598_v32, 1 }
  0x29   :  { %4075 = vmatpush1.bf16.msra.mxu1 %v5406_v63  ;;  %3936 = vmatprep.subr.bf16.mxu0 %v5139_v0  ;;  %7159 = vst [vmem:[#allocation15_spill] sm:$0xff] %v5755_v39 }
  0x2a   :  { %4076 = vmatprep.subr.bf16.mxu1 %v5139_v0  ;;  %3558 = vmatprep.mubr.msk.f32.mxu0 %vm70_vm0, %v5425_v6  ;;  %7161 = vst [vmem:[#allocation17_spill] sm:$0xff] %v5775_v21 }
  0x2b   :  { %3658 = vmatprep.mubr.msk.f32.mxu1 %vm70_vm0, %v5425_v6 }
  0x2c   :  { %3938 = vmatpush1.bf16.msra.mxu0 %v5429_v7 }
  0x2d   :  { %4078 = vmatpush1.bf16.msra.mxu1 %v5433_v9  ;;  %3939 = vmatprep.subr.bf16.mxu0 %v5139_v0 }
  0x2e   :  { %4079 = vmatprep.subr.bf16.mxu1 %v5139_v0 }
  0x30   :  { %3941 = vmatpush1.bf16.msra.mxu0 %v5453_v16 }
  0x31   :  { %4081 = vmatpush1.bf16.msra.mxu1 %v5457_v19  ;;  %3942 = vmatprep.subr.bf16.mxu0 %v5139_v0 }
  0x32   :  { %4082 = vmatprep.subr.bf16.mxu1 %v5139_v0 }
  0x34   :  { %3944 = vmatpush1.bf16.msra.mxu0 %v5473_v26 }
  0x35   :  { %4084 = vmatpush1.bf16.msra.mxu1 %v5477_v28  ;;  %3945 = vmatprep.subr.bf16.mxu0 %v5139_v0 }
  0x36   :  { %4085 = vmatprep.subr.bf16.mxu1 %v5139_v0 }
  0x38   :  { %3947 = vmatpush1.bf16.msra.mxu0 %v5493_v35 }
  0x39   :  { %4087 = vmatpush1.bf16.msra.mxu1 %v5497_v38  ;;  %3948 = vmatprep.subr.bf16.mxu0 %v5139_v0 }
  0x3a   :  { %4088 = vmatprep.subr.bf16.mxu1 %v5139_v0 }
  0x3c   :  { %3950 = vmatpush1.bf16.msra.mxu0 %v5513_v45 }
  0x3d   :  { %4090 = vmatpush1.bf16.msra.mxu1 %v5517_v46  ;;  %3951 = vmatprep.subr.bf16.mxu0 %v5139_v0 }
  0x3e   :  { %4091 = vmatprep.subr.bf16.mxu1 %v5139_v0 }
  0x40   :  { %3953 = vmatpush1.bf16.msra.mxu0 %v5533_v53 }
  0x41   :  { %4093 = vmatpush1.bf16.msra.mxu1 %v5537_v57  ;;  %3954 = vmatprep.subr.bf16.mxu0 %v5139_v0 }
  0x42   :  { %4094 = vmatprep.subr.bf16.mxu1 %v5139_v0 }
  0x44   :  { %3956 = vmatpush1.bf16.msra.mxu0 %v5553_v2 }
  0x45   :  { %4096 = vmatpush1.bf16.msra.mxu1 %v5557_v3  ;;  %3957 = vmatprep.subr.bf16.mxu0 %v5139_v0 }
  0x46   :  { %4097 = vmatprep.subr.bf16.mxu1 %v5139_v0 }
  0x48   :  { %3960 = vmatpush1.bf16.msk.msra.mxu0 %vm5373_vm3, %v5573_v15 }
  0x49   :  { %4100 = vmatpush1.bf16.msk.msra.mxu1 %vm5373_vm3, %v5577_v20  ;;  %3961 = vmatprep.subr.bf16.mxu0 %v5139_v0 }
  0x4a   :  { %4101 = vmatprep.subr.bf16.mxu1 %v5139_v0 }
  0x4b   :  { %219 = vmatmul.mubr.f32.vlgmr.msra.gmra.mrb[0].mxu0 %v5598_v32 }
  0x4c   :  { %3963 = vmatpush1.bf16.msra.mxu0 %v5600_v33  ;;  %699 = vmatmul.mubr.f32.vlgmr.msra.gmra.mrb[0].mxu1 %v5598_v32 }
  0x4d   :  { %4103 = vmatpush1.bf16.msra.mxu1 %v5606_v34  ;;  %3964 = vmatprep.subr.bf16.mxu0 %v5139_v0 }
  0x4e   :  { %4104 = vmatprep.subr.bf16.mxu1 %v5139_v0  ;;  %3578 = vmatprep.mubr.msk.f32.mxu0 %vm70_vm0, %v5622_v47 }
  0x4f   :  { %3678 = vmatprep.mubr.msk.f32.mxu1 %vm70_vm0, %v5622_v47 }
  0x50   :  { %3966 = vmatpush1.bf16.msra.mxu0 %v5627_v50 }
  0x51   :  { %4106 = vmatpush1.bf16.msra.mxu1 %v5631_v51  ;;  %3967 = vmatprep.subr.bf16.mxu0 %v5139_v0 }
  0x52   :  { %4107 = vmatprep.subr.bf16.mxu1 %v5139_v0 }
  0x54   :  { %3969 = vmatpush1.bf16.msra.mxu0 %v5651_v1 }
  0x55   :  { %4109 = vmatpush1.bf16.msra.mxu1 %v5655_v5  ;;  %3970 = vmatprep.subr.bf16.mxu0 %v5139_v0 }
  0x56   :  { %4110 = vmatprep.subr.bf16.mxu1 %v5139_v0 }
  0x58   :  { %3972 = vmatpush1.bf16.msra.mxu0 %v5671_v22 }
  0x59   :  { %4112 = vmatpush1.bf16.msra.mxu1 %v5675_v25  ;;  %3973 = vmatprep.subr.bf16.mxu0 %v5139_v0 }
  0x5a   :  { %4113 = vmatprep.subr.bf16.mxu1 %v5139_v0 }
  0x5c   :  { %3975 = vmatpush1.bf16.msra.mxu0 %v5691_v44  ;;  %v3602_v44 = vld [vmem:[%s7038_s2 + $0x258] sm:$0xff] }
  0x5d   :  { %4115 = vmatpush1.bf16.msra.mxu1 %v5695_v52  ;;  %3976 = vmatprep.subr.bf16.mxu0 %v5139_v0  ;;  %v3584_v52 = vld [vmem:[%s7038_s2 + $0x1d8] sm:$0xff] }
  0x5e   :  { %4116 = vmatprep.subr.bf16.mxu1 %v5139_v0 }
  0x60   :  { %3978 = vmatpush1.bf16.msra.mxu0 %v5711_v13  ;;  %v3582_v13 = vld [vmem:[%s7038_s2 + $0x1c8] sm:$0xff] }
  0x61   :  { %4118 = vmatpush1.bf16.msra.mxu1 %v5715_v14  ;;  %3979 = vmatprep.subr.bf16.mxu0 %v5139_v0  ;;  %v3576_v14 = vld [vmem:[%s7038_s2 + $0x1a8] sm:$0xf] }
  0x62   :  { %4119 = vmatprep.subr.bf16.mxu1 %v5139_v0  ;;  %v5771_v10 = vpack.c.bf16 %v3576_v14, %v3575_v40  ;;  %v3679_v14 = vld [vmem:[%s7038_s2 + $0x480] sm:$0xff]  ;;  %v3680_v40 = vld [vmem:[%s7038_s2 + $0x488] sm:$0xff] }
  0x64   :  { %3981 = vmatpush1.bf16.msra.mxu0 %v5731_v41  ;;  %7160 = vst [vmem:[#allocation16_spill] sm:$0xff] %v5771_v10  ;;  %v3580_v41 = vld [vmem:[%s7038_s2 + $0x1b8] sm:$0xff] }
  0x65   :  { %4121 = vmatpush1.bf16.msra.mxu1 %v5735_v58  ;;  %3982 = vmatprep.subr.bf16.mxu0 %v5139_v0  ;;  %v3579_v58 = vld [vmem:[%s7038_s2 + $0x1b0] sm:$0xff] }
  0x66   :  { %4122 = vmatprep.subr.bf16.mxu1 %v5139_v0  ;;  %v5796_v60 = vpack.c.bf16 %v3580_v41, %v3579_v58  ;;  %v3681_v41 = vld [vmem:[%s7038_s2 + $0x490] sm:$0xff]  ;;  %v3682_v58 = vld [vmem:[%s7038_s2 + $0x498] sm:$0xff] }
  0x68   :  { %3984 = vmatpush1.bf16.msra.mxu0 %v5751_v29  ;;  %7162 = vst [vmem:[#allocation18_spill] sm:$0xff] %v5796_v60  ;;  %v3581_v29 = vld [vmem:[%s7038_s2 + $0x1c0] sm:$0xff] }
  0x69   :  { %4124 = vmatpush1.bf16.msra.mxu1 %v5755_v39  ;;  %3985 = vmatprep.subr.bf16.mxu0 %v5139_v0  ;;  %v5802_v39 = vpack.c.bf16 %v3680_v40, %v3679_v14  ;;  %v5818_v14 = vrot.slane %v5274_v27, 1  ;;  %v5823_v40 = vpack.c.bf16 %v3582_v13, %v3581_v29  ;;  %v3683_v13 = vld [vmem:[%s7038_s2 + $0x4a0] sm:$0xff]  ;;  %v3684_v29 = vld [vmem:[%s7038_s2 + $0x4a8] sm:$0xff] }
  0x6a   :  { %4125 = vmatprep.subr.bf16.mxu1 %v5139_v0 }
  0x6b   :  { %7163 = vst [vmem:[#allocation19_spill] sm:$0xff] %v5802_v39  ;;  %7164 = vst [vmem:[#allocation20_spill] sm:$0xff] %v5823_v40 }
  0x6c   :  { %3988 = vmatpush1.bf16.msk.msra.mxu0 %vm5373_vm3, %v5771_v10  ;;  %v3583_v10 = vld [vmem:[%s7038_s2 + $0x1d0] sm:$0xff] }
  0x6d   :  { %4128 = vmatpush1.bf16.msk.msra.mxu1 %vm5373_vm3, %v5775_v21  ;;  %3989 = vmatprep.subr.bf16.mxu0 %v5139_v0  ;;  %v5827_v21 = vpack.c.bf16 %v3682_v58, %v3681_v41  ;;  %v5847_v41 = vpack.c.bf16 %v3584_v52, %v3583_v10  ;;  %v5851_v58 = vpack.c.bf16 %v3684_v29, %v3683_v13  ;;  %v3685_v52 = vld [vmem:[%s7038_s2 + $0x4b0] sm:$0xff]  ;;  %v3686_v10 = vld [vmem:[%s7038_s2 + $0x4b8] sm:$0xff] }
  0x6e   :  { %4129 = vmatprep.subr.bf16.mxu1 %v5139_v0  ;;  %v5871_v29 = vpack.c.bf16 %v3686_v10, %v3685_v52 }
  0x6f   :  { %317 = vmatmul.mubr.f32.vlgmr.msra.gmra.mrb[0].mxu0 %v5791_v59  ;;  %7165 = vst [vmem:[#allocation21_spill] sm:$0xff] %v5827_v21  ;;  %7166 = vst [vmem:[#allocation22_spill] sm:$0xff] %v5847_v41 }
  0x70   :  { %3991 = vmatpush1.bf16.msra.mxu0 %v5796_v60  ;;  %791 = vmatmul.mubr.f32.vlgmr.msra.gmra.mrb[0].mxu1 %v5791_v59  ;;  %7167 = vst [vmem:[#allocation23_spill] sm:$0xff] %v5851_v58  ;;  %v3586_v60 = vld [vmem:[%s7038_s2 + $0x1e8] sm:$0xff]  ;;  %7169 = vst [vmem:[#allocation25_spill] sm:$0xff] %v5871_v29 }
  0x71   :  { %4131 = vmatpush1.bf16.msra.mxu1 %v5802_v39  ;;  %3992 = vmatprep.subr.bf16.mxu0 %v5139_v0  ;;  %v3585_v39 = vld [vmem:[%s7038_s2 + $0x1e0] sm:$0xff] }
  0x72   :  { %4132 = vmatprep.subr.bf16.mxu1 %v5139_v0  ;;  %3598 = vmatprep.mubr.msk.f32.mxu0 %vm70_vm0, %v5818_v14  ;;  %v5867_v13 = vpack.c.bf16 %v3586_v60, %v3585_v39  ;;  %v3687_v39 = vld [vmem:[%s7038_s2 + $0x4c0] sm:$0xff]  ;;  %v3688_v60 = vld [vmem:[%s7038_s2 + $0x4c8] sm:$0xff] }
  0x73   :  { %3698 = vmatprep.mubr.msk.f32.mxu1 %vm70_vm0, %v5818_v14  ;;  %v5891_v10 = vpack.c.bf16 %v3688_v60, %v3687_v39 }
  0x74   :  { %3994 = vmatpush1.bf16.msra.mxu0 %v5823_v40  ;;  %7168 = vst [vmem:[#allocation24_spill] sm:$0xff] %v5867_v13  ;;  %v3588_v40 = vld [vmem:[%s7038_s2 + $0x1f8] sm:$0xff] }
  0x75   :  { %4134 = vmatpush1.bf16.msra.mxu1 %v5827_v21  ;;  %3995 = vmatprep.subr.bf16.mxu0 %v5139_v0  ;;  %v3587_v21 = vld [vmem:[%s7038_s2 + $0x1f0] sm:$0xff]  ;;  %7171 = vst [vmem:[#allocation27_spill] sm:$0xff] %v5891_v10 }
  0x76   :  { %4135 = vmatprep.subr.bf16.mxu1 %v5139_v0  ;;  %v5887_v52 = vpack.c.bf16 %v3588_v40, %v3587_v21  ;;  %v3689_v21 = vld [vmem:[%s7038_s2 + $0x4d0] sm:$0xff]  ;;  %v3690_v40 = vld [vmem:[%s7038_s2 + $0x4d8] sm:$0xff] }
  0x77   :  { %v5911_v60 = vpack.c.bf16 %v3690_v40, %v3689_v21 }
  0x78   :  { %3997 = vmatpush1.bf16.msra.mxu0 %v5847_v41  ;;  %7170 = vst [vmem:[#allocation26_spill] sm:$0xff] %v5887_v52  ;;  %v3590_v41 = vld [vmem:[%s7038_s2 + $0x208] sm:$0xff] }
  0x79   :  { %4137 = vmatpush1.bf16.msra.mxu1 %v5851_v58  ;;  %3998 = vmatprep.subr.bf16.mxu0 %v5139_v0  ;;  %v3589_v58 = vld [vmem:[%s7038_s2 + $0x200] sm:$0xff]  ;;  %7173 = vst [vmem:[#allocation29_spill] sm:$0xff] %v5911_v60 }
  0x7a   :  { %4138 = vmatprep.subr.bf16.mxu1 %v5139_v0  ;;  %v5907_v39 = vpack.c.bf16 %v3590_v41, %v3589_v58  ;;  %v3691_v41 = vld [vmem:[%s7038_s2 + $0x4e0] sm:$0xff]  ;;  %v3692_v58 = vld [vmem:[%s7038_s2 + $0x4e8] sm:$0xff] }
  0x7b   :  { %v5931_v40 = vpack.c.bf16 %v3692_v58, %v3691_v41 }
  0x7c   :  { %4000 = vmatpush1.bf16.msra.mxu0 %v5867_v13  ;;  %7172 = vst [vmem:[#allocation28_spill] sm:$0xff] %v5907_v39  ;;  %v3592_v13 = vld [vmem:[%s7038_s2 + $0x218] sm:$0xff] }
  0x7d   :  { %4140 = vmatpush1.bf16.msra.mxu1 %v5871_v29  ;;  %4001 = vmatprep.subr.bf16.mxu0 %v5139_v0  ;;  %v3591_v29 = vld [vmem:[%s7038_s2 + $0x210] sm:$0xff]  ;;  %7175 = vst [vmem:[#allocation31_spill] sm:$0xff] %v5931_v40 }
  0x7e   :  { %4141 = vmatprep.subr.bf16.mxu1 %v5139_v0  ;;  %v5927_v21 = vpack.c.bf16 %v3592_v13, %v3591_v29  ;;  %v3693_v13 = vld [vmem:[%s7038_s2 + $0x4f0] sm:$0xff]  ;;  %v3694_v29 = vld [vmem:[%s7038_s2 + $0x4f8] sm:$0xff] }
  0x7f   :  { %v5951_v58 = vpack.c.bf16 %v3694_v29, %v3693_v13 }
  0x80   :  { %4003 = vmatpush1.bf16.msra.mxu0 %v5887_v52  ;;  %7174 = vst [vmem:[#allocation30_spill] sm:$0xff] %v5927_v21  ;;  %v3594_v52 = vld [vmem:[%s7038_s2 + $0x228] sm:$0xff] }
  0x81   :  { %4143 = vmatpush1.bf16.msra.mxu1 %v5891_v10  ;;  %4004 = vmatprep.subr.bf16.mxu0 %v5139_v0  ;;  %v3593_v10 = vld [vmem:[%s7038_s2 + $0x220] sm:$0xff]  ;;  %7177 = vst [vmem:[#allocation33_spill] sm:$0xff] %v5951_v58 }
  0x82   :  { %4144 = vmatprep.subr.bf16.mxu1 %v5139_v0  ;;  %v5947_v41 = vpack.c.bf16 %v3594_v52, %v3593_v10  ;;  %v3695_v52 = vld [vmem:[%s7038_s2 + $0x500] sm:$0xff]  ;;  %v3696_v10 = vld [vmem:[%s7038_s2 + $0x508] sm:$0xf] }
  0x83   :  { %v5971_v29 = vpack.c.bf16 %v3696_v10, %v3695_v52  ;;  %v5987_v52 = vrot.slane %v5398_v61, 1 }
  0x84   :  { %4006 = vmatpush1.bf16.msra.mxu0 %v5907_v39  ;;  %7176 = vst [vmem:[#allocation32_spill] sm:$0xff] %v5947_v41  ;;  %v3596_v39 = vld [vmem:[%s7038_s2 + $0x238] sm:$0xf] }
  0x85   :  { %4146 = vmatpush1.bf16.msra.mxu1 %v5911_v60  ;;  %4007 = vmatprep.subr.bf16.mxu0 %v5139_v0  ;;  %v3595_v60 = vld [vmem:[%s7038_s2 + $0x230] sm:$0xff]  ;;  %7179 = vst [vmem:[#allocation35_spill] sm:$0xff] %v5971_v29 }
  0x86   :  { %4147 = vmatprep.subr.bf16.mxu1 %v5139_v0  ;;  %v5967_v13 = vpack.c.bf16 %v3596_v39, %v3595_v60  ;;  %v3699_v39 = vld [vmem:[%s7038_s2 + $0x510] sm:$0xff]  ;;  %v3700_v60 = vld [vmem:[%s7038_s2 + $0x518] sm:$0xff] }
  0x88   :  { %4009 = vmatpush1.bf16.msra.mxu0 %v5927_v21  ;;  %7178 = vst [vmem:[#allocation34_spill] sm:$0xff] %v5967_v13  ;;  %v3600_v21 = vld [vmem:[%s7038_s2 + $0x248] sm:$0xff] }
  0x89   :  { %4149 = vmatpush1.bf16.msra.mxu1 %v5931_v40  ;;  %4010 = vmatprep.subr.bf16.mxu0 %v5139_v0  ;;  %v3599_v40 = vld [vmem:[%s7038_s2 + $0x240] sm:$0xff] }
  0x8a   :  { %4150 = vmatprep.subr.bf16.mxu1 %v5139_v0  ;;  %v5992_v10 = vpack.c.bf16 %v3600_v21, %v3599_v40  ;;  %v3701_v21 = vld [vmem:[%s7038_s2 + $0x520] sm:$0xff]  ;;  %v3702_v40 = vld [vmem:[%s7038_s2 + $0x528] sm:$0xff] }
  0x8c   :  { %4012 = vmatpush1.bf16.msra.mxu0 %v5947_v41  ;;  %7180 = vst [vmem:[#allocation36_spill] sm:$0xff] %v5992_v10  ;;  %v3601_v41 = vld [vmem:[%s7038_s2 + $0x250] sm:$0xff] }
  0x8d   :  { %4152 = vmatpush1.bf16.msra.mxu1 %v5951_v58  ;;  %4013 = vmatprep.subr.bf16.mxu0 %v5139_v0  ;;  %v5998_v58 = vpack.c.bf16 %v3700_v60, %v3699_v39  ;;  %v6014_v39 = vrot.slane %v5425_v6, 2  ;;  %v6019_v60 = vpack.c.bf16 %v3602_v44, %v3601_v41  ;;  %v3604_v6 = vld [vmem:[%s7038_s2 + $0x268] sm:$0xff]  ;;  %v3703_v44 = vld [vmem:[%s7038_s2 + $0x530] sm:$0xff]  ;;  %v3704_v41 = vld [vmem:[%s7038_s2 + $0x538] sm:$0xff] }
  0x8e   :  { %4153 = vmatprep.subr.bf16.mxu1 %v5139_v0 }
  0x8f   :  { %7181 = vst [vmem:[#allocation37_spill] sm:$0xff] %v5998_v58  ;;  %7182 = vst [vmem:[#allocation38_spill] sm:$0xff] %v6019_v60 }
  0x90   :  { %4016 = vmatpush1.bf16.msk.msra.mxu0 %vm5373_vm3, %v5967_v13  ;;  %v3603_v13 = vld [vmem:[%s7038_s2 + $0x260] sm:$0xff] }
  0x91   :  { %4156 = vmatpush1.bf16.msk.msra.mxu1 %vm5373_vm3, %v5971_v29  ;;  %4017 = vmatprep.subr.bf16.mxu0 %v5139_v0  ;;  %v6023_v29 = vpack.c.bf16 %v3702_v40, %v3701_v21  ;;  %v6043_v21 = vpack.c.bf16 %v3604_v6, %v3603_v13  ;;  %v6047_v40 = vpack.c.bf16 %v3704_v41, %v3703_v44  ;;  %v3705_v13 = vld [vmem:[%s7038_s2 + $0x540] sm:$0xff]  ;;  %v3706_v6 = vld [vmem:[%s7038_s2 + $0x548] sm:$0xff] }
  0x92   :  { %4157 = vmatprep.subr.bf16.mxu1 %v5139_v0  ;;  %v6067_v41 = vpack.c.bf16 %v3706_v6, %v3705_v13 }
  0x93   :  { %416 = vmatmul.mubr.f32.vlgmr.msra.gmra.mrb[0].mxu0 %v5987_v52  ;;  %7183 = vst [vmem:[#allocation39_spill] sm:$0xff] %v6023_v29  ;;  %7184 = vst [vmem:[#allocation40_spill] sm:$0xff] %v6043_v21 }
  0x94   :  { %4019 = vmatpush1.bf16.msra.mxu0 %v5992_v10  ;;  %884 = vmatmul.mubr.f32.vlgmr.msra.gmra.mrb[0].mxu1 %v5987_v52  ;;  %7185 = vst [vmem:[#allocation41_spill] sm:$0xff] %v6047_v40  ;;  %v3606_v10 = vld [vmem:[%s7038_s2 + $0x278] sm:$0xff]  ;;  %7187 = vst [vmem:[#allocation43_spill] sm:$0xff] %v6067_v41 }
  0x95   :  { %4159 = vmatpush1.bf16.msra.mxu1 %v5998_v58  ;;  %4020 = vmatprep.subr.bf16.mxu0 %v5139_v0  ;;  %v3605_v58 = vld [vmem:[%s7038_s2 + $0x270] sm:$0xff] }
  0x96   :  { %4160 = vmatprep.subr.bf16.mxu1 %v5139_v0  ;;  %3618 = vmatprep.mubr.msk.f32.mxu0 %vm70_vm0, %v6014_v39  ;;  %v6063_v44 = vpack.c.bf16 %v3606_v10, %v3605_v58  ;;  %v3707_v58 = vld [vmem:[%s7038_s2 + $0x550] sm:$0xff]  ;;  %v3708_v10 = vld [vmem:[%s7038_s2 + $0x558] sm:$0xff] }
  0x97   :  { %3718 = vmatprep.mubr.msk.f32.mxu1 %vm70_vm0, %v6014_v39  ;;  %v6087_v6 = vpack.c.bf16 %v3708_v10, %v3707_v58 }
  0x98   :  { %4022 = vmatpush1.bf16.msra.mxu0 %v6019_v60  ;;  %7186 = vst [vmem:[#allocation42_spill] sm:$0xff] %v6063_v44  ;;  %v3608_v60 = vld [vmem:[%s7038_s2 + $0x288] sm:$0xff] }
  0x99   :  { %4162 = vmatpush1.bf16.msra.mxu1 %v6023_v29  ;;  %4023 = vmatprep.subr.bf16.mxu0 %v5139_v0  ;;  %v3607_v29 = vld [vmem:[%s7038_s2 + $0x280] sm:$0xff]  ;;  %7189 = vst [vmem:[#allocation45_spill] sm:$0xff] %v6087_v6 }
  0x9a   :  { %4163 = vmatprep.subr.bf16.mxu1 %v5139_v0  ;;  %v6083_v13 = vpack.c.bf16 %v3608_v60, %v3607_v29  ;;  %v3709_v29 = vld [vmem:[%s7038_s2 + $0x560] sm:$0xff]  ;;  %v3710_v60 = vld [vmem:[%s7038_s2 + $0x568] sm:$0xff] }
  0x9b   :  { %v6107_v10 = vpack.c.bf16 %v3710_v60, %v3709_v29 }
  0x9c   :  { %4025 = vmatpush1.bf16.msra.mxu0 %v6043_v21  ;;  %7188 = vst [vmem:[#allocation44_spill] sm:$0xff] %v6083_v13  ;;  %v3610_v21 = vld [vmem:[%s7038_s2 + $0x298] sm:$0xff] }
  0x9d   :  { %4165 = vmatpush1.bf16.msra.mxu1 %v6047_v40  ;;  %4026 = vmatprep.subr.bf16.mxu0 %v5139_v0  ;;  %v3609_v40 = vld [vmem:[%s7038_s2 + $0x290] sm:$0xff]  ;;  %7191 = vst [vmem:[#allocation47_spill] sm:$0xff] %v6107_v10 }
  0x9e   :  { %4166 = vmatprep.subr.bf16.mxu1 %v5139_v0  ;;  %v6103_v58 = vpack.c.bf16 %v3610_v21, %v3609_v40  ;;  %v3711_v21 = vld [vmem:[%s7038_s2 + $0x570] sm:$0xff]  ;;  %v3712_v40 = vld [vmem:[%s7038_s2 + $0x578] sm:$0xff] }
  0x9f   :  { %v6127_v60 = vpack.c.bf16 %v3712_v40, %v3711_v21 }
  0xa0   :  { %4028 = vmatpush1.bf16.msra.mxu0 %v6063_v44  ;;  %7190 = vst [vmem:[#allocation46_spill] sm:$0xff] %v6103_v58  ;;  %v3612_v44 = vld [vmem:[%s7038_s2 + $0x2a8] sm:$0xff] }
  0xa1   :  { %4168 = vmatpush1.bf16.msra.mxu1 %v6067_v41  ;;  %4029 = vmatprep.subr.bf16.mxu0 %v5139_v0  ;;  %v3611_v41 = vld [vmem:[%s7038_s2 + $0x2a0] sm:$0xff]  ;;  %7192 = vst [vmem:[#allocation48_spill] sm:$0xff] %v6127_v60 }
  0xa2   :  { %4169 = vmatprep.subr.bf16.mxu1 %v5139_v0  ;;  %v6123_v29 = vpack.c.bf16 %v3612_v44, %v3611_v41  ;;  %v3713_v44 = vld [vmem:[%s7038_s2 + $0x580] sm:$0xff]  ;;  %v3714_v41 = vld [vmem:[%s7038_s2 + $0x588] sm:$0xff] }
  0xa3   :  { %v6147_v40 = vpack.c.bf16 %v3714_v41, %v3713_v44 }
  0xa4   :  { %4031 = vmatpush1.bf16.msra.mxu0 %v6083_v13  ;;  %v3614_v13 = vld [vmem:[%s7038_s2 + $0x2b8] sm:$0xff] }
  0xa5   :  { %4171 = vmatpush1.bf16.msra.mxu1 %v6087_v6  ;;  %4032 = vmatprep.subr.bf16.mxu0 %v5139_v0  ;;  %v3613_v6 = vld [vmem:[%s7038_s2 + $0x2b0] sm:$0xff]  ;;  %7193 = vst [vmem:[#allocation49_spill] sm:$0xff] %v6147_v40 }
  0xa6   :  { %4172 = vmatprep.subr.bf16.mxu1 %v5139_v0  ;;  %v6143_v21 = vpack.c.bf16 %v3614_v13, %v3613_v6  ;;  %v3715_v13 = vld [vmem:[%s7038_s2 + $0x590] sm:$0xff]  ;;  %v3716_v6 = vld [vmem:[%s7038_s2 + $0x598] sm:$0xf] }
  0xa7   :  { %v6167_v41 = vpack.c.bf16 %v3716_v6, %v3715_v13  ;;  %v7202_v13 = vld [vmem:[#allocation16_spill] sm:$0xff]  ;;  %v7203_v6 = vld [vmem:[#allocation17_spill] sm:$0xff] }
  0xa8   :  { %4034 = vmatpush1.bf16.msra.mxu0 %v6103_v58  ;;  %v3616_v58 = vld [vmem:[%s7038_s2 + $0x2c8] sm:$0xf] }
  0xa9   :  { %4174 = vmatpush1.bf16.msra.mxu1 %v6107_v10  ;;  %4035 = vmatprep.subr.bf16.mxu0 %v5139_v0  ;;  %v3615_v10 = vld [vmem:[%s7038_s2 + $0x2c0] sm:$0xff] }
  0xaa   :  { %4175 = vmatprep.subr.bf16.mxu1 %v5139_v0  ;;  %v6163_v44 = vpack.c.bf16 %v3616_v58, %v3615_v10  ;;  %v7200_v58 = vld [vmem:[#allocation14_spill] sm:$0xff]  ;;  %v7201_v10 = vld [vmem:[#allocation15_spill] sm:$0xff] }
  0xac   :  { %4037 = vmatpush1.bf16.msra.mxu0 %v6123_v29 }
  0xad   :  { %4177 = vmatpush1.bf16.msra.mxu1 %v6127_v60  ;;  %4038 = vmatprep.subr.bf16.mxu0 %v5139_v0  ;;  %v6171_v60 = vrot.slane %v5598_v32, 2  ;;  %v7196_v32 = vld [vmem:[#allocation10_spill] sm:$0xff] }
  0xae   :  { %4178 = vmatprep.subr.bf16.mxu1 %v5139_v0 }
  0xb0   :  { %4040 = vmatpush1.bf16.msra.mxu0 %v6143_v21 }
  0xb1   :  { %4180 = vmatpush1.bf16.msra.mxu1 %v6147_v40  ;;  %4041 = vmatprep.subr.bf16.mxu0 %v5139_v0 }
  0xb2   :  { %4181 = vmatprep.subr.bf16.mxu1 %v5139_v0 }
  0xb4   :  { %4044 = vmatpush1.bf16.msk.msra.mxu0 %vm5373_vm3, %v6163_v44 }
  0xb5   :  { %4184 = vmatpush1.bf16.msk.msra.mxu1 %vm5373_vm3, %v6167_v41  ;;  %4185 = vmatprep.subr.bf16.mxu0 %v5139_v0 }
  0xb6   :  { %4325 = vmatprep.subr.bf16.mxu1 %v5139_v0 }
  0xb7   :  { %514 = vmatmul.mubr.f32.vlgmr.msra.gmra.mrb[0].mxu0 %v6171_v60 }
  0xb8   :  { %977 = vmatmul.mubr.f32.vlgmr.msra.gmra.mrb[0].mxu1 %v6171_v60  ;;  %4187 = vmatpush1.bf16.msra.mxu0 %v5199_v4 }
  0xb9   :  { %4327 = vmatpush1.bf16.msra.mxu1 %v5210_v8  ;;  %4188 = vmatprep.subr.bf16.mxu0 %v5139_v0 }
  0xba   :  { %4328 = vmatprep.subr.bf16.mxu1 %v5139_v0  ;;  %3720 = vmatprep.mubr.msk.f32.mxu0 %vm70_vm0, %v5622_v47 }
  0xbb   :  { %3730 = vmatprep.mubr.msk.f32.mxu1 %vm70_vm0, %v5622_v47  ;;  %v7197_v47 = vld [vmem:[#allocation11_spill] sm:$0xff] }
  0xbc   :  { %4190 = vmatpush1.bf16.msra.mxu0 %v5219_v11 }
  0xbd   :  { %4330 = vmatpush1.bf16.msra.mxu1 %v5223_v12  ;;  %4191 = vmatprep.subr.bf16.mxu0 %v5139_v0 }
  0xbe   :  { %4331 = vmatprep.subr.bf16.mxu1 %v5139_v0 }
  0xc0   :  { %4193 = vmatpush1.bf16.msra.mxu0 %v5239_v17 }
  0xc1   :  { %4333 = vmatpush1.bf16.msra.mxu1 %v5243_v18  ;;  %4194 = vmatprep.subr.bf16.mxu0 %v5139_v0 }
  0xc2   :  { %4334 = vmatprep.subr.bf16.mxu1 %v5139_v0 }
  0xc4   :  { %4196 = vmatpush1.bf16.msra.mxu0 %v5259_v23 }
  0xc5   :  { %4336 = vmatpush1.bf16.msra.mxu1 %v5263_v24  ;;  %4197 = vmatprep.subr.bf16.mxu0 %v5139_v0 }
  0xc6   :  { %4337 = vmatprep.subr.bf16.mxu1 %v5139_v0 }
  0xc8   :  { %4199 = vmatpush1.bf16.msra.mxu0 %v5288_v30 }
  0xc9   :  { %4339 = vmatpush1.bf16.msra.mxu1 %v5292_v31  ;;  %4200 = vmatprep.subr.bf16.mxu0 %v5139_v0 }
  0xca   :  { %4340 = vmatprep.subr.bf16.mxu1 %v5139_v0 }
  0xcc   :  { %4202 = vmatpush1.bf16.msra.mxu0 %v5308_v36 }
  0xcd   :  { %4342 = vmatpush1.bf16.msra.mxu1 %v5312_v37  ;;  %4203 = vmatprep.subr.bf16.mxu0 %v5139_v0 }
  0xce   :  { %4343 = vmatprep.subr.bf16.mxu1 %v5139_v0 }
  0xd0   :  { %4205 = vmatpush1.bf16.msra.mxu0 %v5328_v42 }
  0xd1   :  { %4345 = vmatpush1.bf16.msra.mxu1 %v5332_v43  ;;  %4206 = vmatprep.subr.bf16.mxu0 %v5139_v0 }
  0xd2   :  { %4346 = vmatprep.subr.bf16.mxu1 %v5139_v0 }
  0xd4   :  { %4208 = vmatpush1.bf16.msra.mxu0 %v5348_v48 }
  0xd5   :  { %4348 = vmatpush1.bf16.msra.mxu1 %v5352_v49  ;;  %4209 = vmatprep.subr.bf16.mxu0 %v5139_v0 }
  0xd6   :  { %4349 = vmatprep.subr.bf16.mxu1 %v5139_v0 }
  0xd8   :  { %4212 = vmatpush1.bf16.msk.msra.mxu0 %vm5373_vm3, %v5368_v54 }
  0xd9   :  { %4352 = vmatpush1.bf16.msk.msra.mxu1 %vm5373_vm3, %v5377_v56  ;;  %4213 = vmatprep.subr.bf16.mxu0 %v5139_v0 }
  0xda   :  { %4353 = vmatprep.subr.bf16.mxu1 %v5139_v0 }
  0xdb   :  { %1048 = vmatmul.mubr.f32.vlgmr.msra.gmra.mrb[2].mxu0 %v5791_v59 }
  0xdc   :  { %4215 = vmatpush1.bf16.msra.mxu0 %v5400_v62  ;;  %1406 = vmatmul.mubr.f32.vlgmr.msra.gmra.mrb[2].mxu1 %v5791_v59  ;;  %v7198_v59 = vld [vmem:[#allocation12_spill] sm:$0xff] }
  0xdd   :  { %4355 = vmatpush1.bf16.msra.mxu1 %v5406_v63  ;;  %4216 = vmatprep.subr.bf16.mxu0 %v5139_v0 }
  0xde   :  { %4356 = vmatprep.subr.bf16.mxu1 %v5139_v0  ;;  %3722 = vmatprep.mubr.msk.f32.mxu0 %vm70_vm0, %v5274_v27 }
  0xdf   :  { %3732 = vmatprep.mubr.msk.f32.mxu1 %vm70_vm0, %v5274_v27  ;;  %v7194_v27 = vld [vmem:[#allocation8_spill] sm:$0xff] }
  0xe0   :  { %4218 = vmatpush1.bf16.msra.mxu0 %v5429_v7 }
  0xe1   :  { %4358 = vmatpush1.bf16.msra.mxu1 %v5433_v9  ;;  %4219 = vmatprep.subr.bf16.mxu0 %v5139_v0 }
  0xe2   :  { %4359 = vmatprep.subr.bf16.mxu1 %v5139_v0 }
  0xe4   :  { %4221 = vmatpush1.bf16.msra.mxu0 %v5453_v16 }
  0xe5   :  { %4361 = vmatpush1.bf16.msra.mxu1 %v5457_v19  ;;  %4222 = vmatprep.subr.bf16.mxu0 %v5139_v0 }
  0xe6   :  { %4362 = vmatprep.subr.bf16.mxu1 %v5139_v0 }
  0xe8   :  { %4224 = vmatpush1.bf16.msra.mxu0 %v5473_v26 }
  0xe9   :  { %4364 = vmatpush1.bf16.msra.mxu1 %v5477_v28  ;;  %4225 = vmatprep.subr.bf16.mxu0 %v5139_v0 }
  0xea   :  { %4365 = vmatprep.subr.bf16.mxu1 %v5139_v0 }
  0xec   :  { %4227 = vmatpush1.bf16.msra.mxu0 %v5493_v35 }
  0xed   :  { %4367 = vmatpush1.bf16.msra.mxu1 %v5497_v38  ;;  %4228 = vmatprep.subr.bf16.mxu0 %v5139_v0 }
  0xee   :  { %4368 = vmatprep.subr.bf16.mxu1 %v5139_v0 }
  0xf0   :  { %4230 = vmatpush1.bf16.msra.mxu0 %v5513_v45 }
  0xf1   :  { %4370 = vmatpush1.bf16.msra.mxu1 %v5517_v46  ;;  %4231 = vmatprep.subr.bf16.mxu0 %v5139_v0 }
  0xf2   :  { %4371 = vmatprep.subr.bf16.mxu1 %v5139_v0 }
  0xf4   :  { %4233 = vmatpush1.bf16.msra.mxu0 %v5533_v53 }
  0xf5   :  { %4373 = vmatpush1.bf16.msra.mxu1 %v5537_v57  ;;  %4234 = vmatprep.subr.bf16.mxu0 %v5139_v0 }
  0xf6   :  { %4374 = vmatprep.subr.bf16.mxu1 %v5139_v0 }
  0xf8   :  { %4236 = vmatpush1.bf16.msra.mxu0 %v5553_v2 }
  0xf9   :  { %4376 = vmatpush1.bf16.msra.mxu1 %v5557_v3  ;;  %4237 = vmatprep.subr.bf16.mxu0 %v5139_v0 }
  0xfa   :  { %4377 = vmatprep.subr.bf16.mxu1 %v5139_v0 }
  0xfc   :  { %4240 = vmatpush1.bf16.msk.msra.mxu0 %vm5373_vm3, %v5573_v15 }
  0xfd   :  { %4380 = vmatpush1.bf16.msk.msra.mxu1 %vm5373_vm3, %v5577_v20  ;;  %4241 = vmatprep.subr.bf16.mxu0 %v5139_v0 }
  0xfe   :  { %4381 = vmatprep.subr.bf16.mxu1 %v5139_v0 }
  0xff   :  { %1118 = vmatmul.mubr.f32.vlgmr.msra.gmra.mrb[2].mxu0 %v5398_v61 }
 0x100   :  { %4243 = vmatpush1.bf16.msra.mxu0 %v5600_v33  ;;  %1476 = vmatmul.mubr.f32.vlgmr.msra.gmra.mrb[2].mxu1 %v5398_v61  ;;  %v7195_v61 = vld [vmem:[#allocation9_spill] sm:$0xff] }
 0x101   :  { %4383 = vmatpush1.bf16.msra.mxu1 %v5606_v34  ;;  %4244 = vmatprep.subr.bf16.mxu0 %v5139_v0 }
 0x102   :  { %4384 = vmatprep.subr.bf16.mxu1 %v5139_v0  ;;  %3724 = vmatprep.mubr.msk.f32.mxu0 %vm70_vm0, %v5818_v14 }
 0x103   :  { %3734 = vmatprep.mubr.msk.f32.mxu1 %vm70_vm0, %v5818_v14  ;;  %v7199_v14 = vld [vmem:[#allocation13_spill] sm:$0xff] }
 0x104   :  { %4246 = vmatpush1.bf16.msra.mxu0 %v5627_v50 }
 0x105   :  { %4386 = vmatpush1.bf16.msra.mxu1 %v5631_v51  ;;  %4247 = vmatprep.subr.bf16.mxu0 %v5139_v0 }
 0x106   :  { %4387 = vmatprep.subr.bf16.mxu1 %v5139_v0 }
 0x108   :  { %4249 = vmatpush1.bf16.msra.mxu0 %v5651_v1 }
 0x109   :  { %4389 = vmatpush1.bf16.msra.mxu1 %v5655_v5  ;;  %4250 = vmatprep.subr.bf16.mxu0 %v5139_v0 }
 0x10a   :  { %4390 = vmatprep.subr.bf16.mxu1 %v5139_v0 }
 0x10c   :  { %4252 = vmatpush1.bf16.msra.mxu0 %v5671_v22 }
 0x10d   :  { %4392 = vmatpush1.bf16.msra.mxu1 %v5675_v25  ;;  %4253 = vmatprep.subr.bf16.mxu0 %v5139_v0 }
 0x10e   :  { %4393 = vmatprep.subr.bf16.mxu1 %v5139_v0 }
 0x110   :  { %4255 = vmatpush1.bf16.msra.mxu0 %v7194_v27 }
 0x111   :  { %4395 = vmatpush1.bf16.msra.mxu1 %v7195_v61  ;;  %4256 = vmatprep.subr.bf16.mxu0 %v5139_v0 }
 0x112   :  { %4396 = vmatprep.subr.bf16.mxu1 %v5139_v0 }
 0x114   :  { %4258 = vmatpush1.bf16.msra.mxu0 %v7196_v32 }
 0x115   :  { %4398 = vmatpush1.bf16.msra.mxu1 %v7197_v47  ;;  %4259 = vmatprep.subr.bf16.mxu0 %v5139_v0 }
 0x116   :  { %4399 = vmatprep.subr.bf16.mxu1 %v5139_v0 }
 0x118   :  { %4261 = vmatpush1.bf16.msra.mxu0 %v7198_v59 }
 0x119   :  { %4401 = vmatpush1.bf16.msra.mxu1 %v7199_v14  ;;  %4262 = vmatprep.subr.bf16.mxu0 %v5139_v0  ;;  %v7211_v14 = vld [vmem:[#allocation25_spill] sm:$0xff] }
 0x11a   :  { %4402 = vmatprep.subr.bf16.mxu1 %v5139_v0 }
 0x11c   :  { %4264 = vmatpush1.bf16.msra.mxu0 %v7200_v58  ;;  %v7204_v58 = vld [vmem:[#allocation18_spill] sm:$0xff] }
 0x11d   :  { %4404 = vmatpush1.bf16.msra.mxu1 %v7201_v10  ;;  %4265 = vmatprep.subr.bf16.mxu0 %v5139_v0  ;;  %v7205_v10 = vld [vmem:[#allocation19_spill] sm:$0xff] }
 0x11e   :  { %4405 = vmatprep.subr.bf16.mxu1 %v5139_v0 }
 0x120   :  { %4268 = vmatpush1.bf16.msk.msra.mxu0 %vm5373_vm3, %v7202_v13  ;;  %v7207_v13 = vld [vmem:[#allocation21_spill] sm:$0xff] }
 0x121   :  { %4408 = vmatpush1.bf16.msk.msra.mxu1 %vm5373_vm3, %v7203_v6  ;;  %4269 = vmatprep.subr.bf16.mxu0 %v5139_v0  ;;  %v7206_v6 = vld [vmem:[#allocation20_spill] sm:$0xff] }
 0x122   :  { %4409 = vmatprep.subr.bf16.mxu1 %v5139_v0 }
 0x123   :  { %1188 = vmatmul.mubr.f32.vlgmr.msra.gmra.mrb[2].mxu0 %v5987_v52 }
 0x124   :  { %4271 = vmatpush1.bf16.msra.mxu0 %v7204_v58  ;;  %1546 = vmatmul.mubr.f32.vlgmr.msra.gmra.mrb[2].mxu1 %v5987_v52  ;;  %v7208_v52 = vld [vmem:[#allocation22_spill] sm:$0xff]  ;;  %v7210_v58 = vld [vmem:[#allocation24_spill] sm:$0xff] }
 0x125   :  { %4411 = vmatpush1.bf16.msra.mxu1 %v7205_v10  ;;  %4272 = vmatprep.subr.bf16.mxu0 %v5139_v0  ;;  %v7209_v10 = vld [vmem:[#allocation23_spill] sm:$0xff] }
 0x126   :  { %4412 = vmatprep.subr.bf16.mxu1 %v5139_v0  ;;  %3726 = vmatprep.mubr.msk.f32.mxu0 %vm70_vm0, %v6014_v39 }
 0x127   :  { %3736 = vmatprep.mubr.msk.f32.mxu1 %vm70_vm0, %v6014_v39  ;;  %v7212_v39 = vld [vmem:[#allocation26_spill] sm:$0xff] }
 0x128   :  { %4274 = vmatpush1.bf16.msra.mxu0 %v7206_v6 }
 0x129   :  { %4414 = vmatpush1.bf16.msra.mxu1 %v7207_v13  ;;  %4275 = vmatprep.subr.bf16.mxu0 %v5139_v0  ;;  %v7213_v13 = vld [vmem:[#allocation27_spill] sm:$0xff] }
 0x12a   :  { %4415 = vmatprep.subr.bf16.mxu1 %v5139_v0 }
 0x12c   :  { %4277 = vmatpush1.bf16.msra.mxu0 %v7208_v52  ;;  %v7215_v52 = vld [vmem:[#allocation29_spill] sm:$0xff] }
 0x12d   :  { %4417 = vmatpush1.bf16.msra.mxu1 %v7209_v10  ;;  %4278 = vmatprep.subr.bf16.mxu0 %v5139_v0  ;;  %v7214_v10 = vld [vmem:[#allocation28_spill] sm:$0xff] }
 0x12e   :  { %4418 = vmatprep.subr.bf16.mxu1 %v5139_v0 }
 0x130   :  { %4280 = vmatpush1.bf16.msra.mxu0 %v7210_v58  ;;  %v7217_v58 = vld [vmem:[#allocation31_spill] sm:$0xff] }
 0x131   :  { %4420 = vmatpush1.bf16.msra.mxu1 %v7211_v14  ;;  %4281 = vmatprep.subr.bf16.mxu0 %v5139_v0  ;;  %v7216_v14 = vld [vmem:[#allocation30_spill] sm:$0xff] }
 0x132   :  { %4421 = vmatprep.subr.bf16.mxu1 %v5139_v0 }
 0x134   :  { %4283 = vmatpush1.bf16.msra.mxu0 %v7212_v39  ;;  %v7219_v39 = vld [vmem:[#allocation33_spill] sm:$0xff] }
 0x135   :  { %4423 = vmatpush1.bf16.msra.mxu1 %v7213_v13  ;;  %4284 = vmatprep.subr.bf16.mxu0 %v5139_v0  ;;  %v7218_v13 = vld [vmem:[#allocation32_spill] sm:$0xff] }
 0x136   :  { %4424 = vmatprep.subr.bf16.mxu1 %v5139_v0 }
 0x138   :  { %4286 = vmatpush1.bf16.msra.mxu0 %v7214_v10  ;;  %v7221_v10 = vld [vmem:[#allocation35_spill] sm:$0xff] }
 0x139   :  { %4426 = vmatpush1.bf16.msra.mxu1 %v7215_v52  ;;  %4287 = vmatprep.subr.bf16.mxu0 %v5139_v0  ;;  %v7220_v52 = vld [vmem:[#allocation34_spill] sm:$0xff] }
 0x13a   :  { %4427 = vmatprep.subr.bf16.mxu1 %v5139_v0 }
 0x13c   :  { %4289 = vmatpush1.bf16.msra.mxu0 %v7216_v14  ;;  %v7225_v14 = vld [vmem:[#allocation39_spill] sm:$0xff] }
 0x13d   :  { %4429 = vmatpush1.bf16.msra.mxu1 %v7217_v58  ;;  %4290 = vmatprep.subr.bf16.mxu0 %v5139_v0  ;;  %v7222_v58 = vld [vmem:[#allocation36_spill] sm:$0xff] }
 0x13e   :  { %4430 = vmatprep.subr.bf16.mxu1 %v5139_v0 }
 0x140   :  { %4292 = vmatpush1.bf16.msra.mxu0 %v7218_v13 }
 0x141   :  { %4432 = vmatpush1.bf16.msra.mxu1 %v7219_v39  ;;  %4293 = vmatprep.subr.bf16.mxu0 %v5139_v0  ;;  %v5137_v39 = vld [vmem:[%s7039_s1 + $0x8] sm:$0x7f] }
 0x142   :  { %4433 = vmatprep.subr.bf16.mxu1 %v5139_v0  ;;  %v1266_v13 = vrot.slane %v5137_v39, 2  ;;  %v7226_v39 = vld [vmem:[#allocation40_spill] sm:$0xff] }
 0x144   :  { %4296 = vmatpush1.bf16.msk.msra.mxu0 %vm5373_vm3, %v7220_v52  ;;  %v7223_v52 = vld [vmem:[#allocation37_spill] sm:$0xff] }
 0x145   :  { %4436 = vmatpush1.bf16.msk.msra.mxu1 %vm5373_vm3, %v7221_v10  ;;  %4297 = vmatprep.subr.bf16.mxu0 %v5139_v0  ;;  %v7224_v10 = vld [vmem:[#allocation38_spill] sm:$0xff] }
 0x146   :  { %4437 = vmatprep.subr.bf16.mxu1 %v5139_v0 }
 0x147   :  { %1259 = vmatmul.mubr.f32.vlgmr.msra.gmra.mrb[2].mxu0 %v6171_v60 }
 0x148   :  { %4299 = vmatpush1.bf16.msra.mxu0 %v7222_v58  ;;  %1617 = vmatmul.mubr.f32.vlgmr.msra.gmra.mrb[2].mxu1 %v6171_v60  ;;  %v7227_v60 = vld [vmem:[#allocation41_spill] sm:$0xff]  ;;  %v7229_v58 = vld [vmem:[#allocation43_spill] sm:$0xff] }
 0x149   :  { %4439 = vmatpush1.bf16.msra.mxu1 %v7223_v52  ;;  %4300 = vmatprep.subr.bf16.mxu0 %v5139_v0  ;;  %v7228_v52 = vld [vmem:[#allocation42_spill] sm:$0xff] }
 0x14a   :  { %4440 = vmatprep.subr.bf16.mxu1 %v5139_v0  ;;  %3728 = vmatprep.mubr.msk.f32.mxu0 %vm70_vm0, %v1266_v13 }
 0x14b   :  { %3738 = vmatprep.mubr.msk.f32.mxu1 %vm70_vm0, %v1266_v13  ;;  %v7230_v13 = vld [vmem:[#allocation44_spill] sm:$0xff] }
 0x14c   :  { %4302 = vmatpush1.bf16.msra.mxu0 %v7224_v10 }
 0x14d   :  { %4442 = vmatpush1.bf16.msra.mxu1 %v7225_v14  ;;  %4303 = vmatprep.subr.bf16.mxu0 %v5139_v0  ;;  %v7231_v14 = vld [vmem:[#allocation45_spill] sm:$0xff] }
 0x14e   :  { %4443 = vmatprep.subr.bf16.mxu1 %v5139_v0 }
 0x150   :  { %4305 = vmatpush1.bf16.msra.mxu0 %v7226_v39  ;;  %v7233_v39 = vld [vmem:[#allocation47_spill] sm:$0xff] }
 0x151   :  { %4445 = vmatpush1.bf16.msra.mxu1 %v7227_v60  ;;  %4306 = vmatprep.subr.bf16.mxu0 %v5139_v0  ;;  %v7232_v60 = vld [vmem:[#allocation46_spill] sm:$0xff] }
 0x152   :  { %4446 = vmatprep.subr.bf16.mxu1 %v5139_v0 }
 0x154   :  { %4308 = vmatpush1.bf16.msra.mxu0 %v7228_v52 }
 0x155   :  { %4448 = vmatpush1.bf16.msra.mxu1 %v7229_v58  ;;  %4309 = vmatprep.subr.bf16.mxu0 %v5139_v0  ;;  %v7234_v58 = vld [vmem:[#allocation48_spill] sm:$0xff] }
 0x156   :  { %4449 = vmatprep.subr.bf16.mxu1 %v5139_v0 }
 0x158   :  { %4311 = vmatpush1.bf16.msra.mxu0 %v7230_v13 }
 0x159   :  { %4451 = vmatpush1.bf16.msra.mxu1 %v7231_v14  ;;  %4312 = vmatprep.subr.bf16.mxu0 %v5139_v0 }
 0x15a   :  { %4452 = vmatprep.subr.bf16.mxu1 %v5139_v0 }
 0x15c   :  { %4314 = vmatpush1.bf16.msra.mxu0 %v7232_v60 }
 0x15d   :  { %4454 = vmatpush1.bf16.msra.mxu1 %v7233_v39  ;;  %4315 = vmatprep.subr.bf16.mxu0 %v5139_v0  ;;  %v5138_v39 = vld [vmem:[%s7039_s1] sm:$0x7f] }
 0x15e   :  { %4455 = vmatprep.subr.bf16.mxu1 %v5139_v0  ;;  %v1265_v60 = vrot.slane %v5138_v39, 2 }
 0x160   :  { %4317 = vmatpush1.bf16.msra.mxu0 %v6123_v29 }
 0x161   :  { %4457 = vmatpush1.bf16.msra.mxu1 %v7234_v58  ;;  %4318 = vmatprep.subr.bf16.mxu0 %v5139_v0 }
 0x162   :  { %4458 = vmatprep.subr.bf16.mxu1 %v5139_v0 }
 0x164   :  { %4320 = vmatpush1.bf16.msra.mxu0 %v6143_v21 }
 0x165   :  { %4460 = vmatpush1.bf16.msra.mxu1 %v6147_v40  ;;  %4321 = vmatprep.subr.bf16.mxu0 %v5139_v0  ;;  %v6418_v40 = vld [vmem:[%s7039_s1 + $0x18] sm:$0x7f] }
 0x166   :  { %4461 = vmatprep.subr.bf16.mxu1 %v5139_v0 }
 0x168   :  { %4324 = vmatpush1.bf16.msk.msra.mxu0 %vm5373_vm3, %v6163_v44 }
 0x169   :  { %4464 = vmatpush1.bf16.msk.msra.mxu1 %vm5373_vm3, %v6167_v41  ;;  %4465 = vmatprep.subr.bf16.mxu0 %v5139_v0 }
 0x16a   :  { %4605 = vmatprep.subr.bf16.mxu1 %v5139_v0 }
 0x16b   :  { %1335 = vmatmul.mubr.f32.vlgmr.msra.gmra.mrb[2].mxu0 %v1265_v60 }
 0x16c   :  { %1688 = vmatmul.mubr.f32.vlgmr.msra.gmra.mrb[2].mxu1 %v1265_v60  ;;  %4467 = vmatpush1.bf16.msra.mxu0 %v5199_v4 }
 0x16d   :  { %4607 = vmatpush1.bf16.msra.mxu1 %v5210_v8  ;;  %4468 = vmatprep.subr.bf16.mxu0 %v5139_v0 }
 0x16e   :  { %4608 = vmatprep.subr.bf16.mxu1 %v5139_v0  ;;  %3745 = vmatprep.mubr.msk.f32.mxu0 %vm70_vm0, %v6418_v40 }
 0x16f   :  { %3755 = vmatprep.mubr.msk.f32.mxu1 %vm70_vm0, %v6418_v40 }
 0x170   :  { %4470 = vmatpush1.bf16.msra.mxu0 %v5219_v11 }
 0x171   :  { %4610 = vmatpush1.bf16.msra.mxu1 %v5223_v12  ;;  %4471 = vmatprep.subr.bf16.mxu0 %v5139_v0 }
 0x172   :  { %4611 = vmatprep.subr.bf16.mxu1 %v5139_v0 }
 0x174   :  { %4473 = vmatpush1.bf16.msra.mxu0 %v5239_v17 }
 0x175   :  { %4613 = vmatpush1.bf16.msra.mxu1 %v5243_v18  ;;  %4474 = vmatprep.subr.bf16.mxu0 %v5139_v0 }
 0x176   :  { %4614 = vmatprep.subr.bf16.mxu1 %v5139_v0 }
 0x178   :  { %4476 = vmatpush1.bf16.msra.mxu0 %v5259_v23 }
 0x179   :  { %4616 = vmatpush1.bf16.msra.mxu1 %v5263_v24  ;;  %4477 = vmatprep.subr.bf16.mxu0 %v5139_v0 }
 0x17a   :  { %4617 = vmatprep.subr.bf16.mxu1 %v5139_v0 }
 0x17c   :  { %4479 = vmatpush1.bf16.msra.mxu0 %v5288_v30 }
 0x17d   :  { %4619 = vmatpush1.bf16.msra.mxu1 %v5292_v31  ;;  %4480 = vmatprep.subr.bf16.mxu0 %v5139_v0 }
 0x17e   :  { %4620 = vmatprep.subr.bf16.mxu1 %v5139_v0 }
 0x180   :  { %4482 = vmatpush1.bf16.msra.mxu0 %v5308_v36 }
 0x181   :  { %4622 = vmatpush1.bf16.msra.mxu1 %v5312_v37  ;;  %4483 = vmatprep.subr.bf16.mxu0 %v5139_v0 }
 0x182   :  { %4623 = vmatprep.subr.bf16.mxu1 %v5139_v0 }
 0x184   :  { %4485 = vmatpush1.bf16.msra.mxu0 %v5328_v42 }
 0x185   :  { %4625 = vmatpush1.bf16.msra.mxu1 %v5332_v43  ;;  %4486 = vmatprep.subr.bf16.mxu0 %v5139_v0 }
 0x186   :  { %4626 = vmatprep.subr.bf16.mxu1 %v5139_v0 }
 0x188   :  { %4488 = vmatpush1.bf16.msra.mxu0 %v5348_v48 }
 0x189   :  { %4628 = vmatpush1.bf16.msra.mxu1 %v5352_v49  ;;  %4489 = vmatprep.subr.bf16.mxu0 %v5139_v0  ;;  %v6468_v49 = vld [vmem:[%s7039_s1 + $0x10] sm:$0x7f] }
 0x18a   :  { %v6455_v39 = vpop.f32.mrb[0].mxu0  ;;  %4629 = vmatprep.subr.bf16.mxu1 %v5139_v0 }
 0x18b   :  { %v6458_v60 = vpop.f32.mrb[0].mxu1  ;;  %v517_v37 = vpop.f32.mrb[1].mxu0 }
 0x18c   :  { %v980_v42 = vpop.f32.mrb[1].mxu1  ;;  %4492 = vmatpush1.bf16.msk.msra.mxu0 %vm5373_vm3, %v5368_v54  ;;  %v6479_v37 = vld [vmem:[%s7040_s0 + $0x18] sm:$0x7f] }
 0x18d   :  { %4632 = vmatpush1.bf16.msk.msra.mxu1 %vm5373_vm3, %v5377_v56  ;;  %4493 = vmatprep.subr.bf16.mxu0 %v5139_v0  ;;  %v6524_v42 = vld [vmem:[%s7040_s0 + $0x10] sm:$0x7f]  ;;  %v6532_v43 = vrot.slane %v6479_v37, 1 }
 0x18e   :  { %4633 = vmatprep.subr.bf16.mxu1 %v5139_v0 }
 0x18f   :  { %1796 = vmatmul.mubr.f32.vlgmr.msra.gmra.mrb[4].mxu0 %v6468_v49 }
 0x190   :  { %4495 = vmatpush1.bf16.msra.mxu0 %v5400_v62  ;;  %2169 = vmatmul.mubr.f32.vlgmr.msra.gmra.mrb[4].mxu1 %v6468_v49 }
 0x191   :  { %4635 = vmatpush1.bf16.msra.mxu1 %v5406_v63  ;;  %4496 = vmatprep.subr.bf16.mxu0 %v5139_v0 }
 0x192   :  { %4636 = vmatprep.subr.bf16.mxu1 %v5139_v0  ;;  %3747 = vmatprep.mubr.msk.f32.mxu0 %vm70_vm0, %v6479_v37 }
 0x193   :  { %3757 = vmatprep.mubr.msk.f32.mxu1 %vm70_vm0, %v6479_v37 }
 0x194   :  { %4498 = vmatpush1.bf16.msra.mxu0 %v5429_v7 }
 0x195   :  { %4638 = vmatpush1.bf16.msra.mxu1 %v5433_v9  ;;  %4499 = vmatprep.subr.bf16.mxu0 %v5139_v0 }
 0x196   :  { %4639 = vmatprep.subr.bf16.mxu1 %v5139_v0 }
 0x198   :  { %4501 = vmatpush1.bf16.msra.mxu0 %v5453_v16 }
 0x199   :  { %4641 = vmatpush1.bf16.msra.mxu1 %v5457_v19  ;;  %4502 = vmatprep.subr.bf16.mxu0 %v5139_v0 }
 0x19a   :  { %4642 = vmatprep.subr.bf16.mxu1 %v5139_v0 }
 0x19c   :  { %4504 = vmatpush1.bf16.msra.mxu0 %v5473_v26 }
 0x19d   :  { %4644 = vmatpush1.bf16.msra.mxu1 %v5477_v28  ;;  %4505 = vmatprep.subr.bf16.mxu0 %v5139_v0 }
 0x19e   :  { %4645 = vmatprep.subr.bf16.mxu1 %v5139_v0 }
 0x1a0   :  { %4507 = vmatpush1.bf16.msra.mxu0 %v5493_v35 }
 0x1a1   :  { %4647 = vmatpush1.bf16.msra.mxu1 %v5497_v38  ;;  %4508 = vmatprep.subr.bf16.mxu0 %v5139_v0 }
 0x1a2   :  { %4648 = vmatprep.subr.bf16.mxu1 %v5139_v0 }
 0x1a4   :  { %4510 = vmatpush1.bf16.msra.mxu0 %v5513_v45 }
 0x1a5   :  { %4650 = vmatpush1.bf16.msra.mxu1 %v5517_v46  ;;  %4511 = vmatprep.subr.bf16.mxu0 %v5139_v0 }
 0x1a6   :  { %4651 = vmatprep.subr.bf16.mxu1 %v5139_v0 }
 0x1a8   :  { %4513 = vmatpush1.bf16.msra.mxu0 %v5533_v53 }
 0x1a9   :  { %4653 = vmatpush1.bf16.msra.mxu1 %v5537_v57  ;;  %4514 = vmatprep.subr.bf16.mxu0 %v5139_v0 }
 0x1aa   :  { %4654 = vmatprep.subr.bf16.mxu1 %v5139_v0 }
 0x1ac   :  { %4516 = vmatpush1.bf16.msra.mxu0 %v5553_v2 }
 0x1ad   :  { %4656 = vmatpush1.bf16.msra.mxu1 %v5557_v3  ;;  %4517 = vmatprep.subr.bf16.mxu0 %v5139_v0 }
 0x1ae   :  { %4657 = vmatprep.subr.bf16.mxu1 %v5139_v0 }
 0x1b0   :  { %4520 = vmatpush1.bf16.msk.msra.mxu0 %vm5373_vm3, %v5573_v15 }
 0x1b1   :  { %4660 = vmatpush1.bf16.msk.msra.mxu1 %vm5373_vm3, %v5577_v20  ;;  %4521 = vmatprep.subr.bf16.mxu0 %v5139_v0 }
 0x1b2   :  { %4661 = vmatprep.subr.bf16.mxu1 %v5139_v0 }
 0x1b3   :  { %1869 = vmatmul.mubr.f32.vlgmr.msra.gmra.mrb[4].mxu0 %v6524_v42 }
 0x1b4   :  { %4523 = vmatpush1.bf16.msra.mxu0 %v5600_v33  ;;  %2239 = vmatmul.mubr.f32.vlgmr.msra.gmra.mrb[4].mxu1 %v6524_v42 }
 0x1b5   :  { %4663 = vmatpush1.bf16.msra.mxu1 %v5606_v34  ;;  %4524 = vmatprep.subr.bf16.mxu0 %v5139_v0 }
 0x1b6   :  { %4664 = vmatprep.subr.bf16.mxu1 %v5139_v0  ;;  %3749 = vmatprep.mubr.msk.f32.mxu0 %vm70_vm0, %v6532_v43 }
 0x1b7   :  { %3759 = vmatprep.mubr.msk.f32.mxu1 %vm70_vm0, %v6532_v43 }
 0x1b8   :  { %4526 = vmatpush1.bf16.msra.mxu0 %v5627_v50 }
 0x1b9   :  { %4666 = vmatpush1.bf16.msra.mxu1 %v5631_v51  ;;  %4527 = vmatprep.subr.bf16.mxu0 %v5139_v0 }
 0x1ba   :  { %4667 = vmatprep.subr.bf16.mxu1 %v5139_v0 }
 0x1bc   :  { %4529 = vmatpush1.bf16.msra.mxu0 %v5651_v1 }
 0x1bd   :  { %4669 = vmatpush1.bf16.msra.mxu1 %v5655_v5  ;;  %4530 = vmatprep.subr.bf16.mxu0 %v5139_v0 }
 0x1be   :  { %4670 = vmatprep.subr.bf16.mxu1 %v5139_v0 }
 0x1c0   :  { %4532 = vmatpush1.bf16.msra.mxu0 %v5671_v22  ;;  %v7246_v22 = vld [vmem:[#allocation25_spill] sm:$0xff] }
 0x1c1   :  { %4672 = vmatpush1.bf16.msra.mxu1 %v5675_v25  ;;  %4533 = vmatprep.subr.bf16.mxu0 %v5139_v0  ;;  %v7235_v25 = vld [vmem:[#allocation13_spill] sm:$0xff] }
 0x1c2   :  { %4673 = vmatprep.subr.bf16.mxu1 %v5139_v0 }
 0x1c4   :  { %4535 = vmatpush1.bf16.msra.mxu0 %v7194_v27  ;;  %v7237_v27 = vld [vmem:[#allocation15_spill] sm:$0xff] }
 0x1c5   :  { %4675 = vmatpush1.bf16.msra.mxu1 %v7195_v61  ;;  %4536 = vmatprep.subr.bf16.mxu0 %v5139_v0  ;;  %v7236_v61 = vld [vmem:[#allocation14_spill] sm:$0xff] }
 0x1c6   :  { %4676 = vmatprep.subr.bf16.mxu1 %v5139_v0 }
 0x1c8   :  { %4538 = vmatpush1.bf16.msra.mxu0 %v7196_v32  ;;  %v7238_v32 = vld [vmem:[#allocation16_spill] sm:$0xff] }
 0x1c9   :  { %4678 = vmatpush1.bf16.msra.mxu1 %v7197_v47  ;;  %4539 = vmatprep.subr.bf16.mxu0 %v5139_v0  ;;  %v6573_v47 = vrot.slane %v6524_v42, 1 }
 0x1ca   :  { %4679 = vmatprep.subr.bf16.mxu1 %v5139_v0 }
 0x1cc   :  { %4541 = vmatpush1.bf16.msra.mxu0 %v7198_v59  ;;  %v7241_v59 = vld [vmem:[#allocation19_spill] sm:$0xff] }
 0x1cd   :  { %4681 = vmatpush1.bf16.msra.mxu1 %v7235_v25  ;;  %4542 = vmatprep.subr.bf16.mxu0 %v5139_v0  ;;  %v7239_v25 = vld [vmem:[#allocation17_spill] sm:$0xff] }
 0x1ce   :  { %4682 = vmatprep.subr.bf16.mxu1 %v5139_v0 }
 0x1d0   :  { %4544 = vmatpush1.bf16.msra.mxu0 %v7236_v61  ;;  %v7240_v61 = vld [vmem:[#allocation18_spill] sm:$0xff] }
 0x1d1   :  { %4684 = vmatpush1.bf16.msra.mxu1 %v7237_v27  ;;  %4545 = vmatprep.subr.bf16.mxu0 %v5139_v0  ;;  %v6584_v27 = vrot.slane %v6418_v40, 1 }
 0x1d2   :  { %4685 = vmatprep.subr.bf16.mxu1 %v5139_v0 }
 0x1d4   :  { %4548 = vmatpush1.bf16.msk.msra.mxu0 %vm5373_vm3, %v7238_v32  ;;  %v7245_v32 = vld [vmem:[#allocation24_spill] sm:$0xff] }
 0x1d5   :  { %4688 = vmatpush1.bf16.msk.msra.mxu1 %vm5373_vm3, %v7239_v25  ;;  %4549 = vmatprep.subr.bf16.mxu0 %v5139_v0  ;;  %v7242_v25 = vld [vmem:[#allocation21_spill] sm:$0xff] }
 0x1d6   :  { %4689 = vmatprep.subr.bf16.mxu1 %v5139_v0 }
 0x1d7   :  { %1945 = vmatmul.mubr.f32.vlgmr.msra.gmra.mrb[4].mxu0 %v6573_v47 }
 0x1d8   :  { %4551 = vmatpush1.bf16.msra.mxu0 %v7240_v61  ;;  %2309 = vmatmul.mubr.f32.vlgmr.msra.gmra.mrb[4].mxu1 %v6573_v47  ;;  %v7243_v61 = vld [vmem:[#allocation22_spill] sm:$0xff] }
 0x1d9   :  { %4691 = vmatpush1.bf16.msra.mxu1 %v7241_v59  ;;  %4552 = vmatprep.subr.bf16.mxu0 %v5139_v0  ;;  %v7244_v59 = vld [vmem:[#allocation23_spill] sm:$0xff] }
 0x1da   :  { %4692 = vmatprep.subr.bf16.mxu1 %v5139_v0  ;;  %3751 = vmatprep.mubr.msk.f32.mxu0 %vm70_vm0, %v6584_v27 }
 0x1db   :  { %3761 = vmatprep.mubr.msk.f32.mxu1 %vm70_vm0, %v6584_v27 }
 0x1dc   :  { %4554 = vmatpush1.bf16.msra.mxu0 %v7206_v6  ;;  %v7248_v6 = vld [vmem:[#allocation27_spill] sm:$0xff] }
 0x1dd   :  { %4694 = vmatpush1.bf16.msra.mxu1 %v7242_v25  ;;  %4555 = vmatprep.subr.bf16.mxu0 %v5139_v0  ;;  %v7247_v25 = vld [vmem:[#allocation26_spill] sm:$0xff] }
 0x1de   :  { %4695 = vmatprep.subr.bf16.mxu1 %v5139_v0 }
 0x1e0   :  { %4557 = vmatpush1.bf16.msra.mxu0 %v7243_v61  ;;  %v7250_v61 = vld [vmem:[#allocation29_spill] sm:$0xff] }
 0x1e1   :  { %4697 = vmatpush1.bf16.msra.mxu1 %v7244_v59  ;;  %4558 = vmatprep.subr.bf16.mxu0 %v5139_v0  ;;  %v7249_v59 = vld [vmem:[#allocation28_spill] sm:$0xff] }
 0x1e2   :  { %4698 = vmatprep.subr.bf16.mxu1 %v5139_v0 }
 0x1e4   :  { %4560 = vmatpush1.bf16.msra.mxu0 %v7245_v32  ;;  %v7252_v32 = vld [vmem:[#allocation31_spill] sm:$0xff] }
 0x1e5   :  { %4700 = vmatpush1.bf16.msra.mxu1 %v7246_v22  ;;  %4561 = vmatprep.subr.bf16.mxu0 %v5139_v0  ;;  %v7251_v22 = vld [vmem:[#allocation30_spill] sm:$0xff] }
 0x1e6   :  { %4701 = vmatprep.subr.bf16.mxu1 %v5139_v0 }
 0x1e8   :  { %4563 = vmatpush1.bf16.msra.mxu0 %v7247_v25  ;;  %v7254_v25 = vld [vmem:[#allocation33_spill] sm:$0xff] }
 0x1e9   :  { %4703 = vmatpush1.bf16.msra.mxu1 %v7248_v6  ;;  %4564 = vmatprep.subr.bf16.mxu0 %v5139_v0  ;;  %v7253_v6 = vld [vmem:[#allocation32_spill] sm:$0xff] }
 0x1ea   :  { %4704 = vmatprep.subr.bf16.mxu1 %v5139_v0 }
 0x1ec   :  { %4566 = vmatpush1.bf16.msra.mxu0 %v7249_v59  ;;  %v7255_v59 = vld [vmem:[#allocation34_spill] sm:$0xff] }
 0x1ed   :  { %4706 = vmatpush1.bf16.msra.mxu1 %v7250_v61  ;;  %4567 = vmatprep.subr.bf16.mxu0 %v5139_v0  ;;  %v6625_v61 = vrot.slane %v6468_v49, 1 }
 0x1ee   :  { %4707 = vmatprep.subr.bf16.mxu1 %v5139_v0 }
 0x1f0   :  { %4569 = vmatpush1.bf16.msra.mxu0 %v7251_v22  ;;  %v7258_v22 = vld [vmem:[#allocation37_spill] sm:$0xff] }
 0x1f1   :  { %4709 = vmatpush1.bf16.msra.mxu1 %v7252_v32  ;;  %4570 = vmatprep.subr.bf16.mxu0 %v5139_v0  ;;  %v7256_v32 = vld [vmem:[#allocation35_spill] sm:$0xff] }
 0x1f2   :  { %4710 = vmatprep.subr.bf16.mxu1 %v5139_v0 }
 0x1f4   :  { %4572 = vmatpush1.bf16.msra.mxu0 %v7253_v6  ;;  %v7257_v6 = vld [vmem:[#allocation36_spill] sm:$0xff] }
 0x1f5   :  { %4712 = vmatpush1.bf16.msra.mxu1 %v7254_v25  ;;  %4573 = vmatprep.subr.bf16.mxu0 %v5139_v0  ;;  %v6636_v25 = vrot.slane %v6479_v37, 2  ;;  %v7259_v37 = vld [vmem:[#allocation39_spill] sm:$0xff] }
 0x1f6   :  { %4713 = vmatprep.subr.bf16.mxu1 %v5139_v0 }
 0x1f8   :  { %4576 = vmatpush1.bf16.msk.msra.mxu0 %vm5373_vm3, %v7255_v59 }
 0x1f9   :  { %4716 = vmatpush1.bf16.msk.msra.mxu1 %vm5373_vm3, %v7256_v32  ;;  %4577 = vmatprep.subr.bf16.mxu0 %v5139_v0  ;;  %v7262_v32 = vld [vmem:[#allocation43_spill] sm:$0xff] }
 0x1fa   :  { %4717 = vmatprep.subr.bf16.mxu1 %v5139_v0 }
 0x1fb   :  { %2022 = vmatmul.mubr.f32.vlgmr.msra.gmra.mrb[4].mxu0 %v6625_v61 }
 0x1fc   :  { %4579 = vmatpush1.bf16.msra.mxu0 %v7257_v6  ;;  %2380 = vmatmul.mubr.f32.vlgmr.msra.gmra.mrb[4].mxu1 %v6625_v61  ;;  %v7260_v6 = vld [vmem:[#allocation40_spill] sm:$0xff] }
 0x1fd   :  { %4719 = vmatpush1.bf16.msra.mxu1 %v7258_v22  ;;  %4580 = vmatprep.subr.bf16.mxu0 %v5139_v0  ;;  %v7261_v22 = vld [vmem:[#allocation41_spill] sm:$0xff] }
 0x1fe   :  { %4720 = vmatprep.subr.bf16.mxu1 %v5139_v0  ;;  %3753 = vmatprep.mubr.msk.f32.mxu0 %vm70_vm0, %v6636_v25 }
 0x1ff   :  { %3763 = vmatprep.mubr.msk.f32.mxu1 %vm70_vm0, %v6636_v25 }
 0x200   :  { %4582 = vmatpush1.bf16.msra.mxu0 %v7224_v10 }
 0x201   :  { %4722 = vmatpush1.bf16.msra.mxu1 %v7259_v37  ;;  %4583 = vmatprep.subr.bf16.mxu0 %v5139_v0 }
 0x202   :  { %4723 = vmatprep.subr.bf16.mxu1 %v5139_v0 }
 0x204   :  { %4585 = vmatpush1.bf16.msra.mxu0 %v7260_v6  ;;  %v7264_v6 = vld [vmem:[#allocation47_spill] sm:$0xff] }
 0x205   :  { %4725 = vmatpush1.bf16.msra.mxu1 %v7261_v22  ;;  %4586 = vmatprep.subr.bf16.mxu0 %v5139_v0  ;;  %v7263_v22 = vld [vmem:[#allocation46_spill] sm:$0xff] }
 0x206   :  { %4726 = vmatprep.subr.bf16.mxu1 %v5139_v0 }
 0x208   :  { %4588 = vmatpush1.bf16.msra.mxu0 %v7228_v52 }
 0x209   :  { %4728 = vmatpush1.bf16.msra.mxu1 %v7262_v32  ;;  %4589 = vmatprep.subr.bf16.mxu0 %v5139_v0 }
 0x20a   :  { %4729 = vmatprep.subr.bf16.mxu1 %v5139_v0 }
 0x20c   :  { %4591 = vmatpush1.bf16.msra.mxu0 %v7230_v13 }
 0x20d   :  { %4731 = vmatpush1.bf16.msra.mxu1 %v7231_v14  ;;  %4592 = vmatprep.subr.bf16.mxu0 %v5139_v0  ;;  %v7265_v14 = vld [vmem:[#allocation49_spill] sm:$0xff] }
 0x20e   :  { %4732 = vmatprep.subr.bf16.mxu1 %v5139_v0 }
 0x210   :  { %4594 = vmatpush1.bf16.msra.mxu0 %v7263_v22 }
 0x211   :  { %4734 = vmatpush1.bf16.msra.mxu1 %v7264_v6  ;;  %4595 = vmatprep.subr.bf16.mxu0 %v5139_v0  ;;  %v6677_v6 = vrot.slane %v6524_v42, 2 }
 0x212   :  { %4735 = vmatprep.subr.bf16.mxu1 %v5139_v0 }
 0x214   :  { %4597 = vmatpush1.bf16.msra.mxu0 %v6123_v29 }
 0x215   :  { %4737 = vmatpush1.bf16.msra.mxu1 %v7234_v58  ;;  %4598 = vmatprep.subr.bf16.mxu0 %v5139_v0 }
 0x216   :  { %4738 = vmatprep.subr.bf16.mxu1 %v5139_v0 }
 0x218   :  { %4600 = vmatpush1.bf16.msra.mxu0 %v6143_v21 }
 0x219   :  { %4740 = vmatpush1.bf16.msra.mxu1 %v7265_v14  ;;  %4601 = vmatprep.subr.bf16.mxu0 %v5139_v0 }
 0x21a   :  { %4741 = vmatprep.subr.bf16.mxu1 %v5139_v0 }
 0x21c   :  { %4604 = vmatpush1.bf16.msk.msra.mxu0 %vm5373_vm3, %v6163_v44 }
 0x21d   :  { %4744 = vmatpush1.bf16.msk.msra.mxu1 %vm5373_vm3, %v6167_v41  ;;  %4745 = vmatprep.subr.bf16.mxu0 %v5139_v0 }
 0x21e   :  { %4885 = vmatprep.subr.bf16.mxu1 %v5139_v0 }
 0x21f   :  { %2098 = vmatmul.mubr.f32.vlgmr.msra.gmra.mrb[4].mxu0 %v6677_v6 }
 0x220   :  { %2451 = vmatmul.mubr.f32.vlgmr.msra.gmra.mrb[4].mxu1 %v6677_v6  ;;  %4747 = vmatpush1.bf16.msra.mxu0 %v5199_v4  ;;  %v7266_v4 = vld [vmem:[#allocation2_spill] sm:$0xff] }
 0x221   :  { %4887 = vmatpush1.bf16.msra.mxu1 %v5210_v8  ;;  %4748 = vmatprep.subr.bf16.mxu0 %v5139_v0  ;;  %v7267_v8 = vld [vmem:[#allocation3_spill] sm:$0xff] }
 0x222   :  { %4888 = vmatprep.subr.bf16.mxu1 %v5139_v0  ;;  %3765 = vmatprep.mubr.msk.f32.mxu0 %vm70_vm0, %v6532_v43 }
 0x223   :  { %3775 = vmatprep.mubr.msk.f32.mxu1 %vm70_vm0, %v6532_v43  ;;  %v7271_v43 = vld [vmem:[#allocation6_spill] sm:$0xff] }
 0x224   :  { %4750 = vmatpush1.bf16.msra.mxu0 %v5219_v11  ;;  %v7268_v11 = vld [vmem:[#allocation4_spill] sm:$0xff] }
 0x225   :  { %4890 = vmatpush1.bf16.msra.mxu1 %v5223_v12  ;;  %4751 = vmatprep.subr.bf16.mxu0 %v5139_v0  ;;  %v7269_v12 = vld [vmem:[#allocation5_spill] sm:$0xff] }
 0x226   :  { %4891 = vmatprep.subr.bf16.mxu1 %v5139_v0 }
 0x228   :  { %4753 = vmatpush1.bf16.msra.mxu0 %v5239_v17 }
 0x229   :  { %4893 = vmatpush1.bf16.msra.mxu1 %v5243_v18  ;;  %4754 = vmatprep.subr.bf16.mxu0 %v5139_v0 }
 0x22a   :  { %4894 = vmatprep.subr.bf16.mxu1 %v5139_v0 }
 0x22c   :  { %4756 = vmatpush1.bf16.msra.mxu0 %v5259_v23 }
 0x22d   :  { %4896 = vmatpush1.bf16.msra.mxu1 %v5263_v24  ;;  %4757 = vmatprep.subr.bf16.mxu0 %v5139_v0 }
 0x22e   :  { %4897 = vmatprep.subr.bf16.mxu1 %v5139_v0 }
 0x230   :  { %4759 = vmatpush1.bf16.msra.mxu0 %v5288_v30 }
 0x231   :  { %4899 = vmatpush1.bf16.msra.mxu1 %v5292_v31  ;;  %4760 = vmatprep.subr.bf16.mxu0 %v5139_v0  ;;  %v7270_v31 = vmax.f32 %v6455_v39, %v6458_v60  ;;  %v3194_v39 = vld [vmem:[%s7041_s6 + $0x20] sm:$0xff]  ;;  %v3195_v60 = vld [vmem:[%s7041_s6 + $0x28] sm:$0xff] }
 0x232   :  { %4900 = vmatprep.subr.bf16.mxu1 %v5139_v0  ;;  %v5032_v42 = vpack.c.bf16 %v3195_v60, %v3194_v39 }
 0x234   :  { %4762 = vmatpush1.bf16.msra.mxu0 %v5308_v36 }
 0x235   :  { %4902 = vmatpush1.bf16.msra.mxu1 %v7266_v4  ;;  %4763 = vmatprep.subr.bf16.mxu0 %v5139_v0  ;;  %v3197_v4 = vld [vmem:[%s7041_s6 + $0x38] sm:$0xff] }
 0x236   :  { %4903 = vmatprep.subr.bf16.mxu1 %v5139_v0 }
 0x238   :  { %4765 = vmatpush1.bf16.msra.mxu0 %v7267_v8 }
 0x239   :  { %4905 = vmatpush1.bf16.msra.mxu1 %v7268_v11  ;;  %4766 = vmatprep.subr.bf16.mxu0 %v5139_v0  ;;  %v3198_v11 = vld [vmem:[%s7041_s6 + $0x40] sm:$0xff] }
 0x23a   :  { %4906 = vmatprep.subr.bf16.mxu1 %v5139_v0 }
 0x23c   :  { %4768 = vmatpush1.bf16.msra.mxu0 %v5348_v48  ;;  %v7272_v48 = vld [vmem:[#allocation7_spill] sm:$0xff] }
 0x23d   :  { %4908 = vmatpush1.bf16.msra.mxu1 %v7269_v12  ;;  %4769 = vmatprep.subr.bf16.mxu0 %v5139_v0  ;;  %v3199_v12 = vld [vmem:[%s7041_s6 + $0x48] sm:$0xff] }
 0x23e   :  { %v1336_v17 = vpop.f32.mrb[2].mxu0  ;;  %4909 = vmatprep.subr.bf16.mxu1 %v5139_v0 }
 0x23f   :  { %v1689_v18 = vpop.f32.mrb[2].mxu1  ;;  %v1338_v23 = vpop.f32.mrb[3].mxu0 }
 0x240   :  { %v1695_v24 = vmax.f32 %v1336_v17, %v1689_v18  ;;  %v1691_v30 = vpop.f32.mrb[3].mxu1  ;;  %4772 = vmatpush1.bf16.msk.msra.mxu0 %vm5373_vm3, %v5368_v54  ;;  %v7273_v54 = vld [vmem:[#allocation8_spill] sm:$0xff]  ;;  %v5038_v17 = vpack.c.bf16 %v3199_v12, %v3198_v11  ;;  %v3201_v23 = vld [vmem:[%s7041_s6 + $0x58] sm:$0xff]  ;;  %v3358_v11 = vld [vmem:[%s7044_s4] sm:$0x1] }
 0x241   :  { %4912 = vmatpush1.bf16.msk.msra.mxu1 %vm5373_vm3, %v5377_v56  ;;  %4773 = vmatprep.subr.bf16.mxu0 %v5139_v0  ;;  %v7274_v56 = vld [vmem:[#allocation9_spill] sm:$0xff]  ;;  %v3200_v18 = vld [vmem:[%s7041_s6 + $0x50] sm:$0xff]  ;;  %v5141_v30 = vmov 0.0  }
 0x242   :  { %v6735_v36 = vmax.f32 %v7270_v31, %v1695_v24  ;;  %4913 = vmatprep.subr.bf16.mxu1 %v5139_v0  ;;  %v5041_v24 = vpack.c.bf16 %v3201_v23, %v3200_v18  ;;  %v3202_v31 = vld [vmem:[%s7041_s6 + $0x60] sm:$0xf] }
 0x243   :  { %2522 = vmatmul.mubr.f32.vlgmr.msra.gmra.mrb[6].mxu0 %v6573_v47  ;;  %v3362_v18 = vld [vmem:[%s7045_s5] sm:$0x1] }
 0x244   :  { %4775 = vmatpush1.bf16.msra.mxu0 %v5400_v62  ;;  %2880 = vmatmul.mubr.f32.vlgmr.msra.gmra.mrb[6].mxu1 %v6573_v47  ;;  %v7275_v62 = vld [vmem:[#allocation10_spill] sm:$0xff]  ;;  %v7301_v47 = vld [vmem:[#allocation37_spill] sm:$0xff] }
 0x245   :  { %4915 = vmatpush1.bf16.msra.mxu1 %v5406_v63  ;;  %4776 = vmatprep.subr.bf16.mxu0 %v5139_v0  ;;  %v7276_v63 = vld [vmem:[#allocation11_spill] sm:$0xff] }
 0x246   :  { %4916 = vmatprep.subr.bf16.mxu1 %v5139_v0  ;;  %3767 = vmatprep.mubr.msk.f32.mxu0 %vm70_vm0, %v6418_v40 }
 0x247   :  { %3777 = vmatprep.mubr.msk.f32.mxu1 %vm70_vm0, %v6418_v40 }
 0x248   :  { %4778 = vmatpush1.bf16.msra.mxu0 %v5429_v7  ;;  %v7277_v7 = vld [vmem:[#allocation12_spill] sm:$0xff] }
 0x249   :  { %4918 = vmatpush1.bf16.msra.mxu1 %v5433_v9  ;;  %4779 = vmatprep.subr.bf16.mxu0 %v5139_v0  ;;  %v7278_v9 = vld [vmem:[#allocation13_spill] sm:$0xff] }
 0x24a   :  { %4919 = vmatprep.subr.bf16.mxu1 %v5139_v0 }
 0x24c   :  { %4781 = vmatpush1.bf16.msra.mxu0 %v5453_v16  ;;  %v7279_v16 = vld [vmem:[#allocation14_spill] sm:$0xff] }
 0x24d   :  { %4921 = vmatpush1.bf16.msra.mxu1 %v5457_v19  ;;  %4782 = vmatprep.subr.bf16.mxu0 %v5139_v0  ;;  %v7280_v19 = vld [vmem:[#allocation15_spill] sm:$0xff] }
 0x24e   :  { %4922 = vmatprep.subr.bf16.mxu1 %v5139_v0 }
 0x250   :  { %4784 = vmatpush1.bf16.msra.mxu0 %v5473_v26  ;;  %v7281_v26 = vld [vmem:[#allocation16_spill] sm:$0xff] }
 0x251   :  { %4924 = vmatpush1.bf16.msra.mxu1 %v5477_v28  ;;  %4785 = vmatprep.subr.bf16.mxu0 %v5139_v0  ;;  %v7282_v28 = vld [vmem:[#allocation17_spill] sm:$0xff] }
 0x252   :  { %4925 = vmatprep.subr.bf16.mxu1 %v5139_v0 }
 0x254   :  { %4787 = vmatpush1.bf16.msra.mxu0 %v5493_v35  ;;  %v7283_v35 = vld [vmem:[#allocation18_spill] sm:$0xff] }
 0x255   :  { %4927 = vmatpush1.bf16.msra.mxu1 %v5497_v38  ;;  %4788 = vmatprep.subr.bf16.mxu0 %v5139_v0  ;;  %v7284_v38 = vld [vmem:[#allocation19_spill] sm:$0xff] }
 0x256   :  { %4928 = vmatprep.subr.bf16.mxu1 %v5139_v0 }
 0x258   :  { %4790 = vmatpush1.bf16.msra.mxu0 %v5513_v45  ;;  %v7285_v45 = vld [vmem:[#allocation20_spill] sm:$0xff] }
 0x259   :  { %4930 = vmatpush1.bf16.msra.mxu1 %v5517_v46  ;;  %4791 = vmatprep.subr.bf16.mxu0 %v5139_v0  ;;  %v7286_v46 = vld [vmem:[#allocation21_spill] sm:$0xff] }
 0x25a   :  { %4931 = vmatprep.subr.bf16.mxu1 %v5139_v0 }
 0x25c   :  { %4793 = vmatpush1.bf16.msra.mxu0 %v5533_v53  ;;  %v7287_v53 = vld [vmem:[#allocation22_spill] sm:$0xff] }
 0x25d   :  { %4933 = vmatpush1.bf16.msra.mxu1 %v5537_v57  ;;  %4794 = vmatprep.subr.bf16.mxu0 %v5139_v0  ;;  %v7288_v57 = vld [vmem:[#allocation23_spill] sm:$0xff] }
 0x25e   :  { %4934 = vmatprep.subr.bf16.mxu1 %v5139_v0 }
 0x260   :  { %4796 = vmatpush1.bf16.msra.mxu0 %v5553_v2  ;;  %v7289_v2 = vld [vmem:[#allocation24_spill] sm:$0xff] }
 0x261   :  { %4936 = vmatpush1.bf16.msra.mxu1 %v5557_v3  ;;  %4797 = vmatprep.subr.bf16.mxu0 %v5139_v0  ;;  %v7290_v3 = vld [vmem:[#allocation25_spill] sm:$0xff] }
 0x262   :  { %4937 = vmatprep.subr.bf16.mxu1 %v5139_v0 }
 0x264   :  { %4800 = vmatpush1.bf16.msk.msra.mxu0 %vm5373_vm3, %v5573_v15  ;;  %v7291_v15 = vld [vmem:[#allocation26_spill] sm:$0xff] }
 0x265   :  { %4940 = vmatpush1.bf16.msk.msra.mxu1 %vm5373_vm3, %v5577_v20  ;;  %4801 = vmatprep.subr.bf16.mxu0 %v5139_v0  ;;  %v7292_v20 = vld [vmem:[#allocation27_spill] sm:$0xff] }
 0x266   :  { %4941 = vmatprep.subr.bf16.mxu1 %v5139_v0 }
 0x267   :  { %2592 = vmatmul.mubr.f32.vlgmr.msra.gmra.mrb[6].mxu0 %v6468_v49 }
 0x268   :  { %4803 = vmatpush1.bf16.msra.mxu0 %v5600_v33  ;;  %2950 = vmatmul.mubr.f32.vlgmr.msra.gmra.mrb[6].mxu1 %v6468_v49  ;;  %v7293_v33 = vld [vmem:[#allocation28_spill] sm:$0xff] }
 0x269   :  { %4943 = vmatpush1.bf16.msra.mxu1 %v5606_v34  ;;  %4804 = vmatprep.subr.bf16.mxu0 %v5139_v0  ;;  %v7294_v34 = vld [vmem:[#allocation29_spill] sm:$0xff] }
 0x26a   :  { %4944 = vmatprep.subr.bf16.mxu1 %v5139_v0  ;;  %3769 = vmatprep.mubr.msk.f32.mxu0 %vm70_vm0, %v6584_v27 }
 0x26b   :  { %3779 = vmatprep.mubr.msk.f32.mxu1 %vm70_vm0, %v6584_v27  ;;  %v2740_v27 = vrot.slane %v6418_v40, 2  ;;  %v7302_v40 = vld [vmem:[#allocation40_spill] sm:$0xff] }
 0x26c   :  { %4806 = vmatpush1.bf16.msra.mxu0 %v5627_v50  ;;  %v7295_v50 = vld [vmem:[#allocation30_spill] sm:$0xff] }
 0x26d   :  { %4946 = vmatpush1.bf16.msra.mxu1 %v5631_v51  ;;  %4807 = vmatprep.subr.bf16.mxu0 %v5139_v0  ;;  %v7296_v51 = vld [vmem:[#allocation31_spill] sm:$0xff] }
 0x26e   :  { %4947 = vmatprep.subr.bf16.mxu1 %v5139_v0 }
 0x270   :  { %4809 = vmatpush1.bf16.msra.mxu0 %v5651_v1  ;;  %v7297_v1 = vld [vmem:[#allocation32_spill] sm:$0xff] }
 0x271   :  { %4949 = vmatpush1.bf16.msra.mxu1 %v5655_v5  ;;  %4810 = vmatprep.subr.bf16.mxu0 %v5139_v0  ;;  %v7298_v5 = vld [vmem:[#allocation33_spill] sm:$0xff] }
 0x272   :  { %4950 = vmatprep.subr.bf16.mxu1 %v5139_v0 }
 0x274   :  { %4812 = vmatpush1.bf16.msra.mxu0 %v7271_v43  ;;  %v3739_v43 = vld [vmem:[%s7042_s3] ss:$0 sm:$0xff] }
 0x275   :  { %4952 = vmatpush1.bf16.msra.mxu1 %v7272_v48  ;;  %4813 = vmatprep.subr.bf16.mxu0 %v5139_v0  ;;  %v1704_v48 = vadd.f32 %v3739_v43, %v6735_v36 }
 0x276   :  { %4953 = vmatprep.subr.bf16.mxu1 %v5139_v0 }
 0x278   :  { %4815 = vmatpush1.bf16.msra.mxu0 %v7273_v54  ;;  %v6991_v54 = vmax.f32 %v1704_v48, 0.0 }
 0x279   :  { %4955 = vmatpush1.bf16.msra.mxu1 %v7274_v56  ;;  %4816 = vmatprep.subr.bf16.mxu0 %v5139_v0 }
 0x27a   :  { %4956 = vmatprep.subr.bf16.mxu1 %v5139_v0  ;;  %v1714_v56 = vmul.f32 %v6991_v54, %v6991_v54 }
 0x27c   :  { %4818 = vmatpush1.bf16.msra.mxu0 %v7275_v62  ;;  %v1707_v62 = vsel %vm1706_vm5, %v6991_v54, 0.0 }
 0x27d   :  { %4958 = vmatpush1.bf16.msra.mxu1 %v7276_v63  ;;  %4819 = vmatprep.subr.bf16.mxu0 %v5139_v0  ;;  %v1715_v63 = vsel %vm1706_vm5, %v1714_v56, 0.0 }
 0x27e   :  { %4959 = vmatprep.subr.bf16.mxu1 %v5139_v0 }
 0x280   :  { %4821 = vmatpush1.bf16.msra.mxu0 %v7277_v7 }
 0x281   :  { %4961 = vmatpush1.bf16.msra.mxu1 %v7278_v9  ;;  %4822 = vmatprep.subr.bf16.mxu0 %v5139_v0  ;;  %v1708_v9 = vrot.slane %v1707_v62, 4 }
 0x282   :  { %4962 = vmatprep.subr.bf16.mxu1 %v5139_v0 }
 0x283   :  { %v1709_v36 = vadd.f32 %v1708_v9, %v1707_v62 }
 0x284   :  { %4824 = vmatpush1.bf16.msra.mxu0 %v7279_v16 }
 0x285   :  { %4964 = vmatpush1.bf16.msra.mxu1 %v7280_v19  ;;  %4825 = vmatprep.subr.bf16.mxu0 %v5139_v0 }
 0x286   :  { %4965 = vmatprep.subr.bf16.mxu1 %v5139_v0 }
 0x288   :  { %4828 = vmatpush1.bf16.msk.msra.mxu0 %vm5373_vm3, %v7281_v26 }
 0x289   :  { %4968 = vmatpush1.bf16.msk.msra.mxu1 %vm5373_vm3, %v7282_v28  ;;  %4829 = vmatprep.subr.bf16.mxu0 %v5139_v0  ;;  %v1716_v28 = vrot.slane %v1715_v63, 4 }
 0x28a   :  { %4969 = vmatprep.subr.bf16.mxu1 %v5139_v0 }
 0x28b   :  { %2662 = vmatmul.mubr.f32.vlgmr.msra.gmra.mrb[6].mxu0 %v6625_v61 }
 0x28c   :  { %4831 = vmatpush1.bf16.msra.mxu0 %v7283_v35  ;;  %3020 = vmatmul.mubr.f32.vlgmr.msra.gmra.mrb[6].mxu1 %v6625_v61  ;;  %v7300_v61 = vld [vmem:[#allocation36_spill] sm:$0xff] }
 0x28d   :  { %4971 = vmatpush1.bf16.msra.mxu1 %v7284_v38  ;;  %4832 = vmatprep.subr.bf16.mxu0 %v5139_v0 }
 0x28e   :  { %4972 = vmatprep.subr.bf16.mxu1 %v5139_v0  ;;  %3771 = vmatprep.mubr.msk.f32.mxu0 %vm70_vm0, %v6636_v25 }
 0x28f   :  { %3781 = vmatprep.mubr.msk.f32.mxu1 %vm70_vm0, %v6636_v25  ;;  %v7299_v25 = vld [vmem:[#allocation35_spill] sm:$0xff] }
 0x290   :  { %4834 = vmatpush1.bf16.msra.mxu0 %v7285_v45  ;;  %v1717_v45 = vadd.f32 %v1716_v28, %v1715_v63 }
 0x291   :  { %4974 = vmatpush1.bf16.msra.mxu1 %v7286_v46  ;;  %4835 = vmatprep.subr.bf16.mxu0 %v5139_v0 }
 0x292   :  { %4975 = vmatprep.subr.bf16.mxu1 %v5139_v0 }
 0x294   :  { %4837 = vmatpush1.bf16.msra.mxu0 %v7287_v53  ;;  %v1710_v53 = vrot.slane %v1709_v36, 2 }
 0x295   :  { %4977 = vmatpush1.bf16.msra.mxu1 %v7288_v57  ;;  %4838 = vmatprep.subr.bf16.mxu0 %v5139_v0 }
 0x296   :  { %4978 = vmatprep.subr.bf16.mxu1 %v5139_v0 }
 0x298   :  { %4840 = vmatpush1.bf16.msra.mxu0 %v7289_v2 }
 0x299   :  { %4980 = vmatpush1.bf16.msra.mxu1 %v7290_v3  ;;  %4841 = vmatprep.subr.bf16.mxu0 %v5139_v0  ;;  %v1718_v3 = vrot.slane %v1717_v45, 2 }
 0x29a   :  { %4981 = vmatprep.subr.bf16.mxu1 %v5139_v0 }
 0x29c   :  { %4843 = vmatpush1.bf16.msra.mxu0 %v7291_v15 }
 0x29d   :  { %4983 = vmatpush1.bf16.msra.mxu1 %v7292_v20  ;;  %4844 = vmatprep.subr.bf16.mxu0 %v5139_v0 }
 0x29e   :  { %4984 = vmatprep.subr.bf16.mxu1 %v5139_v0 }
 0x2a0   :  { %4846 = vmatpush1.bf16.msra.mxu0 %v7293_v33  ;;  %v1711_v33 = vadd.f32 %v1710_v53, %v1709_v36 }
 0x2a1   :  { %4986 = vmatpush1.bf16.msra.mxu1 %v7294_v34  ;;  %4847 = vmatprep.subr.bf16.mxu0 %v5139_v0 }
 0x2a2   :  { %4987 = vmatprep.subr.bf16.mxu1 %v5139_v0 }
 0x2a4   :  { %4849 = vmatpush1.bf16.msra.mxu0 %v7295_v50 }
 0x2a5   :  { %4989 = vmatpush1.bf16.msra.mxu1 %v7296_v51  ;;  %4850 = vmatprep.subr.bf16.mxu0 %v5139_v0  ;;  %v1719_v51 = vadd.f32 %v1718_v3, %v1717_v45 }
 0x2a6   :  { %4990 = vmatprep.subr.bf16.mxu1 %v5139_v0 }
 0x2a8   :  { %4852 = vmatpush1.bf16.msra.mxu0 %v7297_v1 }
 0x2a9   :  { %4992 = vmatpush1.bf16.msra.mxu1 %v7298_v5  ;;  %4853 = vmatprep.subr.bf16.mxu0 %v5139_v0 }
 0x2aa   :  { %4993 = vmatprep.subr.bf16.mxu1 %v5139_v0 }
 0x2ac   :  { %4856 = vmatpush1.bf16.msk.msra.mxu0 %vm5373_vm3, %v7255_v59  ;;  %v7303_v59 = vld [vmem:[#allocation41_spill] sm:$0xff] }
 0x2ad   :  { %4996 = vmatpush1.bf16.msk.msra.mxu1 %vm5373_vm3, %v7299_v25  ;;  %4857 = vmatprep.subr.bf16.mxu0 %v5139_v0  ;;  %v1712_v25 = vrot.slane %v1711_v33, 1 }
 0x2ae   :  { %4997 = vmatprep.subr.bf16.mxu1 %v5139_v0 }
 0x2af   :  { %2733 = vmatmul.mubr.f32.vlgmr.msra.gmra.mrb[6].mxu0 %v6677_v6 }
 0x2b0   :  { %4859 = vmatpush1.bf16.msra.mxu0 %v7300_v61  ;;  %3091 = vmatmul.mubr.f32.vlgmr.msra.gmra.mrb[6].mxu1 %v6677_v6  ;;  %v7305_v6 = vld [vmem:[#allocation47_spill] sm:$0xff] }
 0x2b1   :  { %4999 = vmatpush1.bf16.msra.mxu1 %v7301_v47  ;;  %4860 = vmatprep.subr.bf16.mxu0 %v5139_v0 }
 0x2b2   :  { %5000 = vmatprep.subr.bf16.mxu1 %v5139_v0  ;;  %3773 = vmatprep.mubr.msk.f32.mxu0 %vm70_vm0, %v2740_v27 }
 0x2b3   :  { %3783 = vmatprep.mubr.msk.f32.mxu1 %vm70_vm0, %v2740_v27 }
 0x2b4   :  { %4862 = vmatpush1.bf16.msra.mxu0 %v7224_v10  ;;  %v7304_v10 = vld [vmem:[#allocation45_spill] sm:$0xff] }
 0x2b5   :  { %5002 = vmatpush1.bf16.msra.mxu1 %v7259_v37  ;;  %4863 = vmatprep.subr.bf16.mxu0 %v5139_v0  ;;  %v3196_v37 = vld [vmem:[%s7041_s6 + $0x30] sm:$0xff] }
 0x2b6   :  { %5003 = vmatprep.subr.bf16.mxu1 %v5139_v0  ;;  %v5035_v8 = vpack.c.bf16 %v3197_v4, %v3196_v37 }
 0x2b8   :  { %4865 = vmatpush1.bf16.msra.mxu0 %v7302_v40 }
 0x2b9   :  { %5005 = vmatpush1.bf16.msra.mxu1 %v7303_v59  ;;  %4866 = vmatprep.subr.bf16.mxu0 %v5139_v0  ;;  %v1720_v59 = vrot.slane %v1719_v51, 1 }
 0x2ba   :  { %5006 = vmatprep.subr.bf16.mxu1 %v5139_v0 }
 0x2bc   :  { %4868 = vmatpush1.bf16.msra.mxu0 %v7228_v52  ;;  %v3193_v52 = vld [vmem:[%s7041_s6 + $0x18] sm:$0xff] }
 0x2bd   :  { %5008 = vmatpush1.bf16.msra.mxu1 %v7262_v32  ;;  %4869 = vmatprep.subr.bf16.mxu0 %v5139_v0  ;;  %v2739_v32 = vrot.slane %v6468_v49, 2 }
 0x2be   :  { %5009 = vmatprep.subr.bf16.mxu1 %v5139_v0 }
 0x2c0   :  { %4871 = vmatpush1.bf16.msra.mxu0 %v7230_v13 }
 0x2c1   :  { %5011 = vmatpush1.bf16.msra.mxu1 %v7304_v10  ;;  %4872 = vmatprep.subr.bf16.mxu0 %v5139_v0  ;;  %v1713_v10 = vadd.f32 %v1712_v25, %v1711_v33 }
 0x2c2   :  { %5012 = vmatprep.subr.bf16.mxu1 %v5139_v0 }
 0x2c4   :  { %4874 = vmatpush1.bf16.msra.mxu0 %v7263_v22  ;;  %v3190_v22 = vld [vmem:[%s7041_s6] sm:$0xff] }
 0x2c5   :  { %5014 = vmatpush1.bf16.msra.mxu1 %v7305_v6  ;;  %4875 = vmatprep.subr.bf16.mxu0 %v5139_v0 }
 0x2c6   :  { %5015 = vmatprep.subr.bf16.mxu1 %v5139_v0 }
 0x2c8   :  { %4877 = vmatpush1.bf16.msra.mxu0 %v6123_v29  ;;  %v3191_v29 = vld [vmem:[%s7041_s6 + $0x8] sm:$0xff] }
 0x2c9   :  { %5017 = vmatpush1.bf16.msra.mxu1 %v7234_v58  ;;  %4878 = vmatprep.subr.bf16.mxu0 %v5139_v0  ;;  %v3192_v58 = vld [vmem:[%s7041_s6 + $0x10] sm:$0xff] }
 0x2ca   :  { %5018 = vmatprep.subr.bf16.mxu1 %v5139_v0  ;;  %v5029_v13 = vpack.c.bf16 %v3193_v52, %v3192_v58 }
 0x2cc   :  { %4880 = vmatpush1.bf16.msra.mxu0 %v6143_v21  ;;  %v5026_v21 = vpack.c.bf16 %v3191_v29, %v3190_v22 }
 0x2cd   :  { %5020 = vmatpush1.bf16.msra.mxu1 %v7265_v14  ;;  %4881 = vmatprep.subr.bf16.mxu0 %v5139_v0 }
 0x2ce   :  { %5021 = vmatprep.subr.bf16.mxu1 %v5139_v0 }
 0x2d0   :  { %4884 = vmatpush1.bf16.msk.msra.mxu0 %vm5373_vm3, %v6163_v44 }
 0x2d1   :  { %5024 = vmatpush1.bf16.msk.msra.mxu1 %vm5373_vm3, %v6167_v41  ;;  %5025 = vmatprep.subr.bf16.mxu0 %v5139_v0 }
 0x2d2   :  { %5043 = vmatprep.subr.bf16.mxu1 %v5139_v0 }
 0x2d3   :  { %2809 = vmatmul.mubr.f32.vlgmr.msra.gmra.mrb[6].mxu0 %v2739_v32 }
 0x2d4   :  { %3162 = vmatmul.mubr.f32.vlgmr.msra.gmra.mrb[6].mxu1 %v2739_v32  ;;  %5027 = vmatpush3.bf16.msra.mxu0 %v5026_v21  ;;  %v1721_v32 = vadd.f32 %v1720_v59, %v1719_v51 }
 0x2d5   :  { %5045 = vmatpush3.bf16.msra.mxu1 %v5026_v21  ;;  %5028 = vmatprep.subr.bf16.mxu0 %v5139_v0 }
 0x2d6   :  { %5046 = vmatprep.subr.bf16.mxu1 %v5139_v0  ;;  %3855 = vmatprep.mubr.msk.f32.mxu0 %vm5142_vm4, %v5141_v30 }
 0x2d7   :  { %3884 = vmatprep.mubr.msk.f32.mxu1 %vm5142_vm4, %v5141_v30 }
 0x2d8   :  { %5030 = vmatpush3.bf16.msra.mxu0 %v5029_v13 }
 0x2d9   :  { %5048 = vmatpush3.bf16.msra.mxu1 %v5029_v13  ;;  %5031 = vmatprep.subr.bf16.mxu0 %v5139_v0 }
 0x2da   :  { %5049 = vmatprep.subr.bf16.mxu1 %v5139_v0 }
 0x2dc   :  { %5033 = vmatpush3.bf16.msra.mxu0 %v5032_v42 }
 0x2dd   :  { %5051 = vmatpush3.bf16.msra.mxu1 %v5032_v42  ;;  %5034 = vmatprep.subr.bf16.mxu0 %v5139_v0 }
 0x2de   :  { %5052 = vmatprep.subr.bf16.mxu1 %v5139_v0 }
 0x2e0   :  { %5036 = vmatpush3.bf16.msra.mxu0 %v5035_v8 }
 0x2e1   :  { %5054 = vmatpush3.bf16.msra.mxu1 %v5035_v8  ;;  %5037 = vmatprep.subr.bf16.mxu0 %v5139_v0 }
 0x2e2   :  { %5055 = vmatprep.subr.bf16.mxu1 %v5139_v0 }
 0x2e4   :  { %5039 = vmatpush3.bf16.msra.mxu0 %v5038_v17 }
 0x2e5   :  { %5057 = vmatpush3.bf16.msra.mxu1 %v5038_v17  ;;  %5040 = vmatprep.subr.bf16.mxu0 %v5139_v0 }
 0x2e6   :  { %5058 = vmatprep.subr.bf16.mxu1 %v5139_v0 }
 0x2e8   :  { %5042 = vmatpush3.bf16.msra.mxu0 %v5041_v24 }
 0x2e9   :  { %5060 = vmatpush3.bf16.msra.mxu1 %v5041_v24  ;;  %3853 = vmatprep.subr.mxu0 %v5141_v30 }
 0x2ea   :  { %3882 = vmatprep.subr.mxu1 %v5141_v30 }
 0x2ec   :  { %3854 = vmatpush3.msk.msra.mxu0 %vm74_vm1, %v3202_v31 }
 0x2ed   :  { %3883 = vmatpush3.msk.msra.mxu1 %vm74_vm1, %v3202_v31  ;;  %5061 = vmatprep.subr.bf16.mxu0 %v5139_v0 }
 0x2ee   :  { %5064 = vmatprep.subr.bf16.mxu1 %v5139_v0 }
 0x2f2   :  { %v6930_v49 = vpop.f32.mrb[4].mxu0 }
 0x2f3   :  { %v6932_v44 = vpop.f32.mrb[4].mxu1  ;;  %v2101_v14 = vpop.f32.mrb[5].mxu0 }
 0x2f4   :  { %v3168_v55 = vmax.f32 %v6930_v49, %v6932_v44  ;;  %v2454_v41 = vpop.f32.mrb[5].mxu1  ;;  %v3365_v44 = vld [vmem:[%s7043_s7] sm:$0xff]  ;;  %v3366_v14 = vld [vmem:[%s7043_s7 + $0x8] sm:$0xff] }
 0x2f5   :  { %v3367_v41 = vld [vmem:[%s7043_s7 + $0x10] sm:$0xf] }
 0x3a6   :  { %v2810_v7 = vpop.f32.mrb[6].mxu0 }
 0x3a7   :  { %v3163_v0 = vpop.f32.mrb[6].mxu1  ;;  %v2812_v16 = vpop.f32.mrb[7].mxu0 }
 0x3a8   :  { %v3169_v19 = vmax.f32 %v2810_v7, %v3163_v0  ;;  %v3165_v26 = vpop.f32.mrb[7].mxu1 }
 0x3aa   :  { %v3170_v35 = vmax.f32 %v3168_v55, %v3169_v19  ;;  %v5062_v55 = vpack.c.bf16 %v3366_v14, %v3365_v44 }
 0x3ac   :  { %v3171_v38 = vadd.f32 %v3739_v43, %v3170_v35 }
 0x3ae   :  { %v6998_v46 = vmax.f32 %v3171_v38, 0.0 }
 0x3b0   :  { %v3173_v57 = vsel %vm1706_vm5, %v6998_v46, 0.0  ;;  %v3180_v2 = vmul.f32 %v6998_v46, %v6998_v46 }
 0x3b1   :  { %v3174_v15 = vrot.slane %v3173_v57, 4 }
 0x3b2   :  { %v3181_v20 = vsel %vm1706_vm5, %v3180_v2, 0.0 }
 0x3b3   :  { %v3175_v34 = vadd.f32 %v3174_v15, %v3173_v57  ;;  %v3182_v50 = vrot.slane %v3181_v20, 4 }
 0x3b5   :  { %v3176_v1 = vrot.slane %v3175_v34, 2  ;;  %v3183_v5 = vadd.f32 %v3182_v50, %v3181_v20 }
 0x3b7   :  { %v3177_v27 = vadd.f32 %v3176_v1, %v3175_v34  ;;  %v3184_v61 = vrot.slane %v3183_v5, 2 }
 0x3b9   :  { %v3178_v47 = vrot.slane %v3177_v27, 1  ;;  %v3185_v40 = vadd.f32 %v3184_v61, %v3183_v5 }
 0x3bb   :  { %v3179_v6 = vadd.f32 %v3178_v47, %v3177_v27  ;;  %v3186_v22 = vrot.slane %v3185_v40, 1 }
 0x3bd   :  { %v3188_v29 = vadd.f32 %v3179_v6, %v1713_v10  ;;  %v3187_v21 = vadd.f32 %v3186_v22, %v3185_v40 }
 0x3bf   :  { %3856 = vmatmul.mubr.msk.f32.vlgmr.msra.gmra.mrb[8].mxu0 %vm3203_vm6, %v3188_v29  ;;  %v3189_v49 = vadd.f32 %v3187_v21, %v1721_v32 }
 0x3c0   :  { %3893 = vmatprep.mubr.msk.f32.mxu0 %vm5142_vm4, %v5141_v30  ;;  %5063 = vmatpush3.bf16.msra.mxu0 %v5062_v55 }
 0x3c1   :  { %3885 = vmatmul.mubr.msk.f32.vlgmr.msra.gmra.mrb[8].mxu1 %vm3203_vm6, %v3189_v49  ;;  %3891 = vmatprep.subr.mxu0 %v5141_v30 }
 0x3c2   :  { %3902 = vmatprep.mubr.msk.f32.mxu1 %vm5142_vm4, %v5141_v30  ;;  %5066 = vmatpush3.bf16.msra.mxu1 %v5062_v55 }
 0x3c3   :  { %3900 = vmatprep.subr.mxu1 %v5141_v30  ;;  %v3518_v30 = vlaneseq }
 0x3c4   :  { %3892 = vmatpush3.msk.msra.mxu0 %vm74_vm1, %v3367_v41 }
 0x3c5   :  { %v3519_v31 = vshrl.u32 %v3518_v30, 7 }
 0x3c6   :  { %3901 = vmatpush3.msk.msra.mxu1 %vm74_vm1, %v3367_v41 }
 0x3c7   :  { %v3520_v43 = vsub.s32 0, %v3519_v31 }
 0x492   :  { %v3276_v58 = vpop.f32.mrb[8].mxu0 }
 0x493   :  { %v3281_v52 = vmul.f32 0.02, %v3276_v58  ;;  %v3857_v13 = vpop.f32.mrb[9].mxu0 }
 0x494   :  { %v3351_v39 = vpop.f32.mrb[8].mxu1 }
 0x495   :  { %v3356_v60 = vmul.f32 %v3281_v52, %v3281_v52  ;;  %v3355_v42 = vmul.f32 0.02, %v3351_v39  ;;  %v3886_v37 = vpop.f32.mrb[9].mxu1 }
 0x497   :  { %v3357_v4 = vsub.f32 %v3355_v42, %v3356_v60 }
 0x499   :  { %v3359_v8 = vadd.f32 1e-05, %v3357_v4 }
 0x49b   :  { %5135 = vrsqrt.f32 %v3359_v8 }
 0x4a5   :  { %v5136_v12 = vpop.eup %5135 }
 0x4a6   :  { %v3361_v17 = vmul.f32 %v5136_v12, %v3358_v11 }
 0x4a8   :  { %3894 = vmatmul.mubr.msk.f32.vlgmr.msra.gmra.mrb[10].mxu0 %vm3368_vm7, %v3361_v17  ;;  %v3363_v23 = vmul.f32 %v3361_v17, %v3281_v52 }
 0x4aa   :  { %v3364_v24 = vsub.f32 %v3362_v18, %v3363_v23 }
 0x4ac   :  { %3903 = vmatmul.mubr.msk.f32.vlgmr.msra.gmra.mrb[10].mxu1 %vm3368_vm7, %v3364_v24 }
 0x57b   :  { %v3441_v48 = vpop.f32.mrb[10].mxu0 }
 0x57c   :  { %v3521_v56 = vrot.slane %v3441_v48, %v3520_v43  ;;  %v3895_v62 = vpop.f32.mrb[11].mxu0 }
 0x57e   :  { %v3522_v7 = vmul.f32 %v3521_v56, %v6991_v54  ;;  %v3529_v9 = vmul.f32 %v3521_v56, %v6998_v46 }
 0x57f   :  { %v3514_v63 = vpop.f32.mrb[10].mxu1 }
 0x580   :  { %v3526_v0 = vrot.slane %v3514_v63, %v3520_v43  ;;  %v3904_v16 = vpop.f32.mrb[11].mxu1 }
 0x582   :  { %v3527_v19 = vadd.f32 %v3526_v0, %v3522_v7  ;;  %v3530_v26 = vadd.f32 %v3529_v9, %v3526_v0 }
 0x584   :  { %3528 = vst.msk [vmem:[%s7046_s8] sm:$0x1f] %vm1706_vm5, %v3527_v19  ;;  %3792 = vst.msk [vmem:[%s7046_s8 + $0x8] sm:$0x1f] %vm1706_vm5, %v3530_v26 }

// kernel: stn_forward.5
= control target key start
LH: loop header
LB: loop body
LE: loop exit
PB: predicated region body
PF: predicated region fallthrough
CT: control target
= control target key end

     0   :  { %s3179_s17 = smov 0   ;;  %s4634_s0 = inlined_call_operand.vmem [shape: f32[2,1,500], index: 0, kind: input, shape index: {}]   ;;  %s4635_s1 = inlined_call_operand.vmem [shape: f32[500,32], index: 1, kind: input, shape index: {}]   ;;  %s4636_s2 = inlined_call_operand.vmem [shape: f32[1,32], index: 2, kind: input, shape index: {}]   ;;  %s4637_s3 = inlined_call_operand.vmem [shape: f32[32,6], index: 3, kind: input, shape index: {}]   ;;  %s4638_s4 = inlined_call_operand.vmem [shape: f32[1,6], index: 4, kind: input, shape index: {}]   ;;  %s4639_s5 = inlined_call_operand.vmem [shape: f32[1,1024], index: 5, kind: input, shape index: {}]   ;;  %s4640_s6 = inlined_call_operand.vmem [shape: f32[1,1024], index: 6, kind: input, shape index: {}]   ;;  %s4641_s7 = inlined_call_operand.vmem [shape: f32[32,1], index: 7, kind: input, shape index: {}, may-alias: {7,8}]   ;;  %s4642_s8 = inlined_call_operand.vmem [shape: f32[32,1], index: 8, kind: input, shape index: {}, may-alias: {7,8}]   ;;  %s4643_s9 = inlined_call_operand.vmem [shape: f32[4,128], index: 9, kind: input, shape index: {}]   ;;  %s4644_s10 = inlined_call_operand.vmem [shape: f32[2,128,32], index: 10, kind: input, shape index: {}]   ;;  %s4645_s11 = inlined_call_operand.vmem [shape: f32[2,4,1024], index: 11, kind: output, shape index: {}]  }
   0x1 LB: > { %s2695_s18 = sadd.s32 4294967295, %s3108_s17   ;;  %p2699_p0 = scmp.ge.s32.totalorder %s3108_s17, 1  ;;  %s3108_s17 = sphi %s3179_s17, %s21_s17  }
   0x2   : > { %p346_p1 = scmp.lt.s32.totalorder %s3108_s17, 3 }
   0x4   : > { %p347_p2 = pnand %p2699_p0, %p346_p1 }
   0x6   : > { %350 = sbr.rel (%p347_p2) target bundleno = 1262 (0x4ee), region = 64 }
   0xd   : > { %v437_v0 = vld [vmem:[%s4635_s1 + $0x100] sm:$0xff]  ;;  %v438_v1 = vld [vmem:[%s4635_s1 + $0x108] sm:$0xff]  ;;  %v439_v2 = vld [vmem:[%s4635_s1 + $0x110] sm:$0xff]  ;;  %v3110_v3 = vmov 0.0|0.0   ;;  %p3230_p3 = scmp.lt.s32.totalorder %s2695_s18, 1  ;;  %v470_v29 = vlaneseq  ;;  %vm489_vm0 = vcmask 949248  }
   0xe   : > { %2861 = vmatprep.subr.bf16.mxu1 %v3110_v3  ;;  %v2862_v4 = vpack.c.bf16 %v438_v1, %v437_v0  ;;  %v440_v5 = vld [vmem:[%s4635_s1 + $0x118] sm:$0xff]  ;;  %v441_v7 = vld [vmem:[%s4635_s1 + $0x120] sm:$0xff]  ;;  %v442_v8 = vld [vmem:[%s4635_s1 + $0x128] sm:$0xff]  ;;  %vm492_vm1 = vcmask 1043456   ;;  %vm3112_vm2 = vmmov 0   ;;  %vm642_vm3 = vcmask 261120  }
   0xf   : > { %v2865_v6 = vpack.c.bf16 %v440_v5, %v439_v2  ;;  %v421_v9 = vld [vmem:[%s4635_s1 + $0x80] sm:$0xff]  ;;  %v422_v10 = vld [vmem:[%s4635_s1 + $0x88] sm:$0xff]  ;;  %v423_v15 = vld [vmem:[%s4635_s1 + $0x90] sm:$0xff]  ;;  %v2868_v18 = vpack.c.bf16 %v442_v8, %v441_v7  ;;  %s4702_s18 = smov (!%p3230_p3, %s2695_s18), 1  ;;  %v3281_v39 = vshrl.u32 %v470_v29, 7 }
  0x10   : > { %2863 = vmatpush1.bf16.msra.mxu1 %v2862_v4  ;;  %v405_v11 = vld [vmem:[%s4635_s1] sm:$0xff]  ;;  %v2829_v12 = vpack.c.bf16 %v422_v10, %v421_v9  ;;  %v406_v13 = vld [vmem:[%s4635_s1 + $0x8] sm:$0xff]  ;;  %v424_v16 = vld [vmem:[%s4635_s1 + $0x98] sm:$0xff]  ;;  %s2700_s25 = sshll.u32 %s4702_s18, 2  ;;  %s2776_s30 = sshll.u32 %s4702_s18, 7 }
  0x11   : > { %2864 = vmatprep.subr.bf16.mxu1 %v3110_v3  ;;  %v2831_v14 = vpack.c.bf16 %v406_v13, %v405_v11  ;;  %v407_v17 = vld [vmem:[%s4635_s1 + $0x10] sm:$0xff]  ;;  %v2833_v20 = vpack.c.bf16 %v424_v16, %v423_v15  ;;  %v408_v21 = vld [vmem:[%s4635_s1 + $0x18] sm:$0xff]  ;;  %v425_v24 = vld [vmem:[%s4635_s1 + $0xa0] sm:$0xff]  ;;  %s393_s19 = scalar_lea.vmem %s4634_s0, %s2700_s25  ;;  %v3307_v49 = vsub.s32 1, %v3281_v39  ;;  %v3310_v50 = vsub.s32 3, %v3281_v39  ;;  %s3683_s14 = scalar_lea.vmem %s4644_s10, %s2776_s30 }
  0x12   : > { %v443_v19 = vld [vmem:[%s4635_s1 + $0x130] sm:$0xff]  ;;  %2830 = vmatprep.subr.bf16.mxu0 %v2829_v12  ;;  %v444_v22 = vld [vmem:[%s4635_s1 + $0x138] sm:$0xff]  ;;  %v2835_v23 = vpack.c.bf16 %v408_v21, %v407_v17  ;;  %v426_v25 = vld [vmem:[%s4635_s1 + $0xa8] sm:$0xff]  ;;  %s2777_s16 = sshll.u32 %s4702_s18, 5 }
  0x13   : > { %2832 = vmatpush3.bf16.msra.mxu0 %v2831_v14  ;;  %v2837_v26 = vpack.c.bf16 %v426_v25, %v425_v24  ;;  %v409_v27 = vld [vmem:[%s4635_s1 + $0x20] sm:$0xff]  ;;  %v410_v28 = vld [vmem:[%s4635_s1 + $0x28] sm:$0xff]  ;;  %v427_v30 = vld [vmem:[%s4635_s1 + $0xb0] sm:$0xff]  ;;  %v2871_v32 = vpack.c.bf16 %v444_v22, %v443_v19  ;;  %v3376_v19 = vsub.s32 0, %v3281_v39  ;;  %s403_s21 = scalar_lea.vmem %s4645_s11, %s2777_s16 }
  0x14   : > { %2866 = vmatpush1.bf16.msra.mxu1 %v2865_v6  ;;  %2834 = vmatprep.subr.bf16.mxu0 %v2833_v20  ;;  %v428_v31 = vld [vmem:[%s4635_s1 + $0xb8] sm:$0xff]  ;;  %v445_v33 = vld [vmem:[%s4635_s1 + $0x140] sm:$0xff]  ;;  %v446_v34 = vld [vmem:[%s4635_s1 + $0x148] sm:$0xff]  ;;  %v2839_v35 = vpack.c.bf16 %v410_v28, %v409_v27 }
  0x15   : > { %2867 = vmatprep.subr.bf16.mxu1 %v3110_v3  ;;  %v2841_v36 = vpack.c.bf16 %v428_v31, %v427_v30  ;;  %v411_v37 = vld [vmem:[%s4635_s1 + $0x30] sm:$0xff]  ;;  %v412_v38 = vld [vmem:[%s4635_s1 + $0x38] sm:$0xff]  ;;  %v429_v40 = vld [vmem:[%s4635_s1 + $0xc0] sm:$0xff]  ;;  %v2874_v42 = vpack.c.bf16 %v446_v34, %v445_v33 }
  0x16   : > { %v430_v41 = vld [vmem:[%s4635_s1 + $0xc8] sm:$0xff]  ;;  %v447_v43 = vld [vmem:[%s4635_s1 + $0x150] sm:$0xff]  ;;  %v448_v44 = vld [vmem:[%s4635_s1 + $0x158] sm:$0xff]  ;;  %v2843_v45 = vpack.c.bf16 %v412_v38, %v411_v37 }
  0x17   : > { %2836 = vmatpush3.bf16.msra.mxu0 %v2835_v23  ;;  %v2845_v46 = vpack.c.bf16 %v430_v41, %v429_v40  ;;  %v413_v47 = vld [vmem:[%s4635_s1 + $0x40] sm:$0xff]  ;;  %v414_v48 = vld [vmem:[%s4635_s1 + $0x48] sm:$0xff]  ;;  %v431_v51 = vld [vmem:[%s4635_s1 + $0xd0] sm:$0xff]  ;;  %v2877_v53 = vpack.c.bf16 %v448_v44, %v447_v43  ;;  %v3425_v41 = vsub.s32 2, %v3281_v39 }
  0x18   : > { %2869 = vmatpush1.bf16.msra.mxu1 %v2868_v18  ;;  %2838 = vmatprep.subr.bf16.mxu0 %v2837_v26  ;;  %v432_v52 = vld [vmem:[%s4635_s1 + $0xd8] sm:$0xff]  ;;  %v449_v54 = vld [vmem:[%s4635_s1 + $0x160] sm:$0xff]  ;;  %v450_v55 = vld [vmem:[%s4635_s1 + $0x168] sm:$0xff]  ;;  %v2847_v56 = vpack.c.bf16 %v414_v48, %v413_v47 }
  0x19   : > { %2870 = vmatprep.subr.bf16.mxu1 %v3110_v3  ;;  %v3325_v57 = vld [vmem:[%s393_s19] sm:$0xf]  ;;  %v2849_v58 = vpack.c.bf16 %v432_v52, %v431_v51  ;;  %v415_v59 = vld [vmem:[%s4635_s1 + $0x50] sm:$0xff]  ;;  %v416_v60 = vld [vmem:[%s4635_s1 + $0x58] sm:$0xff]  ;;  %v2880_v1 = vpack.c.bf16 %v450_v55, %v449_v54 }
  0x1a   : > { %v477_v61 = vrot.slane %v3325_v57, %v3307_v49  ;;  %v485_v62 = vrot.slane %v3325_v57, %v3310_v50  ;;  %v433_v63 = vld [vmem:[%s4635_s1 + $0xe0] sm:$0xff]  ;;  %v434_v0 = vld [vmem:[%s4635_s1 + $0xe8] sm:$0xff]  ;;  %v451_v2 = vld [vmem:[%s4635_s1 + $0x170] sm:$0xff]  ;;  %v2851_v5 = vpack.c.bf16 %v416_v60, %v415_v59  ;;  %v473_v24 = vrot.slane %v3325_v57, %v3376_v19 }
  0x1b   : > { %2840 = vmatpush3.bf16.msra.mxu0 %v2839_v35  ;;  %v452_v4 = vld [vmem:[%s4635_s1 + $0x178] sm:$0xff]  ;;  %v2853_v6 = vpack.c.bf16 %v434_v0, %v433_v63  ;;  %v417_v7 = vld [vmem:[%s4635_s1 + $0x60] sm:$0xff]  ;;  %v418_v8 = vld [vmem:[%s4635_s1 + $0x68] sm:$0xff]  ;;  %v481_v44 = vrot.slane %v3325_v57, %v3425_v41 }
  0x1c   : > { %2872 = vmatpush1.bf16.msra.mxu1 %v2871_v32  ;;  %2842 = vmatprep.subr.bf16.mxu0 %v2841_v36  ;;  %v435_v9 = vld [vmem:[%s4635_s1 + $0xf0] sm:$0xff]  ;;  %v436_v10 = vld [vmem:[%s4635_s1 + $0xf8] sm:$0xff]  ;;  %v2883_v11 = vpack.c.bf16 %v452_v4, %v451_v2  ;;  %v453_v12 = vld [vmem:[%s4635_s1 + $0x180] sm:$0xff]  ;;  %v2855_v14 = vpack.c.bf16 %v418_v8, %v417_v7 }
  0x1d   : > { %2873 = vmatprep.subr.bf16.mxu1 %v3110_v3  ;;  %560 = vmatprep.mubr.f32.mxu0 %v477_v61  ;;  %v454_v13 = vld [vmem:[%s4635_s1 + $0x188] sm:$0xff]  ;;  %v2857_v15 = vpack.c.bf16 %v436_v10, %v435_v9  ;;  %v419_v16 = vld [vmem:[%s4635_s1 + $0x70] sm:$0xff]  ;;  %v420_v17 = vld [vmem:[%s4635_s1 + $0x78] sm:$0xff]  ;;  %v3113_v61 = vmov 5   ;;  %v3117_v10 = vmov 1  }
  0x1e   : > { %2706 = vmatprep.mubr.msk.f32.mxu1 %vm489_vm0, %v485_v62  ;;  %v2886_v18 = vpack.c.bf16 %v454_v13, %v453_v12  ;;  %v455_v20 = vld [vmem:[%s4635_s1 + $0x190] sm:$0xff]  ;;  %v456_v21 = vld [vmem:[%s4635_s1 + $0x198] sm:$0xff]  ;;  %v2859_v22 = vpack.c.bf16 %v420_v17, %v419_v16  ;;  %v457_v25 = vld [vmem:[%s4635_s1 + $0x1a0] sm:$0xff]  ;;  %3095 = vset.pattern.permute.xlu1 %v3113_v61  ;;  %v3114_v62 = vmov 3   ;;  %v3118_v12 = vmov 2  }
  0x1f   : > { %2844 = vmatpush3.bf16.msra.mxu0 %v2843_v45  ;;  %v2889_v23 = vpack.c.bf16 %v456_v21, %v455_v20  ;;  %v458_v26 = vld [vmem:[%s4635_s1 + $0x1a8] sm:$0xff]  ;;  %v459_v28 = vld [vmem:[%s4635_s1 + $0x1b0] sm:$0xff]  ;;  %v460_v29 = vld [vmem:[%s4635_s1 + $0x1b8] sm:$0xff]  ;;  %3093 = vset.pattern.permute.xlu0 %v3114_v62 }
  0x20   : > { %2875 = vmatpush1.bf16.msra.mxu1 %v2874_v42  ;;  %2846 = vmatprep.subr.bf16.mxu0 %v2845_v46  ;;  %v2892_v27 = vpack.c.bf16 %v458_v26, %v457_v25  ;;  %v2895_v30 = vpack.c.bf16 %v460_v29, %v459_v28  ;;  %v461_v31 = vld [vmem:[%s4635_s1 + $0x1c0] sm:$0xff]  ;;  %v462_v32 = vld [vmem:[%s4635_s1 + $0x1c8] sm:$0xff]  ;;  %v463_v34 = vld [vmem:[%s4635_s1 + $0x1d0] sm:$0xff]  ;;  %v4650_v42 = vmov 0.0  }
  0x21   : > { %2876 = vmatprep.subr.bf16.mxu1 %v3110_v3  ;;  %v2898_v33 = vpack.c.bf16 %v462_v32, %v461_v31  ;;  %v464_v35 = vld [vmem:[%s4635_s1 + $0x1d8] sm:$0xff]  ;;  %v465_v37 = vld [vmem:[%s4635_s1 + $0x1e0] sm:$0xff]  ;;  %v466_v38 = vld [vmem:[%s4635_s1 + $0x1e8] sm:$0xff] }
  0x22   : > { %v2901_v36 = vpack.c.bf16 %v464_v35, %v463_v34  ;;  %v2904_v40 = vpack.c.bf16 %v466_v38, %v465_v37  ;;  %v467_v43 = vld [vmem:[%s4635_s1 + $0x1f0] sm:$0xf]  ;;  %v637_v45 = vld [vmem:[%s4637_s3] sm:$0xff]  ;;  %v638_v46 = vld [vmem:[%s4637_s3 + $0x8] sm:$0xff] }
  0x23   : > { %2848 = vmatpush3.bf16.msra.mxu0 %v2847_v56  ;;  %v2907_v47 = vpack.c.bf16 %v638_v46, %v637_v45  ;;  %v639_v48 = vld [vmem:[%s4637_s3 + $0x10] sm:$0xff]  ;;  %v640_v51 = vld [vmem:[%s4637_s3 + $0x18] sm:$0xff]  ;;  %v641_v63 = vld [vmem:[%s4638_s4] sm:$0x1]  ;;  %v3500_v46 = vsub.s32 7, %v3281_v39 }
  0x24   : > { %2878 = vmatpush1.bf16.msra.mxu1 %v2877_v53  ;;  %2850 = vmatprep.subr.bf16.mxu0 %v2849_v58  ;;  %v2910_v52 = vpack.c.bf16 %v640_v51, %v639_v48  ;;  %v789_v4 = vld [vmem:[%s4641_s7] sm:$0xff]  ;;  %v790_v7 = vld [vmem:[%s4641_s7 + $0x8] sm:$0xff]  ;;  %v791_v8 = vld [vmem:[%s4641_s7 + $0x10] sm:$0xff] }
  0x25   : > { %2879 = vmatprep.subr.bf16.mxu1 %v3110_v3  ;;  %v792_v9 = vld [vmem:[%s4641_s7 + $0x18] sm:$0xff]  ;;  %v1846_v13 = vld [vmem:[%s4642_s8] sm:$0xff] }
  0x26   : > { %v716_v20 = vld [vmem:[%s4639_s5] sm:$0xff] }
  0x27   : > { %2852 = vmatpush3.bf16.msra.mxu0 %v2851_v5  ;;  %v3115_v5 = vmov 0  }
  0x28   : > { %2881 = vmatpush1.bf16.msra.mxu1 %v2880_v1  ;;  %2854 = vmatprep.subr.bf16.mxu0 %v2853_v6  ;;  %v3116_v6 = vmov 4  }
  0x29   : > { %2882 = vmatprep.subr.bf16.mxu1 %v3110_v3 }
  0x2b   : > { %2856 = vmatpush3.bf16.msra.mxu0 %v2855_v14  ;;  %v1848_v14 = vld [vmem:[%s4642_s8 + $0x10] sm:$0xff] }
  0x2c   : > { %2884 = vmatpush1.bf16.msra.mxu1 %v2883_v11  ;;  %2858 = vmatprep.subr.bf16.mxu0 %v2857_v15  ;;  %v1847_v11 = vld [vmem:[%s4642_s8 + $0x8] sm:$0xff]  ;;  %v1849_v15 = vld [vmem:[%s4642_s8 + $0x18] sm:$0xff] }
  0x2d   : > { %2885 = vmatprep.subr.bf16.mxu1 %v3110_v3 }
  0x2f   : > { %2860 = vmatpush3.bf16.msra.mxu0 %v2859_v22  ;;  %v717_v22 = vld [vmem:[%s4640_s6] sm:$0xff] }
  0x30   : > { %2887 = vmatpush1.bf16.msra.mxu1 %v2886_v18  ;;  %2906 = vmatprep.subr.bf16.mxu0 %v3110_v3 }
  0x31   : > { %2888 = vmatprep.subr.bf16.mxu1 %v3110_v3 }
  0x32   : > { %561 = vmatmul.mubr.f32.vlgmr.msra.gmra.mrb[0].mxu0 %v473_v24 }
  0x33   : > { %2908 = vmatpush3.bf16.msra.mxu0 %v2907_v47  ;;  %2826 = vmatprep.mubr.msk.f32.mxu0 %vm3112_vm2, %v4650_v42 }
  0x34   : > { %2890 = vmatpush1.bf16.msra.mxu1 %v2889_v23  ;;  %2909 = vmatprep.subr.bf16.mxu0 %v3110_v3 }
  0x35   : > { %2891 = vmatprep.subr.bf16.mxu1 %v3110_v3 }
  0x37   : > { %2911 = vmatpush3.bf16.msra.mxu0 %v2910_v52 }
  0x38   : > { %2893 = vmatpush1.bf16.msra.mxu1 %v2892_v27 }
  0x39   : > { %2894 = vmatprep.subr.bf16.mxu1 %v3110_v3 }
  0x3c   : > { %2896 = vmatpush1.bf16.msra.mxu1 %v2895_v30 }
  0x3d   : > { %2897 = vmatprep.subr.bf16.mxu1 %v3110_v3 }
  0x40   : > { %2899 = vmatpush1.bf16.msra.mxu1 %v2898_v33 }
  0x41   : > { %2900 = vmatprep.subr.bf16.mxu1 %v3110_v3 }
  0x44   : > { %2902 = vmatpush1.bf16.msra.mxu1 %v2901_v36 }
  0x45   : > { %2903 = vmatprep.subr.bf16.mxu1 %v3110_v3  ;;  %v468_v3 = vld [vmem:[%s4636_s2] sm:$0x1] }
  0x48   : > { %2905 = vmatpush1.bf16.msra.mxu1 %v2904_v40 }
  0x49   : > { %626 = vmatprep.subr.mxu1 %v4650_v42 }
  0x4c   : > { %2705 = vmatpush1.msk.msra.mxu1 %vm492_vm1, %v467_v43 }
  0x4d   : > { %631 = vmatmul.mubr.f32.vlgmr.msra.gmra.mrb[0].mxu1 %v481_v44 }
  0x4e   : > { %1439 = vmatprep.mubr.f32.mxu1 %v4650_v42 }
 0x105   : > { %v2810_v53 = vpop.f32.mrb[0].mxu0 }
 0x106   : > { %v2811_v54 = vpop.f32.mrb[1].mxu0 }
 0x107   : > { %v2812_v55 = vadd.f32 %v2811_v54, %v2810_v53  ;;  %v3506_v53 = vsub.s32 6, %v3281_v39  ;;  %v3509_v54 = vsub.s32 5, %v3281_v39 }
 0x109   : > { %v563_v56 = vadd.f32 %v2812_v55, %v468_v3  ;;  %v3512_v55 = vsub.s32 4, %v3281_v39 }
 0x120   : > { %v632_v57 = vpop.f32.mrb[0].mxu1 }
 0x121   : > { %v633_v58 = vadd.f32 %v632_v57, %v563_v56  ;;  %v634_v59 = vpop.f32.mrb[1].mxu1 }
 0x123   : > { %v636_v60 = vmax.f32 %v633_v58, 0.0 }
 0x125   : > { %2827 = vmatmul.mubr.msk.f32.vlgmr.msra.gmra.mrb[2].mxu0 %vm642_vm3, %v636_v60 }
 0x126   : > { %1266 = vmatprep.mubr.f32.mxu0 %v4650_v42 }
 0x1f8   : > { %v712_v0 = vpop.f32.mrb[2].mxu0 }
 0x1f9   : > { %v713_v1 = vadd.f32 %v712_v0, %v641_v63  ;;  %v2828_v2 = vpop.f32.mrb[3].mxu0 }
 0x1fb   : > { %767 = vperm.xlu1 %3095, %v713_v1   ;;  %748 = vperm.xlu0 %3093, %v713_v1  }
 0x1ff   : > { %3096 = vset.pattern.permute.xlu1 %v3115_v5  ;;  %3094 = vset.pattern.permute.xlu0 %v3116_v6 }
 0x200   : > { %795 = vperm.xlu1 %3096, %v789_v4   ;;  %757 = vperm.xlu0 %3094, %v713_v1  }
 0x204   : > { %800 = vperm.xlu1 %3096, %v790_v7   ;;  %3097 = vset.pattern.permute.xlu0 %v3115_v5 }
 0x205   : > { %805 = vperm.xlu0 %3097, %v791_v8  }
 0x208   : > { %810 = vperm.xlu1 %3096, %v792_v9  }
 0x209   : > { %3098 = vset.pattern.permute.xlu0 %v3117_v10 }
 0x20a   : > { %729 = vperm.xlu0 %3098, %v713_v1  }
 0x20c   : > { %720 = vperm.xlu1 %3096, %v713_v1  }
 0x20e   : > { %3101 = vset.pattern.permute.xlu0 %v3115_v5 }
 0x20f   : > { %1857 = vperm.xlu0 %3101, %v1847_v11  }
 0x210   : > { %3099 = vset.pattern.permute.xlu1 %v3118_v12 }
 0x211   : > { %739 = vperm.xlu1 %3099, %v713_v1  }
 0x215   : > { %3100 = vset.pattern.permute.xlu1 %v3115_v5 }
 0x216   : > { %1852 = vperm.xlu1 %3100, %v1846_v13  }
 0x21a   : > { %1862 = vperm.xlu1 %3100, %v1848_v14  }
 0x21e   : > { %1867 = vperm.xlu1 %3100, %v1849_v15  }
 0x27a   : > { %v768_v16 = vpop.permute.xlu1 %767  ;;  %v749_v17 = vpop.permute.xlu0 %748 }
 0x27b   : > { %v753_v18 = vrot.slane %v749_v17, %v3376_v19  ;;  %v772_v28 = vrot.slane %v768_v16, %v3376_v19 }
 0x27d   : > { %v755_v25 = vmul.f32 %v753_v18, %v716_v20 }
 0x27f   : > { %v3484_v21 = vpop.permute.xlu1 %795  ;;  %v758_v23 = vpop.permute.xlu0 %757 }
 0x280   : > { %v762_v24 = vrot.slane %v758_v23, %v3376_v19 }
 0x282   : > { %v764_v26 = vmul.f32 %v762_v24, %v717_v22 }
 0x283   : > { %v3490_v27 = vpop.permute.xlu1 %800 }
 0x284   : > { %v765_v29 = vadd.f32 %v764_v26, %v755_v25  ;;  %v3493_v30 = vpop.permute.xlu0 %805 }
 0x286   : > { %v774_v31 = vadd.f32 %v772_v28, %v765_v29 }
 0x287   : > { %v3495_v32 = vpop.permute.xlu1 %810 }
 0x288   : > { %v779_v33 = vadd.f32 1.0, %v774_v31 }
 0x289   : > { %v730_v34 = vpop.permute.xlu0 %729 }
 0x28a   : > { %v780_v35 = vmul.f32 32.0, %v779_v33  ;;  %v734_v36 = vrot.slane %v730_v34, %v3376_v19 }
 0x28b   : > { %v721_v37 = vpop.permute.xlu1 %720 }
 0x28c   : > { %v2709_v38 = vadd.f32 -1.0, %v780_v35  ;;  %v725_v40 = vrot.slane %v721_v37, %v3376_v19  ;;  %v736_v44 = vmul.f32 %v734_v36, %v717_v22 }
 0x28e   : > { %v782_v43 = vmul.f32 0.5, %v2709_v38  ;;  %v727_v45 = vmul.f32 %v725_v40, %v716_v20 }
 0x290   : > { %v3502_v47 = vfloor.f32 %v782_v43  ;;  %v740_v48 = vpop.permute.xlu1 %739  ;;  %v737_v51 = vadd.f32 %v736_v44, %v727_v45 }
 0x291   : > { %v744_v52 = vrot.slane %v740_v48, %v3376_v19 }
 0x292   : > { %v3515_v3 = vsub.f32 %v782_v43, %v3502_v47  ;;  %v3519_v56 = vrot.slane %v3502_v47, %v3307_v49  ;;  %v3522_v57 = vadd.f32 1.0, %v3502_v47  ;;  %v3526_v58 = vrot.slane %v3502_v47, %v3310_v50 }
 0x293   : > { %v746_v59 = vadd.f32 %v744_v52, %v737_v51  ;;  %v3530_v60 = vrot.slane %v3502_v47, %v3376_v19  ;;  %v3534_v39 = vrot.slane %v3502_v47, %v3425_v41  ;;  %v3538_v61 = vrot.slane %v3502_v47, %v3500_v46 }
 0x294   : > { %v3541_v62 = vsub.f32 1.0, %v3515_v3  ;;  %vm855_vm4 = vcmp.eq.f32.partialorder %v3484_v21, %v3519_v56  ;;  %vm863_vm5 = vcmp.eq.f32.partialorder %v3490_v27, %v3519_v56  ;;  %v3549_v63 = vrot.slane %v3522_v57, %v3307_v49 }
 0x295   : > { %v775_v0 = vadd.f32 1.0, %v746_v59  ;;  %v3553_v1 = vrot.slane %v3515_v3, %v3307_v49  ;;  %vm857_vm6 = vcmp.eq.f32.partialorder %v3484_v21, %v3526_v58  ;;  %vm865_vm7 = vcmp.eq.f32.partialorder %v3490_v27, %v3526_v58 }
 0x296   : > { %v894_v2 = vrot.slane %v3541_v62, %v3307_v49  ;;  %vm1002_vm8 = vcmp.eq.f32.partialorder %v3484_v21, %v3549_v63  ;;  %vm1010_vm9 = vcmp.eq.f32.partialorder %v3490_v27, %v3549_v63  ;;  %v3567_v4 = vrot.slane %v3541_v62, %v3310_v50 }
 0x297   : > { %v776_v5 = vmul.f32 32.0, %v775_v0  ;;  %v1075_v6 = vsel %vm1002_vm8, %v3553_v1, 0.0  ;;  %v1083_v7 = vsel %vm1010_vm9, %v3553_v1, 0.0  ;;  %v3573_v8 = vrot.slane %v3522_v57, %v3310_v50 }
 0x298   : > { %v928_v9 = vsel %vm855_vm4, %v894_v2, 0.0  ;;  %v936_v10 = vsel %vm863_vm5, %v894_v2, 0.0  ;;  %v930_v11 = vsel %vm857_vm6, %v3567_v4, 0.0  ;;  %v938_v12 = vsel %vm865_vm7, %v3567_v4, 0.0 }
 0x299   : > { %v2708_v13 = vadd.f32 -1.0, %v776_v5  ;;  %v1107_v14 = vadd.f32 %v1075_v6, %v928_v9  ;;  %v1115_v15 = vadd.f32 %v1083_v7, %v936_v10  ;;  %vm1004_vm10 = vcmp.eq.f32.partialorder %v3484_v21, %v3573_v8 }
 0x29a   : > { %vm1012_vm11 = vcmp.eq.f32.partialorder %v3490_v27, %v3573_v8  ;;  %v1049_v16 = vrot.slane %v3515_v3, %v3310_v50  ;;  %vm854_vm12 = vcmp.eq.f32.partialorder %v3484_v21, %v3530_v60  ;;  %vm862_vm13 = vcmp.eq.f32.partialorder %v3490_v27, %v3530_v60 }
 0x29b   : > { %v778_v17 = vmul.f32 0.5, %v2708_v13  ;;  %v2912_v18 = vpack.c.bf16 %v1115_v15, %v1107_v14  ;;  %v3589_v20 = vrot.slane %v3541_v62, %v3376_v19  ;;  %v3593_v22 = vrot.slane %v3522_v57, %v3376_v19 }
 0x29c   : > { %v1077_v23 = vsel %vm1004_vm10, %v1049_v16, 0.0  ;;  %v1085_v24 = vsel %vm1012_vm11, %v1049_v16, 0.0  ;;  %v3597_v25 = vrot.slane %v3515_v3, %v3376_v19  ;;  %vm856_vm14 = vcmp.eq.f32.partialorder %v3484_v21, %v3534_v39 }
 0x29d   : > { %v3601_v26 = vfloor.f32 %v778_v17  ;;  %2913 = vmatprep.subr.bf16.mxu0 %v2912_v18  ;;  %v1109_v28 = vadd.f32 %v1077_v23, %v930_v11  ;;  %v1117_v29 = vadd.f32 %v1085_v24, %v938_v12  ;;  %v927_v31 = vsel %vm854_vm12, %v3589_v20, 0.0 }
 0x29e   : > { %v935_v33 = vsel %vm862_vm13, %v3589_v20, 0.0  ;;  %vm1001_vm15 = vcmp.eq.f32.partialorder %v3484_v21, %v3593_v22  ;;  %vm1009_vm0 = vcmp.eq.f32.partialorder %v3490_v27, %v3593_v22  ;;  %vm864_vm1 = vcmp.eq.f32.partialorder %v3490_v27, %v3534_v39 }
 0x29f   : > { %v3612_v34 = vsub.f32 %v778_v17, %v3601_v26  ;;  %v3614_v35 = vpack.c.bf16 %v1117_v29, %v1109_v28  ;;  %v1074_v36 = vsel %vm1001_vm15, %v3597_v25, 0.0  ;;  %v1082_v37 = vsel %vm1009_vm0, %v3597_v25, 0.0 }
 0x2a0   : > { %v1106_v38 = vadd.f32 %v1074_v36, %v927_v31  ;;  %v1114_v40 = vadd.f32 %v1082_v37, %v935_v33  ;;  %v898_v43 = vrot.slane %v3541_v62, %v3425_v41  ;;  %v3622_v44 = vrot.slane %v3522_v57, %v3425_v41 }
 0x2a1   : > { %v3625_v45 = vsub.f32 1.0, %v3612_v34  ;;  %3072 = vmatprep.subr.bf16.mxu1 %v3614_v35  ;;  %v1045_v48 = vrot.slane %v3515_v3, %v3425_v41  ;;  %vm871_vm2 = vcmp.eq.f32.partialorder %v3493_v30, %v3519_v56  ;;  %vm879_vm4 = vcmp.eq.f32.partialorder %v3495_v32, %v3519_v56 }
 0x2a2   : > { %v2914_v51 = vpack.c.bf16 %v1114_v40, %v1106_v38  ;;  %v929_v52 = vsel %vm856_vm14, %v898_v43, 0.0  ;;  %v937_v59 = vsel %vm864_vm1, %v898_v43, 0.0  ;;  %vm1003_vm5 = vcmp.eq.f32.partialorder %v3484_v21, %v3622_v44 }
 0x2a3   : > { %vm1011_vm6 = vcmp.eq.f32.partialorder %v3490_v27, %v3622_v44  ;;  %v1076_v0 = vsel %vm1003_vm5, %v1045_v48, 0.0  ;;  %v944_v5 = vsel %vm871_vm2, %v894_v2, 0.0  ;;  %v952_v6 = vsel %vm879_vm4, %v894_v2, 0.0 }
 0x2a4   : > { %2915 = vmatpush1.bf16.msra.mxu0 %v2914_v51  ;;  %v1084_v56 = vsel %vm1011_vm6, %v1045_v48, 0.0  ;;  %v1108_v7 = vadd.f32 %v1076_v0, %v929_v52  ;;  %vm1018_vm7 = vcmp.eq.f32.partialorder %v3493_v30, %v3549_v63  ;;  %vm1026_vm8 = vcmp.eq.f32.partialorder %v3495_v32, %v3549_v63 }
 0x2a5   : > { %v1116_v9 = vadd.f32 %v1084_v56, %v937_v59  ;;  %v1091_v10 = vsel %vm1018_vm7, %v3553_v1, 0.0  ;;  %v1099_v11 = vsel %vm1026_vm8, %v3553_v1, 0.0  ;;  %vm873_vm9 = vcmp.eq.f32.partialorder %v3493_v30, %v3526_v58 }
 0x2a6   : > { %v1123_v12 = vadd.f32 %v1091_v10, %v944_v5  ;;  %v1131_v13 = vadd.f32 %v1099_v11, %v952_v6  ;;  %vm881_vm10 = vcmp.eq.f32.partialorder %v3495_v32, %v3526_v58  ;;  %v946_v2 = vsel %vm873_vm9, %v3567_v4, 0.0 }
 0x2a7   : > { %v3655_v14 = vpack.c.bf16 %v1116_v9, %v1108_v7  ;;  %v954_v63 = vsel %vm881_vm10, %v3567_v4, 0.0  ;;  %vm1020_vm11 = vcmp.eq.f32.partialorder %v3493_v30, %v3573_v8  ;;  %vm1028_vm12 = vcmp.eq.f32.partialorder %v3495_v32, %v3573_v8 }
 0x2a8   : > { %v2916_v1 = vpack.c.bf16 %v1131_v13, %v1123_v12  ;;  %v1093_v15 = vsel %vm1020_vm11, %v1049_v16, 0.0  ;;  %v1101_v17 = vsel %vm1028_vm12, %v1049_v16, 0.0  ;;  %vm870_vm13 = vcmp.eq.f32.partialorder %v3493_v30, %v3530_v60  ;;  %v3730_v13 = vld [vmem:[%s3683_s14 + $0x8] sm:$0xff] }
 0x2a9   : > { %3074 = vmatpush1.bf16.msra.mxu1 %v3655_v14  ;;  %v1125_v58 = vadd.f32 %v1093_v15, %v946_v2  ;;  %v1133_v18 = vadd.f32 %v1101_v17, %v954_v63  ;;  %vm878_vm14 = vcmp.eq.f32.partialorder %v3495_v32, %v3530_v60  ;;  %v943_v4 = vsel %vm870_vm13, %v3589_v20, 0.0 }
 0x2aa   : > { %2917 = vmatprep.subr.bf16.mxu0 %v2916_v1  ;;  %v951_v23 = vsel %vm878_vm14, %v3589_v20, 0.0  ;;  %vm1017_vm15 = vcmp.eq.f32.partialorder %v3493_v30, %v3593_v22  ;;  %vm1025_vm0 = vcmp.eq.f32.partialorder %v3495_v32, %v3593_v22  ;;  %vm872_vm1 = vcmp.eq.f32.partialorder %v3493_v30, %v3534_v39 }
 0x2ab   : > { %v2924_v8 = vpack.c.bf16 %v1133_v18, %v1125_v58  ;;  %v1090_v16 = vsel %vm1017_vm15, %v3597_v25, 0.0  ;;  %v1098_v60 = vsel %vm1025_vm0, %v3597_v25, 0.0  ;;  %vm880_vm2 = vcmp.eq.f32.partialorder %v3495_v32, %v3534_v39  ;;  %v3737_v58 = vld [vmem:[%s3683_s14 + $0x18] sm:$0xff] }
 0x2ac   : > { %v1122_v24 = vadd.f32 %v1090_v16, %v943_v4  ;;  %v1130_v28 = vadd.f32 %v1098_v60, %v951_v23  ;;  %v945_v20 = vsel %vm872_vm1, %v898_v43, 0.0  ;;  %v953_v29 = vsel %vm880_vm2, %v898_v43, 0.0 }
 0x2ad   : > { %3073 = vmatprep.subr.bf16.mxu1 %v2924_v8  ;;  %vm1019_vm4 = vcmp.eq.f32.partialorder %v3493_v30, %v3622_v44  ;;  %vm1027_vm5 = vcmp.eq.f32.partialorder %v3495_v32, %v3622_v44  ;;  %vm861_vm6 = vcmp.eq.f32.partialorder %v3484_v21, %v3538_v61  ;;  %vm869_vm7 = vcmp.eq.f32.partialorder %v3490_v27, %v3538_v61  ;;  %v3700_v44 = vld [vmem:[%s3683_s14] sm:$0xff] }
 0x2ae   : > { %v2918_v39 = vpack.c.bf16 %v1130_v28, %v1122_v24  ;;  %v1092_v22 = vsel %vm1019_vm4, %v1045_v48, 0.0  ;;  %v1100_v25 = vsel %vm1027_vm5, %v1045_v48, 0.0  ;;  %v918_v31 = vrot.slane %v3541_v62, %v3500_v46 }
 0x2af   : > { %v1124_v33 = vadd.f32 %v1092_v22, %v945_v20  ;;  %v1132_v36 = vadd.f32 %v1100_v25, %v953_v29  ;;  %v992_v37 = vrot.slane %v3522_v57, %v3500_v46  ;;  %v1065_v38 = vrot.slane %v3515_v3, %v3500_v46  ;;  %v3756_v25 = vld [vmem:[%s3683_s14 + $0x20] sm:$0xff] }
 0x2b0   : > { %2919 = vmatpush1.bf16.msra.mxu0 %v2918_v39  ;;  %v934_v40 = vsel %vm861_vm6, %v918_v31, 0.0  ;;  %v942_v43 = vsel %vm869_vm7, %v918_v31, 0.0  ;;  %v841_v48 = vrot.slane %v3502_v47, %v3506_v53  ;;  %v914_v51 = vrot.slane %v3541_v62, %v3506_v53 }
 0x2b1   : > { %v2926_v52 = vpack.c.bf16 %v1132_v36, %v1124_v33  ;;  %2921 = vmatprep.subr.bf16.mxu0 %v3614_v35  ;;  %vm1008_vm8 = vcmp.eq.f32.partialorder %v3484_v21, %v992_v37  ;;  %vm1016_vm9 = vcmp.eq.f32.partialorder %v3490_v27, %v992_v37  ;;  %v988_v59 = vrot.slane %v3522_v57, %v3506_v53  ;;  %v3716_v35 = vld [vmem:[%s3683_s14 + $0x10] sm:$0xff] }
 0x2b2   : > { %v1081_v0 = vsel %vm1008_vm8, %v1065_v38, 0.0  ;;  %v1089_v5 = vsel %vm1016_vm9, %v1065_v38, 0.0  ;;  %vm860_vm10 = vcmp.eq.f32.partialorder %v3484_v21, %v841_v48  ;;  %vm868_vm11 = vcmp.eq.f32.partialorder %v3490_v27, %v841_v48 }
 0x2b3   : > { %3075 = vmatpush1.bf16.msra.mxu1 %v2926_v52  ;;  %v1113_v6 = vadd.f32 %v1081_v0, %v934_v40  ;;  %v1121_v56 = vadd.f32 %v1089_v5, %v942_v43  ;;  %2710 = vmatmul.mubr.msk.f32.vlgmr.msra.gmra.mrb[4].mxu0 %vm642_vm3, %v3700_v44  ;;  %v933_v7 = vsel %vm860_vm10, %v914_v51, 0.0  ;;  %v941_v9 = vsel %vm868_vm11, %v914_v51, 0.0 }
 0x2b4   : > { %2923 = vmatpush1.bf16.msra.mxu0 %v3655_v14  ;;  %vm1007_vm12 = vcmp.eq.f32.partialorder %v3484_v21, %v988_v59  ;;  %vm1015_vm13 = vcmp.eq.f32.partialorder %v3490_v27, %v988_v59  ;;  %v1061_v10 = vrot.slane %v3515_v3, %v3506_v53  ;;  %vm877_vm14 = vcmp.eq.f32.partialorder %v3493_v30, %v3538_v61 }
 0x2b5   : > { %v2936_v11 = vpack.c.bf16 %v1121_v56, %v1113_v6  ;;  %2925 = vmatprep.subr.bf16.mxu0 %v2924_v8  ;;  %vm885_vm15 = vcmp.eq.f32.partialorder %v3495_v32, %v3538_v61  ;;  %v950_v12 = vsel %vm877_vm14, %v918_v31, 0.0  ;;  %vm1024_vm0 = vcmp.eq.f32.partialorder %v3493_v30, %v992_v37  ;;  %1272 = vmatprep.mubr.f32.mxu0 %v4650_v42 }
 0x2b6   : > { %2728 = vmatmul.mubr.msk.f32.vlgmr.msra.gmra.mrb[2].mxu1 %vm642_vm3, %v3716_v35  ;;  %v1080_v2 = vsel %vm1007_vm12, %v1061_v10, 0.0  ;;  %v1088_v14 = vsel %vm1015_vm13, %v1061_v10, 0.0  ;;  %v958_v63 = vsel %vm885_vm15, %v918_v31, 0.0  ;;  %vm1032_vm1 = vcmp.eq.f32.partialorder %v3495_v32, %v992_v37 }
 0x2b7   : > { %2937 = vmatprep.subr.bf16.mxu1 %v2936_v11  ;;  %v1112_v1 = vadd.f32 %v1080_v2, %v933_v7  ;;  %v1120_v15 = vadd.f32 %v1088_v14, %v941_v9  ;;  %v1097_v61 = vsel %vm1024_vm0, %v1065_v38, 0.0  ;;  %v1105_v17 = vsel %vm1032_vm1, %v1065_v38, 0.0  ;;  %1445 = vmatprep.mubr.f32.mxu1 %v4650_v42  ;;  %v3792_v7 = vpop.permute.xlu1 %1852  ;;  %v3796_v9 = vld [vmem:[%s3683_s14 + $0x30] sm:$0xff] }
 0x2b8   : > { %v1129_v18 = vadd.f32 %v1097_v61, %v950_v12  ;;  %v1137_v4 = vadd.f32 %v1105_v17, %v958_v63  ;;  %2711 = vmatmul.mubr.msk.f32.gmra.mrb[6].mxu0 %vm642_vm3, %v3730_v13  ;;  %vm876_vm2 = vcmp.eq.f32.partialorder %v3493_v30, %v841_v48  ;;  %vm884_vm4 = vcmp.eq.f32.partialorder %v3495_v32, %v841_v48  ;;  %v3820_v17 = vld [vmem:[%s3683_s14 + $0x38] sm:$0xff] }
 0x2b9   : > { %v2938_v23 = vpack.c.bf16 %v1120_v15, %v1112_v1  ;;  %2927 = vmatpush1.bf16.msra.mxu0 %v2926_v52  ;;  %v949_v8 = vsel %vm876_vm2, %v914_v51, 0.0  ;;  %v957_v16 = vsel %vm884_vm4, %v914_v51, 0.0  ;;  %vm1023_vm5 = vcmp.eq.f32.partialorder %v3493_v30, %v988_v59  ;;  %1278 = vmatprep.mubr.f32.mxu0 %v4650_v42 }
 0x2ba   : > { %v2940_v60 = vpack.c.bf16 %v1137_v4, %v1129_v18  ;;  %2729 = vmatmul.mubr.msk.f32.gmra.mrb[4].mxu1 %vm642_vm3, %v3737_v58  ;;  %vm1031_vm6 = vcmp.eq.f32.partialorder %v3495_v32, %v988_v59  ;;  %v1096_v24 = vsel %vm1023_vm5, %v1061_v10, 0.0  ;;  %v837_v28 = vrot.slane %v3502_v47, %v3509_v54  ;;  %v3773_v59 = vld [vmem:[%s3683_s14 + $0x28] sm:$0xff] }
 0x2bb   : > { %2939 = vmatpush1.bf16.msra.mxu1 %v2938_v23  ;;  %v1104_v20 = vsel %vm1031_vm6, %v1061_v10, 0.0  ;;  %v1128_v29 = vadd.f32 %v1096_v24, %v949_v8  ;;  %v910_v39 = vrot.slane %v3541_v62, %v3509_v54  ;;  %v984_v22 = vrot.slane %v3522_v57, %v3509_v54  ;;  %1451 = vmatprep.mubr.f32.mxu1 %v4650_v42 }
 0x2bc   : > { %2941 = vmatprep.subr.bf16.mxu1 %v2940_v60  ;;  %v1136_v31 = vadd.f32 %v1104_v20, %v957_v16  ;;  %vm859_vm7 = vcmp.eq.f32.partialorder %v3484_v21, %v837_v28  ;;  %vm867_vm8 = vcmp.eq.f32.partialorder %v3490_v27, %v837_v28  ;;  %v1057_v33 = vrot.slane %v3515_v3, %v3509_v54  ;;  %v3830_v60 = vpop.permute.xlu1 %1862  ;;  %v3853_v20 = vld [vmem:[%s3683_s14 + $0x40] sm:$0xff] }
 0x2bd   : > { %v932_v36 = vsel %vm859_vm7, %v910_v39, 0.0  ;;  %v940_v37 = vsel %vm867_vm8, %v910_v39, 0.0  ;;  %vm1006_vm9 = vcmp.eq.f32.partialorder %v3484_v21, %v984_v22  ;;  %vm1014_vm10 = vcmp.eq.f32.partialorder %v3490_v27, %v984_v22  ;;  %2712 = vmatmul.mubr.msk.f32.gmra.mrb[8].mxu0 %vm642_vm3, %v3716_v35 }
 0x2be   : > { %v2942_v38 = vpack.c.bf16 %v1136_v31, %v1128_v29  ;;  %v1079_v40 = vsel %vm1006_vm9, %v1057_v33, 0.0  ;;  %v1087_v43 = vsel %vm1014_vm10, %v1057_v33, 0.0  ;;  %2730 = vmatmul.mubr.msk.f32.gmra.mrb[6].mxu1 %vm642_vm3, %v3756_v25  ;;  %1284 = vmatprep.mubr.f32.mxu0 %v4650_v42  ;;  %v833_v48 = vrot.slane %v3502_v47, %v3512_v55 }
 0x2bf   : > { %v1111_v51 = vadd.f32 %v1079_v40, %v932_v36  ;;  %v1119_v52 = vadd.f32 %v1087_v43, %v940_v37  ;;  %1457 = vmatprep.mubr.f32.mxu1 %v4650_v42  ;;  %v906_v0 = vrot.slane %v3541_v62, %v3512_v55  ;;  %v980_v5 = vrot.slane %v3522_v57, %v3512_v55 }
 0x2c0   : > { %2943 = vmatpush1.bf16.msra.mxu1 %v2942_v38  ;;  %vm858_vm11 = vcmp.eq.f32.partialorder %v3484_v21, %v833_v48  ;;  %vm866_vm12 = vcmp.eq.f32.partialorder %v3490_v27, %v833_v48  ;;  %v1053_v47 = vrot.slane %v3515_v3, %v3512_v55  ;;  %vm875_vm13 = vcmp.eq.f32.partialorder %v3493_v30, %v837_v28  ;;  %v3871_v36 = vpop.permute.xlu1 %1867 }
 0x2c1   : > { %v2928_v6 = vpack.c.bf16 %v1119_v52, %v1111_v51  ;;  %2713 = vmatmul.mubr.msk.f32.gmra.mrb[10].mxu0 %vm642_vm3, %v3737_v58  ;;  %v931_v56 = vsel %vm858_vm11, %v906_v0, 0.0  ;;  %v939_v62 = vsel %vm866_vm12, %v906_v0, 0.0  ;;  %vm1005_vm14 = vcmp.eq.f32.partialorder %v3484_v21, %v980_v5 }
 0x2c2   : > { %2731 = vmatmul.mubr.msk.f32.gmra.mrb[8].mxu1 %vm642_vm3, %v3773_v59  ;;  %1290 = vmatprep.mubr.f32.mxu0 %v4650_v42  ;;  %vm1013_vm15 = vcmp.eq.f32.partialorder %v3490_v27, %v980_v5  ;;  %v1078_v57 = vsel %vm1005_vm14, %v1053_v47, 0.0  ;;  %vm883_vm0 = vcmp.eq.f32.partialorder %v3495_v32, %v837_v28  ;;  %v948_v3 = vsel %vm875_vm13, %v910_v39, 0.0 }
 0x2c3   : > { %2929 = vmatprep.subr.bf16.mxu0 %v2928_v6  ;;  %1463 = vmatprep.mubr.f32.mxu1 %v4650_v42  ;;  %v1086_v10 = vsel %vm1013_vm15, %v1053_v47, 0.0  ;;  %v3798_v21 = vadd.f32 %v1078_v57, %v931_v56  ;;  %v956_v11 = vsel %vm883_vm0, %v910_v39, 0.0  ;;  %vm1022_vm1 = vcmp.eq.f32.partialorder %v3493_v30, %v984_v22  ;;  %v3914_v56 = vld [vmem:[%s3683_s14 + $0x58] sm:$0xff] }
 0x2c4   : > { %v3801_v12 = vadd.f32 %v1086_v10, %v939_v62  ;;  %vm1030_vm2 = vcmp.eq.f32.partialorder %v3495_v32, %v984_v22  ;;  %v1095_v27 = vsel %vm1022_vm1, %v1057_v33, 0.0  ;;  %vm874_vm4 = vcmp.eq.f32.partialorder %v3493_v30, %v833_v48  ;;  %v3923_v10 = vpop.permute.xlu0 %1857 }
 0x2c5   : > { %2714 = vmatmul.mubr.msk.f32.gmra.mrb[12].mxu0 %vm642_vm3, %v3756_v25  ;;  %v1103_v2 = vsel %vm1030_vm2, %v1057_v33, 0.0  ;;  %v3807_v14 = vadd.f32 %v1095_v27, %v948_v3  ;;  %vm882_vm5 = vcmp.eq.f32.partialorder %v3495_v32, %v833_v48  ;;  %v947_v63 = vsel %vm874_vm4, %v906_v0, 0.0 }
 0x2c6   : > { %2732 = vmatmul.mubr.msk.f32.gmra.mrb[10].mxu1 %vm642_vm3, %v3796_v9  ;;  %1296 = vmatprep.mubr.f32.mxu0 %v4650_v42  ;;  %v3815_v15 = vadd.f32 %v1103_v2, %v956_v11  ;;  %v955_v61 = vsel %vm882_vm5, %v906_v0, 0.0  ;;  %vm1021_vm6 = vcmp.eq.f32.partialorder %v3493_v30, %v980_v5  ;;  %vm1029_vm7 = vcmp.eq.f32.partialorder %v3495_v32, %v980_v5  ;;  %v3935_v2 = vld [vmem:[%s3683_s14 + $0x60] sm:$0xff] }
 0x2c7   : > { %1469 = vmatprep.mubr.f32.mxu1 %v4650_v42  ;;  %v1094_v18 = vsel %vm1021_vm6, %v1053_v47, 0.0  ;;  %v1102_v23 = vsel %vm1029_vm7, %v1053_v47, 0.0  ;;  %v3828_v16 = vadd.f32 1.0, %v3601_v26  ;;  %v3838_v32 = vrot.slane %v3601_v26, %v3425_v41 }
 0x2c8   : > { %v3825_v8 = vadd.f32 %v1094_v18, %v947_v63  ;;  %v3834_v30 = vadd.f32 %v1102_v23, %v955_v61  ;;  %v3845_v24 = vrot.slane %v3625_v45, %v3425_v41  ;;  %v2102_v39 = vrot.slane %v3612_v34, %v3425_v41 }
 0x2c9   : > { %2715 = vmatmul.mubr.msk.f32.gmra.mrb[14].mxu0 %vm642_vm3, %v3773_v59  ;;  %v3849_v28 = vrot.slane %v3828_v16, %v3425_v41  ;;  %vm1929_vm8 = vcmp.eq.f32.partialorder %v3830_v60, %v3838_v32  ;;  %v3875_v41 = vld [vmem:[%s3683_s14 + $0x48] sm:$0xff]  ;;  %v1886_v37 = vrot.slane %v3601_v26, %v3310_v50  ;;  %v1959_v38 = vrot.slane %v3625_v45, %v3310_v50 }
 0x2ca   : > { %2733 = vmatmul.mubr.msk.f32.gmra.mrb[12].mxu1 %vm642_vm3, %v3820_v17  ;;  %1302 = vmatprep.mubr.f32.mxu0 %v4650_v42  ;;  %v2002_v22 = vsel %vm1929_vm8, %v3845_v24, 0.0  ;;  %v2033_v40 = vrot.slane %v3828_v16, %v3310_v50  ;;  %v2106_v43 = vrot.slane %v3612_v34, %v3310_v50  ;;  %vm1937_vm12 = vcmp.eq.f32.partialorder %v3871_v36, %v3838_v32  ;;  %v3896_v50 = vld [vmem:[%s3683_s14 + $0x50] sm:$0xff] }
 0x2cb   : > { %1475 = vmatprep.mubr.f32.mxu1 %v4650_v42  ;;  %vm2076_vm9 = vcmp.eq.f32.partialorder %v3830_v60, %v3849_v28  ;;  %vm1930_vm10 = vcmp.eq.f32.partialorder %v3830_v60, %v1886_v37  ;;  %v2010_v0 = vsel %vm1937_vm12, %v3845_v24, 0.0  ;;  %vm2084_vm13 = vcmp.eq.f32.partialorder %v3871_v36, %v3849_v28 }
 0x2cc   : > { %v2149_v31 = vsel %vm2076_vm9, %v2102_v39, 0.0  ;;  %vm2077_vm11 = vcmp.eq.f32.partialorder %v3830_v60, %v2033_v40  ;;  %v2003_v48 = vsel %vm1930_vm10, %v1959_v38, 0.0  ;;  %v2157_v5 = vsel %vm2084_vm13, %v2102_v39, 0.0 }
 0x2cd   : > { %2716 = vmatmul.mubr.msk.f32.gmra.mrb[16].mxu0 %vm642_vm3, %v3796_v9  ;;  %v3869_v33 = vadd.f32 %v2149_v31, %v2002_v22  ;;  %v2150_v51 = vsel %vm2077_vm11, %v2106_v43, 0.0  ;;  %vm1938_vm14 = vcmp.eq.f32.partialorder %v3871_v36, %v1886_v37  ;;  %v3906_v47 = vadd.f32 %v2157_v5, %v2010_v0  ;;  %v3952_v31 = vld [vmem:[%s3683_s14 + $0x68] sm:$0xff] }
 0x2ce   : > { %2734 = vmatmul.mubr.msk.f32.gmra.mrb[14].mxu1 %vm642_vm3, %v3853_v20  ;;  %1308 = vmatprep.mubr.f32.mxu0 %v4650_v42  ;;  %v3898_v52 = vadd.f32 %v2150_v51, %v2003_v48  ;;  %v2011_v6 = vsel %vm1938_vm14, %v1959_v38, 0.0  ;;  %vm2085_vm15 = vcmp.eq.f32.partialorder %v3871_v36, %v2033_v40  ;;  %vm1913_vm0 = vcmp.eq.f32.partialorder %v3792_v7, %v3838_v32 }
 0x2cf   : > { %1481 = vmatprep.mubr.f32.mxu1 %v4650_v42  ;;  %v2158_v62 = vsel %vm2085_vm15, %v2106_v43, 0.0  ;;  %v1986_v3 = vsel %vm1913_vm0, %v3845_v24, 0.0  ;;  %vm2060_vm1 = vcmp.eq.f32.partialorder %v3792_v7, %v3849_v28  ;;  %vm1914_vm2 = vcmp.eq.f32.partialorder %v3792_v7, %v1886_v37 }
 0x2d0   : > { %v3918_v57 = vadd.f32 %v2158_v62, %v2011_v6  ;;  %v2133_v11 = vsel %vm2060_vm1, %v2102_v39, 0.0  ;;  %v1987_v63 = vsel %vm1914_vm2, %v1959_v38, 0.0  ;;  %vm2061_vm4 = vcmp.eq.f32.partialorder %v3792_v7, %v2033_v40 }
 0x2d1   : > { %2717 = vmatmul.mubr.msk.f32.gmra.mrb[18].mxu0 %vm642_vm3, %v3820_v17  ;;  %v3930_v27 = vadd.f32 %v2133_v11, %v1986_v3  ;;  %v2134_v61 = vsel %vm2061_vm4, %v2106_v43, 0.0  ;;  %vm1921_vm5 = vcmp.eq.f32.partialorder %v3923_v10, %v3838_v32  ;;  %vm2068_vm6 = vcmp.eq.f32.partialorder %v3923_v10, %v3849_v28 }
 0x2d2   : > { %2735 = vmatmul.mubr.msk.f32.gmra.mrb[16].mxu1 %vm642_vm3, %v3875_v41  ;;  %1314 = vmatprep.mubr.f32.mxu0 %v4650_v42  ;;  %v3942_v18 = vadd.f32 %v2134_v61, %v1987_v63  ;;  %v1994_v23 = vsel %vm1921_vm5, %v3845_v24, 0.0  ;;  %v2141_v22 = vsel %vm2068_vm6, %v2102_v39, 0.0  ;;  %vm1922_vm7 = vcmp.eq.f32.partialorder %v3923_v10, %v1886_v37 }
 0x2d3   : > { %1487 = vmatprep.mubr.f32.mxu1 %v4650_v42  ;;  %v3954_v32 = vadd.f32 %v2141_v22, %v1994_v23  ;;  %v1995_v48 = vsel %vm1922_vm7, %v1959_v38, 0.0  ;;  %vm2069_vm8 = vcmp.eq.f32.partialorder %v3923_v10, %v2033_v40  ;;  %v1898_v24 = vrot.slane %v3601_v26, %v3506_v53  ;;  %v3978_v40 = vld [vmem:[%s3683_s14 + $0x70] sm:$0xff] }
 0x2d4   : > { %v2142_v28 = vsel %vm2069_vm8, %v2106_v43, 0.0  ;;  %v1971_v39 = vrot.slane %v3625_v45, %v3506_v53  ;;  %v2045_v51 = vrot.slane %v3828_v16, %v3506_v53  ;;  %v2118_v0 = vrot.slane %v3612_v34, %v3506_v53 }
 0x2d5   : > { %2718 = vmatmul.mubr.msk.f32.gmra.mrb[20].mxu0 %vm642_vm3, %v3853_v20  ;;  %v3971_v37 = vadd.f32 %v2142_v28, %v1995_v48  ;;  %vm1917_vm9 = vcmp.eq.f32.partialorder %v3792_v7, %v1898_v24  ;;  %v1902_v38 = vrot.slane %v3601_v26, %v3500_v46  ;;  %v1975_v53 = vrot.slane %v3625_v45, %v3500_v46 }
 0x2d6   : > { %2736 = vmatmul.mubr.msk.f32.gmra.mrb[18].mxu1 %vm642_vm3, %v3896_v50  ;;  %1320 = vmatprep.mubr.f32.mxu0 %v4650_v42  ;;  %v1990_v43 = vsel %vm1917_vm9, %v1971_v39, 0.0  ;;  %vm2064_vm10 = vcmp.eq.f32.partialorder %v3792_v7, %v2045_v51  ;;  %v2049_v5 = vrot.slane %v3828_v16, %v3500_v46  ;;  %v2122_v62 = vrot.slane %v3612_v34, %v3500_v46  ;;  %v4002_v46 = vld [vmem:[%s3683_s14 + $0x78] sm:$0xff] }
 0x2d7   : > { %1493 = vmatprep.mubr.f32.mxu1 %v4650_v42  ;;  %v2137_v6 = vsel %vm2064_vm10, %v2118_v0, 0.0  ;;  %vm1918_vm11 = vcmp.eq.f32.partialorder %v3792_v7, %v1902_v38  ;;  %vm1925_vm12 = vcmp.eq.f32.partialorder %v3923_v10, %v1898_v24  ;;  %vm2072_vm14 = vcmp.eq.f32.partialorder %v3923_v10, %v2045_v51 }
 0x2d8   : > { %v3991_v3 = vadd.f32 %v2137_v6, %v1990_v43  ;;  %v1991_v11 = vsel %vm1918_vm11, %v1975_v53, 0.0  ;;  %vm2065_vm13 = vcmp.eq.f32.partialorder %v3792_v7, %v2049_v5  ;;  %v1998_v63 = vsel %vm1925_vm12, %v1971_v39, 0.0 }
 0x2d9   : > { %2719 = vmatmul.mubr.msk.f32.gmra.mrb[22].mxu0 %vm642_vm3, %v3875_v41  ;;  %v2138_v61 = vsel %vm2065_vm13, %v2122_v62, 0.0  ;;  %vm1926_vm15 = vcmp.eq.f32.partialorder %v3923_v10, %v1902_v38  ;;  %vm2073_vm0 = vcmp.eq.f32.partialorder %v3923_v10, %v2049_v5  ;;  %v2145_v22 = vsel %vm2072_vm14, %v2118_v0, 0.0 }
 0x2da   : > { %2737 = vmatmul.mubr.msk.f32.gmra.mrb[20].mxu1 %vm642_vm3, %v3914_v56  ;;  %1326 = vmatprep.mubr.f32.mxu0 %v4650_v42  ;;  %v4004_v23 = vadd.f32 %v2138_v61, %v1991_v11  ;;  %v1999_v48 = vsel %vm1926_vm15, %v1975_v53, 0.0  ;;  %v2146_v28 = vsel %vm2073_vm0, %v2122_v62, 0.0  ;;  %v4006_v43 = vadd.f32 %v2145_v22, %v1998_v63 }
 0x2db   : > { %1499 = vmatprep.mubr.f32.mxu1 %v4650_v42  ;;  %v4008_v6 = vadd.f32 %v2146_v28, %v1999_v48  ;;  %vm1933_vm1 = vcmp.eq.f32.partialorder %v3830_v60, %v1898_v24  ;;  %vm2080_vm2 = vcmp.eq.f32.partialorder %v3830_v60, %v2045_v51  ;;  %vm1934_vm4 = vcmp.eq.f32.partialorder %v3830_v60, %v1902_v38 }
 0x2dc   : > { %v2006_v29 = vsel %vm1933_vm1, %v1971_v39, 0.0  ;;  %v2153_v4 = vsel %vm2080_vm2, %v2118_v0, 0.0  ;;  %vm2081_vm5 = vcmp.eq.f32.partialorder %v3830_v60, %v2049_v5  ;;  %v2007_v63 = vsel %vm1934_vm4, %v1975_v53, 0.0 }
 0x2dd   : > { %2720 = vmatmul.mubr.msk.f32.gmra.mrb[24].mxu0 %vm642_vm3, %v3896_v50  ;;  %v4019_v11 = vadd.f32 %v2153_v4, %v2006_v29  ;;  %v2154_v61 = vsel %vm2081_vm5, %v2122_v62, 0.0  ;;  %vm1941_vm6 = vcmp.eq.f32.partialorder %v3871_v36, %v1898_v24  ;;  %vm2088_vm7 = vcmp.eq.f32.partialorder %v3871_v36, %v2045_v51 }
 0x2de   : > { %2738 = vmatmul.mubr.msk.f32.gmra.mrb[22].mxu1 %vm642_vm3, %v3935_v2  ;;  %1332 = vmatprep.mubr.f32.mxu0 %v4650_v42  ;;  %v4023_v22 = vadd.f32 %v2154_v61, %v2007_v63  ;;  %v2014_v48 = vsel %vm1941_vm6, %v1971_v39, 0.0  ;;  %vm1942_vm8 = vcmp.eq.f32.partialorder %v3871_v36, %v1902_v38  ;;  %v2161_v28 = vsel %vm2088_vm7, %v2118_v0, 0.0 }
 0x2df   : > { %1505 = vmatprep.mubr.f32.mxu1 %v4650_v42  ;;  %v2015_v1 = vsel %vm1942_vm8, %v1975_v53, 0.0  ;;  %vm2089_vm9 = vcmp.eq.f32.partialorder %v3871_v36, %v2049_v5  ;;  %v1890_v4 = vrot.slane %v3601_v26, %v3512_v55  ;;  %v4032_v29 = vadd.f32 %v2161_v28, %v2014_v48 }
 0x2e0   : > { %4659 = vst [vmem:[#allocation2_spill] sm:$0xff] %v4023_v22  ;;  %v2162_v24 = vsel %vm2089_vm9, %v2122_v62, 0.0  ;;  %v1963_v39 = vrot.slane %v3625_v45, %v3512_v55  ;;  %v2037_v51 = vrot.slane %v3828_v16, %v3512_v55  ;;  %v2110_v38 = vrot.slane %v3612_v34, %v3512_v55 }
 0x2e1   : > { %2721 = vmatmul.mubr.msk.f32.gmra.mrb[26].mxu0 %vm642_vm3, %v3914_v56  ;;  %4660 = vst [vmem:[#allocation3_spill] sm:$0xff] %v4032_v29  ;;  %v4041_v0 = vadd.f32 %v2162_v24, %v2015_v1  ;;  %vm1915_vm10 = vcmp.eq.f32.partialorder %v3792_v7, %v1890_v4  ;;  %v1894_v5 = vrot.slane %v3601_v26, %v3509_v54 }
 0x2e2   : > { %2739 = vmatmul.mubr.msk.f32.gmra.mrb[24].mxu1 %vm642_vm3, %v3952_v31  ;;  %1338 = vmatprep.mubr.f32.mxu0 %v4650_v42  ;;  %v1988_v53 = vsel %vm1915_vm10, %v1963_v39, 0.0  ;;  %vm2062_vm11 = vcmp.eq.f32.partialorder %v3792_v7, %v2037_v51  ;;  %v1967_v62 = vrot.slane %v3625_v45, %v3509_v54  ;;  %v2041_v1 = vrot.slane %v3828_v16, %v3509_v54 }
 0x2e3   : > { %1511 = vmatprep.mubr.f32.mxu1 %v4650_v42  ;;  %4661 = vst [vmem:[#allocation4_spill] sm:$0xff] %v4041_v0  ;;  %v2135_v63 = vsel %vm2062_vm11, %v2110_v38, 0.0  ;;  %v2114_v61 = vrot.slane %v3612_v34, %v3509_v54  ;;  %vm1923_vm12 = vcmp.eq.f32.partialorder %v3923_v10, %v1890_v4  ;;  %vm1916_vm13 = vcmp.eq.f32.partialorder %v3792_v7, %v1894_v5 }
 0x2e4   : > { %v4059_v55 = vadd.f32 %v2135_v63, %v1988_v53  ;;  %v1996_v48 = vsel %vm1923_vm12, %v1963_v39, 0.0  ;;  %vm2070_vm14 = vcmp.eq.f32.partialorder %v3923_v10, %v2037_v51  ;;  %v1989_v28 = vsel %vm1916_vm13, %v1967_v62, 0.0 }
 0x2e5   : > { %2722 = vmatmul.mubr.msk.f32.gmra.mrb[28].mxu0 %vm642_vm3, %v3935_v2  ;;  %vm2063_vm15 = vcmp.eq.f32.partialorder %v3792_v7, %v2041_v1  ;;  %v2143_v54 = vsel %vm2070_vm14, %v2110_v38, 0.0  ;;  %vm1924_vm0 = vcmp.eq.f32.partialorder %v3923_v10, %v1894_v5  ;;  %vm2071_vm1 = vcmp.eq.f32.partialorder %v3923_v10, %v2041_v1 }
 0x2e6   : > { %2740 = vmatmul.mubr.msk.f32.gmra.mrb[26].mxu1 %vm642_vm3, %v3978_v40  ;;  %1344 = vmatprep.mubr.f32.mxu0 %v4650_v42  ;;  %4662 = vst [vmem:[#allocation5_spill] sm:$0xff] %v4059_v55  ;;  %v2136_v24 = vsel %vm2063_vm15, %v2114_v61, 0.0  ;;  %v4069_v53 = vadd.f32 %v2143_v54, %v1996_v48  ;;  %v1997_v63 = vsel %vm1924_vm0, %v1967_v62, 0.0  ;;  %v2144_v0 = vsel %vm2071_vm1, %v2114_v61, 0.0 }
 0x2e7   : > { %1517 = vmatprep.mubr.f32.mxu1 %v4650_v42  ;;  %v4072_v55 = vadd.f32 %v2136_v24, %v1989_v28  ;;  %vm1931_vm2 = vcmp.eq.f32.partialorder %v3830_v60, %v1890_v4  ;;  %vm2078_vm4 = vcmp.eq.f32.partialorder %v3830_v60, %v2037_v51  ;;  %v4078_v29 = vadd.f32 %v2144_v0, %v1997_v63 }
 0x2e8   : > { %v2004_v22 = vsel %vm1931_vm2, %v1963_v39, 0.0  ;;  %vm1932_vm5 = vcmp.eq.f32.partialorder %v3830_v60, %v1894_v5  ;;  %v4664_v48 = vpack.c.bf16 %v3801_v12, %v3798_v21  ;;  %vm2079_vm6 = vcmp.eq.f32.partialorder %v3830_v60, %v2041_v1 }
 0x2e9   : > { %2723 = vmatmul.mubr.msk.f32.gmra.mrb[30].mxu0 %vm642_vm3, %v3952_v31  ;;  %4663 = vst [vmem:[#allocation6_spill] sm:$0xff] %v4078_v29  ;;  %v2005_v54 = vsel %vm1932_vm5, %v1967_v62, 0.0  ;;  %vm1939_vm7 = vcmp.eq.f32.partialorder %v3871_v36, %v1890_v4  ;;  %v4665_v0 = vpack.c.bf16 %v3815_v15, %v3807_v14  ;;  %v4666_v24 = vmov 0.0  }
 0x2ea   : > { %2741 = vmatmul.mubr.msk.f32.gmra.mrb[28].mxu1 %vm642_vm3, %v4002_v46  ;;  %1350 = vmatprep.mubr.f32.mxu0 %v4650_v42  ;;  %v2152_v63 = vsel %vm2079_vm6, %v2114_v61, 0.0  ;;  %v2012_v29 = vsel %vm1939_vm7, %v1963_v39, 0.0  ;;  %vm2086_vm8 = vcmp.eq.f32.partialorder %v3871_v36, %v2037_v51  ;;  %vm1940_vm9 = vcmp.eq.f32.partialorder %v3871_v36, %v1894_v5 }
 0x2eb   : > { %1749 = vmatprep.mubr.f32.mxu1 %v4650_v42  ;;  %v2159_v21 = vsel %vm2086_vm8, %v2110_v38, 0.0  ;;  %v2013_v12 = vsel %vm1940_vm9, %v1967_v62, 0.0  ;;  %vm2087_vm10 = vcmp.eq.f32.partialorder %v3871_v36, %v2041_v1 }
 0x2ec   : > { %v4102_v14 = vadd.f32 %v2159_v21, %v2012_v29  ;;  %v2160_v15 = vsel %vm2087_vm10, %v2114_v61, 0.0 }
 0x2ed   : > { %2724 = vmatmul.mubr.msk.f32.gmra.mrb[32].mxu0 %vm642_vm3, %v3978_v40  ;;  %v4109_v4 = vadd.f32 %v2160_v15, %v2013_v12 }
 0x2ee   : > { %2758 = vmatmul.mubr.msk.f32.vlgmr.msra.gmra.mrb[30].mxu1 %vm642_vm3, %v3700_v44  ;;  %1356 = vmatprep.mubr.f32.mxu0 %v4650_v42 }
 0x2ef   : > { %1755 = vmatprep.mubr.f32.mxu1 %v4650_v42 }
 0x2f1   : > { %2725 = vmatmul.mubr.msk.f32.gmra.mrb[34].mxu0 %vm642_vm3, %v4002_v46 }
 0x2f2   : > { %2759 = vmatmul.mubr.msk.f32.gmra.mrb[32].mxu1 %vm642_vm3, %v3730_v13  ;;  %1427 = vmatprep.mubr.f32.mxu0 %v4650_v42 }
 0x2f3   : > { %1761 = vmatprep.mubr.f32.mxu1 %v4650_v42  ;;  %v2151_v42 = vsel %vm2078_vm4, %v2110_v38, 0.0 }
 0x2f4   : > { %v4086_v28 = vadd.f32 %v2151_v42, %v2004_v22  ;;  %v4097_v42 = vadd.f32 %v2152_v63, %v2005_v54  ;;  %v4667_v22 = vpack.c.bf16 %v3834_v30, %v3825_v8 }
 0x2f5   : > { %2726 = vmatmul.mubr.msk.f32.vlgmr.msra.gmra.mrb[36].mxu0 %vm642_vm3, %v3700_v44 }
 0x2f6   : > { %2931 = vmatpush1.bf16.msra.mxu0 %v4664_v48  ;;  %2760 = vmatmul.mubr.msk.f32.gmra.mrb[34].mxu1 %vm642_vm3, %v3716_v35 }
 0x2f7   : > { %2933 = vmatprep.subr.bf16.mxu0 %v4665_v0  ;;  %1433 = vmatprep.mubr.f32.mxu0 %v4666_v24 }
 0x2f8   : > { %1767 = vmatprep.mubr.f32.mxu1 %v4666_v24 }
 0x2f9   : > { %2727 = vmatmul.mubr.msk.f32.gmra.mrb[38].mxu0 %vm642_vm3, %v3730_v13 }
 0x2fa   : > { %2935 = vmatpush1.bf16.msra.mxu0 %v4667_v22  ;;  %2761 = vmatmul.mubr.msk.f32.gmra.mrb[36].mxu1 %vm642_vm3, %v3737_v58 }
 0x2fb   : > { %1588 = vmatprep.mubr.f32.mxu0 %v4666_v24  ;;  %1773 = vmatprep.mubr.f32.mxu1 %v4666_v24 }
 0x2fd   : > { %2742 = vmatmul.mubr.msk.f32.vlgmr.msra.gmra.mrb[40].mxu0 %vm642_vm3, %v3700_v44  ;;  %v2021_v44 = vrot.slane %v3828_v16, %v3376_v19 }
 0x2fe   : > { %2762 = vmatmul.mubr.msk.f32.gmra.mrb[38].mxu1 %vm642_vm3, %v3756_v25  ;;  %1594 = vmatprep.mubr.f32.mxu0 %v4666_v24 }
 0x2ff   : > { %1779 = vmatprep.mubr.f32.mxu1 %v4666_v24  ;;  %vm2066_vm11 = vcmp.eq.f32.partialorder %v3923_v10, %v2021_v44  ;;  %vm2074_vm2 = vcmp.eq.f32.partialorder %v3830_v60, %v2021_v44  ;;  %vm2082_vm6 = vcmp.eq.f32.partialorder %v3871_v36, %v2021_v44 }
 0x301   : > { %2743 = vmatmul.mubr.msk.f32.gmra.mrb[42].mxu0 %vm642_vm3, %v3730_v13  ;;  %v4203_v13 = vrot.slane %v3828_v16, %v3307_v49 }
 0x302   : > { %2763 = vmatmul.mubr.msk.f32.gmra.mrb[40].mxu1 %vm642_vm3, %v3773_v59  ;;  %1600 = vmatprep.mubr.f32.mxu0 %v4666_v24 }
 0x303   : > { %1785 = vmatprep.mubr.f32.mxu1 %v4666_v24  ;;  %vm2059_vm13 = vcmp.eq.f32.partialorder %v3792_v7, %v4203_v13  ;;  %vm2067_vm14 = vcmp.eq.f32.partialorder %v3923_v10, %v4203_v13  ;;  %vm2075_vm7 = vcmp.eq.f32.partialorder %v3830_v60, %v4203_v13  ;;  %vm2083_vm8 = vcmp.eq.f32.partialorder %v3871_v36, %v4203_v13 }
 0x305   : > { %2744 = vmatmul.mubr.msk.f32.gmra.mrb[44].mxu0 %vm642_vm3, %v3716_v35  ;;  %v1874_v35 = vrot.slane %v3601_v26, %v3376_v19 }
 0x306   : > { %2764 = vmatmul.mubr.msk.f32.gmra.mrb[42].mxu1 %vm642_vm3, %v3796_v9  ;;  %1606 = vmatprep.mubr.f32.mxu0 %v4666_v24 }
 0x307   : > { %1791 = vmatprep.mubr.f32.mxu1 %v4666_v24  ;;  %vm1911_vm12 = vcmp.eq.f32.partialorder %v3792_v7, %v1874_v35  ;;  %vm1919_vm15 = vcmp.eq.f32.partialorder %v3923_v10, %v1874_v35  ;;  %vm1927_vm4 = vcmp.eq.f32.partialorder %v3830_v60, %v1874_v35  ;;  %vm1935_vm9 = vcmp.eq.f32.partialorder %v3871_v36, %v1874_v35 }
 0x309   : > { %2745 = vmatmul.mubr.msk.f32.gmra.mrb[46].mxu0 %vm642_vm3, %v3737_v58  ;;  %v1947_v58 = vrot.slane %v3625_v45, %v3376_v19 }
 0x30a   : > { %2765 = vmatmul.mubr.msk.f32.gmra.mrb[44].mxu1 %vm642_vm3, %v3820_v17  ;;  %1612 = vmatprep.mubr.f32.mxu0 %v4666_v24 }
 0x30b   : > { %1797 = vmatprep.mubr.f32.mxu1 %v4666_v24  ;;  %v1984_v8 = vsel %vm1911_vm12, %v1947_v58, 0.0  ;;  %v2000_v5 = vsel %vm1927_vm4, %v1947_v58, 0.0 }
 0x30d   : > { %2746 = vmatmul.mubr.msk.f32.gmra.mrb[48].mxu0 %vm642_vm3, %v3756_v25  ;;  %v2094_v25 = vrot.slane %v3612_v34, %v3376_v19 }
 0x30e   : > { %2766 = vmatmul.mubr.msk.f32.gmra.mrb[46].mxu1 %vm642_vm3, %v3853_v20  ;;  %1618 = vmatprep.mubr.f32.mxu0 %v4666_v24 }
 0x30f   : > { %1803 = vmatprep.mubr.f32.mxu1 %v4666_v24  ;;  %v2147_v62 = vsel %vm2074_vm2, %v2094_v25, 0.0 }
 0x311   : > { %2747 = vmatmul.mubr.msk.f32.gmra.mrb[50].mxu0 %vm642_vm3, %v3773_v59  ;;  %v1878_v59 = vrot.slane %v3601_v26, %v3307_v49 }
 0x312   : > { %2767 = vmatmul.mubr.msk.f32.gmra.mrb[48].mxu1 %vm642_vm3, %v3875_v41  ;;  %1624 = vmatprep.mubr.f32.mxu0 %v4666_v24 }
 0x313   : > { %1809 = vmatprep.mubr.f32.mxu1 %v4666_v24  ;;  %vm1912_vm0 = vcmp.eq.f32.partialorder %v3792_v7, %v1878_v59  ;;  %vm1920_vm1 = vcmp.eq.f32.partialorder %v3923_v10, %v1878_v59  ;;  %vm1928_vm5 = vcmp.eq.f32.partialorder %v3830_v60, %v1878_v59  ;;  %vm1936_vm10 = vcmp.eq.f32.partialorder %v3871_v36, %v1878_v59 }
 0x315   : > { %2748 = vmatmul.mubr.msk.f32.gmra.mrb[52].mxu0 %vm642_vm3, %v3796_v9  ;;  %v1951_v9 = vrot.slane %v3625_v45, %v3307_v49  ;;  %v1992_v45 = vsel %vm1919_vm15, %v1947_v58, 0.0 }
 0x316   : > { %2768 = vmatmul.mubr.msk.f32.gmra.mrb[50].mxu1 %vm642_vm3, %v3896_v50  ;;  %1630 = vmatprep.mubr.f32.mxu0 %v4666_v24 }
 0x317   : > { %1815 = vmatprep.mubr.f32.mxu1 %v4666_v24  ;;  %v2001_v15 = vsel %vm1928_vm5, %v1951_v9, 0.0 }
 0x319   : > { %2749 = vmatmul.mubr.msk.f32.gmra.mrb[54].mxu0 %vm642_vm3, %v3820_v17  ;;  %v2098_v17 = vrot.slane %v3612_v34, %v3307_v49  ;;  %v2139_v49 = vsel %vm2066_vm11, %v2094_v25, 0.0  ;;  %v1985_v34 = vsel %vm1912_vm0, %v1951_v9, 0.0 }
 0x31a   : > { %2769 = vmatmul.mubr.msk.f32.gmra.mrb[52].mxu1 %vm642_vm3, %v3914_v56  ;;  %1636 = vmatprep.mubr.f32.mxu0 %v4666_v24 }
 0x31b   : > { %1821 = vmatprep.mubr.f32.mxu1 %v4666_v24  ;;  %v2132_v30 = vsel %vm2059_vm13, %v2098_v17, 0.0  ;;  %v2156_v35 = vsel %vm2083_vm8, %v2098_v17, 0.0 }
 0x31d   : > { %2750 = vmatmul.mubr.msk.f32.gmra.mrb[56].mxu0 %vm642_vm3, %v3853_v20  ;;  %v1993_v20 = vsel %vm1920_vm1, %v1951_v9, 0.0 }
 0x31e   : > { %2770 = vmatmul.mubr.msk.f32.gmra.mrb[54].mxu1 %vm642_vm3, %v3935_v2  ;;  %1642 = vmatprep.mubr.f32.mxu0 %v4666_v24 }
 0x31f   : > { %1827 = vmatprep.mubr.f32.mxu1 %v4666_v24 }
 0x321   : > { %2751 = vmatmul.mubr.msk.f32.gmra.mrb[58].mxu0 %vm642_vm3, %v3875_v41  ;;  %v2140_v41 = vsel %vm2067_vm14, %v2098_v17, 0.0 }
 0x322   : > { %2771 = vmatmul.mubr.msk.f32.gmra.mrb[56].mxu1 %vm642_vm3, %v3952_v31  ;;  %1648 = vmatprep.mubr.f32.mxu0 %v4666_v24  ;;  %v4238_v29 = vadd.f32 %v2140_v41, %v1993_v20 }
 0x323   : > { %1833 = vmatprep.mubr.f32.mxu1 %v4666_v24 }
 0x325   : > { %2752 = vmatmul.mubr.msk.f32.gmra.mrb[60].mxu0 %vm642_vm3, %v3896_v50 }
 0x326   : > { %2772 = vmatmul.mubr.msk.f32.gmra.mrb[58].mxu1 %vm642_vm3, %v3978_v40  ;;  %1654 = vmatprep.mubr.f32.mxu0 %v4666_v24 }
 0x327   : > { %1839 = vmatprep.mubr.f32.mxu1 %v4666_v24 }
 0x329   : > { %2753 = vmatmul.mubr.msk.f32.gmra.mrb[62].mxu0 %vm642_vm3, %v3914_v56 }
 0x32a   : > { %2773 = vmatmul.mubr.msk.f32.gmra.mrb[60].mxu1 %vm642_vm3, %v4002_v46  ;;  %1660 = vmatprep.mubr.f32.mxu0 %v4666_v24 }
 0x32b   : > { %2459 = vmatprep.mubr.f32.mxu1 %v4666_v24 }
 0x32d   : > { %2754 = vmatmul.mubr.msk.f32.gmra.mrb[64].mxu0 %vm642_vm3, %v3935_v2 }
 0x32e   : > { %1666 = vmatprep.mubr.f32.mxu0 %v4666_v24 }
 0x331   : > { %2755 = vmatmul.mubr.msk.f32.gmra.mrb[66].mxu0 %vm642_vm3, %v3952_v31 }
 0x332   : > { %1672 = vmatprep.mubr.f32.mxu0 %v4666_v24 }
 0x335   : > { %2756 = vmatmul.mubr.msk.f32.gmra.mrb[68].mxu0 %vm642_vm3, %v3978_v40  ;;  %v4231_v40 = vadd.f32 %v2139_v49, %v1992_v45  ;;  %v2148_v45 = vsel %vm2075_vm7, %v2098_v17, 0.0  ;;  %v2009_v49 = vsel %vm1936_vm10, %v1951_v9, 0.0 }
 0x336   : > { %1678 = vmatprep.mubr.f32.mxu0 %v4666_v24  ;;  %v4276_v20 = vadd.f32 %v2148_v45, %v2001_v15  ;;  %v4278_v9 = vadd.f32 %v2156_v35, %v2009_v49 }
 0x339   : > { %2757 = vmatmul.mubr.msk.f32.gmra.mrb[70].mxu0 %vm642_vm3, %v4002_v46  ;;  %vm2058_vm3 = vcmp.eq.f32.partialorder %v3792_v7, %v2021_v44  ;;  %v4233_v7 = vadd.f32 %v2132_v30, %v1985_v34 }
 0x33a   : > { %2388 = vmatprep.mubr.f32.mxu0 %v4666_v24  ;;  %v2131_v16 = vsel %vm2058_vm3, %v2094_v25, 0.0 }
 0x33b   : > { %v4226_v56 = vadd.f32 %v2131_v16, %v1984_v8  ;;  %v2155_v8 = vsel %vm2082_vm6, %v2094_v25, 0.0 }
 0x386   : > { %v1268_v19 = vpop.f32.mrb[4].mxu0 }
 0x387   : > { %v1270_v26 = vpop.f32.mrb[5].mxu0  ;;  %v2196_v39 = vmul.f32 %v4226_v56, %v1268_v19  ;;  %v2008_v19 = vsel %vm1935_vm9, %v1947_v58, 0.0  ;;  %v4269_v58 = vadd.f32 %v2147_v62, %v2000_v5 }
 0x388   : > { %v2197_v1 = vmul.f32 %v4233_v7, %v1270_v26  ;;  %v4274_v59 = vadd.f32 %v2155_v8, %v2008_v19 }
 0x389   : > { %v1441_v50 = vpop.f32.mrb[2].mxu1 }
 0x38a   : > { %v4229_v2 = vmul.f32 %v3869_v33, %v1441_v50  ;;  %v1443_v31 = vpop.f32.mrb[3].mxu1 }
 0x38b   : > { %v4236_v46 = vmul.f32 %v3898_v52, %v1443_v31  ;;  %v1274_v10 = vpop.f32.mrb[6].mxu0 }
 0x38c   : > { %v2204_v51 = vmul.f32 %v4231_v40, %v1274_v10  ;;  %v1276_v38 = vpop.f32.mrb[7].mxu0 }
 0x38d   : > { %v1447_v61 = vpop.f32.mrb[4].mxu1  ;;  %v2205_v48 = vmul.f32 %v4238_v29, %v1276_v38 }
 0x38e   : > { %v2946_v54 = vpack.c.bf16 %v2204_v51, %v2196_v39  ;;  %v4248_v0 = vmul.f32 %v3906_v47, %v1447_v61  ;;  %v1449_v63 = vpop.f32.mrb[5].mxu1 }
 0x38f   : > { %v2944_v21 = vpack.c.bf16 %v2205_v48, %v2197_v1  ;;  %v4255_v12 = vmul.f32 %v3918_v57, %v1449_v63 }
 0x390   : > { %v1280_v44 = vpop.f32.mrb[8].mxu0 }
 0x391   : > { %v1453_v16 = vpop.f32.mrb[6].mxu1  ;;  %v1282_v26 = vpop.f32.mrb[9].mxu0  ;;  %2945 = vmatprep.subr.bf16.mxu0 %v2944_v21  ;;  %v2212_v36 = vmul.f32 %v4269_v58, %v1280_v44 }
 0x392   : > { %v4267_v34 = vmul.f32 %v3930_v27, %v1453_v16  ;;  %v1455_v30 = vpop.f32.mrb[7].mxu1  ;;  %2947 = vmatpush1.bf16.msra.mxu0 %v2946_v54  ;;  %v2213_v31 = vmul.f32 %v4276_v20, %v1282_v26 }
 0x393   : > { %v4272_v25 = vmul.f32 %v3942_v18, %v1455_v30 }
 0x394   : > { %v1286_v41 = vpop.f32.mrb[10].mxu0 }
 0x395   : > { %v2220_v13 = vmul.f32 %v4274_v59, %v1286_v41  ;;  %v1459_v17 = vpop.f32.mrb[8].mxu1  ;;  %v1288_v50 = vpop.f32.mrb[11].mxu0 }
 0x396   : > { %v4284_v10 = vmul.f32 %v3954_v32, %v1459_v17  ;;  %v2221_v39 = vmul.f32 %v4278_v9, %v1288_v50  ;;  %v1461_v51 = vpop.f32.mrb[9].mxu1 }
 0x397   : > { %v2950_v38 = vpack.c.bf16 %v2220_v13, %v2212_v36  ;;  %v4288_v5 = vmul.f32 %v3971_v37, %v1461_v51 }
 0x398   : > { %v2948_v1 = vpack.c.bf16 %v2221_v39, %v2213_v31  ;;  %v1292_v61 = vpop.f32.mrb[12].mxu0 }
 0x399   : > { %v1465_v54 = vpop.f32.mrb[10].mxu1  ;;  %v1294_v63 = vpop.f32.mrb[13].mxu0  ;;  %v2228_v8 = vmul.f32 %v4226_v56, %v1292_v61 }
 0x39a   : > { %v4295_v21 = vmul.f32 %v3869_v33, %v1465_v54  ;;  %v1467_v15 = vpop.f32.mrb[11].mxu1  ;;  %2949 = vmatprep.subr.bf16.mxu0 %v2948_v1  ;;  %v2229_v49 = vmul.f32 %v4233_v7, %v1294_v63 }
 0x39b   : > { %v4298_v44 = vmul.f32 %v3898_v52, %v1467_v15  ;;  %2951 = vmatpush1.bf16.msra.mxu0 %v2950_v38 }
 0x39c   : > { %v1298_v19 = vpop.f32.mrb[14].mxu0 }
 0x39d   : > { %v2236_v16 = vmul.f32 %v4231_v40, %v1298_v19  ;;  %v1471_v26 = vpop.f32.mrb[12].mxu1  ;;  %v1300_v45 = vpop.f32.mrb[15].mxu0 }
 0x39e   : > { %v4304_v35 = vmul.f32 %v3906_v47, %v1471_v26  ;;  %v2237_v30 = vmul.f32 %v4238_v29, %v1300_v45  ;;  %v1473_v41 = vpop.f32.mrb[13].mxu1 }
 0x39f   : > { %v2954_v36 = vpack.c.bf16 %v2236_v16, %v2228_v8  ;;  %v4308_v13 = vmul.f32 %v3918_v57, %v1473_v41 }
 0x3a0   : > { %v2952_v50 = vpack.c.bf16 %v2237_v30, %v2229_v49  ;;  %v1304_v31 = vpop.f32.mrb[16].mxu0 }
 0x3a1   : > { %v1477_v51 = vpop.f32.mrb[14].mxu1  ;;  %v1306_v38 = vpop.f32.mrb[17].mxu0  ;;  %v2244_v15 = vmul.f32 %v4269_v58, %v1304_v31 }
 0x3a2   : > { %v4315_v1 = vmul.f32 %v3930_v27, %v1477_v51  ;;  %v1479_v61 = vpop.f32.mrb[15].mxu1  ;;  %2953 = vmatprep.subr.bf16.mxu0 %v2952_v50  ;;  %v2245_v26 = vmul.f32 %v4276_v20, %v1306_v38 }
 0x3a3   : > { %v4318_v54 = vmul.f32 %v3942_v18, %v1479_v61  ;;  %2955 = vmatpush1.bf16.msra.mxu0 %v2954_v36 }
 0x3a4   : > { %v1310_v63 = vpop.f32.mrb[18].mxu0 }
 0x3a5   : > { %v2252_v19 = vmul.f32 %v4274_v59, %v1310_v63  ;;  %v1483_v8 = vpop.f32.mrb[16].mxu1  ;;  %v1312_v16 = vpop.f32.mrb[19].mxu0 }
 0x3a6   : > { %v4324_v45 = vmul.f32 %v3954_v32, %v1483_v8  ;;  %v2253_v49 = vmul.f32 %v4278_v9, %v1312_v16  ;;  %v1485_v30 = vpop.f32.mrb[17].mxu1 }
 0x3a7   : > { %v2958_v41 = vpack.c.bf16 %v2252_v19, %v2244_v15  ;;  %v4328_v50 = vmul.f32 %v3971_v37, %v1485_v30 }
 0x3a8   : > { %v2956_v31 = vpack.c.bf16 %v2253_v49, %v2245_v26  ;;  %v1316_v51 = vpop.f32.mrb[20].mxu0 }
 0x3a9   : > { %v1489_v63 = vpop.f32.mrb[18].mxu1  ;;  %v1318_v38 = vpop.f32.mrb[21].mxu0  ;;  %v2260_v16 = vmul.f32 %v4226_v56, %v1316_v51 }
 0x3aa   : > { %v4335_v8 = vmul.f32 %v3869_v33, %v1489_v63  ;;  %v1491_v17 = vpop.f32.mrb[19].mxu1  ;;  %2957 = vmatprep.subr.bf16.mxu0 %v2956_v31  ;;  %v2261_v36 = vmul.f32 %v4233_v7, %v1318_v38 }
 0x3ab   : > { %v4338_v15 = vmul.f32 %v3898_v52, %v1491_v17  ;;  %2959 = vmatpush1.bf16.msra.mxu0 %v2958_v41 }
 0x3ac   : > { %4668 = vst [vmem:[#allocation7_spill] sm:$0xff] %v4335_v8  ;;  %v1322_v19 = vpop.f32.mrb[22].mxu0 }
 0x3ad   : > { %4669 = vst [vmem:[#allocation8_spill] sm:$0xff] %v4338_v15  ;;  %v2268_v26 = vmul.f32 %v4231_v40, %v1322_v19  ;;  %v1495_v49 = vpop.f32.mrb[20].mxu1  ;;  %v1324_v30 = vpop.f32.mrb[23].mxu0 }
 0x3ae   : > { %v4344_v61 = vmul.f32 %v3906_v47, %v1495_v49  ;;  %v2269_v63 = vmul.f32 %v4238_v29, %v1324_v30  ;;  %v1497_v39 = vpop.f32.mrb[21].mxu1 }
 0x3af   : > { %v2962_v31 = vpack.c.bf16 %v2268_v26, %v2260_v16  ;;  %v4348_v17 = vmul.f32 %v3918_v57, %v1497_v39 }
 0x3b0   : > { %4670 = vst [vmem:[#allocation9_spill] sm:$0xff] %v4344_v61  ;;  %v2960_v51 = vpack.c.bf16 %v2269_v63, %v2261_v36  ;;  %v1328_v62 = vpop.f32.mrb[24].mxu0 }
 0x3b1   : > { %v1501_v48 = vpop.f32.mrb[22].mxu1  ;;  %v1330_v38 = vpop.f32.mrb[25].mxu0  ;;  %v2276_v26 = vmul.f32 %v4269_v58, %v1328_v62 }
 0x3b2   : > { %v4355_v49 = vmul.f32 %v3930_v27, %v1501_v48  ;;  %v1503_v22 = vpop.f32.mrb[23].mxu1  ;;  %2961 = vmatprep.subr.bf16.mxu0 %v2960_v51  ;;  %v2277_v41 = vmul.f32 %v4276_v20, %v1330_v38 }
 0x3b3   : > { %v4358_v16 = vmul.f32 %v3942_v18, %v1503_v22  ;;  %2963 = vmatpush1.bf16.msra.mxu0 %v2962_v31 }
 0x3b4   : > { %v1334_v39 = vpop.f32.mrb[26].mxu0 }
 0x3b5   : > { %v2284_v36 = vmul.f32 %v4274_v59, %v1334_v39  ;;  %v1507_v30 = vpop.f32.mrb[24].mxu1  ;;  %v1336_v63 = vpop.f32.mrb[27].mxu0 }
 0x3b6   : > { %v4364_v19 = vmul.f32 %v3954_v32, %v1507_v30  ;;  %v2285_v48 = vmul.f32 %v4278_v9, %v1336_v63  ;;  %v1509_v60 = vpop.f32.mrb[25].mxu1 }
 0x3b7   : > { %v2966_v51 = vpack.c.bf16 %v2284_v36, %v2276_v26  ;;  %v4368_v22 = vmul.f32 %v3971_v37, %v1509_v60 }
 0x3b8   : > { %v2964_v62 = vpack.c.bf16 %v2285_v48, %v2277_v41  ;;  %v1340_v8 = vpop.f32.mrb[28].mxu0 }
 0x3b9   : > { %v1513_v61 = vpop.f32.mrb[26].mxu1  ;;  %v1342_v38 = vpop.f32.mrb[29].mxu0  ;;  %v2292_v36 = vmul.f32 %v4226_v56, %v1340_v8 }
 0x3ba   : > { %v4375_v30 = vmul.f32 %v3869_v33, %v1513_v61  ;;  %v1515_v15 = vpop.f32.mrb[27].mxu1  ;;  %2965 = vmatprep.subr.bf16.mxu0 %v2964_v62  ;;  %v2293_v31 = vmul.f32 %v4233_v7, %v1342_v38 }
 0x3bb   : > { %v4378_v26 = vmul.f32 %v3898_v52, %v1515_v15  ;;  %2967 = vmatpush1.bf16.msra.mxu0 %v2966_v51 }
 0x3bc   : > { %v1346_v60 = vpop.f32.mrb[30].mxu0 }
 0x3bd   : > { %v2300_v41 = vmul.f32 %v4231_v40, %v1346_v60  ;;  %v1519_v63 = vpop.f32.mrb[28].mxu1  ;;  %v1348_v48 = vpop.f32.mrb[31].mxu0 }
 0x3be   : > { %v4384_v39 = vmul.f32 %v3906_v47, %v1519_v63  ;;  %v2301_v33 = vmul.f32 %v4238_v29, %v1348_v48  ;;  %v1521_v61 = vpop.f32.mrb[29].mxu1 }
 0x3bf   : > { %v2970_v62 = vpack.c.bf16 %v2300_v41, %v2292_v36  ;;  %v4388_v52 = vmul.f32 %v3918_v57, %v1521_v61 }
 0x3c0   : > { %v2968_v56 = vpack.c.bf16 %v2301_v33, %v2293_v31  ;;  %v1352_v8 = vpop.f32.mrb[32].mxu0 }
 0x3c1   : > { %v1751_v51 = vpop.f32.mrb[30].mxu1  ;;  %v1354_v7 = vpop.f32.mrb[33].mxu0  ;;  %v2308_v60 = vmul.f32 %v4269_v58, %v1352_v8 }
 0x3c2   : > { %v4395_v47 = vmul.f32 %v3991_v3, %v1751_v51  ;;  %v1753_v38 = vpop.f32.mrb[31].mxu1  ;;  %2969 = vmatprep.subr.bf16.mxu0 %v2968_v56  ;;  %v2309_v63 = vmul.f32 %v4276_v20, %v1354_v7 }
 0x3c3   : > { %v4398_v29 = vmul.f32 %v4004_v23, %v1753_v38  ;;  %2971 = vmatpush1.bf16.msra.mxu0 %v2970_v62 }
 0x3c4   : > { %v1358_v57 = vpop.f32.mrb[34].mxu0 }
 0x3c5   : > { %v2316_v31 = vmul.f32 %v4274_v59, %v1358_v57  ;;  %v1757_v36 = vpop.f32.mrb[32].mxu1  ;;  %v1360_v41 = vpop.f32.mrb[35].mxu0  ;;  %v4676_v59 = vld [vmem:[#allocation5_spill] sm:$0xff] }
 0x3c6   : > { %v4404_v48 = vmul.f32 %v4006_v43, %v1757_v36  ;;  %v2317_v33 = vmul.f32 %v4278_v9, %v1360_v41  ;;  %v1759_v61 = vpop.f32.mrb[33].mxu1  ;;  %v4425_v41 = vld [vmem:[%s4643_s9] sm:$0xf] }
 0x3c7   : > { %v2974_v56 = vpack.c.bf16 %v2316_v31, %v2308_v60  ;;  %v4408_v51 = vmul.f32 %v4008_v6, %v1759_v61  ;;  %v4672_v31 = vld [vmem:[#allocation2_spill] sm:$0xff] }
 0x3c8   : > { %v2972_v58 = vpack.c.bf16 %v2317_v33, %v2309_v63  ;;  %v1429_v8 = vpop.f32.mrb[36].mxu0 }
 0x3c9   : > { %v2198_v20 = vmul.f32 %v3930_v27, %v1429_v8  ;;  %v1763_v7 = vpop.f32.mrb[34].mxu1  ;;  %v1431_v38 = vpop.f32.mrb[37].mxu0  ;;  %v4673_v8 = vld [vmem:[#allocation3_spill] sm:$0xff] }
 0x3ca   : > { %v4416_v57 = vmul.f32 %v4019_v11, %v1763_v7  ;;  %v2199_v9 = vmul.f32 %v3942_v18, %v1431_v38  ;;  %v1765_v60 = vpop.f32.mrb[35].mxu1  ;;  %2973 = vmatprep.subr.bf16.mxu0 %v2972_v58 }
 0x3cb   : > { %v4420_v36 = vmul.f32 %v4672_v31, %v1765_v60  ;;  %2975 = vmatpush1.bf16.msra.mxu0 %v2974_v56  ;;  %v4675_v56 = vld [vmem:[#allocation4_spill] sm:$0xff] }
 0x3cc   : > { %4671 = vst [vmem:[#allocation10_spill] sm:$0xff] %v4416_v57  ;;  %v1435_v63 = vpop.f32.mrb[38].mxu0  ;;  %v4678_v57 = vld [vmem:[#allocation6_spill] sm:$0xff] }
 0x3cd   : > { %v2206_v27 = vmul.f32 %v3954_v32, %v1435_v63  ;;  %v1769_v33 = vpop.f32.mrb[36].mxu1  ;;  %v1437_v61 = vpop.f32.mrb[39].mxu0 }
 0x3ce   : > { %v4429_v7 = vmul.f32 %v4673_v8, %v1769_v33  ;;  %v2207_v18 = vmul.f32 %v3971_v37, %v1437_v61  ;;  %v1771_v58 = vpop.f32.mrb[37].mxu1  ;;  %2389 = vmatmul.mubr.f32.vlgmr.msra.gmra.mrb[72].mxu0 %v4425_v41 }
 0x3cf   : > { %v2978_v38 = vpack.c.bf16 %v2206_v27, %v2198_v20  ;;  %v4434_v60 = vmul.f32 %v4675_v56, %v1771_v58  ;;  %2530 = vmatprep.mubr.f32.mxu0 %v4666_v24 }
 0x3d0   : > { %4674 = vst [vmem:[#allocation2_spill] sm:$0xff] %v4429_v7  ;;  %v2976_v32 = vpack.c.bf16 %v2207_v18, %v2199_v9  ;;  %v1590_v63 = vpop.f32.mrb[40].mxu0  ;;  %v4677_v18 = vpack.c.bf16 %v4255_v12, %v4236_v46 }
 0x3d1   : > { %v2200_v15 = vmul.f32 %v4676_v59, %v1590_v63  ;;  %v1775_v37 = vpop.f32.mrb[38].mxu1  ;;  %v1592_v61 = vpop.f32.mrb[41].mxu0 }
 0x3d2   : > { %v4443_v40 = vmul.f32 %v3991_v3, %v1775_v37  ;;  %v2201_v20 = vmul.f32 %v4072_v55, %v1592_v61  ;;  %v1777_v27 = vpop.f32.mrb[39].mxu1  ;;  %2977 = vmatprep.subr.bf16.mxu1 %v2976_v32 }
 0x3d3   : > { %v4447_v58 = vmul.f32 %v4004_v23, %v1777_v27  ;;  %2979 = vmatpush1.bf16.msra.mxu1 %v2978_v38  ;;  %v4679_v38 = vpack.c.bf16 %v4248_v0, %v4229_v2 }
 0x3d4   : > { %v1596_v9 = vpop.f32.mrb[42].mxu0  ;;  %2981 = vmatprep.subr.bf16.mxu1 %v4677_v18 }
 0x3d5   : > { %v2208_v63 = vmul.f32 %v4069_v53, %v1596_v9  ;;  %v1781_v62 = vpop.f32.mrb[40].mxu1  ;;  %v1598_v33 = vpop.f32.mrb[43].mxu0 }
 0x3d6   : > { %v4454_v37 = vmul.f32 %v4006_v43, %v1781_v62  ;;  %v2209_v61 = vmul.f32 %v4678_v57, %v1598_v33  ;;  %v1783_v7 = vpop.f32.mrb[41].mxu1  ;;  %v4680_v62 = vpack.c.bf16 %v4288_v5, %v4272_v25  ;;  %v4681_v25 = vpack.c.bf16 %v4284_v10, %v4267_v34 }
 0x3d7   : > { %v3010_v32 = vpack.c.bf16 %v2208_v63, %v2200_v15  ;;  %v4458_v27 = vmul.f32 %v4008_v6, %v1783_v7  ;;  %2983 = vmatpush1.bf16.msra.mxu1 %v4679_v38  ;;  %v4683_v10 = vpack.c.bf16 %v4304_v35, %v4295_v21 }
 0x3d8   : > { %v3050_v46 = vpack.c.bf16 %v4454_v37, %v4443_v40  ;;  %v3008_v12 = vpack.c.bf16 %v2209_v61, %v2201_v20  ;;  %v1602_v9 = vpop.f32.mrb[44].mxu0  ;;  %2985 = vmatprep.subr.bf16.mxu1 %v4680_v62  ;;  %v4682_v61 = vpack.c.bf16 %v4308_v13, %v4298_v44 }
 0x3d9   : > { %v3048_v33 = vpack.c.bf16 %v4458_v27, %v4447_v58  ;;  %v2216_v15 = vmul.f32 %v4086_v28, %v1602_v9  ;;  %v1787_v7 = vpop.f32.mrb[42].mxu1  ;;  %v1604_v18 = vpop.f32.mrb[45].mxu0 }
 0x3da   : > { %v4472_v63 = vmul.f32 %v4019_v11, %v1787_v7  ;;  %v2217_v2 = vmul.f32 %v4097_v42, %v1604_v18  ;;  %v1789_v0 = vpop.f32.mrb[43].mxu1  ;;  %3009 = vmatprep.subr.bf16.mxu0 %v3008_v12 }
 0x3db   : > { %v4476_v20 = vmul.f32 %v4672_v31, %v1789_v0  ;;  %2987 = vmatpush1.bf16.msra.mxu1 %v4681_v25  ;;  %3011 = vmatpush1.bf16.msra.mxu0 %v3010_v32  ;;  %v4684_v25 = vpack.c.bf16 %v4328_v50, %v4318_v54  ;;  %v4685_v54 = vpack.c.bf16 %v4324_v45, %v4315_v1  ;;  %v4688_v45 = vld [vmem:[#allocation9_spill] sm:$0xff] }
 0x3dc   : > { %v1608_v5 = vpop.f32.mrb[46].mxu0  ;;  %2989 = vmatprep.subr.bf16.mxu1 %v4682_v61 }
 0x3dd   : > { %v2224_v38 = vmul.f32 %v4102_v14, %v1608_v5  ;;  %v1793_v9 = vpop.f32.mrb[44].mxu1  ;;  %v1610_v62 = vpop.f32.mrb[47].mxu0 }
 0x3de   : > { %v4486_v7 = vmul.f32 %v4673_v8, %v1793_v9  ;;  %v2225_v12 = vmul.f32 %v4109_v4, %v1610_v62  ;;  %v1795_v18 = vpop.f32.mrb[45].mxu1  ;;  %v4686_v62 = vld [vmem:[#allocation8_spill] sm:$0xff] }
 0x3df   : > { %v3014_v0 = vpack.c.bf16 %v2224_v38, %v2216_v15  ;;  %v4490_v34 = vmul.f32 %v4675_v56, %v1795_v18  ;;  %2991 = vmatpush1.bf16.msra.mxu1 %v4683_v10 }
 0x3e0   : > { %v3054_v44 = vpack.c.bf16 %v4486_v7, %v4472_v63  ;;  %v3012_v13 = vpack.c.bf16 %v2225_v12, %v2217_v2  ;;  %v1614_v32 = vpop.f32.mrb[48].mxu0  ;;  %2993 = vmatprep.subr.bf16.mxu1 %v4684_v25  ;;  %v4687_v12 = vpack.c.bf16 %v4348_v17, %v4686_v62  ;;  %v4691_v62 = vpack.c.bf16 %v4368_v22, %v4358_v16 }
 0x3e1   : > { %v3052_v5 = vpack.c.bf16 %v4490_v34, %v4476_v20  ;;  %v2232_v15 = vmul.f32 %v4676_v59, %v1614_v32  ;;  %v1799_v61 = vpop.f32.mrb[46].mxu1  ;;  %v1616_v38 = vpop.f32.mrb[49].mxu0  ;;  %v4692_v16 = vpack.c.bf16 %v4364_v19, %v4355_v49  ;;  %v4694_v49 = vpack.c.bf16 %v4384_v39, %v4375_v30 }
 0x3e2   : > { %v4504_v9 = vmul.f32 %v3991_v3, %v1799_v61  ;;  %v2233_v21 = vmul.f32 %v4072_v55, %v1616_v38  ;;  %v1801_v35 = vpop.f32.mrb[47].mxu1  ;;  %3013 = vmatprep.subr.bf16.mxu0 %v3012_v13 }
 0x3e3   : > { %v4508_v2 = vmul.f32 %v4004_v23, %v1801_v35  ;;  %2995 = vmatpush1.bf16.msra.mxu1 %v4685_v54  ;;  %3015 = vmatpush1.bf16.msra.mxu0 %v3014_v0  ;;  %v4689_v0 = vld [vmem:[#allocation7_spill] sm:$0xff] }
 0x3e4   : > { %v1620_v50 = vpop.f32.mrb[50].mxu0  ;;  %2997 = vmatprep.subr.bf16.mxu1 %v4687_v12  ;;  %v4690_v35 = vpack.c.bf16 %v4688_v45, %v4689_v0 }
 0x3e5   : > { %v2240_v18 = vmul.f32 %v4069_v53, %v1620_v50  ;;  %v1805_v10 = vpop.f32.mrb[48].mxu1  ;;  %v1622_v32 = vpop.f32.mrb[51].mxu0 }
 0x3e6   : > { %v4518_v25 = vmul.f32 %v4006_v43, %v1805_v10  ;;  %v2241_v13 = vmul.f32 %v4678_v57, %v1622_v32  ;;  %v1807_v61 = vpop.f32.mrb[49].mxu1 }
 0x3e7   : > { %v3018_v38 = vpack.c.bf16 %v2240_v18, %v2232_v15  ;;  %v4522_v1 = vmul.f32 %v4008_v6, %v1807_v61  ;;  %2999 = vmatpush1.bf16.msra.mxu1 %v4690_v35 }
 0x3e8   : > { %v3058_v17 = vpack.c.bf16 %v4518_v25, %v4504_v9  ;;  %v3016_v54 = vpack.c.bf16 %v2241_v13, %v2233_v21  ;;  %v1626_v50 = vpop.f32.mrb[52].mxu0  ;;  %3001 = vmatprep.subr.bf16.mxu1 %v4691_v62  ;;  %v4693_v13 = vpack.c.bf16 %v4388_v52, %v4378_v26 }
 0x3e9   : > { %v3056_v12 = vpack.c.bf16 %v4522_v1, %v4508_v2  ;;  %v2248_v15 = vmul.f32 %v4086_v28, %v1626_v50  ;;  %v1811_v18 = vpop.f32.mrb[50].mxu1  ;;  %v1628_v10 = vpop.f32.mrb[53].mxu0 }
 0x3ea   : > { %v4536_v32 = vmul.f32 %v4019_v11, %v1811_v18  ;;  %v2249_v61 = vmul.f32 %v4097_v42, %v1628_v10  ;;  %v1813_v45 = vpop.f32.mrb[51].mxu1  ;;  %3017 = vmatprep.subr.bf16.mxu0 %v3016_v54 }
 0x3eb   : > { %v4540_v21 = vmul.f32 %v4672_v31, %v1813_v45  ;;  %3003 = vmatpush1.bf16.msra.mxu1 %v4692_v16  ;;  %3019 = vmatpush1.bf16.msra.mxu0 %v3018_v38  ;;  %v4695_v45 = vpack.c.bf16 %v4408_v51, %v4398_v29  ;;  %v4696_v29 = vpack.c.bf16 %v4404_v48, %v4395_v47  ;;  %v4698_v48 = vld [vmem:[#allocation2_spill] sm:$0xff] }
 0x3ec   : > { %v1632_v22 = vpop.f32.mrb[54].mxu0  ;;  %3005 = vmatprep.subr.bf16.mxu1 %v4693_v13 }
 0x3ed   : > { %v2256_v0 = vmul.f32 %v4102_v14, %v1632_v22  ;;  %v1817_v35 = vpop.f32.mrb[52].mxu1  ;;  %v1634_v50 = vpop.f32.mrb[55].mxu0 }
 0x3ee   : > { %v4550_v62 = vmul.f32 %v4673_v8, %v1817_v35  ;;  %v2257_v54 = vmul.f32 %v4109_v4, %v1634_v50  ;;  %v1819_v18 = vpop.f32.mrb[53].mxu1 }
 0x3ef   : > { %v3022_v10 = vpack.c.bf16 %v2256_v0, %v2248_v15  ;;  %v4554_v19 = vmul.f32 %v4675_v56, %v1819_v18  ;;  %3007 = vmatpush1.bf16.msra.mxu1 %v4694_v49 }
 0x3f0   : > { %v3062_v26 = vpack.c.bf16 %v4550_v62, %v4536_v32  ;;  %v3020_v52 = vpack.c.bf16 %v2257_v54, %v2249_v61  ;;  %v1638_v38 = vpop.f32.mrb[56].mxu0  ;;  %3041 = vmatprep.subr.bf16.mxu1 %v4695_v45 }
 0x3f1   : > { %v3060_v16 = vpack.c.bf16 %v4554_v19, %v4540_v21  ;;  %v2264_v15 = vmul.f32 %v4676_v59, %v1638_v38  ;;  %v1823_v22 = vpop.f32.mrb[54].mxu1  ;;  %v1640_v13 = vpop.f32.mrb[57].mxu0  ;;  %v4697_v21 = vpack.c.bf16 %v4434_v60, %v4420_v36  ;;  %v4699_v19 = vld [vmem:[#allocation10_spill] sm:$0xff] }
 0x3f2   : > { %v4568_v0 = vmul.f32 %v3991_v3, %v1823_v22  ;;  %v2265_v39 = vmul.f32 %v4072_v55, %v1640_v13  ;;  %v1825_v30 = vpop.f32.mrb[55].mxu1  ;;  %3021 = vmatprep.subr.bf16.mxu0 %v3020_v52  ;;  %2460 = vmatmul.mubr.f32.vlgmr.msra.gmra.mrb[62].mxu1 %v4425_v41  ;;  %v4700_v49 = vpack.c.bf16 %v4698_v48, %v4699_v19 }
 0x3f3   : > { %v2299_v61 = vmul.f32 %v4004_v23, %v1825_v30  ;;  %3023 = vmatpush1.bf16.msra.mxu0 %v3022_v10  ;;  %3043 = vmatpush1.bf16.msra.mxu1 %v4696_v29 }
 0x3f4   : > { %v1644_v51 = vpop.f32.mrb[58].mxu0  ;;  %3045 = vmatprep.subr.bf16.mxu1 %v4697_v21  ;;  %2601 = vmatprep.mubr.f32.mxu1 %v4666_v24 }
 0x3f5   : > { %v2272_v3 = vmul.f32 %v4069_v53, %v1644_v51  ;;  %v1829_v35 = vpop.f32.mrb[56].mxu1  ;;  %v1646_v50 = vpop.f32.mrb[59].mxu0 }
 0x3f6   : > { %v2306_v54 = vmul.f32 %v4006_v43, %v1829_v35  ;;  %v2273_v23 = vmul.f32 %v4678_v57, %v1646_v50  ;;  %v1831_v18 = vpop.f32.mrb[57].mxu1 }
 0x3f7   : > { %v3026_v10 = vpack.c.bf16 %v2272_v3, %v2264_v15  ;;  %v2307_v47 = vmul.f32 %v4008_v6, %v1831_v18  ;;  %3047 = vmatpush1.bf16.msra.mxu1 %v4700_v49 }
 0x3f8   : > { %v3066_v36 = vpack.c.bf16 %v2306_v54, %v4568_v0  ;;  %v3024_v60 = vpack.c.bf16 %v2273_v23, %v2265_v39  ;;  %v1650_v24 = vpop.f32.mrb[60].mxu0  ;;  %3049 = vmatprep.subr.bf16.mxu1 %v3048_v33 }
 0x3f9   : > { %v3064_v52 = vpack.c.bf16 %v2307_v47, %v2299_v61  ;;  %v2280_v43 = vmul.f32 %v4086_v28, %v1650_v24  ;;  %v1835_v38 = vpop.f32.mrb[58].mxu1  ;;  %v1652_v45 = vpop.f32.mrb[61].mxu0 }
 0x3fa   : > { %v2314_v15 = vmul.f32 %v4019_v11, %v1835_v38  ;;  %v2281_v6 = vmul.f32 %v4097_v42, %v1652_v45  ;;  %v1837_v22 = vpop.f32.mrb[59].mxu1  ;;  %3025 = vmatprep.subr.bf16.mxu0 %v3024_v60 }
 0x3fb   : > { %v2315_v13 = vmul.f32 %v4672_v31, %v1837_v22  ;;  %3027 = vmatpush1.bf16.msra.mxu0 %v3026_v10  ;;  %3051 = vmatpush1.bf16.msra.mxu1 %v3050_v46 }
 0x3fc   : > { %v1656_v58 = vpop.f32.mrb[62].mxu0  ;;  %3053 = vmatprep.subr.bf16.mxu1 %v3052_v5 }
 0x3fd   : > { %v2288_v27 = vmul.f32 %v4102_v14, %v1656_v58  ;;  %v1841_v33 = vpop.f32.mrb[60].mxu1  ;;  %v1658_v11 = vpop.f32.mrb[63].mxu0 }
 0x3fe   : > { %v2322_v0 = vmul.f32 %v4673_v8, %v1841_v33  ;;  %v2289_v39 = vmul.f32 %v4109_v4, %v1658_v11  ;;  %v1843_v30 = vpop.f32.mrb[61].mxu1 }
 0x3ff   : > { %v3030_v31 = vpack.c.bf16 %v2288_v27, %v2280_v43  ;;  %v2323_v61 = vmul.f32 %v4675_v56, %v1843_v30  ;;  %3055 = vmatpush1.bf16.msra.mxu1 %v3054_v44 }
 0x400   : > { %v3070_v40 = vpack.c.bf16 %v2322_v0, %v2314_v15  ;;  %v3028_v37 = vpack.c.bf16 %v2289_v39, %v2281_v6  ;;  %v1662_v46 = vpop.f32.mrb[64].mxu0  ;;  %3057 = vmatprep.subr.bf16.mxu1 %v3056_v12 }
 0x401   : > { %v3068_v20 = vpack.c.bf16 %v2323_v61, %v2315_v13  ;;  %v2296_v8 = vmul.f32 %v4676_v59, %v1662_v46  ;;  %v1664_v34 = vpop.f32.mrb[65].mxu0 }
 0x402   : > { %v2297_v5 = vmul.f32 %v4072_v55, %v1664_v34  ;;  %3029 = vmatprep.subr.bf16.mxu0 %v3028_v37 }
 0x403   : > { %3031 = vmatpush1.bf16.msra.mxu0 %v3030_v31  ;;  %3059 = vmatpush1.bf16.msra.mxu1 %v3058_v17 }
 0x404   : > { %v1668_v56 = vpop.f32.mrb[66].mxu0  ;;  %3061 = vmatprep.subr.bf16.mxu1 %v3060_v16 }
 0x405   : > { %v2304_v63 = vmul.f32 %v4069_v53, %v1668_v56  ;;  %v1670_v7 = vpop.f32.mrb[67].mxu0 }
 0x406   : > { %v2305_v44 = vmul.f32 %v4678_v57, %v1670_v7 }
 0x407   : > { %v3034_v2 = vpack.c.bf16 %v2304_v63, %v2296_v8  ;;  %3063 = vmatpush1.bf16.msra.mxu1 %v3062_v26 }
 0x408   : > { %v3032_v59 = vpack.c.bf16 %v2305_v44, %v2297_v5  ;;  %v1674_v55 = vpop.f32.mrb[68].mxu0  ;;  %3065 = vmatprep.subr.bf16.mxu1 %v3064_v52 }
 0x409   : > { %v2312_v1 = vmul.f32 %v4086_v28, %v1674_v55  ;;  %v1676_v12 = vpop.f32.mrb[69].mxu0 }
 0x40a   : > { %v2313_v9 = vmul.f32 %v4097_v42, %v1676_v12  ;;  %3033 = vmatprep.subr.bf16.mxu0 %v3032_v59 }
 0x40b   : > { %3035 = vmatpush1.bf16.msra.mxu0 %v3034_v2  ;;  %3067 = vmatpush1.bf16.msra.mxu1 %v3066_v36 }
 0x40c   : > { %v1680_v53 = vpop.f32.mrb[70].mxu0  ;;  %3069 = vmatprep.subr.bf16.mxu1 %v3068_v20 }
 0x40d   : > { %v2320_v57 = vmul.f32 %v4102_v14, %v1680_v53  ;;  %v1682_v25 = vpop.f32.mrb[71].mxu0 }
 0x40e   : > { %v2321_v17 = vmul.f32 %v4109_v4, %v1682_v25 }
 0x40f   : > { %v3038_v32 = vpack.c.bf16 %v2320_v57, %v2312_v1  ;;  %3071 = vmatpush1.bf16.msra.mxu1 %v3070_v40 }
 0x410   : > { %v3036_v62 = vpack.c.bf16 %v2321_v17, %v2313_v9 }
 0x412   : > { %3037 = vmatprep.subr.bf16.mxu0 %v3036_v62  ;;  %2602 = vmatmul.mubr.f32.vlgmr.msra.gmra.mrb[64].mxu1 %v4425_v41 }
 0x413   : > { %3039 = vmatpush1.bf16.msra.mxu0 %v3038_v32 }
 0x416   : > { %2531 = vmatmul.mubr.f32.vlgmr.msra.gmra.mrb[74].mxu0 %v4425_v41 }
 0x4a1   : > { %v2390_v28 = vpop.f32.mrb[72].mxu0 }
 0x4a2   : > { %v2392_v42 = vpop.f32.mrb[73].mxu0 }
 0x4a3   : > { %v2616_v14 = vcombine.low %v2390_v28, %v2392_v42 }
 0x4a5   : > { %2624 = vst [vmem:[%s403_s21] sm:$0xff] %v2616_v14 }
 0x4c5   : > { %v2461_v26 = vpop.f32.mrb[62].mxu1 }
 0x4c6   : > { %v2463_v4 = vpop.f32.mrb[63].mxu1 }
 0x4c7   : > { %v2617_v16 = vcombine.low %v2461_v26, %v2463_v4 }
 0x4c9   : > { %2625 = vst [vmem:[%s403_s21 + $0x8] sm:$0xff] %v2617_v16 }
 0x4e5   : > { %v2603_v29 = vpop.f32.mrb[64].mxu1 }
 0x4e6   : > { %v2605_v51 = vpop.f32.mrb[65].mxu1 }
 0x4e7   : > { %v2619_v21 = vcombine.low %v2603_v29, %v2605_v51 }
 0x4e9   : > { %v2532_v3 = vpop.f32.mrb[74].mxu0  ;;  %2627 = vst [vmem:[%s403_s21 + $0x18] sm:$0xff] %v2619_v21 }
 0x4ea   : > { %v2534_v35 = vpop.f32.mrb[75].mxu0 }
 0x4eb   : > { %v2618_v41 = vcombine.low %v2532_v3, %v2534_v35 }
 0x4ed   : > { %2626 = vst [vmem:[%s403_s21 + $0x10] sm:$0xff] %v2618_v41 }
 0x4ee PF: > { %s21_s17 = sadd.s32 1, %s3108_s17  }
 0x4ef   : > { %p18_p4 = scmp.ge.s32.totalorder %s21_s17, 4  }
 0x4f1   :  { %20 = sbr.rel (!%p18_p4) target bundleno = 1 (0x1), region = 97 }

</bundles_post_ra>
